<compile_context>
chip_gen: v5e
topology: v5e:2x2
jax: 0.10.0
libtpu: 0.0.40
codegen_flags: <defaults>
</compile_context>

<pallas_src>
import functools

import jax
import jax.numpy as jnp
from jax import lax
from jax.experimental import pallas as pl
from jax.experimental.pallas import tpu as pltpu


_LANES = 128
_CHUNK_ROWS = 512              # inner-loop chunk; multiple of 8/16/32 sublane tiles
_TARGET_TILE_BYTES = 4 << 20   # ~4 MiB per input per pipeline buffer
_SMALL_INPUT_BYTES = 1 << 20   # below this, plain XLA reduction is faster
_VMEM_LIMIT_BYTES = 32 << 20   # fits v5e/v6e (128 MiB) and v7x (64 MiB) physical VMEM


# ---------------------------------------------------------------------------
# Pallas kernel: per-partial vreg-shaped sums of |out - tgt|
# ---------------------------------------------------------------------------
def _l1_partial_sum_kernel(o_ref, t_ref, acc_ref, *, chunk_rows):
    """acc_ref (8,128) accumulates partial sums across the 'arbitrary' grid axis.

    The (tr, 128) input tile is consumed in `chunk_rows`-row chunks inside an
    unrolled fori_loop so live ranges stay bounded (a few vregs instead of a
    full-tile temporary), keeping VMEM free for large DMA tiles and leaving the
    hot loop as pure vld + vsub + vabs + vadd filler under the DMA.
    """
    s = pl.program_id(1)

    @pl.when(s == 0)
    def _():
        acc_ref[...] = jnp.zeros_like(acc_ref)

    n_chunks = o_ref.shape[0] // chunk_rows

    def body(i, carry):
        r0 = pl.multiple_of(i * chunk_rows, chunk_rows)
        # Cast in-kernel so bf16 inputs are DMA'd at native (half) HBM bytes.
        o = o_ref[pl.ds(r0, chunk_rows), :].astype(jnp.float32)
        t = t_ref[pl.ds(r0, chunk_rows), :].astype(jnp.float32)
        d = jnp.abs(o - t)
        # (chunk,128) -> (chunk//8, 8, 128); leading-axis sum = pure VPU adds,
        # no per-step XLU cross-lane reduce, no serializing scalar chain.
        acc_ref[...] += jnp.sum(d.reshape(-1, 8, _LANES), axis=0)
        return carry

    lax.fori_loop(0, n_chunks, body, 0, unroll=True)


def _default_num_partials():
    """2 partials only on dual-TensorCore v7x; a leading 'parallel' axis on
    single-TC v5e/v6e is just a serial loop boundary (extra resident block +
    writeback), so default to 1 there."""
    try:
        kind = jax.devices()[0].device_kind.lower()
        if "v7" in kind:
            return 2
    except Exception:  # pragma: no cover - best-effort detection only
        pass
    return 1


def l1_loss_pallas(outputs, targets, *, num_partials=None):
    """Mean |outputs - targets| (nn.L1Loss, reduction='mean').

    outputs/targets: arrays of identical shape (NCHW in practice), any rank.
    Returns a scalar float32.
    """
    assert outputs.shape == targets.shape, (outputs.shape, targets.shape)
    total = outputs.size
    if total == 0:
        return jnp.float32(0.0)
    itemsize = jnp.dtype(outputs.dtype).itemsize

    def _jnp_l1(o, t):
        return jnp.mean(jnp.abs(o.astype(jnp.float32) - t.astype(jnp.float32)))

    # Small-input dispatch: kernel launch + grid setup + per-partial epilogue
    # dominate for tiny tensors; XLA's fused reduction is strictly faster.
    if total * itemsize < _SMALL_INPUT_BYTES:
        return _jnp_l1(outputs, targets)

    np_eff = _default_num_partials() if num_partials is None else max(1, int(num_partials))

    full_rows = total // _LANES                       # complete 128-lane rows
    target_tr = _TARGET_TILE_BYTES // (_LANES * itemsize)  # 8192 f32 / 16384 bf16
    tr = min(target_tr, full_rows // np_eff)
    tr = (tr // _CHUNK_ROWS) * _CHUNK_ROWS            # multiple of chunk and of the
                                                      # 8/16/32 packed sublane tile
    if tr == 0:
        return _jnp_l1(outputs, targets)

    steps = full_rows // (np_eff * tr)                # >= 1 by construction
    prefix_rows = np_eff * steps * tr
    prefix = prefix_rows * _LANES

    # Aligned prefix goes through Pallas; no padded HBM copies are ever made.
    o_flat = outputs.reshape(-1)
    t_flat = targets.reshape(-1)
    o2 = o_flat[:prefix].reshape(prefix_rows, _LANES)
    t2 = t_flat[:prefix].reshape(prefix_rows, _LANES)

    cost = pl.CostEstimate(
        flops=3 * prefix,
        transcendentals=0,
        bytes_accessed=2 * prefix * itemsize + np_eff * 8 * _LANES * 4,
    )

    in_map = lambda p, s: (p * steps + s, 0)  # noqa: E731 (closure over `steps`)

    partials = pl.pallas_call(
        functools.partial(_l1_partial_sum_kernel, chunk_rows=_CHUNK_ROWS),
        out_shape=jax.ShapeDtypeStruct((np_eff, 8, _LANES), jnp.float32),
        grid_spec=pltpu.PrefetchScalarGridSpec(
            num_scalar_prefetch=0,
            grid=(np_eff, steps),
            in_specs=[
                pl.BlockSpec((tr, _LANES), in_map),
                pl.BlockSpec((tr, _LANES), in_map),
            ],
            # Output block depends only on the parallel axis -> stays resident
            # in VMEM across the reduction axis (accumulator).
            out_specs=pl.BlockSpec((None, 8, _LANES), lambda p, s: (p, 0, 0)),
        ),
        compiler_params=pltpu.CompilerParams(
            dimension_semantics=("parallel", "arbitrary"),
            vmem_limit_bytes=_VMEM_LIMIT_BYTES,
        ),
        cost_estimate=cost,
    )(o2, t2)

    # Single tiny cross-lane reduction + partial combine.
    loss_sum = jnp.sum(partials)

    # Ragged tail (< one tile of elements): cheap XLA reduction.
    if prefix < total:
        o_tail = o_flat[prefix:].astype(jnp.float32)
        t_tail = t_flat[prefix:].astype(jnp.float32)
        loss_sum = loss_sum + jnp.sum(jnp.abs(o_tail - t_tail))

    return loss_sum * (1.0 / float(total))


# ---------------------------------------------------------------------------
# SetCriterion equivalent (JAX side): applies each loss fn, returns a dict.
# ---------------------------------------------------------------------------
class SetCriterion:
    """JAX/Pallas port of UPNet's SetCriterion forward.

    losses:      dict name -> callable(outputs, targets[, *args]) returning a
                 scalar or a dict of scalars.
    weight_dict: dict name -> relative weight (kept for parity; the PyTorch
                 forward does not apply it, so neither do we).
    """

    def __init__(self, losses, weight_dict):
        self.losses = losses
        self.weight_dict = weight_dict
        # Note: persists across calls exactly like the PyTorch module's
        # self.loss_dicts (intentional parity with the original behavior).
        self.loss_dicts = {}

    def __call__(self, outputs, targets, *args, **kwargs):
        for k in self.losses.keys():
            loss_fn = self.losses[k]
            if k == 'loss':
                loss_val = loss_fn(outputs, targets)
            else:
                loss_val = loss_fn(outputs, targets, *args)
            if isinstance(loss_val, dict):
                self.loss_dicts.update(loss_val)
            else:
                self.loss_dicts.update({k: loss_val})
        return self.loss_dicts


if __name__ == "__main__":
    key = jax.random.PRNGKey(0)
    k1, k2, k3, k4, k5, k6, k7, k8 = jax.random.split(key, 8)

    criterion = SetCriterion(
        losses={'loss': l1_loss_pallas},
        weight_dict={'loss': 1.0},
    )

    # Case 1: UPNet-style small NCHW pred/gt (2,4,16,16) f32 via SetCriterion
    # (small-input dispatch -> fused XLA path).
    pred = jax.random.normal(k1, (2, 4, 16, 16), dtype=jnp.float32)
    gt = jax.random.normal(k2, (2, 4, 16, 16), dtype=jnp.float32)
    loss = jax.block_until_ready(criterion(pred, gt)['loss'])
    ref = jnp.mean(jnp.abs(pred - gt))
    assert jnp.allclose(loss, ref, rtol=1e-5, atol=1e-6), (loss, ref)

    # Case 2: larger f32 input -> Pallas reduction (aligned path).
    pred_l = jax.random.normal(k3, (2, 8, 256, 256), dtype=jnp.float32)
    gt_l = jax.random.normal(k4, (2, 8, 256, 256), dtype=jnp.float32)
    loss_l = jax.block_until_ready(l1_loss_pallas(pred_l, gt_l))
    ref_l = jnp.mean(jnp.abs(pred_l - gt_l))
    assert jnp.allclose(loss_l, ref_l, rtol=1e-4, atol=1e-6), (loss_l, ref_l)

    # Case 3: bf16 inputs (native-dtype DMA, f32 accumulation in-kernel).
    pred_bf = jax.random.normal(k5, (2, 8, 256, 256), dtype=jnp.bfloat16)
    gt_bf = jax.random.normal(k6, (2, 8, 256, 256), dtype=jnp.bfloat16)
    loss_bf = jax.block_until_ready(l1_loss_pallas(pred_bf, gt_bf))
    ref_bf = jnp.mean(jnp.abs(pred_bf.astype(jnp.float32) - gt_bf.astype(jnp.float32)))
    assert jnp.allclose(loss_bf, ref_bf, rtol=1e-4, atol=1e-5), (loss_bf, ref_bf)

    # Case 4: ragged size -> Pallas aligned prefix + jnp tail (no padded copies).
    pred_r = jax.random.normal(k7, (2, 4, 255, 257), dtype=jnp.float32)
    gt_r = jax.random.normal(k8, (2, 4, 255, 257), dtype=jnp.float32)
    loss_r = jax.block_until_ready(l1_loss_pallas(pred_r, gt_r))
    ref_r = jnp.mean(jnp.abs(pred_r - gt_r))
    assert jnp.allclose(loss_r, ref_r, rtol=1e-4, atol=1e-6), (loss_r, ref_r)

    print("KERNEL_OK")
</pallas_src>

<mosaic_0001>
module attributes {stable_mosaic.version = 11 : i64} {
  func.func @_l1_partial_sum_kernel(%arg0: i32, %arg1: i32, %arg2: memref<8192x128xf32, #tpu.memory_space<vmem>>, %arg3: memref<8192x128xf32, #tpu.memory_space<vmem>>, %arg4: memref<1x8x128xf32, #tpu.memory_space<vmem>>) attributes {dimension_semantics = [#tpu.dimension_semantics<parallel>, #tpu.dimension_semantics<arbitrary>], iteration_bounds = array<i64: 1, 1>, scalar_prefetch = 0 : i64, scratch_operands = 0 : i64, tpu.core_type = #tpu.core_type<tc>, window_params = [{transform_indices = @transform_0, window_bounds = array<i64: 8192, 128>}, {transform_indices = @transform_1, window_bounds = array<i64: 8192, 128>}, {transform_indices = @transform_2, window_bounds = array<i64: 1, 8, 128>}]} {
    %c0_i32 = arith.constant 0 : i32
    %0 = arith.cmpi eq, %arg1, %c0_i32 : i32
    %1 = arith.extui %0 : i1 to i32
    %c0_i32_0 = arith.constant 0 : i32
    %2 = arith.cmpi ne, %1, %c0_i32_0 : i32
    scf.if %2 {
      %cst_159 = arith.constant 0.000000e+00 : f32
      %259 = vector.broadcast %cst_159 : f32 to vector<8x128xf32>
      %c0_160 = arith.constant 0 : index
      %c0_161 = arith.constant 0 : index
      %c0_162 = arith.constant 0 : index
      %260 = vector.load %arg4[%c0_160, %c0_161, %c0_162] : memref<1x8x128xf32, #tpu.memory_space<vmem>>, vector<1x8x128xf32>
      %261 = vector.shape_cast %260 : vector<1x8x128xf32> to vector<8x128xf32>
      %262 = vector.shape_cast %259 : vector<8x128xf32> to vector<1x8x128xf32>
      tpu.vector_store %arg4[%c0_160, %c0_161, %c0_162], %262 {strides = array<i32>} : memref<1x8x128xf32, #tpu.memory_space<vmem>>, vector<1x8x128xf32>,
    } else {
    }
    %c0_i32_1 = arith.constant 0 : i32
    %c512_i32 = arith.constant 512 : i32
    %3 = arith.muli %c0_i32_1, %c512_i32 : i32
    %4 = tpu.assume_multiple %3, 512 : i32
    %5 = arith.index_cast %4 : i32 to index
    %c0 = arith.constant 0 : index
    %6 = vector.load %arg2[%5, %c0] : memref<8192x128xf32, #tpu.memory_space<vmem>>, vector<512x128xf32>
    %7 = arith.index_cast %4 : i32 to index
    %c0_2 = arith.constant 0 : index
    %8 = vector.load %arg3[%7, %c0_2] : memref<8192x128xf32, #tpu.memory_space<vmem>>, vector<512x128xf32>
    %9 = arith.subf %6, %8 : vector<512x128xf32>
    %10 = math.absf %9 : vector<512x128xf32>
    %c0_3 = arith.constant 0 : index
    %c0_4 = arith.constant 0 : index
    %c0_5 = arith.constant 0 : index
    %11 = vector.load %arg4[%c0_3, %c0_4, %c0_5] : memref<1x8x128xf32, #tpu.memory_space<vmem>>, vector<1x8x128xf32>
    %12 = vector.shape_cast %11 : vector<1x8x128xf32> to vector<8x128xf32>
    %13 = vector.shape_cast %10 : vector<512x128xf32> to vector<64x8x128xf32>
    %cst = arith.constant dense<0.000000e+00> : vector<8x128xf32>
    %14 = vector.multi_reduction <add>, %13, %cst [0] : vector<64x8x128xf32> to vector<8x128xf32>
    %15 = arith.addf %12, %14 : vector<8x128xf32>
    %c0_6 = arith.constant 0 : index
    %c0_7 = arith.constant 0 : index
    %c0_8 = arith.constant 0 : index
    %16 = vector.load %arg4[%c0_6, %c0_7, %c0_8] : memref<1x8x128xf32, #tpu.memory_space<vmem>>, vector<1x8x128xf32>
    %17 = vector.shape_cast %16 : vector<1x8x128xf32> to vector<8x128xf32>
    %18 = vector.shape_cast %15 : vector<8x128xf32> to vector<1x8x128xf32>
    tpu.vector_store %arg4[%c0_6, %c0_7, %c0_8], %18 {strides = array<i32>} : memref<1x8x128xf32, #tpu.memory_space<vmem>>, vector<1x8x128xf32>,
    %c1_i32 = arith.constant 1 : i32
    %c512_i32_9 = arith.constant 512 : i32
    %19 = arith.muli %c1_i32, %c512_i32_9 : i32
    %20 = tpu.assume_multiple %19, 512 : i32
    %21 = arith.index_cast %20 : i32 to index
    %c0_10 = arith.constant 0 : index
    %22 = vector.load %arg2[%21, %c0_10] : memref<8192x128xf32, #tpu.memory_space<vmem>>, vector<512x128xf32>
    %23 = arith.index_cast %20 : i32 to index
    %c0_11 = arith.constant 0 : index
    %24 = vector.load %arg3[%23, %c0_11] : memref<8192x128xf32, #tpu.memory_space<vmem>>, vector<512x128xf32>
    %25 = arith.subf %22, %24 : vector<512x128xf32>
    %26 = math.absf %25 : vector<512x128xf32>
    %c0_12 = arith.constant 0 : index
    %c0_13 = arith.constant 0 : index
    %c0_14 = arith.constant 0 : index
    %27 = vector.load %arg4[%c0_12, %c0_13, %c0_14] : memref<1x8x128xf32, #tpu.memory_space<vmem>>, vector<1x8x128xf32>
    %28 = vector.shape_cast %27 : vector<1x8x128xf32> to vector<8x128xf32>
    %29 = vector.shape_cast %26 : vector<512x128xf32> to vector<64x8x128xf32>
    %cst_15 = arith.constant dense<0.000000e+00> : vector<8x128xf32>
    %30 = vector.multi_reduction <add>, %29, %cst_15 [0] : vector<64x8x128xf32> to vector<8x128xf32>
    %31 = arith.addf %28, %30 : vector<8x128xf32>
    %c0_16 = arith.constant 0 : index
    %c0_17 = arith.constant 0 : index
    %c0_18 = arith.constant 0 : index
    %32 = vector.load %arg4[%c0_16, %c0_17, %c0_18] : memref<1x8x128xf32, #tpu.memory_space<vmem>>, vector<1x8x128xf32>
    %33 = vector.shape_cast %32 : vector<1x8x128xf32> to vector<8x128xf32>
    %34 = vector.shape_cast %31 : vector<8x128xf32> to vector<1x8x128xf32>
    tpu.vector_store %arg4[%c0_16, %c0_17, %c0_18], %34 {strides = array<i32>} : memref<1x8x128xf32, #tpu.memory_space<vmem>>, vector<1x8x128xf32>,
    %c2_i32 = arith.constant 2 : i32
    %c512_i32_19 = arith.constant 512 : i32
    %35 = arith.muli %c2_i32, %c512_i32_19 : i32
    %36 = tpu.assume_multiple %35, 512 : i32
    %37 = arith.index_cast %36 : i32 to index
    %c0_20 = arith.constant 0 : index
    %38 = vector.load %arg2[%37, %c0_20] : memref<8192x128xf32, #tpu.memory_space<vmem>>, vector<512x128xf32>
    %39 = arith.index_cast %36 : i32 to index
    %c0_21 = arith.constant 0 : index
    %40 = vector.load %arg3[%39, %c0_21] : memref<8192x128xf32, #tpu.memory_space<vmem>>, vector<512x128xf32>
    %41 = arith.subf %38, %40 : vector<512x128xf32>
    %42 = math.absf %41 : vector<512x128xf32>
    %c0_22 = arith.constant 0 : index
    %c0_23 = arith.constant 0 : index
    %c0_24 = arith.constant 0 : index
    %43 = vector.load %arg4[%c0_22, %c0_23, %c0_24] : memref<1x8x128xf32, #tpu.memory_space<vmem>>, vector<1x8x128xf32>
    %44 = vector.shape_cast %43 : vector<1x8x128xf32> to vector<8x128xf32>
    %45 = vector.shape_cast %42 : vector<512x128xf32> to vector<64x8x128xf32>
    %cst_25 = arith.constant dense<0.000000e+00> : vector<8x128xf32>
    %46 = vector.multi_reduction <add>, %45, %cst_25 [0] : vector<64x8x128xf32> to vector<8x128xf32>
    %47 = arith.addf %44, %46 : vector<8x128xf32>
    %c0_26 = arith.constant 0 : index
    %c0_27 = arith.constant 0 : index
    %c0_28 = arith.constant 0 : index
    %48 = vector.load %arg4[%c0_26, %c0_27, %c0_28] : memref<1x8x128xf32, #tpu.memory_space<vmem>>, vector<1x8x128xf32>
    %49 = vector.shape_cast %48 : vector<1x8x128xf32> to vector<8x128xf32>
    %50 = vector.shape_cast %47 : vector<8x128xf32> to vector<1x8x128xf32>
    tpu.vector_store %arg4[%c0_26, %c0_27, %c0_28], %50 {strides = array<i32>} : memref<1x8x128xf32, #tpu.memory_space<vmem>>, vector<1x8x128xf32>,
    %c3_i32 = arith.constant 3 : i32
    %c512_i32_29 = arith.constant 512 : i32
    %51 = arith.muli %c3_i32, %c512_i32_29 : i32
    %52 = tpu.assume_multiple %51, 512 : i32
    %53 = arith.index_cast %52 : i32 to index
    %c0_30 = arith.constant 0 : index
    %54 = vector.load %arg2[%53, %c0_30] : memref<8192x128xf32, #tpu.memory_space<vmem>>, vector<512x128xf32>
    %55 = arith.index_cast %52 : i32 to index
    %c0_31 = arith.constant 0 : index
    %56 = vector.load %arg3[%55, %c0_31] : memref<8192x128xf32, #tpu.memory_space<vmem>>, vector<512x128xf32>
    %57 = arith.subf %54, %56 : vector<512x128xf32>
    %58 = math.absf %57 : vector<512x128xf32>
    %c0_32 = arith.constant 0 : index
    %c0_33 = arith.constant 0 : index
    %c0_34 = arith.constant 0 : index
    %59 = vector.load %arg4[%c0_32, %c0_33, %c0_34] : memref<1x8x128xf32, #tpu.memory_space<vmem>>, vector<1x8x128xf32>
    %60 = vector.shape_cast %59 : vector<1x8x128xf32> to vector<8x128xf32>
    %61 = vector.shape_cast %58 : vector<512x128xf32> to vector<64x8x128xf32>
    %cst_35 = arith.constant dense<0.000000e+00> : vector<8x128xf32>
    %62 = vector.multi_reduction <add>, %61, %cst_35 [0] : vector<64x8x128xf32> to vector<8x128xf32>
    %63 = arith.addf %60, %62 : vector<8x128xf32>
    %c0_36 = arith.constant 0 : index
    %c0_37 = arith.constant 0 : index
    %c0_38 = arith.constant 0 : index
    %64 = vector.load %arg4[%c0_36, %c0_37, %c0_38] : memref<1x8x128xf32, #tpu.memory_space<vmem>>, vector<1x8x128xf32>
    %65 = vector.shape_cast %64 : vector<1x8x128xf32> to vector<8x128xf32>
    %66 = vector.shape_cast %63 : vector<8x128xf32> to vector<1x8x128xf32>
    tpu.vector_store %arg4[%c0_36, %c0_37, %c0_38], %66 {strides = array<i32>} : memref<1x8x128xf32, #tpu.memory_space<vmem>>, vector<1x8x128xf32>,
    %c4_i32 = arith.constant 4 : i32
    %c512_i32_39 = arith.constant 512 : i32
    %67 = arith.muli %c4_i32, %c512_i32_39 : i32
    %68 = tpu.assume_multiple %67, 512 : i32
    %69 = arith.index_cast %68 : i32 to index
    %c0_40 = arith.constant 0 : index
    %70 = vector.load %arg2[%69, %c0_40] : memref<8192x128xf32, #tpu.memory_space<vmem>>, vector<512x128xf32>
    %71 = arith.index_cast %68 : i32 to index
    %c0_41 = arith.constant 0 : index
    %72 = vector.load %arg3[%71, %c0_41] : memref<8192x128xf32, #tpu.memory_space<vmem>>, vector<512x128xf32>
    %73 = arith.subf %70, %72 : vector<512x128xf32>
    %74 = math.absf %73 : vector<512x128xf32>
    %c0_42 = arith.constant 0 : index
    %c0_43 = arith.constant 0 : index
    %c0_44 = arith.constant 0 : index
    %75 = vector.load %arg4[%c0_42, %c0_43, %c0_44] : memref<1x8x128xf32, #tpu.memory_space<vmem>>, vector<1x8x128xf32>
    %76 = vector.shape_cast %75 : vector<1x8x128xf32> to vector<8x128xf32>
    %77 = vector.shape_cast %74 : vector<512x128xf32> to vector<64x8x128xf32>
    %cst_45 = arith.constant dense<0.000000e+00> : vector<8x128xf32>
    %78 = vector.multi_reduction <add>, %77, %cst_45 [0] : vector<64x8x128xf32> to vector<8x128xf32>
    %79 = arith.addf %76, %78 : vector<8x128xf32>
    %c0_46 = arith.constant 0 : index
    %c0_47 = arith.constant 0 : index
    %c0_48 = arith.constant 0 : index
    %80 = vector.load %arg4[%c0_46, %c0_47, %c0_48] : memref<1x8x128xf32, #tpu.memory_space<vmem>>, vector<1x8x128xf32>
    %81 = vector.shape_cast %80 : vector<1x8x128xf32> to vector<8x128xf32>
    %82 = vector.shape_cast %79 : vector<8x128xf32> to vector<1x8x128xf32>
    tpu.vector_store %arg4[%c0_46, %c0_47, %c0_48], %82 {strides = array<i32>} : memref<1x8x128xf32, #tpu.memory_space<vmem>>, vector<1x8x128xf32>,
    %c5_i32 = arith.constant 5 : i32
    %c512_i32_49 = arith.constant 512 : i32
    %83 = arith.muli %c5_i32, %c512_i32_49 : i32
    %84 = tpu.assume_multiple %83, 512 : i32
    %85 = arith.index_cast %84 : i32 to index
    %c0_50 = arith.constant 0 : index
    %86 = vector.load %arg2[%85, %c0_50] : memref<8192x128xf32, #tpu.memory_space<vmem>>, vector<512x128xf32>
    %87 = arith.index_cast %84 : i32 to index
    %c0_51 = arith.constant 0 : index
    %88 = vector.load %arg3[%87, %c0_51] : memref<8192x128xf32, #tpu.memory_space<vmem>>, vector<512x128xf32>
    %89 = arith.subf %86, %88 : vector<512x128xf32>
    %90 = math.absf %89 : vector<512x128xf32>
    %c0_52 = arith.constant 0 : index
    %c0_53 = arith.constant 0 : index
    %c0_54 = arith.constant 0 : index
    %91 = vector.load %arg4[%c0_52, %c0_53, %c0_54] : memref<1x8x128xf32, #tpu.memory_space<vmem>>, vector<1x8x128xf32>
    %92 = vector.shape_cast %91 : vector<1x8x128xf32> to vector<8x128xf32>
    %93 = vector.shape_cast %90 : vector<512x128xf32> to vector<64x8x128xf32>
    %cst_55 = arith.constant dense<0.000000e+00> : vector<8x128xf32>
    %94 = vector.multi_reduction <add>, %93, %cst_55 [0] : vector<64x8x128xf32> to vector<8x128xf32>
    %95 = arith.addf %92, %94 : vector<8x128xf32>
    %c0_56 = arith.constant 0 : index
    %c0_57 = arith.constant 0 : index
    %c0_58 = arith.constant 0 : index
    %96 = vector.load %arg4[%c0_56, %c0_57, %c0_58] : memref<1x8x128xf32, #tpu.memory_space<vmem>>, vector<1x8x128xf32>
    %97 = vector.shape_cast %96 : vector<1x8x128xf32> to vector<8x128xf32>
    %98 = vector.shape_cast %95 : vector<8x128xf32> to vector<1x8x128xf32>
    tpu.vector_store %arg4[%c0_56, %c0_57, %c0_58], %98 {strides = array<i32>} : memref<1x8x128xf32, #tpu.memory_space<vmem>>, vector<1x8x128xf32>,
    %c6_i32 = arith.constant 6 : i32
    %c512_i32_59 = arith.constant 512 : i32
    %99 = arith.muli %c6_i32, %c512_i32_59 : i32
    %100 = tpu.assume_multiple %99, 512 : i32
    %101 = arith.index_cast %100 : i32 to index
    %c0_60 = arith.constant 0 : index
    %102 = vector.load %arg2[%101, %c0_60] : memref<8192x128xf32, #tpu.memory_space<vmem>>, vector<512x128xf32>
    %103 = arith.index_cast %100 : i32 to index
    %c0_61 = arith.constant 0 : index
    %104 = vector.load %arg3[%103, %c0_61] : memref<8192x128xf32, #tpu.memory_space<vmem>>, vector<512x128xf32>
    %105 = arith.subf %102, %104 : vector<512x128xf32>
    %106 = math.absf %105 : vector<512x128xf32>
    %c0_62 = arith.constant 0 : index
    %c0_63 = arith.constant 0 : index
    %c0_64 = arith.constant 0 : index
    %107 = vector.load %arg4[%c0_62, %c0_63, %c0_64] : memref<1x8x128xf32, #tpu.memory_space<vmem>>, vector<1x8x128xf32>
    %108 = vector.shape_cast %107 : vector<1x8x128xf32> to vector<8x128xf32>
    %109 = vector.shape_cast %106 : vector<512x128xf32> to vector<64x8x128xf32>
    %cst_65 = arith.constant dense<0.000000e+00> : vector<8x128xf32>
    %110 = vector.multi_reduction <add>, %109, %cst_65 [0] : vector<64x8x128xf32> to vector<8x128xf32>
    %111 = arith.addf %108, %110 : vector<8x128xf32>
    %c0_66 = arith.constant 0 : index
    %c0_67 = arith.constant 0 : index
    %c0_68 = arith.constant 0 : index
    %112 = vector.load %arg4[%c0_66, %c0_67, %c0_68] : memref<1x8x128xf32, #tpu.memory_space<vmem>>, vector<1x8x128xf32>
    %113 = vector.shape_cast %112 : vector<1x8x128xf32> to vector<8x128xf32>
    %114 = vector.shape_cast %111 : vector<8x128xf32> to vector<1x8x128xf32>
    tpu.vector_store %arg4[%c0_66, %c0_67, %c0_68], %114 {strides = array<i32>} : memref<1x8x128xf32, #tpu.memory_space<vmem>>, vector<1x8x128xf32>,
    %c7_i32 = arith.constant 7 : i32
    %c512_i32_69 = arith.constant 512 : i32
    %115 = arith.muli %c7_i32, %c512_i32_69 : i32
    %116 = tpu.assume_multiple %115, 512 : i32
    %117 = arith.index_cast %116 : i32 to index
    %c0_70 = arith.constant 0 : index
    %118 = vector.load %arg2[%117, %c0_70] : memref<8192x128xf32, #tpu.memory_space<vmem>>, vector<512x128xf32>
    %119 = arith.index_cast %116 : i32 to index
    %c0_71 = arith.constant 0 : index
    %120 = vector.load %arg3[%119, %c0_71] : memref<8192x128xf32, #tpu.memory_space<vmem>>, vector<512x128xf32>
    %121 = arith.subf %118, %120 : vector<512x128xf32>
    %122 = math.absf %121 : vector<512x128xf32>
    %c0_72 = arith.constant 0 : index
    %c0_73 = arith.constant 0 : index
    %c0_74 = arith.constant 0 : index
    %123 = vector.load %arg4[%c0_72, %c0_73, %c0_74] : memref<1x8x128xf32, #tpu.memory_space<vmem>>, vector<1x8x128xf32>
    %124 = vector.shape_cast %123 : vector<1x8x128xf32> to vector<8x128xf32>
    %125 = vector.shape_cast %122 : vector<512x128xf32> to vector<64x8x128xf32>
    %cst_75 = arith.constant dense<0.000000e+00> : vector<8x128xf32>
    %126 = vector.multi_reduction <add>, %125, %cst_75 [0] : vector<64x8x128xf32> to vector<8x128xf32>
    %127 = arith.addf %124, %126 : vector<8x128xf32>
    %c0_76 = arith.constant 0 : index
    %c0_77 = arith.constant 0 : index
    %c0_78 = arith.constant 0 : index
    %128 = vector.load %arg4[%c0_76, %c0_77, %c0_78] : memref<1x8x128xf32, #tpu.memory_space<vmem>>, vector<1x8x128xf32>
    %129 = vector.shape_cast %128 : vector<1x8x128xf32> to vector<8x128xf32>
    %130 = vector.shape_cast %127 : vector<8x128xf32> to vector<1x8x128xf32>
    tpu.vector_store %arg4[%c0_76, %c0_77, %c0_78], %130 {strides = array<i32>} : memref<1x8x128xf32, #tpu.memory_space<vmem>>, vector<1x8x128xf32>,
    %c8_i32 = arith.constant 8 : i32
    %c512_i32_79 = arith.constant 512 : i32
    %131 = arith.muli %c8_i32, %c512_i32_79 : i32
    %132 = tpu.assume_multiple %131, 512 : i32
    %133 = arith.index_cast %132 : i32 to index
    %c0_80 = arith.constant 0 : index
    %134 = vector.load %arg2[%133, %c0_80] : memref<8192x128xf32, #tpu.memory_space<vmem>>, vector<512x128xf32>
    %135 = arith.index_cast %132 : i32 to index
    %c0_81 = arith.constant 0 : index
    %136 = vector.load %arg3[%135, %c0_81] : memref<8192x128xf32, #tpu.memory_space<vmem>>, vector<512x128xf32>
    %137 = arith.subf %134, %136 : vector<512x128xf32>
    %138 = math.absf %137 : vector<512x128xf32>
    %c0_82 = arith.constant 0 : index
    %c0_83 = arith.constant 0 : index
    %c0_84 = arith.constant 0 : index
    %139 = vector.load %arg4[%c0_82, %c0_83, %c0_84] : memref<1x8x128xf32, #tpu.memory_space<vmem>>, vector<1x8x128xf32>
    %140 = vector.shape_cast %139 : vector<1x8x128xf32> to vector<8x128xf32>
    %141 = vector.shape_cast %138 : vector<512x128xf32> to vector<64x8x128xf32>
    %cst_85 = arith.constant dense<0.000000e+00> : vector<8x128xf32>
    %142 = vector.multi_reduction <add>, %141, %cst_85 [0] : vector<64x8x128xf32> to vector<8x128xf32>
    %143 = arith.addf %140, %142 : vector<8x128xf32>
    %c0_86 = arith.constant 0 : index
    %c0_87 = arith.constant 0 : index
    %c0_88 = arith.constant 0 : index
    %144 = vector.load %arg4[%c0_86, %c0_87, %c0_88] : memref<1x8x128xf32, #tpu.memory_space<vmem>>, vector<1x8x128xf32>
    %145 = vector.shape_cast %144 : vector<1x8x128xf32> to vector<8x128xf32>
    %146 = vector.shape_cast %143 : vector<8x128xf32> to vector<1x8x128xf32>
    tpu.vector_store %arg4[%c0_86, %c0_87, %c0_88], %146 {strides = array<i32>} : memref<1x8x128xf32, #tpu.memory_space<vmem>>, vector<1x8x128xf32>,
    %c9_i32 = arith.constant 9 : i32
    %c512_i32_89 = arith.constant 512 : i32
    %147 = arith.muli %c9_i32, %c512_i32_89 : i32
    %148 = tpu.assume_multiple %147, 512 : i32
    %149 = arith.index_cast %148 : i32 to index
    %c0_90 = arith.constant 0 : index
    %150 = vector.load %arg2[%149, %c0_90] : memref<8192x128xf32, #tpu.memory_space<vmem>>, vector<512x128xf32>
    %151 = arith.index_cast %148 : i32 to index
    %c0_91 = arith.constant 0 : index
    %152 = vector.load %arg3[%151, %c0_91] : memref<8192x128xf32, #tpu.memory_space<vmem>>, vector<512x128xf32>
    %153 = arith.subf %150, %152 : vector<512x128xf32>
    %154 = math.absf %153 : vector<512x128xf32>
    %c0_92 = arith.constant 0 : index
    %c0_93 = arith.constant 0 : index
    %c0_94 = arith.constant 0 : index
    %155 = vector.load %arg4[%c0_92, %c0_93, %c0_94] : memref<1x8x128xf32, #tpu.memory_space<vmem>>, vector<1x8x128xf32>
    %156 = vector.shape_cast %155 : vector<1x8x128xf32> to vector<8x128xf32>
    %157 = vector.shape_cast %154 : vector<512x128xf32> to vector<64x8x128xf32>
    %cst_95 = arith.constant dense<0.000000e+00> : vector<8x128xf32>
    %158 = vector.multi_reduction <add>, %157, %cst_95 [0] : vector<64x8x128xf32> to vector<8x128xf32>
    %159 = arith.addf %156, %158 : vector<8x128xf32>
    %c0_96 = arith.constant 0 : index
    %c0_97 = arith.constant 0 : index
    %c0_98 = arith.constant 0 : index
    %160 = vector.load %arg4[%c0_96, %c0_97, %c0_98] : memref<1x8x128xf32, #tpu.memory_space<vmem>>, vector<1x8x128xf32>
    %161 = vector.shape_cast %160 : vector<1x8x128xf32> to vector<8x128xf32>
    %162 = vector.shape_cast %159 : vector<8x128xf32> to vector<1x8x128xf32>
    tpu.vector_store %arg4[%c0_96, %c0_97, %c0_98], %162 {strides = array<i32>} : memref<1x8x128xf32, #tpu.memory_space<vmem>>, vector<1x8x128xf32>,
    %c10_i32 = arith.constant 10 : i32
    %c512_i32_99 = arith.constant 512 : i32
    %163 = arith.muli %c10_i32, %c512_i32_99 : i32
    %164 = tpu.assume_multiple %163, 512 : i32
    %165 = arith.index_cast %164 : i32 to index
    %c0_100 = arith.constant 0 : index
    %166 = vector.load %arg2[%165, %c0_100] : memref<8192x128xf32, #tpu.memory_space<vmem>>, vector<512x128xf32>
    %167 = arith.index_cast %164 : i32 to index
    %c0_101 = arith.constant 0 : index
    %168 = vector.load %arg3[%167, %c0_101] : memref<8192x128xf32, #tpu.memory_space<vmem>>, vector<512x128xf32>
    %169 = arith.subf %166, %168 : vector<512x128xf32>
    %170 = math.absf %169 : vector<512x128xf32>
    %c0_102 = arith.constant 0 : index
    %c0_103 = arith.constant 0 : index
    %c0_104 = arith.constant 0 : index
    %171 = vector.load %arg4[%c0_102, %c0_103, %c0_104] : memref<1x8x128xf32, #tpu.memory_space<vmem>>, vector<1x8x128xf32>
    %172 = vector.shape_cast %171 : vector<1x8x128xf32> to vector<8x128xf32>
    %173 = vector.shape_cast %170 : vector<512x128xf32> to vector<64x8x128xf32>
    %cst_105 = arith.constant dense<0.000000e+00> : vector<8x128xf32>
    %174 = vector.multi_reduction <add>, %173, %cst_105 [0] : vector<64x8x128xf32> to vector<8x128xf32>
    %175 = arith.addf %172, %174 : vector<8x128xf32>
    %c0_106 = arith.constant 0 : index
    %c0_107 = arith.constant 0 : index
    %c0_108 = arith.constant 0 : index
    %176 = vector.load %arg4[%c0_106, %c0_107, %c0_108] : memref<1x8x128xf32, #tpu.memory_space<vmem>>, vector<1x8x128xf32>
    %177 = vector.shape_cast %176 : vector<1x8x128xf32> to vector<8x128xf32>
    %178 = vector.shape_cast %175 : vector<8x128xf32> to vector<1x8x128xf32>
    tpu.vector_store %arg4[%c0_106, %c0_107, %c0_108], %178 {strides = array<i32>} : memref<1x8x128xf32, #tpu.memory_space<vmem>>, vector<1x8x128xf32>,
    %c11_i32 = arith.constant 11 : i32
    %c512_i32_109 = arith.constant 512 : i32
    %179 = arith.muli %c11_i32, %c512_i32_109 : i32
    %180 = tpu.assume_multiple %179, 512 : i32
    %181 = arith.index_cast %180 : i32 to index
    %c0_110 = arith.constant 0 : index
    %182 = vector.load %arg2[%181, %c0_110] : memref<8192x128xf32, #tpu.memory_space<vmem>>, vector<512x128xf32>
    %183 = arith.index_cast %180 : i32 to index
    %c0_111 = arith.constant 0 : index
    %184 = vector.load %arg3[%183, %c0_111] : memref<8192x128xf32, #tpu.memory_space<vmem>>, vector<512x128xf32>
    %185 = arith.subf %182, %184 : vector<512x128xf32>
    %186 = math.absf %185 : vector<512x128xf32>
    %c0_112 = arith.constant 0 : index
    %c0_113 = arith.constant 0 : index
    %c0_114 = arith.constant 0 : index
    %187 = vector.load %arg4[%c0_112, %c0_113, %c0_114] : memref<1x8x128xf32, #tpu.memory_space<vmem>>, vector<1x8x128xf32>
    %188 = vector.shape_cast %187 : vector<1x8x128xf32> to vector<8x128xf32>
    %189 = vector.shape_cast %186 : vector<512x128xf32> to vector<64x8x128xf32>
    %cst_115 = arith.constant dense<0.000000e+00> : vector<8x128xf32>
    %190 = vector.multi_reduction <add>, %189, %cst_115 [0] : vector<64x8x128xf32> to vector<8x128xf32>
    %191 = arith.addf %188, %190 : vector<8x128xf32>
    %c0_116 = arith.constant 0 : index
    %c0_117 = arith.constant 0 : index
    %c0_118 = arith.constant 0 : index
    %192 = vector.load %arg4[%c0_116, %c0_117, %c0_118] : memref<1x8x128xf32, #tpu.memory_space<vmem>>, vector<1x8x128xf32>
    %193 = vector.shape_cast %192 : vector<1x8x128xf32> to vector<8x128xf32>
    %194 = vector.shape_cast %191 : vector<8x128xf32> to vector<1x8x128xf32>
    tpu.vector_store %arg4[%c0_116, %c0_117, %c0_118], %194 {strides = array<i32>} : memref<1x8x128xf32, #tpu.memory_space<vmem>>, vector<1x8x128xf32>,
    %c12_i32 = arith.constant 12 : i32
    %c512_i32_119 = arith.constant 512 : i32
    %195 = arith.muli %c12_i32, %c512_i32_119 : i32
    %196 = tpu.assume_multiple %195, 512 : i32
    %197 = arith.index_cast %196 : i32 to index
    %c0_120 = arith.constant 0 : index
    %198 = vector.load %arg2[%197, %c0_120] : memref<8192x128xf32, #tpu.memory_space<vmem>>, vector<512x128xf32>
    %199 = arith.index_cast %196 : i32 to index
    %c0_121 = arith.constant 0 : index
    %200 = vector.load %arg3[%199, %c0_121] : memref<8192x128xf32, #tpu.memory_space<vmem>>, vector<512x128xf32>
    %201 = arith.subf %198, %200 : vector<512x128xf32>
    %202 = math.absf %201 : vector<512x128xf32>
    %c0_122 = arith.constant 0 : index
    %c0_123 = arith.constant 0 : index
    %c0_124 = arith.constant 0 : index
    %203 = vector.load %arg4[%c0_122, %c0_123, %c0_124] : memref<1x8x128xf32, #tpu.memory_space<vmem>>, vector<1x8x128xf32>
    %204 = vector.shape_cast %203 : vector<1x8x128xf32> to vector<8x128xf32>
    %205 = vector.shape_cast %202 : vector<512x128xf32> to vector<64x8x128xf32>
    %cst_125 = arith.constant dense<0.000000e+00> : vector<8x128xf32>
    %206 = vector.multi_reduction <add>, %205, %cst_125 [0] : vector<64x8x128xf32> to vector<8x128xf32>
    %207 = arith.addf %204, %206 : vector<8x128xf32>
    %c0_126 = arith.constant 0 : index
    %c0_127 = arith.constant 0 : index
    %c0_128 = arith.constant 0 : index
    %208 = vector.load %arg4[%c0_126, %c0_127, %c0_128] : memref<1x8x128xf32, #tpu.memory_space<vmem>>, vector<1x8x128xf32>
    %209 = vector.shape_cast %208 : vector<1x8x128xf32> to vector<8x128xf32>
    %210 = vector.shape_cast %207 : vector<8x128xf32> to vector<1x8x128xf32>
    tpu.vector_store %arg4[%c0_126, %c0_127, %c0_128], %210 {strides = array<i32>} : memref<1x8x128xf32, #tpu.memory_space<vmem>>, vector<1x8x128xf32>,
    %c13_i32 = arith.constant 13 : i32
    %c512_i32_129 = arith.constant 512 : i32
    %211 = arith.muli %c13_i32, %c512_i32_129 : i32
    %212 = tpu.assume_multiple %211, 512 : i32
    %213 = arith.index_cast %212 : i32 to index
    %c0_130 = arith.constant 0 : index
    %214 = vector.load %arg2[%213, %c0_130] : memref<8192x128xf32, #tpu.memory_space<vmem>>, vector<512x128xf32>
    %215 = arith.index_cast %212 : i32 to index
    %c0_131 = arith.constant 0 : index
    %216 = vector.load %arg3[%215, %c0_131] : memref<8192x128xf32, #tpu.memory_space<vmem>>, vector<512x128xf32>
    %217 = arith.subf %214, %216 : vector<512x128xf32>
    %218 = math.absf %217 : vector<512x128xf32>
    %c0_132 = arith.constant 0 : index
    %c0_133 = arith.constant 0 : index
    %c0_134 = arith.constant 0 : index
    %219 = vector.load %arg4[%c0_132, %c0_133, %c0_134] : memref<1x8x128xf32, #tpu.memory_space<vmem>>, vector<1x8x128xf32>
    %220 = vector.shape_cast %219 : vector<1x8x128xf32> to vector<8x128xf32>
    %221 = vector.shape_cast %218 : vector<512x128xf32> to vector<64x8x128xf32>
    %cst_135 = arith.constant dense<0.000000e+00> : vector<8x128xf32>
    %222 = vector.multi_reduction <add>, %221, %cst_135 [0] : vector<64x8x128xf32> to vector<8x128xf32>
    %223 = arith.addf %220, %222 : vector<8x128xf32>
    %c0_136 = arith.constant 0 : index
    %c0_137 = arith.constant 0 : index
    %c0_138 = arith.constant 0 : index
    %224 = vector.load %arg4[%c0_136, %c0_137, %c0_138] : memref<1x8x128xf32, #tpu.memory_space<vmem>>, vector<1x8x128xf32>
    %225 = vector.shape_cast %224 : vector<1x8x128xf32> to vector<8x128xf32>
    %226 = vector.shape_cast %223 : vector<8x128xf32> to vector<1x8x128xf32>
    tpu.vector_store %arg4[%c0_136, %c0_137, %c0_138], %226 {strides = array<i32>} : memref<1x8x128xf32, #tpu.memory_space<vmem>>, vector<1x8x128xf32>,
    %c14_i32 = arith.constant 14 : i32
    %c512_i32_139 = arith.constant 512 : i32
    %227 = arith.muli %c14_i32, %c512_i32_139 : i32
    %228 = tpu.assume_multiple %227, 512 : i32
    %229 = arith.index_cast %228 : i32 to index
    %c0_140 = arith.constant 0 : index
    %230 = vector.load %arg2[%229, %c0_140] : memref<8192x128xf32, #tpu.memory_space<vmem>>, vector<512x128xf32>
    %231 = arith.index_cast %228 : i32 to index
    %c0_141 = arith.constant 0 : index
    %232 = vector.load %arg3[%231, %c0_141] : memref<8192x128xf32, #tpu.memory_space<vmem>>, vector<512x128xf32>
    %233 = arith.subf %230, %232 : vector<512x128xf32>
    %234 = math.absf %233 : vector<512x128xf32>
    %c0_142 = arith.constant 0 : index
    %c0_143 = arith.constant 0 : index
    %c0_144 = arith.constant 0 : index
    %235 = vector.load %arg4[%c0_142, %c0_143, %c0_144] : memref<1x8x128xf32, #tpu.memory_space<vmem>>, vector<1x8x128xf32>
    %236 = vector.shape_cast %235 : vector<1x8x128xf32> to vector<8x128xf32>
    %237 = vector.shape_cast %234 : vector<512x128xf32> to vector<64x8x128xf32>
    %cst_145 = arith.constant dense<0.000000e+00> : vector<8x128xf32>
    %238 = vector.multi_reduction <add>, %237, %cst_145 [0] : vector<64x8x128xf32> to vector<8x128xf32>
    %239 = arith.addf %236, %238 : vector<8x128xf32>
    %c0_146 = arith.constant 0 : index
    %c0_147 = arith.constant 0 : index
    %c0_148 = arith.constant 0 : index
    %240 = vector.load %arg4[%c0_146, %c0_147, %c0_148] : memref<1x8x128xf32, #tpu.memory_space<vmem>>, vector<1x8x128xf32>
    %241 = vector.shape_cast %240 : vector<1x8x128xf32> to vector<8x128xf32>
    %242 = vector.shape_cast %239 : vector<8x128xf32> to vector<1x8x128xf32>
    tpu.vector_store %arg4[%c0_146, %c0_147, %c0_148], %242 {strides = array<i32>} : memref<1x8x128xf32, #tpu.memory_space<vmem>>, vector<1x8x128xf32>,
    %c15_i32 = arith.constant 15 : i32
    %c512_i32_149 = arith.constant 512 : i32
    %243 = arith.muli %c15_i32, %c512_i32_149 : i32
    %244 = tpu.assume_multiple %243, 512 : i32
    %245 = arith.index_cast %244 : i32 to index
    %c0_150 = arith.constant 0 : index
    %246 = vector.load %arg2[%245, %c0_150] : memref<8192x128xf32, #tpu.memory_space<vmem>>, vector<512x128xf32>
    %247 = arith.index_cast %244 : i32 to index
    %c0_151 = arith.constant 0 : index
    %248 = vector.load %arg3[%247, %c0_151] : memref<8192x128xf32, #tpu.memory_space<vmem>>, vector<512x128xf32>
    %249 = arith.subf %246, %248 : vector<512x128xf32>
    %250 = math.absf %249 : vector<512x128xf32>
    %c0_152 = arith.constant 0 : index
    %c0_153 = arith.constant 0 : index
    %c0_154 = arith.constant 0 : index
    %251 = vector.load %arg4[%c0_152, %c0_153, %c0_154] : memref<1x8x128xf32, #tpu.memory_space<vmem>>, vector<1x8x128xf32>
    %252 = vector.shape_cast %251 : vector<1x8x128xf32> to vector<8x128xf32>
    %253 = vector.shape_cast %250 : vector<512x128xf32> to vector<64x8x128xf32>
    %cst_155 = arith.constant dense<0.000000e+00> : vector<8x128xf32>
    %254 = vector.multi_reduction <add>, %253, %cst_155 [0] : vector<64x8x128xf32> to vector<8x128xf32>
    %255 = arith.addf %252, %254 : vector<8x128xf32>
    %c0_156 = arith.constant 0 : index
    %c0_157 = arith.constant 0 : index
    %c0_158 = arith.constant 0 : index
    %256 = vector.load %arg4[%c0_156, %c0_157, %c0_158] : memref<1x8x128xf32, #tpu.memory_space<vmem>>, vector<1x8x128xf32>
    %257 = vector.shape_cast %256 : vector<1x8x128xf32> to vector<8x128xf32>
    %258 = vector.shape_cast %255 : vector<8x128xf32> to vector<1x8x128xf32>
    tpu.vector_store %arg4[%c0_156, %c0_157, %c0_158], %258 {strides = array<i32>} : memref<1x8x128xf32, #tpu.memory_space<vmem>>, vector<1x8x128xf32>,
    %c16_i32 = arith.constant 16 : i32
    return
  }
  func.func @transform_0(%arg0: i32, %arg1: i32) -> (i32, i32) {
    %c1_i32 = arith.constant 1 : i32
    %0 = arith.muli %arg0, %c1_i32 : i32
    %1 = arith.addi %0, %arg1 : i32
    %c0_i32 = arith.constant 0 : i32
    %c0_i32_0 = arith.constant 0 : i32
    return %1, %c0_i32 : i32, i32
  }
  func.func @transform_1(%arg0: i32, %arg1: i32) -> (i32, i32) {
    %c1_i32 = arith.constant 1 : i32
    %0 = arith.muli %arg0, %c1_i32 : i32
    %1 = arith.addi %0, %arg1 : i32
    %c0_i32 = arith.constant 0 : i32
    %c0_i32_0 = arith.constant 0 : i32
    return %1, %c0_i32 : i32, i32
  }
  func.func @transform_2(%arg0: i32, %arg1: i32) -> (i32, i32, i32) {
    %c0_i32 = arith.constant 0 : i32
    %c0_i32_0 = arith.constant 0 : i32
    %c0_i32_1 = arith.constant 0 : i32
    return %arg0, %c0_i32, %c0_i32_0 : i32, i32, i32
  }
}

</mosaic_0001>

<bundles_post_ra>
// kernel: tpu_custom_call.1
= control target key start
LH: loop header
LB: loop body
LE: loop exit
PB: predicated region body
PF: predicated region fallthrough
CT: control target
= control target key end

     0   :  { %7 = vsyncpa [#allocation3], 0  ;;  %s8200_s0 = inlined_call_operand.hbm [shape: f32[8192,128], index: 0, kind: input, shape index: {}]   ;;  %s8201_s1 = inlined_call_operand.hbm [shape: f32[8192,128], index: 1, kind: input, shape index: {}]   ;;  %s8202_s2 = inlined_call_operand.hbm [shape: f32[1,8,128], index: 2, kind: output, shape index: {}]  }
   0x1   :  { %8 = vsyncpa [#allocation6], 0 }
   0x2   :  { %9 = vsyncpa [#allocation4], 0  ;;  %s18_s11 = sshll.u32 %s8200_s0, 4  ;;  %s5345_s12 = smov [#allocation2]   ;;  %s19_s11 = int_to_ptr.hbm [resolvable:$true] %s18_s11 }
   0x3   :  { %s20_s13 = sshll.u32 %s5345_s12, 4  ;;  %s35_s16 = sshll.u32 %s8201_s1, 4  ;;  %s21_s13 = int_to_ptr.vmem [resolvable:$true] %s20_s13  ;;  %s36_s16 = int_to_ptr.hbm [resolvable:$true] %s35_s16 }
   0x4   :  { %s5346_s17 = smov 128   ;;  %s5347_s18 = smov 8  }
   0x5   :  { %26 = dma.hbm_to_vmem [thread:$0]  %s19_s11, 131072, %s21_s13, [#allocation3], %s5346_s17, %s5346_s17, %s5347_s18  }
   0x6   :  { %s5348_s19 = smov [#allocation5]  }
   0x7   :  { %s37_s20 = sshll.u32 %s5348_s19, 4  ;;  %s38_s20 = int_to_ptr.vmem [resolvable:$true] %s37_s20 }
   0x8   :  { %43 = dma.hbm_to_vmem [thread:$0]  %s36_s16, 131072, %s38_s20, [#allocation6], %s5346_s17, %s5346_s17, %s5347_s18  }
   0x9   :  { %5339 = dma.done.wait [#allocation3], 131072  }
   0xa   :  { %5340 = vsyncadd [#allocation3], 4294836224 }
   0xb   :  { %5341 = dma.done.wait [#allocation6], 131072  }
   0xc   :  { %5342 = vsyncadd [#allocation6], 4294836224  ;;  %v61_v0 = vld [vmem:[#allocation2] sm:$0xff]  ;;  %v62_v1 = vld [vmem:[#allocation2 + $0x8] sm:$0xff]  ;;  %s5349_s0 = smov [#allocation7]   ;;  %s5250_s23 = sshll.u32 %s8202_s2, 4  ;;  %s5251_s23 = int_to_ptr.hbm [resolvable:$true] %s5250_s23 }
   0xd   :  { %v125_v2 = vld [vmem:[#allocation5] sm:$0xff]  ;;  %v126_v3 = vld [vmem:[#allocation5 + $0x8] sm:$0xff]  ;;  %v63_v6 = vld [vmem:[#allocation2 + $0x10] sm:$0xff]  ;;  %s5248_s1 = sshll.u32 %s5349_s0, 4  ;;  %s5249_s1 = int_to_ptr.vmem [resolvable:$true] %s5248_s1 }
   0xe   :  { %v189_v4 = vsub.f32 %v61_v0, %v125_v2  ;;  %v190_v5 = vsub.f32 %v62_v1, %v126_v3  ;;  %v127_v7 = vld [vmem:[#allocation5 + $0x10] sm:$0xff]  ;;  %v64_v11 = vld [vmem:[#allocation2 + $0x18] sm:$0xff]  ;;  %v65_v16 = vld [vmem:[#allocation2 + $0x20] sm:$0xff] }
   0xf   :  { %v191_v8 = vsub.f32 %v63_v6, %v127_v7  ;;  %v128_v12 = vld [vmem:[#allocation5 + $0x18] sm:$0xff]  ;;  %v129_v17 = vld [vmem:[#allocation5 + $0x20] sm:$0xff]  ;;  %v385_v19 = vld [vmem:[#allocation2 + $0x208] sm:$0xff] }
  0x10   :  { %v253_v9 = vand.u32 2147483647, %v189_v4  ;;  %v254_v10 = vand.u32 2147483647, %v190_v5  ;;  %v192_v13 = vsub.f32 %v64_v11, %v128_v12  ;;  %v384_v18 = vld [vmem:[#allocation2 + $0x200] sm:$0xff]  ;;  %v450_v21 = vld [vmem:[#allocation5 + $0x208] sm:$0xff]  ;;  %v193_v22 = vsub.f32 %v65_v16, %v129_v17 }
  0x11   :  { %v255_v14 = vand.u32 2147483647, %v191_v8  ;;  %v449_v20 = vld [vmem:[#allocation5 + $0x200] sm:$0xff]  ;;  %v66_v25 = vld [vmem:[#allocation2 + $0x28] sm:$0xff]  ;;  %v514_v28 = vsub.f32 %v385_v19, %v450_v21  ;;  %v386_v29 = vld [vmem:[#allocation2 + $0x210] sm:$0xff] }
  0x12   :  { %v318_v15 = vadd.f32 %v254_v10, %v253_v9  ;;  %v256_v23 = vand.u32 2147483647, %v192_v13  ;;  %v130_v26 = vld [vmem:[#allocation5 + $0x28] sm:$0xff]  ;;  %v513_v27 = vsub.f32 %v384_v18, %v449_v20  ;;  %v451_v30 = vld [vmem:[#allocation5 + $0x210] sm:$0xff]  ;;  %v257_v32 = vand.u32 2147483647, %v193_v22 }
  0x13   :  { %v194_v31 = vsub.f32 %v66_v25, %v130_v26  ;;  %v67_v34 = vld [vmem:[#allocation2 + $0x30] sm:$0xff]  ;;  %v515_v36 = vsub.f32 %v386_v29, %v451_v30  ;;  %v578_v38 = vand.u32 2147483647, %v514_v28  ;;  %v387_v39 = vld [vmem:[#allocation2 + $0x218] sm:$0xff]  ;;  %v388_v49 = vld [vmem:[#allocation2 + $0x220] sm:$0xff] }
  0x14   :  { %v319_v24 = vadd.f32 %v318_v15, %v255_v14  ;;  %v131_v35 = vld [vmem:[#allocation5 + $0x30] sm:$0xff]  ;;  %v577_v37 = vand.u32 2147483647, %v513_v27  ;;  %v452_v40 = vld [vmem:[#allocation5 + $0x218] sm:$0xff]  ;;  %v453_v50 = vld [vmem:[#allocation5 + $0x220] sm:$0xff] }
  0x15   :  { %v195_v41 = vsub.f32 %v67_v34, %v131_v35  ;;  %v258_v42 = vand.u32 2147483647, %v194_v31  ;;  %v68_v44 = vld [vmem:[#allocation2 + $0x38] sm:$0xff]  ;;  %v516_v46 = vsub.f32 %v387_v39, %v452_v40  ;;  %v579_v47 = vand.u32 2147483647, %v515_v36  ;;  %v69_v54 = vld [vmem:[#allocation2 + $0x40] sm:$0xff] }
  0x16   :  { %v320_v33 = vadd.f32 %v319_v24, %v256_v23  ;;  %v132_v45 = vld [vmem:[#allocation5 + $0x38] sm:$0xff]  ;;  %v642_v48 = vadd.f32 %v578_v38, %v577_v37  ;;  %v133_v55 = vld [vmem:[#allocation5 + $0x40] sm:$0xff]  ;;  %v517_v56 = vsub.f32 %v388_v49, %v453_v50  ;;  %v389_v59 = vld [vmem:[#allocation2 + $0x228] sm:$0xff] }
  0x17   :  { %v196_v51 = vsub.f32 %v68_v44, %v132_v45  ;;  %v259_v52 = vand.u32 2147483647, %v195_v41  ;;  %v580_v57 = vand.u32 2147483647, %v516_v46  ;;  %v454_v60 = vld [vmem:[#allocation5 + $0x228] sm:$0xff]  ;;  %v197_v61 = vsub.f32 %v69_v54, %v133_v55  ;;  %v390_v5 = vld [vmem:[#allocation2 + $0x230] sm:$0xff] }
  0x18   :  { %v321_v43 = vadd.f32 %v320_v33, %v257_v32  ;;  %v643_v58 = vadd.f32 %v642_v48, %v579_v47  ;;  %v70_v0 = vld [vmem:[#allocation2 + $0x48] sm:$0xff]  ;;  %v518_v2 = vsub.f32 %v389_v59, %v454_v60  ;;  %v581_v3 = vand.u32 2147483647, %v517_v56  ;;  %v455_v6 = vld [vmem:[#allocation5 + $0x230] sm:$0xff]  ;;  %v391_v15 = vld [vmem:[#allocation2 + $0x238] sm:$0xff] }
  0x19   :  { %v260_v62 = vand.u32 2147483647, %v196_v51  ;;  %v134_v1 = vld [vmem:[#allocation5 + $0x48] sm:$0xff]  ;;  %v261_v8 = vand.u32 2147483647, %v197_v61  ;;  %v71_v10 = vld [vmem:[#allocation2 + $0x50] sm:$0xff]  ;;  %v519_v12 = vsub.f32 %v390_v5, %v455_v6 }
  0x1a   :  { %v322_v53 = vadd.f32 %v321_v43, %v258_v42  ;;  %v644_v4 = vadd.f32 %v643_v58, %v580_v57  ;;  %v198_v7 = vsub.f32 %v70_v0, %v134_v1  ;;  %v135_v11 = vld [vmem:[#allocation5 + $0x50] sm:$0xff]  ;;  %v582_v13 = vand.u32 2147483647, %v518_v2  ;;  %v456_v16 = vld [vmem:[#allocation5 + $0x238] sm:$0xff]  ;;  %v392_v25 = vld [vmem:[#allocation2 + $0x240] sm:$0xff] }
  0x1b   :  { %v199_v17 = vsub.f32 %v71_v10, %v135_v11  ;;  %v72_v20 = vld [vmem:[#allocation2 + $0x58] sm:$0xff]  ;;  %v520_v22 = vsub.f32 %v391_v15, %v456_v16  ;;  %v583_v23 = vand.u32 2147483647, %v519_v12  ;;  %v457_v26 = vld [vmem:[#allocation5 + $0x240] sm:$0xff]  ;;  %v709_v37 = vld [vmem:[#allocation2 + $0x408] sm:$0xff] }
  0x1c   :  { %v323_v63 = vadd.f32 %v322_v53, %v259_v52  ;;  %v645_v14 = vadd.f32 %v644_v4, %v581_v3  ;;  %v262_v18 = vand.u32 2147483647, %v198_v7  ;;  %v136_v21 = vld [vmem:[#allocation5 + $0x58] sm:$0xff]  ;;  %v73_v27 = vld [vmem:[#allocation2 + $0x60] sm:$0xff]  ;;  %v521_v34 = vsub.f32 %v392_v25, %v457_v26  ;;  %v774_v38 = vld [vmem:[#allocation5 + $0x408] sm:$0xff] }
  0x1d   :  { %v200_v28 = vsub.f32 %v72_v20, %v136_v21  ;;  %v263_v29 = vand.u32 2147483647, %v199_v17  ;;  %v708_v31 = vld [vmem:[#allocation2 + $0x400] sm:$0xff]  ;;  %v584_v35 = vand.u32 2147483647, %v520_v22  ;;  %v393_v39 = vld [vmem:[#allocation2 + $0x248] sm:$0xff]  ;;  %v838_v47 = vsub.f32 %v709_v37, %v774_v38 }
  0x1e   :  { %v324_v9 = vadd.f32 %v323_v63, %v260_v62  ;;  %v646_v24 = vadd.f32 %v645_v14, %v582_v13  ;;  %v773_v32 = vld [vmem:[#allocation5 + $0x400] sm:$0xff]  ;;  %v458_v40 = vld [vmem:[#allocation5 + $0x248] sm:$0xff]  ;;  %v710_v45 = vld [vmem:[#allocation2 + $0x410] sm:$0xff]  ;;  %v585_v51 = vand.u32 2147483647, %v521_v34 }
  0x1f   :  { %v137_v33 = vld [vmem:[#allocation5 + $0x60] sm:$0xff]  ;;  %v837_v41 = vsub.f32 %v708_v31, %v773_v32  ;;  %v264_v43 = vand.u32 2147483647, %v200_v28  ;;  %v775_v46 = vld [vmem:[#allocation5 + $0x410] sm:$0xff]  ;;  %v74_v48 = vld [vmem:[#allocation2 + $0x68] sm:$0xff]  ;;  %v522_v50 = vsub.f32 %v393_v39, %v458_v40 }
  0x20   :  { %v325_v19 = vadd.f32 %v324_v9, %v261_v8  ;;  %v647_v36 = vadd.f32 %v646_v24, %v583_v23  ;;  %v201_v42 = vsub.f32 %v73_v27, %v137_v33  ;;  %v138_v49 = vld [vmem:[#allocation5 + $0x68] sm:$0xff]  ;;  %v394_v53 = vld [vmem:[#allocation2 + $0x250] sm:$0xff]  ;;  %v839_v55 = vsub.f32 %v710_v45, %v775_v46  ;;  %v711_v60 = vld [vmem:[#allocation2 + $0x418] sm:$0xff] }
  0x21   :  { %v459_v54 = vld [vmem:[#allocation5 + $0x250] sm:$0xff]  ;;  %v901_v56 = vand.u32 2147483647, %v837_v41  ;;  %v202_v57 = vsub.f32 %v74_v48, %v138_v49  ;;  %v776_v61 = vld [vmem:[#allocation5 + $0x418] sm:$0xff]  ;;  %v902_v62 = vand.u32 2147483647, %v838_v47 }
  0x22   :  { %v326_v30 = vadd.f32 %v325_v19, %v262_v18  ;;  %v648_v52 = vadd.f32 %v647_v36, %v584_v35  ;;  %v265_v58 = vand.u32 2147483647, %v201_v42  ;;  %v75_v63 = vld [vmem:[#allocation2 + $0x70] sm:$0xff]  ;;  %v523_v1 = vsub.f32 %v394_v53, %v459_v54  ;;  %v395_v4 = vld [vmem:[#allocation2 + $0x258] sm:$0xff]  ;;  %v712_v12 = vld [vmem:[#allocation2 + $0x420] sm:$0xff] }
  0x23   :  { %v139_v0 = vld [vmem:[#allocation5 + $0x70] sm:$0xff]  ;;  %v586_v2 = vand.u32 2147483647, %v522_v50  ;;  %v460_v5 = vld [vmem:[#allocation5 + $0x258] sm:$0xff]  ;;  %v840_v6 = vsub.f32 %v711_v60, %v776_v61  ;;  %v903_v7 = vand.u32 2147483647, %v839_v55  ;;  %v966_v8 = vadd.f32 %v902_v62, %v901_v56 }
  0x24   :  { %v327_v44 = vadd.f32 %v326_v30, %v263_v29  ;;  %v649_v3 = vadd.f32 %v648_v52, %v585_v51  ;;  %v203_v9 = vsub.f32 %v75_v63, %v139_v0  ;;  %v266_v10 = vand.u32 2147483647, %v202_v57  ;;  %v777_v13 = vld [vmem:[#allocation5 + $0x420] sm:$0xff]  ;;  %v76_v14 = vld [vmem:[#allocation2 + $0x78] sm:$0xff]  ;;  %v713_v27 = vld [vmem:[#allocation2 + $0x428] sm:$0xff] }
  0x25   :  { %v140_v15 = vld [vmem:[#allocation5 + $0x78] sm:$0xff]  ;;  %v524_v16 = vsub.f32 %v395_v4, %v460_v5  ;;  %v587_v17 = vand.u32 2147483647, %v523_v1  ;;  %v396_v19 = vld [vmem:[#allocation2 + $0x260] sm:$0xff]  ;;  %v841_v21 = vsub.f32 %v712_v12, %v777_v13  ;;  %v904_v22 = vand.u32 2147483647, %v840_v6 }
  0x26   :  { %v328_v59 = vadd.f32 %v327_v44, %v264_v43  ;;  %v650_v18 = vadd.f32 %v649_v3, %v586_v2  ;;  %v461_v20 = vld [vmem:[#allocation5 + $0x260] sm:$0xff]  ;;  %v967_v23 = vadd.f32 %v966_v8, %v903_v7  ;;  %v204_v24 = vsub.f32 %v76_v14, %v140_v15  ;;  %v778_v28 = vld [vmem:[#allocation5 + $0x428] sm:$0xff]  ;;  %v714_v42 = vld [vmem:[#allocation2 + $0x430] sm:$0xff] }
  0x27   :  { %v267_v25 = vand.u32 2147483647, %v203_v9  ;;  %v77_v29 = vld [vmem:[#allocation2 + $0x80] sm:$0xff]  ;;  %v525_v31 = vsub.f32 %v396_v19, %v461_v20  ;;  %v588_v32 = vand.u32 2147483647, %v524_v16  ;;  %v397_v34 = vld [vmem:[#allocation2 + $0x268] sm:$0xff]  ;;  %v842_v36 = vsub.f32 %v713_v27, %v778_v28 }
  0x28   :  { %v329_v11 = vadd.f32 %v328_v59, %v265_v58  ;;  %v141_v30 = vld [vmem:[#allocation5 + $0x80] sm:$0xff]  ;;  %v651_v33 = vadd.f32 %v650_v18, %v587_v17  ;;  %v462_v35 = vld [vmem:[#allocation5 + $0x268] sm:$0xff]  ;;  %v905_v37 = vand.u32 2147483647, %v841_v21  ;;  %v968_v38 = vadd.f32 %v967_v23, %v904_v22  ;;  %v779_v43 = vld [vmem:[#allocation5 + $0x430] sm:$0xff] }
  0x29   :  { %v205_v39 = vsub.f32 %v77_v29, %v141_v30  ;;  %v268_v40 = vand.u32 2147483647, %v204_v24  ;;  %v78_v44 = vld [vmem:[#allocation2 + $0x88] sm:$0xff]  ;;  %v526_v46 = vsub.f32 %v397_v34, %v462_v35  ;;  %v589_v47 = vand.u32 2147483647, %v525_v31  ;;  %v398_v49 = vld [vmem:[#allocation2 + $0x270] sm:$0xff] }
  0x2a   :  { %v330_v26 = vadd.f32 %v329_v11, %v266_v10  ;;  %v142_v45 = vld [vmem:[#allocation5 + $0x88] sm:$0xff]  ;;  %v652_v48 = vadd.f32 %v651_v33, %v588_v32  ;;  %v463_v50 = vld [vmem:[#allocation5 + $0x270] sm:$0xff]  ;;  %v843_v51 = vsub.f32 %v714_v42, %v779_v43  ;;  %v906_v52 = vand.u32 2147483647, %v842_v36  ;;  %v715_v57 = vld [vmem:[#allocation2 + $0x438] sm:$0xff] }
  0x2b   :  { %v969_v53 = vadd.f32 %v968_v38, %v905_v37  ;;  %v206_v54 = vsub.f32 %v78_v44, %v142_v45  ;;  %v269_v55 = vand.u32 2147483647, %v205_v39  ;;  %v780_v58 = vld [vmem:[#allocation5 + $0x438] sm:$0xff]  ;;  %v79_v59 = vld [vmem:[#allocation2 + $0x90] sm:$0xff]  ;;  %v527_v61 = vsub.f32 %v398_v49, %v463_v50  ;;  %v716_v8 = vld [vmem:[#allocation2 + $0x440] sm:$0xff] }
  0x2c   :  { %v331_v41 = vadd.f32 %v330_v26, %v267_v25  ;;  %v143_v60 = vld [vmem:[#allocation5 + $0x90] sm:$0xff]  ;;  %v590_v62 = vand.u32 2147483647, %v526_v46  ;;  %v653_v63 = vadd.f32 %v652_v48, %v589_v47  ;;  %v399_v0 = vld [vmem:[#allocation2 + $0x278] sm:$0xff]  ;;  %v844_v2 = vsub.f32 %v715_v57, %v780_v58  ;;  %v781_v9 = vld [vmem:[#allocation5 + $0x440] sm:$0xff] }
  0x2d   :  { %v464_v1 = vld [vmem:[#allocation5 + $0x278] sm:$0xff]  ;;  %v907_v3 = vand.u32 2147483647, %v843_v51  ;;  %v970_v4 = vadd.f32 %v969_v53, %v906_v52  ;;  %v207_v5 = vsub.f32 %v79_v59, %v143_v60  ;;  %v270_v6 = vand.u32 2147483647, %v206_v54  ;;  %v400_v15 = vld [vmem:[#allocation2 + $0x280] sm:$0xff] }
  0x2e   :  { %v332_v56 = vadd.f32 %v331_v41, %v268_v40  ;;  %v80_v10 = vld [vmem:[#allocation2 + $0x98] sm:$0xff]  ;;  %v528_v12 = vsub.f32 %v399_v0, %v464_v1  ;;  %v591_v13 = vand.u32 2147483647, %v527_v61  ;;  %v654_v14 = vadd.f32 %v653_v63, %v590_v62  ;;  %v465_v16 = vld [vmem:[#allocation5 + $0x280] sm:$0xff]  ;;  %v717_v23 = vld [vmem:[#allocation2 + $0x448] sm:$0xff] }
  0x2f   :  { %v144_v11 = vld [vmem:[#allocation5 + $0x98] sm:$0xff]  ;;  %v845_v17 = vsub.f32 %v716_v8, %v781_v9  ;;  %v908_v18 = vand.u32 2147483647, %v844_v2  ;;  %v971_v19 = vadd.f32 %v970_v4, %v907_v3  ;;  %v271_v21 = vand.u32 2147483647, %v207_v5  ;;  %v782_v24 = vld [vmem:[#allocation5 + $0x448] sm:$0xff] }
  0x30   :  { %v333_v7 = vadd.f32 %v332_v56, %v269_v55  ;;  %v208_v20 = vsub.f32 %v80_v10, %v144_v11  ;;  %v81_v25 = vld [vmem:[#allocation2 + $0xa0] sm:$0xff]  ;;  %v529_v27 = vsub.f32 %v400_v15, %v465_v16  ;;  %v592_v28 = vand.u32 2147483647, %v528_v12  ;;  %v401_v30 = vld [vmem:[#allocation2 + $0x288] sm:$0xff]  ;;  %v718_v38 = vld [vmem:[#allocation2 + $0x450] sm:$0xff] }
  0x31   :  { %v145_v26 = vld [vmem:[#allocation5 + $0xa0] sm:$0xff]  ;;  %v655_v29 = vadd.f32 %v654_v14, %v591_v13  ;;  %v466_v31 = vld [vmem:[#allocation5 + $0x288] sm:$0xff]  ;;  %v846_v32 = vsub.f32 %v717_v23, %v782_v24  ;;  %v909_v33 = vand.u32 2147483647, %v845_v17  ;;  %v972_v34 = vadd.f32 %v971_v19, %v908_v18  ;;  %v783_v39 = vld [vmem:[#allocation5 + $0x450] sm:$0xff] }
  0x32   :  { %v334_v22 = vadd.f32 %v333_v7, %v270_v6  ;;  %v209_v35 = vsub.f32 %v81_v25, %v145_v26  ;;  %v272_v36 = vand.u32 2147483647, %v208_v20  ;;  %v82_v40 = vld [vmem:[#allocation2 + $0xa8] sm:$0xff]  ;;  %v530_v42 = vsub.f32 %v401_v30, %v466_v31  ;;  %v402_v45 = vld [vmem:[#allocation2 + $0x290] sm:$0xff]  ;;  %v719_v53 = vld [vmem:[#allocation2 + $0x458] sm:$0xff] }
  0x33   :  { %v146_v41 = vld [vmem:[#allocation5 + $0xa8] sm:$0xff]  ;;  %v593_v43 = vand.u32 2147483647, %v529_v27  ;;  %v656_v44 = vadd.f32 %v655_v29, %v592_v28  ;;  %v467_v46 = vld [vmem:[#allocation5 + $0x290] sm:$0xff]  ;;  %v847_v47 = vsub.f32 %v718_v38, %v783_v39  ;;  %v910_v48 = vand.u32 2147483647, %v846_v32 }
  0x34   :  { %v335_v37 = vadd.f32 %v334_v22, %v271_v21  ;;  %v973_v49 = vadd.f32 %v972_v34, %v909_v33  ;;  %v210_v50 = vsub.f32 %v82_v40, %v146_v41  ;;  %v273_v51 = vand.u32 2147483647, %v209_v35  ;;  %v784_v54 = vld [vmem:[#allocation5 + $0x458] sm:$0xff]  ;;  %v83_v55 = vld [vmem:[#allocation2 + $0xb0] sm:$0xff]  ;;  %v720_v4 = vld [vmem:[#allocation2 + $0x460] sm:$0xff] }
  0x35   :  { %v147_v56 = vld [vmem:[#allocation5 + $0xb0] sm:$0xff]  ;;  %v531_v57 = vsub.f32 %v402_v45, %v467_v46  ;;  %v594_v58 = vand.u32 2147483647, %v530_v42  ;;  %v657_v59 = vadd.f32 %v656_v44, %v593_v43  ;;  %v403_v60 = vld [vmem:[#allocation2 + $0x298] sm:$0xff]  ;;  %v848_v62 = vsub.f32 %v719_v53, %v784_v54  ;;  %v785_v5 = vld [vmem:[#allocation5 + $0x460] sm:$0xff] }
  0x36   :  { %v336_v52 = vadd.f32 %v335_v37, %v272_v36  ;;  %v468_v61 = vld [vmem:[#allocation5 + $0x298] sm:$0xff]  ;;  %v911_v63 = vand.u32 2147483647, %v847_v47  ;;  %v974_v0 = vadd.f32 %v973_v49, %v910_v48  ;;  %v211_v1 = vsub.f32 %v83_v55, %v147_v56  ;;  %v404_v11 = vld [vmem:[#allocation2 + $0x2a0] sm:$0xff]  ;;  %v721_v19 = vld [vmem:[#allocation2 + $0x468] sm:$0xff] }
  0x37   :  { %v274_v2 = vand.u32 2147483647, %v210_v50  ;;  %v84_v6 = vld [vmem:[#allocation2 + $0xb8] sm:$0xff]  ;;  %v532_v8 = vsub.f32 %v403_v60, %v468_v61  ;;  %v595_v9 = vand.u32 2147483647, %v531_v57  ;;  %v658_v10 = vadd.f32 %v657_v59, %v594_v58  ;;  %v469_v12 = vld [vmem:[#allocation5 + $0x2a0] sm:$0xff] }
  0x38   :  { %v337_v3 = vadd.f32 %v336_v52, %v273_v51  ;;  %v148_v7 = vld [vmem:[#allocation5 + $0xb8] sm:$0xff]  ;;  %v849_v13 = vsub.f32 %v720_v4, %v785_v5  ;;  %v912_v14 = vand.u32 2147483647, %v848_v62  ;;  %v975_v15 = vadd.f32 %v974_v0, %v911_v63  ;;  %v786_v20 = vld [vmem:[#allocation5 + $0x468] sm:$0xff]  ;;  %v85_v21 = vld [vmem:[#allocation2 + $0xc0] sm:$0xff] }
  0x39   :  { %v212_v16 = vsub.f32 %v84_v6, %v148_v7  ;;  %v275_v17 = vand.u32 2147483647, %v211_v1  ;;  %v149_v22 = vld [vmem:[#allocation5 + $0xc0] sm:$0xff]  ;;  %v533_v23 = vsub.f32 %v404_v11, %v469_v12  ;;  %v596_v24 = vand.u32 2147483647, %v532_v8  ;;  %v405_v26 = vld [vmem:[#allocation2 + $0x2a8] sm:$0xff] }
  0x3a   :  { %v338_v18 = vadd.f32 %v337_v3, %v274_v2  ;;  %v659_v25 = vadd.f32 %v658_v10, %v595_v9  ;;  %v470_v27 = vld [vmem:[#allocation5 + $0x2a8] sm:$0xff]  ;;  %v850_v28 = vsub.f32 %v721_v19, %v786_v20  ;;  %v913_v29 = vand.u32 2147483647, %v849_v13  ;;  %v722_v34 = vld [vmem:[#allocation2 + $0x470] sm:$0xff]  ;;  %v723_v49 = vld [vmem:[#allocation2 + $0x478] sm:$0xff] }
  0x3b   :  { %v976_v30 = vadd.f32 %v975_v15, %v912_v14  ;;  %v213_v31 = vsub.f32 %v85_v21, %v149_v22  ;;  %v276_v32 = vand.u32 2147483647, %v212_v16  ;;  %v787_v35 = vld [vmem:[#allocation5 + $0x470] sm:$0xff]  ;;  %v86_v36 = vld [vmem:[#allocation2 + $0xc8] sm:$0xff]  ;;  %v534_v38 = vsub.f32 %v405_v26, %v470_v27  ;;  %v788_v50 = vld [vmem:[#allocation5 + $0x478] sm:$0xff] }
  0x3c   :  { %v339_v33 = vadd.f32 %v338_v18, %v275_v17  ;;  %v150_v37 = vld [vmem:[#allocation5 + $0xc8] sm:$0xff]  ;;  %v597_v39 = vand.u32 2147483647, %v533_v23  ;;  %v660_v40 = vadd.f32 %v659_v25, %v596_v24  ;;  %v406_v41 = vld [vmem:[#allocation2 + $0x2b0] sm:$0xff]  ;;  %v851_v43 = vsub.f32 %v722_v34, %v787_v35  ;;  %v407_v56 = vld [vmem:[#allocation2 + $0x2b8] sm:$0xff] }
  0x3d   :  { %v471_v42 = vld [vmem:[#allocation5 + $0x2b0] sm:$0xff]  ;;  %v914_v44 = vand.u32 2147483647, %v850_v28  ;;  %v977_v45 = vadd.f32 %v976_v30, %v913_v29  ;;  %v214_v46 = vsub.f32 %v86_v36, %v150_v37  ;;  %v277_v47 = vand.u32 2147483647, %v213_v31  ;;  %v472_v57 = vld [vmem:[#allocation5 + $0x2b8] sm:$0xff] }
  0x3e   :  { %v340_v48 = vadd.f32 %v339_v33, %v276_v32  ;;  %v87_v51 = vld [vmem:[#allocation2 + $0xd0] sm:$0xff]  ;;  %v535_v53 = vsub.f32 %v406_v41, %v471_v42  ;;  %v598_v54 = vand.u32 2147483647, %v534_v38  ;;  %v661_v55 = vadd.f32 %v660_v40, %v597_v39  ;;  %v724_v0 = vld [vmem:[#allocation2 + $0x480] sm:$0xff]  ;;  %v88_v2 = vld [vmem:[#allocation2 + $0xd8] sm:$0xff] }
  0x3f   :  { %v151_v52 = vld [vmem:[#allocation5 + $0xd0] sm:$0xff]  ;;  %v852_v58 = vsub.f32 %v723_v49, %v788_v50  ;;  %v915_v59 = vand.u32 2147483647, %v851_v43  ;;  %v978_v60 = vadd.f32 %v977_v45, %v914_v44  ;;  %v278_v62 = vand.u32 2147483647, %v214_v46  ;;  %v789_v1 = vld [vmem:[#allocation5 + $0x480] sm:$0xff] }
  0x40   :  { %v215_v61 = vsub.f32 %v87_v51, %v151_v52  ;;  %v341_v63 = vadd.f32 %v340_v48, %v277_v47  ;;  %v152_v3 = vld [vmem:[#allocation5 + $0xd8] sm:$0xff]  ;;  %v536_v4 = vsub.f32 %v407_v56, %v472_v57  ;;  %v599_v5 = vand.u32 2147483647, %v535_v53  ;;  %v408_v7 = vld [vmem:[#allocation2 + $0x2c0] sm:$0xff]  ;;  %v725_v15 = vld [vmem:[#allocation2 + $0x488] sm:$0xff] }
  0x41   :  { %v662_v6 = vadd.f32 %v661_v55, %v598_v54  ;;  %v473_v8 = vld [vmem:[#allocation5 + $0x2c0] sm:$0xff]  ;;  %v853_v9 = vsub.f32 %v724_v0, %v789_v1  ;;  %v916_v10 = vand.u32 2147483647, %v852_v58  ;;  %v979_v11 = vadd.f32 %v978_v60, %v915_v59  ;;  %v790_v16 = vld [vmem:[#allocation5 + $0x488] sm:$0xff]  ;;  %v726_v30 = vld [vmem:[#allocation2 + $0x490] sm:$0xff] }
  0x42   :  { %v216_v12 = vsub.f32 %v88_v2, %v152_v3  ;;  %v279_v13 = vand.u32 2147483647, %v215_v61  ;;  %v342_v14 = vadd.f32 %v341_v63, %v278_v62  ;;  %v89_v17 = vld [vmem:[#allocation2 + $0xe0] sm:$0xff]  ;;  %v537_v19 = vsub.f32 %v408_v7, %v473_v8  ;;  %v409_v22 = vld [vmem:[#allocation2 + $0x2c8] sm:$0xff]  ;;  %v791_v31 = vld [vmem:[#allocation5 + $0x490] sm:$0xff] }
  0x43   :  { %v153_v18 = vld [vmem:[#allocation5 + $0xe0] sm:$0xff]  ;;  %v600_v20 = vand.u32 2147483647, %v536_v4  ;;  %v663_v21 = vadd.f32 %v662_v6, %v599_v5  ;;  %v474_v23 = vld [vmem:[#allocation5 + $0x2c8] sm:$0xff]  ;;  %v854_v24 = vsub.f32 %v725_v15, %v790_v16  ;;  %v917_v25 = vand.u32 2147483647, %v853_v9 }
  0x44   :  { %v980_v26 = vadd.f32 %v979_v11, %v916_v10  ;;  %v217_v27 = vsub.f32 %v89_v17, %v153_v18  ;;  %v280_v28 = vand.u32 2147483647, %v216_v12  ;;  %v343_v29 = vadd.f32 %v342_v14, %v279_v13  ;;  %v90_v32 = vld [vmem:[#allocation2 + $0xe8] sm:$0xff]  ;;  %v410_v37 = vld [vmem:[#allocation2 + $0x2d0] sm:$0xff]  ;;  %v727_v45 = vld [vmem:[#allocation2 + $0x498] sm:$0xff] }
  0x45   :  { %v154_v33 = vld [vmem:[#allocation5 + $0xe8] sm:$0xff]  ;;  %v538_v34 = vsub.f32 %v409_v22, %v474_v23  ;;  %v601_v35 = vand.u32 2147483647, %v537_v19  ;;  %v664_v36 = vadd.f32 %v663_v21, %v600_v20  ;;  %v475_v38 = vld [vmem:[#allocation5 + $0x2d0] sm:$0xff]  ;;  %v855_v39 = vsub.f32 %v726_v30, %v791_v31  ;;  %v792_v46 = vld [vmem:[#allocation5 + $0x498] sm:$0xff] }
  0x46   :  { %v918_v40 = vand.u32 2147483647, %v854_v24  ;;  %v981_v41 = vadd.f32 %v980_v26, %v917_v25  ;;  %v218_v42 = vsub.f32 %v90_v32, %v154_v33  ;;  %v281_v43 = vand.u32 2147483647, %v217_v27  ;;  %v91_v47 = vld [vmem:[#allocation2 + $0xf0] sm:$0xff]  ;;  %v411_v52 = vld [vmem:[#allocation2 + $0x2d8] sm:$0xff] }
  0x47   :  { %v344_v44 = vadd.f32 %v343_v29, %v280_v28  ;;  %v155_v48 = vld [vmem:[#allocation5 + $0xf0] sm:$0xff]  ;;  %v539_v49 = vsub.f32 %v410_v37, %v475_v38  ;;  %v602_v50 = vand.u32 2147483647, %v538_v34  ;;  %v665_v51 = vadd.f32 %v664_v36, %v601_v35  ;;  %v476_v53 = vld [vmem:[#allocation5 + $0x2d8] sm:$0xff]  ;;  %v728_v60 = vld [vmem:[#allocation2 + $0x4a0] sm:$0xff] }
  0x48   :  { %v856_v54 = vsub.f32 %v727_v45, %v792_v46  ;;  %v919_v55 = vand.u32 2147483647, %v855_v39  ;;  %v982_v56 = vadd.f32 %v981_v41, %v918_v40  ;;  %v219_v57 = vsub.f32 %v91_v47, %v155_v48  ;;  %v793_v61 = vld [vmem:[#allocation5 + $0x4a0] sm:$0xff]  ;;  %v92_v62 = vld [vmem:[#allocation2 + $0xf8] sm:$0xff]  ;;  %v729_v11 = vld [vmem:[#allocation2 + $0x4a8] sm:$0xff] }
  0x49   :  { %v282_v58 = vand.u32 2147483647, %v218_v42  ;;  %v345_v59 = vadd.f32 %v344_v44, %v281_v43  ;;  %v156_v63 = vld [vmem:[#allocation5 + $0xf8] sm:$0xff]  ;;  %v540_v0 = vsub.f32 %v411_v52, %v476_v53  ;;  %v603_v1 = vand.u32 2147483647, %v539_v49  ;;  %v412_v3 = vld [vmem:[#allocation2 + $0x2e0] sm:$0xff] }
  0x4a   :  { %v666_v2 = vadd.f32 %v665_v51, %v602_v50  ;;  %v477_v4 = vld [vmem:[#allocation5 + $0x2e0] sm:$0xff]  ;;  %v857_v5 = vsub.f32 %v728_v60, %v793_v61  ;;  %v920_v6 = vand.u32 2147483647, %v856_v54  ;;  %v983_v7 = vadd.f32 %v982_v56, %v919_v55  ;;  %v794_v12 = vld [vmem:[#allocation5 + $0x4a8] sm:$0xff]  ;;  %v730_v26 = vld [vmem:[#allocation2 + $0x4b0] sm:$0xff] }
  0x4b   :  { %v220_v8 = vsub.f32 %v92_v62, %v156_v63  ;;  %v283_v9 = vand.u32 2147483647, %v219_v57  ;;  %v346_v10 = vadd.f32 %v345_v59, %v282_v58  ;;  %v93_v13 = vld [vmem:[#allocation2 + $0x100] sm:$0xff]  ;;  %v541_v15 = vsub.f32 %v412_v3, %v477_v4  ;;  %v413_v18 = vld [vmem:[#allocation2 + $0x2e8] sm:$0xff]  ;;  %v795_v27 = vld [vmem:[#allocation5 + $0x4b0] sm:$0xff] }
  0x4c   :  { %v157_v14 = vld [vmem:[#allocation5 + $0x100] sm:$0xff]  ;;  %v604_v16 = vand.u32 2147483647, %v540_v0  ;;  %v667_v17 = vadd.f32 %v666_v2, %v603_v1  ;;  %v478_v19 = vld [vmem:[#allocation5 + $0x2e8] sm:$0xff]  ;;  %v858_v20 = vsub.f32 %v729_v11, %v794_v12  ;;  %v921_v21 = vand.u32 2147483647, %v857_v5 }
  0x4d   :  { %v984_v22 = vadd.f32 %v983_v7, %v920_v6  ;;  %v221_v23 = vsub.f32 %v93_v13, %v157_v14  ;;  %v284_v24 = vand.u32 2147483647, %v220_v8  ;;  %v347_v25 = vadd.f32 %v346_v10, %v283_v9  ;;  %v94_v28 = vld [vmem:[#allocation2 + $0x108] sm:$0xff]  ;;  %v414_v33 = vld [vmem:[#allocation2 + $0x2f0] sm:$0xff]  ;;  %v731_v41 = vld [vmem:[#allocation2 + $0x4b8] sm:$0xff] }
  0x4e   :  { %v158_v29 = vld [vmem:[#allocation5 + $0x108] sm:$0xff]  ;;  %v542_v30 = vsub.f32 %v413_v18, %v478_v19  ;;  %v605_v31 = vand.u32 2147483647, %v541_v15  ;;  %v668_v32 = vadd.f32 %v667_v17, %v604_v16  ;;  %v479_v34 = vld [vmem:[#allocation5 + $0x2f0] sm:$0xff]  ;;  %v859_v35 = vsub.f32 %v730_v26, %v795_v27  ;;  %v796_v42 = vld [vmem:[#allocation5 + $0x4b8] sm:$0xff] }
  0x4f   :  { %v922_v36 = vand.u32 2147483647, %v858_v20  ;;  %v985_v37 = vadd.f32 %v984_v22, %v921_v21  ;;  %v222_v38 = vsub.f32 %v94_v28, %v158_v29  ;;  %v285_v39 = vand.u32 2147483647, %v221_v23  ;;  %v95_v43 = vld [vmem:[#allocation2 + $0x110] sm:$0xff]  ;;  %v415_v48 = vld [vmem:[#allocation2 + $0x2f8] sm:$0xff] }
  0x50   :  { %v348_v40 = vadd.f32 %v347_v25, %v284_v24  ;;  %v159_v44 = vld [vmem:[#allocation5 + $0x110] sm:$0xff]  ;;  %v543_v45 = vsub.f32 %v414_v33, %v479_v34  ;;  %v606_v46 = vand.u32 2147483647, %v542_v30  ;;  %v669_v47 = vadd.f32 %v668_v32, %v605_v31  ;;  %v480_v49 = vld [vmem:[#allocation5 + $0x2f8] sm:$0xff]  ;;  %v1032_v50 = vld [vmem:[#allocation2 + $0x600] sm:$0xff] }
  0x51   :  { %v860_v51 = vsub.f32 %v731_v41, %v796_v42  ;;  %v923_v52 = vand.u32 2147483647, %v859_v35  ;;  %v986_v53 = vadd.f32 %v985_v37, %v922_v36  ;;  %v1033_v54 = vld [vmem:[#allocation2 + $0x608] sm:$0xff]  ;;  %v1097_v55 = vld [vmem:[#allocation5 + $0x600] sm:$0xff]  ;;  %v223_v57 = vsub.f32 %v95_v43, %v159_v44  ;;  %v96_v62 = vld [vmem:[#allocation2 + $0x118] sm:$0xff] }
  0x52   :  { %v1098_v56 = vld [vmem:[#allocation5 + $0x608] sm:$0xff]  ;;  %v286_v58 = vand.u32 2147483647, %v222_v38  ;;  %v349_v59 = vadd.f32 %v348_v40, %v285_v39  ;;  %v732_v60 = vld [vmem:[#allocation2 + $0x4c0] sm:$0xff]  ;;  %v160_v63 = vld [vmem:[#allocation5 + $0x118] sm:$0xff]  ;;  %v544_v0 = vsub.f32 %v415_v48, %v480_v49  ;;  %v670_v2 = vadd.f32 %v669_v47, %v606_v46 }
  0x53   :  { %v797_v61 = vld [vmem:[#allocation5 + $0x4c0] sm:$0xff]  ;;  %v607_v1 = vand.u32 2147483647, %v543_v45  ;;  %v1161_v5 = vsub.f32 %v1032_v50, %v1097_v55  ;;  %v1162_v6 = vsub.f32 %v1033_v54, %v1098_v56  ;;  %v924_v8 = vand.u32 2147483647, %v860_v51  ;;  %v1034_v10 = vld [vmem:[#allocation2 + $0x610] sm:$0xff] }
  0x54   :  { %v416_v3 = vld [vmem:[#allocation2 + $0x300] sm:$0xff]  ;;  %v861_v7 = vsub.f32 %v732_v60, %v797_v61  ;;  %v987_v9 = vadd.f32 %v986_v53, %v923_v52  ;;  %v1099_v11 = vld [vmem:[#allocation5 + $0x610] sm:$0xff]  ;;  %v224_v12 = vsub.f32 %v96_v62, %v160_v63  ;;  %v287_v13 = vand.u32 2147483647, %v223_v57  ;;  %v733_v15 = vld [vmem:[#allocation2 + $0x4c8] sm:$0xff] }
  0x55   :  { %v481_v4 = vld [vmem:[#allocation5 + $0x300] sm:$0xff]  ;;  %v350_v14 = vadd.f32 %v349_v59, %v286_v58  ;;  %v798_v16 = vld [vmem:[#allocation5 + $0x4c8] sm:$0xff]  ;;  %v608_v20 = vand.u32 2147483647, %v544_v0  ;;  %v671_v21 = vadd.f32 %v670_v2, %v607_v1  ;;  %v1163_v24 = vsub.f32 %v1034_v10, %v1099_v11  ;;  %v1035_v30 = vld [vmem:[#allocation2 + $0x618] sm:$0xff] }
  0x56   :  { %v97_v17 = vld [vmem:[#allocation2 + $0x120] sm:$0xff]  ;;  %v545_v19 = vsub.f32 %v416_v3, %v481_v4  ;;  %v417_v22 = vld [vmem:[#allocation2 + $0x308] sm:$0xff]  ;;  %v1225_v25 = vand.u32 2147483647, %v1161_v5  ;;  %v1226_v26 = vand.u32 2147483647, %v1162_v6  ;;  %v862_v27 = vsub.f32 %v733_v15, %v798_v16 }
  0x57   :  { %v161_v18 = vld [vmem:[#allocation5 + $0x120] sm:$0xff]  ;;  %v482_v23 = vld [vmem:[#allocation5 + $0x308] sm:$0xff]  ;;  %v925_v28 = vand.u32 2147483647, %v861_v7  ;;  %v988_v29 = vadd.f32 %v987_v9, %v924_v8  ;;  %v1100_v31 = vld [vmem:[#allocation5 + $0x618] sm:$0xff]  ;;  %v351_v34 = vadd.f32 %v350_v14, %v287_v13  ;;  %v672_v41 = vadd.f32 %v671_v21, %v608_v20 }
  0x58   :  { %v225_v32 = vsub.f32 %v97_v17, %v161_v18  ;;  %v288_v33 = vand.u32 2147483647, %v224_v12  ;;  %v734_v35 = vld [vmem:[#allocation2 + $0x4d0] sm:$0xff]  ;;  %v98_v37 = vld [vmem:[#allocation2 + $0x128] sm:$0xff]  ;;  %v546_v39 = vsub.f32 %v417_v22, %v482_v23  ;;  %v609_v40 = vand.u32 2147483647, %v545_v19 }
  0x59   :  { %v799_v36 = vld [vmem:[#allocation5 + $0x4d0] sm:$0xff]  ;;  %v162_v38 = vld [vmem:[#allocation5 + $0x128] sm:$0xff]  ;;  %v1164_v44 = vsub.f32 %v1035_v30, %v1100_v31  ;;  %v1227_v45 = vand.u32 2147483647, %v1163_v24  ;;  %v1290_v46 = vadd.f32 %v1226_v26, %v1225_v25  ;;  %v926_v48 = vand.u32 2147483647, %v862_v27 }
  0x5a   :  { %v418_v42 = vld [vmem:[#allocation2 + $0x310] sm:$0xff]  ;;  %v863_v47 = vsub.f32 %v734_v35, %v799_v36  ;;  %v989_v49 = vadd.f32 %v988_v29, %v925_v28  ;;  %v1036_v50 = vld [vmem:[#allocation2 + $0x620] sm:$0xff]  ;;  %v226_v52 = vsub.f32 %v98_v37, %v162_v38  ;;  %v289_v53 = vand.u32 2147483647, %v225_v32  ;;  %v735_v55 = vld [vmem:[#allocation2 + $0x4d8] sm:$0xff] }
  0x5b   :  { %v483_v43 = vld [vmem:[#allocation5 + $0x310] sm:$0xff]  ;;  %v1101_v51 = vld [vmem:[#allocation5 + $0x620] sm:$0xff]  ;;  %v352_v54 = vadd.f32 %v351_v34, %v288_v33  ;;  %v800_v56 = vld [vmem:[#allocation5 + $0x4d8] sm:$0xff]  ;;  %v610_v60 = vand.u32 2147483647, %v546_v39  ;;  %v673_v61 = vadd.f32 %v672_v41, %v609_v40  ;;  %v1291_v2 = vadd.f32 %v1290_v46, %v1227_v45 }
  0x5c   :  { %v99_v57 = vld [vmem:[#allocation2 + $0x130] sm:$0xff]  ;;  %v547_v59 = vsub.f32 %v418_v42, %v483_v43  ;;  %v419_v62 = vld [vmem:[#allocation2 + $0x318] sm:$0xff]  ;;  %v1165_v0 = vsub.f32 %v1036_v50, %v1101_v51  ;;  %v1228_v1 = vand.u32 2147483647, %v1164_v44  ;;  %v864_v3 = vsub.f32 %v735_v55, %v800_v56  ;;  %v1037_v6 = vld [vmem:[#allocation2 + $0x628] sm:$0xff] }
  0x5d   :  { %v163_v58 = vld [vmem:[#allocation5 + $0x130] sm:$0xff]  ;;  %v484_v63 = vld [vmem:[#allocation5 + $0x318] sm:$0xff]  ;;  %v927_v4 = vand.u32 2147483647, %v863_v47  ;;  %v990_v5 = vadd.f32 %v989_v49, %v926_v48  ;;  %v1102_v7 = vld [vmem:[#allocation5 + $0x628] sm:$0xff]  ;;  %v353_v10 = vadd.f32 %v352_v54, %v289_v53  ;;  %v674_v17 = vadd.f32 %v673_v61, %v610_v60 }
  0x5e   :  { %v227_v8 = vsub.f32 %v99_v57, %v163_v58  ;;  %v290_v9 = vand.u32 2147483647, %v226_v52  ;;  %v736_v11 = vld [vmem:[#allocation2 + $0x4e0] sm:$0xff]  ;;  %v100_v13 = vld [vmem:[#allocation2 + $0x138] sm:$0xff]  ;;  %v548_v15 = vsub.f32 %v419_v62, %v484_v63  ;;  %v611_v16 = vand.u32 2147483647, %v547_v59 }
  0x5f   :  { %v801_v12 = vld [vmem:[#allocation5 + $0x4e0] sm:$0xff]  ;;  %v164_v14 = vld [vmem:[#allocation5 + $0x138] sm:$0xff]  ;;  %v1166_v20 = vsub.f32 %v1037_v6, %v1102_v7  ;;  %v1229_v21 = vand.u32 2147483647, %v1165_v0  ;;  %v1292_v22 = vadd.f32 %v1291_v2, %v1228_v1  ;;  %v928_v24 = vand.u32 2147483647, %v864_v3 }
  0x60   :  { %v420_v18 = vld [vmem:[#allocation2 + $0x320] sm:$0xff]  ;;  %v865_v23 = vsub.f32 %v736_v11, %v801_v12  ;;  %v991_v25 = vadd.f32 %v990_v5, %v927_v4  ;;  %v1038_v26 = vld [vmem:[#allocation2 + $0x630] sm:$0xff]  ;;  %v228_v28 = vsub.f32 %v100_v13, %v164_v14  ;;  %v291_v29 = vand.u32 2147483647, %v227_v8  ;;  %v737_v31 = vld [vmem:[#allocation2 + $0x4e8] sm:$0xff] }
  0x61   :  { %v485_v19 = vld [vmem:[#allocation5 + $0x320] sm:$0xff]  ;;  %v1103_v27 = vld [vmem:[#allocation5 + $0x630] sm:$0xff]  ;;  %v354_v30 = vadd.f32 %v353_v10, %v290_v9  ;;  %v802_v32 = vld [vmem:[#allocation5 + $0x4e8] sm:$0xff]  ;;  %v612_v36 = vand.u32 2147483647, %v548_v15  ;;  %v675_v37 = vadd.f32 %v674_v17, %v611_v16  ;;  %v1293_v42 = vadd.f32 %v1292_v22, %v1229_v21 }
  0x62   :  { %v101_v33 = vld [vmem:[#allocation2 + $0x140] sm:$0xff]  ;;  %v549_v35 = vsub.f32 %v420_v18, %v485_v19  ;;  %v421_v38 = vld [vmem:[#allocation2 + $0x328] sm:$0xff]  ;;  %v1167_v40 = vsub.f32 %v1038_v26, %v1103_v27  ;;  %v1230_v41 = vand.u32 2147483647, %v1166_v20  ;;  %v866_v43 = vsub.f32 %v737_v31, %v802_v32  ;;  %v1039_v46 = vld [vmem:[#allocation2 + $0x638] sm:$0xff] }
  0x63   :  { %v165_v34 = vld [vmem:[#allocation5 + $0x140] sm:$0xff]  ;;  %v486_v39 = vld [vmem:[#allocation5 + $0x328] sm:$0xff]  ;;  %v929_v44 = vand.u32 2147483647, %v865_v23  ;;  %v992_v45 = vadd.f32 %v991_v25, %v928_v24  ;;  %v1104_v47 = vld [vmem:[#allocation5 + $0x638] sm:$0xff]  ;;  %v355_v50 = vadd.f32 %v354_v30, %v291_v29  ;;  %v676_v57 = vadd.f32 %v675_v37, %v612_v36 }
  0x64   :  { %v229_v48 = vsub.f32 %v101_v33, %v165_v34  ;;  %v292_v49 = vand.u32 2147483647, %v228_v28  ;;  %v738_v51 = vld [vmem:[#allocation2 + $0x4f0] sm:$0xff]  ;;  %v102_v53 = vld [vmem:[#allocation2 + $0x148] sm:$0xff]  ;;  %v550_v55 = vsub.f32 %v421_v38, %v486_v39  ;;  %v613_v56 = vand.u32 2147483647, %v549_v35 }
  0x65   :  { %v803_v52 = vld [vmem:[#allocation5 + $0x4f0] sm:$0xff]  ;;  %v166_v54 = vld [vmem:[#allocation5 + $0x148] sm:$0xff]  ;;  %v1168_v60 = vsub.f32 %v1039_v46, %v1104_v47  ;;  %v1231_v61 = vand.u32 2147483647, %v1167_v40  ;;  %v1294_v62 = vadd.f32 %v1293_v42, %v1230_v41  ;;  %v930_v0 = vand.u32 2147483647, %v866_v43 }
  0x66   :  { %v422_v58 = vld [vmem:[#allocation2 + $0x330] sm:$0xff]  ;;  %v867_v63 = vsub.f32 %v738_v51, %v803_v52  ;;  %v993_v1 = vadd.f32 %v992_v45, %v929_v44  ;;  %v1040_v2 = vld [vmem:[#allocation2 + $0x640] sm:$0xff]  ;;  %v230_v4 = vsub.f32 %v102_v53, %v166_v54  ;;  %v293_v5 = vand.u32 2147483647, %v229_v48  ;;  %v739_v7 = vld [vmem:[#allocation2 + $0x4f8] sm:$0xff] }
  0x67   :  { %v487_v59 = vld [vmem:[#allocation5 + $0x330] sm:$0xff]  ;;  %v1105_v3 = vld [vmem:[#allocation5 + $0x640] sm:$0xff]  ;;  %v356_v6 = vadd.f32 %v355_v50, %v292_v49  ;;  %v804_v8 = vld [vmem:[#allocation5 + $0x4f8] sm:$0xff]  ;;  %v614_v12 = vand.u32 2147483647, %v550_v55  ;;  %v677_v13 = vadd.f32 %v676_v57, %v613_v56  ;;  %v1295_v18 = vadd.f32 %v1294_v62, %v1231_v61 }
  0x68   :  { %v103_v9 = vld [vmem:[#allocation2 + $0x150] sm:$0xff]  ;;  %v551_v11 = vsub.f32 %v422_v58, %v487_v59  ;;  %v423_v14 = vld [vmem:[#allocation2 + $0x338] sm:$0xff]  ;;  %v1169_v16 = vsub.f32 %v1040_v2, %v1105_v3  ;;  %v1232_v17 = vand.u32 2147483647, %v1168_v60  ;;  %v868_v19 = vsub.f32 %v739_v7, %v804_v8  ;;  %v1041_v22 = vld [vmem:[#allocation2 + $0x648] sm:$0xff] }
  0x69   :  { %v167_v10 = vld [vmem:[#allocation5 + $0x150] sm:$0xff]  ;;  %v488_v15 = vld [vmem:[#allocation5 + $0x338] sm:$0xff]  ;;  %v931_v20 = vand.u32 2147483647, %v867_v63  ;;  %v994_v21 = vadd.f32 %v993_v1, %v930_v0  ;;  %v1106_v23 = vld [vmem:[#allocation5 + $0x648] sm:$0xff]  ;;  %v357_v26 = vadd.f32 %v356_v6, %v293_v5  ;;  %v678_v33 = vadd.f32 %v677_v13, %v614_v12 }
  0x6a   :  { %v231_v24 = vsub.f32 %v103_v9, %v167_v10  ;;  %v294_v25 = vand.u32 2147483647, %v230_v4  ;;  %v740_v27 = vld [vmem:[#allocation2 + $0x500] sm:$0xff]  ;;  %v104_v29 = vld [vmem:[#allocation2 + $0x158] sm:$0xff]  ;;  %v552_v31 = vsub.f32 %v423_v14, %v488_v15  ;;  %v615_v32 = vand.u32 2147483647, %v551_v11 }
  0x6b   :  { %v805_v28 = vld [vmem:[#allocation5 + $0x500] sm:$0xff]  ;;  %v168_v30 = vld [vmem:[#allocation5 + $0x158] sm:$0xff]  ;;  %v1170_v36 = vsub.f32 %v1041_v22, %v1106_v23  ;;  %v1233_v37 = vand.u32 2147483647, %v1169_v16  ;;  %v1296_v38 = vadd.f32 %v1295_v18, %v1232_v17  ;;  %v932_v40 = vand.u32 2147483647, %v868_v19 }
  0x6c   :  { %v424_v34 = vld [vmem:[#allocation2 + $0x340] sm:$0xff]  ;;  %v869_v39 = vsub.f32 %v740_v27, %v805_v28  ;;  %v995_v41 = vadd.f32 %v994_v21, %v931_v20  ;;  %v1042_v42 = vld [vmem:[#allocation2 + $0x650] sm:$0xff]  ;;  %v232_v44 = vsub.f32 %v104_v29, %v168_v30  ;;  %v295_v45 = vand.u32 2147483647, %v231_v24  ;;  %v741_v47 = vld [vmem:[#allocation2 + $0x508] sm:$0xff] }
  0x6d   :  { %v489_v35 = vld [vmem:[#allocation5 + $0x340] sm:$0xff]  ;;  %v1107_v43 = vld [vmem:[#allocation5 + $0x650] sm:$0xff]  ;;  %v358_v46 = vadd.f32 %v357_v26, %v294_v25  ;;  %v806_v48 = vld [vmem:[#allocation5 + $0x508] sm:$0xff]  ;;  %v616_v52 = vand.u32 2147483647, %v552_v31  ;;  %v679_v53 = vadd.f32 %v678_v33, %v615_v32  ;;  %v1297_v58 = vadd.f32 %v1296_v38, %v1233_v37 }
  0x6e   :  { %v105_v49 = vld [vmem:[#allocation2 + $0x160] sm:$0xff]  ;;  %v553_v51 = vsub.f32 %v424_v34, %v489_v35  ;;  %v425_v54 = vld [vmem:[#allocation2 + $0x348] sm:$0xff]  ;;  %v1171_v56 = vsub.f32 %v1042_v42, %v1107_v43  ;;  %v1234_v57 = vand.u32 2147483647, %v1170_v36  ;;  %v870_v59 = vsub.f32 %v741_v47, %v806_v48  ;;  %v1043_v62 = vld [vmem:[#allocation2 + $0x658] sm:$0xff] }
  0x6f   :  { %v169_v50 = vld [vmem:[#allocation5 + $0x160] sm:$0xff]  ;;  %v490_v55 = vld [vmem:[#allocation5 + $0x348] sm:$0xff]  ;;  %v933_v60 = vand.u32 2147483647, %v869_v39  ;;  %v996_v61 = vadd.f32 %v995_v41, %v932_v40  ;;  %v1108_v63 = vld [vmem:[#allocation5 + $0x658] sm:$0xff]  ;;  %v359_v2 = vadd.f32 %v358_v46, %v295_v45  ;;  %v680_v9 = vadd.f32 %v679_v53, %v616_v52 }
  0x70   :  { %v233_v0 = vsub.f32 %v105_v49, %v169_v50  ;;  %v296_v1 = vand.u32 2147483647, %v232_v44  ;;  %v742_v3 = vld [vmem:[#allocation2 + $0x510] sm:$0xff]  ;;  %v106_v5 = vld [vmem:[#allocation2 + $0x168] sm:$0xff]  ;;  %v554_v7 = vsub.f32 %v425_v54, %v490_v55  ;;  %v617_v8 = vand.u32 2147483647, %v553_v51 }
  0x71   :  { %v807_v4 = vld [vmem:[#allocation5 + $0x510] sm:$0xff]  ;;  %v170_v6 = vld [vmem:[#allocation5 + $0x168] sm:$0xff]  ;;  %v1172_v12 = vsub.f32 %v1043_v62, %v1108_v63  ;;  %v1235_v13 = vand.u32 2147483647, %v1171_v56  ;;  %v1298_v14 = vadd.f32 %v1297_v58, %v1234_v57  ;;  %v934_v16 = vand.u32 2147483647, %v870_v59 }
  0x72   :  { %v426_v10 = vld [vmem:[#allocation2 + $0x350] sm:$0xff]  ;;  %v871_v15 = vsub.f32 %v742_v3, %v807_v4  ;;  %v997_v17 = vadd.f32 %v996_v61, %v933_v60  ;;  %v1044_v18 = vld [vmem:[#allocation2 + $0x660] sm:$0xff]  ;;  %v234_v20 = vsub.f32 %v106_v5, %v170_v6  ;;  %v297_v21 = vand.u32 2147483647, %v233_v0  ;;  %v743_v23 = vld [vmem:[#allocation2 + $0x518] sm:$0xff] }
  0x73   :  { %v491_v11 = vld [vmem:[#allocation5 + $0x350] sm:$0xff]  ;;  %v1109_v19 = vld [vmem:[#allocation5 + $0x660] sm:$0xff]  ;;  %v360_v22 = vadd.f32 %v359_v2, %v296_v1  ;;  %v808_v24 = vld [vmem:[#allocation5 + $0x518] sm:$0xff]  ;;  %v618_v28 = vand.u32 2147483647, %v554_v7  ;;  %v681_v29 = vadd.f32 %v680_v9, %v617_v8  ;;  %v1299_v34 = vadd.f32 %v1298_v14, %v1235_v13 }
  0x74   :  { %v107_v25 = vld [vmem:[#allocation2 + $0x170] sm:$0xff]  ;;  %v555_v27 = vsub.f32 %v426_v10, %v491_v11  ;;  %v427_v30 = vld [vmem:[#allocation2 + $0x358] sm:$0xff]  ;;  %v1173_v32 = vsub.f32 %v1044_v18, %v1109_v19  ;;  %v1236_v33 = vand.u32 2147483647, %v1172_v12  ;;  %v872_v35 = vsub.f32 %v743_v23, %v808_v24  ;;  %v1045_v38 = vld [vmem:[#allocation2 + $0x668] sm:$0xff] }
  0x75   :  { %v171_v26 = vld [vmem:[#allocation5 + $0x170] sm:$0xff]  ;;  %v492_v31 = vld [vmem:[#allocation5 + $0x358] sm:$0xff]  ;;  %v935_v36 = vand.u32 2147483647, %v871_v15  ;;  %v998_v37 = vadd.f32 %v997_v17, %v934_v16  ;;  %v1110_v39 = vld [vmem:[#allocation5 + $0x668] sm:$0xff]  ;;  %v361_v42 = vadd.f32 %v360_v22, %v297_v21  ;;  %v682_v49 = vadd.f32 %v681_v29, %v618_v28 }
  0x76   :  { %v235_v40 = vsub.f32 %v107_v25, %v171_v26  ;;  %v298_v41 = vand.u32 2147483647, %v234_v20  ;;  %v744_v43 = vld [vmem:[#allocation2 + $0x520] sm:$0xff]  ;;  %v108_v45 = vld [vmem:[#allocation2 + $0x178] sm:$0xff]  ;;  %v556_v47 = vsub.f32 %v427_v30, %v492_v31  ;;  %v619_v48 = vand.u32 2147483647, %v555_v27 }
  0x77   :  { %v809_v44 = vld [vmem:[#allocation5 + $0x520] sm:$0xff]  ;;  %v172_v46 = vld [vmem:[#allocation5 + $0x178] sm:$0xff]  ;;  %v1174_v52 = vsub.f32 %v1045_v38, %v1110_v39  ;;  %v1237_v53 = vand.u32 2147483647, %v1173_v32  ;;  %v1300_v54 = vadd.f32 %v1299_v34, %v1236_v33  ;;  %v936_v56 = vand.u32 2147483647, %v872_v35 }
  0x78   :  { %v428_v50 = vld [vmem:[#allocation2 + $0x360] sm:$0xff]  ;;  %v873_v55 = vsub.f32 %v744_v43, %v809_v44  ;;  %v999_v57 = vadd.f32 %v998_v37, %v935_v36  ;;  %v1046_v58 = vld [vmem:[#allocation2 + $0x670] sm:$0xff]  ;;  %v236_v60 = vsub.f32 %v108_v45, %v172_v46  ;;  %v299_v61 = vand.u32 2147483647, %v235_v40  ;;  %v745_v63 = vld [vmem:[#allocation2 + $0x528] sm:$0xff] }
  0x79   :  { %v493_v51 = vld [vmem:[#allocation5 + $0x360] sm:$0xff]  ;;  %v1111_v59 = vld [vmem:[#allocation5 + $0x670] sm:$0xff]  ;;  %v362_v62 = vadd.f32 %v361_v42, %v298_v41  ;;  %v810_v0 = vld [vmem:[#allocation5 + $0x528] sm:$0xff]  ;;  %v620_v4 = vand.u32 2147483647, %v556_v47  ;;  %v683_v5 = vadd.f32 %v682_v49, %v619_v48  ;;  %v1301_v10 = vadd.f32 %v1300_v54, %v1237_v53 }
  0x7a   :  { %v109_v1 = vld [vmem:[#allocation2 + $0x180] sm:$0xff]  ;;  %v557_v3 = vsub.f32 %v428_v50, %v493_v51  ;;  %v429_v6 = vld [vmem:[#allocation2 + $0x368] sm:$0xff]  ;;  %v1175_v8 = vsub.f32 %v1046_v58, %v1111_v59  ;;  %v1238_v9 = vand.u32 2147483647, %v1174_v52  ;;  %v874_v11 = vsub.f32 %v745_v63, %v810_v0  ;;  %v1047_v14 = vld [vmem:[#allocation2 + $0x678] sm:$0xff] }
  0x7b   :  { %v173_v2 = vld [vmem:[#allocation5 + $0x180] sm:$0xff]  ;;  %v494_v7 = vld [vmem:[#allocation5 + $0x368] sm:$0xff]  ;;  %v937_v12 = vand.u32 2147483647, %v873_v55  ;;  %v1000_v13 = vadd.f32 %v999_v57, %v936_v56  ;;  %v1112_v15 = vld [vmem:[#allocation5 + $0x678] sm:$0xff]  ;;  %v363_v18 = vadd.f32 %v362_v62, %v299_v61  ;;  %v684_v25 = vadd.f32 %v683_v5, %v620_v4 }
  0x7c   :  { %v237_v16 = vsub.f32 %v109_v1, %v173_v2  ;;  %v300_v17 = vand.u32 2147483647, %v236_v60  ;;  %v746_v19 = vld [vmem:[#allocation2 + $0x530] sm:$0xff]  ;;  %v110_v21 = vld [vmem:[#allocation2 + $0x188] sm:$0xff]  ;;  %v558_v23 = vsub.f32 %v429_v6, %v494_v7  ;;  %v621_v24 = vand.u32 2147483647, %v557_v3 }
  0x7d   :  { %v811_v20 = vld [vmem:[#allocation5 + $0x530] sm:$0xff]  ;;  %v174_v22 = vld [vmem:[#allocation5 + $0x188] sm:$0xff]  ;;  %v1176_v28 = vsub.f32 %v1047_v14, %v1112_v15  ;;  %v1239_v29 = vand.u32 2147483647, %v1175_v8  ;;  %v1302_v30 = vadd.f32 %v1301_v10, %v1238_v9  ;;  %v938_v32 = vand.u32 2147483647, %v874_v11 }
  0x7e   :  { %v430_v26 = vld [vmem:[#allocation2 + $0x370] sm:$0xff]  ;;  %v875_v31 = vsub.f32 %v746_v19, %v811_v20  ;;  %v1001_v33 = vadd.f32 %v1000_v13, %v937_v12  ;;  %v1048_v34 = vld [vmem:[#allocation2 + $0x680] sm:$0xff]  ;;  %v238_v36 = vsub.f32 %v110_v21, %v174_v22  ;;  %v301_v37 = vand.u32 2147483647, %v237_v16  ;;  %v747_v39 = vld [vmem:[#allocation2 + $0x538] sm:$0xff] }
  0x7f   :  { %v495_v27 = vld [vmem:[#allocation5 + $0x370] sm:$0xff]  ;;  %v1113_v35 = vld [vmem:[#allocation5 + $0x680] sm:$0xff]  ;;  %v364_v38 = vadd.f32 %v363_v18, %v300_v17  ;;  %v812_v40 = vld [vmem:[#allocation5 + $0x538] sm:$0xff]  ;;  %v622_v44 = vand.u32 2147483647, %v558_v23  ;;  %v685_v45 = vadd.f32 %v684_v25, %v621_v24  ;;  %v1303_v50 = vadd.f32 %v1302_v30, %v1239_v29 }
  0x80   :  { %v111_v41 = vld [vmem:[#allocation2 + $0x190] sm:$0xff]  ;;  %v559_v43 = vsub.f32 %v430_v26, %v495_v27  ;;  %v431_v46 = vld [vmem:[#allocation2 + $0x378] sm:$0xff]  ;;  %v1177_v48 = vsub.f32 %v1048_v34, %v1113_v35  ;;  %v1240_v49 = vand.u32 2147483647, %v1176_v28  ;;  %v876_v51 = vsub.f32 %v747_v39, %v812_v40  ;;  %v1049_v54 = vld [vmem:[#allocation2 + $0x688] sm:$0xff] }
  0x81   :  { %v175_v42 = vld [vmem:[#allocation5 + $0x190] sm:$0xff]  ;;  %v496_v47 = vld [vmem:[#allocation5 + $0x378] sm:$0xff]  ;;  %v939_v52 = vand.u32 2147483647, %v875_v31  ;;  %v1002_v53 = vadd.f32 %v1001_v33, %v938_v32  ;;  %v1114_v55 = vld [vmem:[#allocation5 + $0x688] sm:$0xff]  ;;  %v365_v58 = vadd.f32 %v364_v38, %v301_v37  ;;  %v686_v1 = vadd.f32 %v685_v45, %v622_v44 }
  0x82   :  { %v239_v56 = vsub.f32 %v111_v41, %v175_v42  ;;  %v302_v57 = vand.u32 2147483647, %v238_v36  ;;  %v748_v59 = vld [vmem:[#allocation2 + $0x540] sm:$0xff]  ;;  %v112_v61 = vld [vmem:[#allocation2 + $0x198] sm:$0xff]  ;;  %v560_v63 = vsub.f32 %v431_v46, %v496_v47  ;;  %v623_v0 = vand.u32 2147483647, %v559_v43 }
  0x83   :  { %v813_v60 = vld [vmem:[#allocation5 + $0x540] sm:$0xff]  ;;  %v176_v62 = vld [vmem:[#allocation5 + $0x198] sm:$0xff]  ;;  %v1178_v4 = vsub.f32 %v1049_v54, %v1114_v55  ;;  %v1241_v5 = vand.u32 2147483647, %v1177_v48  ;;  %v1304_v6 = vadd.f32 %v1303_v50, %v1240_v49  ;;  %v940_v8 = vand.u32 2147483647, %v876_v51 }
  0x84   :  { %v432_v2 = vld [vmem:[#allocation2 + $0x380] sm:$0xff]  ;;  %v877_v7 = vsub.f32 %v748_v59, %v813_v60  ;;  %v1003_v9 = vadd.f32 %v1002_v53, %v939_v52  ;;  %v1050_v10 = vld [vmem:[#allocation2 + $0x690] sm:$0xff]  ;;  %v240_v12 = vsub.f32 %v112_v61, %v176_v62  ;;  %v303_v13 = vand.u32 2147483647, %v239_v56  ;;  %v749_v15 = vld [vmem:[#allocation2 + $0x548] sm:$0xff] }
  0x85   :  { %v497_v3 = vld [vmem:[#allocation5 + $0x380] sm:$0xff]  ;;  %v1115_v11 = vld [vmem:[#allocation5 + $0x690] sm:$0xff]  ;;  %v366_v14 = vadd.f32 %v365_v58, %v302_v57  ;;  %v814_v16 = vld [vmem:[#allocation5 + $0x548] sm:$0xff]  ;;  %v624_v20 = vand.u32 2147483647, %v560_v63  ;;  %v687_v21 = vadd.f32 %v686_v1, %v623_v0  ;;  %v1305_v26 = vadd.f32 %v1304_v6, %v1241_v5 }
  0x86   :  { %v113_v17 = vld [vmem:[#allocation2 + $0x1a0] sm:$0xff]  ;;  %v561_v19 = vsub.f32 %v432_v2, %v497_v3  ;;  %v433_v22 = vld [vmem:[#allocation2 + $0x388] sm:$0xff]  ;;  %v1179_v24 = vsub.f32 %v1050_v10, %v1115_v11  ;;  %v1242_v25 = vand.u32 2147483647, %v1178_v4  ;;  %v878_v27 = vsub.f32 %v749_v15, %v814_v16  ;;  %v1051_v30 = vld [vmem:[#allocation2 + $0x698] sm:$0xff] }
  0x87   :  { %v177_v18 = vld [vmem:[#allocation5 + $0x1a0] sm:$0xff]  ;;  %v498_v23 = vld [vmem:[#allocation5 + $0x388] sm:$0xff]  ;;  %v941_v28 = vand.u32 2147483647, %v877_v7  ;;  %v1004_v29 = vadd.f32 %v1003_v9, %v940_v8  ;;  %v1116_v31 = vld [vmem:[#allocation5 + $0x698] sm:$0xff]  ;;  %v367_v34 = vadd.f32 %v366_v14, %v303_v13  ;;  %v688_v41 = vadd.f32 %v687_v21, %v624_v20 }
  0x88   :  { %v241_v32 = vsub.f32 %v113_v17, %v177_v18  ;;  %v304_v33 = vand.u32 2147483647, %v240_v12  ;;  %v750_v35 = vld [vmem:[#allocation2 + $0x550] sm:$0xff]  ;;  %v114_v37 = vld [vmem:[#allocation2 + $0x1a8] sm:$0xff]  ;;  %v562_v39 = vsub.f32 %v433_v22, %v498_v23  ;;  %v625_v40 = vand.u32 2147483647, %v561_v19 }
  0x89   :  { %v815_v36 = vld [vmem:[#allocation5 + $0x550] sm:$0xff]  ;;  %v178_v38 = vld [vmem:[#allocation5 + $0x1a8] sm:$0xff]  ;;  %v1180_v45 = vsub.f32 %v1051_v30, %v1116_v31  ;;  %v1243_v46 = vand.u32 2147483647, %v1179_v24  ;;  %v1306_v47 = vadd.f32 %v1305_v26, %v1242_v25  ;;  %v942_v50 = vand.u32 2147483647, %v878_v27 }
  0x8a   :  { %v115_v42 = vld [vmem:[#allocation2 + $0x1b0] sm:$0xff]  ;;  %v879_v49 = vsub.f32 %v750_v35, %v815_v36  ;;  %v1005_v51 = vadd.f32 %v1004_v29, %v941_v28  ;;  %v1052_v52 = vld [vmem:[#allocation2 + $0x6a0] sm:$0xff]  ;;  %v242_v54 = vsub.f32 %v114_v37, %v178_v38  ;;  %v305_v55 = vand.u32 2147483647, %v241_v32  ;;  %v751_v57 = vld [vmem:[#allocation2 + $0x558] sm:$0xff] }
  0x8b   :  { %v434_v43 = vld [vmem:[#allocation2 + $0x390] sm:$0xff]  ;;  %v1117_v53 = vld [vmem:[#allocation5 + $0x6a0] sm:$0xff]  ;;  %v368_v56 = vadd.f32 %v367_v34, %v304_v33  ;;  %v816_v58 = vld [vmem:[#allocation5 + $0x558] sm:$0xff]  ;;  %v626_v61 = vand.u32 2147483647, %v562_v39  ;;  %v689_v62 = vadd.f32 %v688_v41, %v625_v40  ;;  %v1307_v7 = vadd.f32 %v1306_v47, %v1243_v46 }
  0x8c   :  { %v499_v44 = vld [vmem:[#allocation5 + $0x390] sm:$0xff]  ;;  %v1356_v59 = vld [vmem:[#allocation2 + $0x800] sm:$0xff]  ;;  %v1357_v63 = vld [vmem:[#allocation2 + $0x808] sm:$0xff]  ;;  %v1181_v5 = vsub.f32 %v1052_v52, %v1117_v53  ;;  %v1244_v6 = vand.u32 2147483647, %v1180_v45  ;;  %v880_v10 = vsub.f32 %v751_v57, %v816_v58  ;;  %v1006_v12 = vadd.f32 %v1005_v51, %v942_v50 }
  0x8d   :  { %v179_v48 = vld [vmem:[#allocation5 + $0x1b0] sm:$0xff]  ;;  %v563_v60 = vsub.f32 %v434_v43, %v499_v44  ;;  %v1421_v0 = vld [vmem:[#allocation5 + $0x800] sm:$0xff]  ;;  %v1422_v1 = vld [vmem:[#allocation5 + $0x808] sm:$0xff]  ;;  %v943_v11 = vand.u32 2147483647, %v879_v49  ;;  %v369_v17 = vadd.f32 %v368_v56, %v305_v55  ;;  %v690_v26 = vadd.f32 %v689_v62, %v626_v61 }
  0x8e   :  { %v116_v2 = vld [vmem:[#allocation2 + $0x1b8] sm:$0xff]  ;;  %v243_v9 = vsub.f32 %v115_v42, %v179_v48  ;;  %v1053_v13 = vld [vmem:[#allocation2 + $0x6a8] sm:$0xff]  ;;  %v5371_v15 = vld [vmem:[#allocation2 + $0x1c0] sm:$0xff]  ;;  %v306_v16 = vand.u32 2147483647, %v242_v54  ;;  %v1485_v20 = vsub.f32 %v1356_v59, %v1421_v0  ;;  %v1486_v21 = vsub.f32 %v1357_v63, %v1422_v1 }
  0x8f   :  { %v435_v3 = vld [vmem:[#allocation2 + $0x398] sm:$0xff]  ;;  %v1118_v14 = vld [vmem:[#allocation5 + $0x6a8] sm:$0xff]  ;;  %v752_v18 = vld [vmem:[#allocation2 + $0x560] sm:$0xff]  ;;  %v627_v25 = vand.u32 2147483647, %v563_v60  ;;  %v1308_v35 = vadd.f32 %v1307_v7, %v1244_v6  ;;  %v1007_v39 = vadd.f32 %v1006_v12, %v943_v11 }
  0x90   :  { %v500_v4 = vld [vmem:[#allocation5 + $0x398] sm:$0xff]  ;;  %v817_v19 = vld [vmem:[#allocation5 + $0x560] sm:$0xff]  ;;  %v5373_v22 = vld [vmem:[#allocation2 + $0x1c8] sm:$0xff]  ;;  %v1182_v33 = vsub.f32 %v1053_v13, %v1118_v14  ;;  %v1245_v34 = vand.u32 2147483647, %v1181_v5  ;;  %v370_v43 = vadd.f32 %v369_v17, %v306_v16 }
  0x91   :  { %v180_v8 = vld [vmem:[#allocation5 + $0x1b8] sm:$0xff]  ;;  %v5375_v23 = vld [vmem:[#allocation5 + $0x1c0] sm:$0xff]  ;;  %v564_v24 = vsub.f32 %v435_v3, %v500_v4  ;;  %v1358_v27 = vld [vmem:[#allocation2 + $0x810] sm:$0xff]  ;;  %v307_v36 = vand.u32 2147483647, %v243_v9  ;;  %v881_v37 = vsub.f32 %v752_v18, %v817_v19  ;;  %v691_v54 = vadd.f32 %v690_v26, %v627_v25 }
  0x92   :  { %v1423_v28 = vld [vmem:[#allocation5 + $0x810] sm:$0xff]  ;;  %v5377_v29 = vld [vmem:[#allocation5 + $0x1c8] sm:$0xff]  ;;  %v244_v30 = vsub.f32 %v116_v2, %v180_v8  ;;  %v436_v31 = vld [vmem:[#allocation2 + $0x3a0] sm:$0xff]  ;;  %v944_v38 = vand.u32 2147483647, %v880_v10  ;;  %v245_v51 = vsub.f32 %v5371_v15, %v5375_v23  ;;  %v1309_v63 = vadd.f32 %v1308_v35, %v1245_v34 }
  0x93   :  { %v501_v32 = vld [vmem:[#allocation5 + $0x3a0] sm:$0xff]  ;;  %v1054_v40 = vld [vmem:[#allocation2 + $0x6b0] sm:$0xff]  ;;  %v753_v44 = vld [vmem:[#allocation2 + $0x568] sm:$0xff]  ;;  %v1487_v46 = vsub.f32 %v1358_v27, %v1423_v28  ;;  %v1549_v47 = vand.u32 2147483647, %v1485_v20  ;;  %v246_v58 = vsub.f32 %v5373_v22, %v5377_v29  ;;  %v371_v7 = vadd.f32 %v370_v43, %v307_v36 }
  0x94   :  { %v1119_v41 = vld [vmem:[#allocation5 + $0x6b0] sm:$0xff]  ;;  %v818_v45 = vld [vmem:[#allocation5 + $0x568] sm:$0xff]  ;;  %v1550_v48 = vand.u32 2147483647, %v1486_v21  ;;  %v5381_v49 = vld [vmem:[#allocation2 + $0x1d8] sm:$0xff]  ;;  %v565_v52 = vsub.f32 %v436_v31, %v501_v32  ;;  %v1008_v3 = vadd.f32 %v1007_v39, %v944_v38 }
  0x95   :  { %v5379_v42 = vld [vmem:[#allocation2 + $0x1d0] sm:$0xff]  ;;  %v628_v53 = vand.u32 2147483647, %v564_v24  ;;  %v1359_v55 = vld [vmem:[#allocation2 + $0x818] sm:$0xff]  ;;  %v437_v59 = vld [vmem:[#allocation2 + $0x3a8] sm:$0xff]  ;;  %v1183_v61 = vsub.f32 %v1054_v40, %v1119_v41  ;;  %v882_v1 = vsub.f32 %v753_v44, %v818_v45 }
  0x96   :  { %v5383_v50 = vld [vmem:[#allocation5 + $0x1d0] sm:$0xff]  ;;  %v1424_v56 = vld [vmem:[#allocation5 + $0x818] sm:$0xff]  ;;  %v502_v60 = vld [vmem:[#allocation5 + $0x3a8] sm:$0xff]  ;;  %v1246_v62 = vand.u32 2147483647, %v1182_v33  ;;  %v1614_v12 = vadd.f32 %v1550_v48, %v1549_v47 }
  0x97   :  { %v5387_v57 = vld [vmem:[#allocation5 + $0x1d8] sm:$0xff]  ;;  %v308_v0 = vand.u32 2147483647, %v244_v30  ;;  %v945_v2 = vand.u32 2147483647, %v881_v37  ;;  %v5391_v6 = vld [vmem:[#allocation2 + $0x1e0] sm:$0xff]  ;;  %v1488_v10 = vsub.f32 %v1359_v55, %v1424_v56  ;;  %v247_v15 = vsub.f32 %v5379_v42, %v5383_v50 }
  0x98   :  { %v1055_v4 = vld [vmem:[#allocation2 + $0x6b8] sm:$0xff]  ;;  %v754_v8 = vld [vmem:[#allocation2 + $0x570] sm:$0xff]  ;;  %v1551_v11 = vand.u32 2147483647, %v1487_v46  ;;  %v5393_v13 = vld [vmem:[#allocation2 + $0x1e8] sm:$0xff]  ;;  %v566_v16 = vsub.f32 %v437_v59, %v502_v60  ;;  %v692_v18 = vadd.f32 %v691_v54, %v628_v53  ;;  %v248_v22 = vsub.f32 %v5381_v49, %v5387_v57 }
  0x99   :  { %v1120_v5 = vld [vmem:[#allocation5 + $0x6b8] sm:$0xff]  ;;  %v819_v9 = vld [vmem:[#allocation5 + $0x570] sm:$0xff]  ;;  %v5395_v14 = vld [vmem:[#allocation5 + $0x1e0] sm:$0xff]  ;;  %v629_v17 = vand.u32 2147483647, %v565_v52  ;;  %v1310_v27 = vadd.f32 %v1309_v63, %v1246_v62  ;;  %v1009_v31 = vadd.f32 %v1008_v3, %v945_v2  ;;  %v372_v35 = vadd.f32 %v371_v7, %v308_v0 }
  0x9a   :  { %v1360_v19 = vld [vmem:[#allocation2 + $0x820] sm:$0xff]  ;;  %v5399_v21 = vld [vmem:[#allocation5 + $0x1e8] sm:$0xff]  ;;  %v438_v23 = vld [vmem:[#allocation2 + $0x3b0] sm:$0xff]  ;;  %v1184_v25 = vsub.f32 %v1055_v4, %v1120_v5  ;;  %v1247_v26 = vand.u32 2147483647, %v1183_v61  ;;  %v883_v29 = vsub.f32 %v754_v8, %v819_v9  ;;  %v1615_v40 = vadd.f32 %v1614_v12, %v1551_v11 }
  0x9b   :  { %v1425_v20 = vld [vmem:[#allocation5 + $0x820] sm:$0xff]  ;;  %v503_v24 = vld [vmem:[#allocation5 + $0x3b0] sm:$0xff]  ;;  %v309_v28 = vand.u32 2147483647, %v245_v51  ;;  %v946_v30 = vand.u32 2147483647, %v882_v1  ;;  %v249_v44 = vsub.f32 %v5391_v6, %v5395_v14  ;;  %v693_v47 = vadd.f32 %v692_v18, %v629_v17 }
  0x9c   :  { %v1056_v32 = vld [vmem:[#allocation2 + $0x6c0] sm:$0xff]  ;;  %v5403_v34 = vld [vmem:[#allocation2 + $0x1f0] sm:$0xff]  ;;  %v755_v36 = vld [vmem:[#allocation2 + $0x578] sm:$0xff]  ;;  %v1489_v38 = vsub.f32 %v1360_v19, %v1425_v20  ;;  %v1552_v39 = vand.u32 2147483647, %v1488_v10  ;;  %v567_v45 = vsub.f32 %v438_v23, %v503_v24  ;;  %v250_v53 = vsub.f32 %v5393_v13, %v5399_v21 }
  0x9d   :  { %v1121_v33 = vld [vmem:[#allocation5 + $0x6c0] sm:$0xff]  ;;  %v820_v37 = vld [vmem:[#allocation5 + $0x578] sm:$0xff]  ;;  %v5407_v43 = vld [vmem:[#allocation5 + $0x1f0] sm:$0xff]  ;;  %v630_v46 = vand.u32 2147483647, %v566_v16  ;;  %v1311_v60 = vadd.f32 %v1310_v27, %v1247_v26  ;;  %v1010_v0 = vadd.f32 %v1009_v31, %v946_v30  ;;  %v373_v3 = vadd.f32 %v372_v35, %v309_v28 }
  0x9e   :  { %v5405_v41 = vld [vmem:[#allocation2 + $0x1f8] sm:$0xff]  ;;  %v1361_v48 = vld [vmem:[#allocation2 + $0x828] sm:$0xff]  ;;  %v1185_v56 = vsub.f32 %v1056_v32, %v1121_v33  ;;  %v1248_v59 = vand.u32 2147483647, %v1184_v25  ;;  %v310_v61 = vand.u32 2147483647, %v246_v58  ;;  %v884_v62 = vsub.f32 %v755_v36, %v820_v37 }
  0x9f   :  { %v1426_v51 = vld [vmem:[#allocation5 + $0x828] sm:$0xff]  ;;  %v5411_v52 = vld [vmem:[#allocation5 + $0x1f8] sm:$0xff]  ;;  %v947_v63 = vand.u32 2147483647, %v883_v29  ;;  %v756_v4 = vld [vmem:[#allocation2 + $0x580] sm:$0xff]  ;;  %v1616_v8 = vadd.f32 %v1615_v40, %v1552_v39  ;;  %v251_v9 = vsub.f32 %v5403_v34, %v5407_v43  ;;  %v694_v12 = vadd.f32 %v693_v47, %v630_v46 }
  0xa0   :  { %v439_v54 = vld [vmem:[#allocation2 + $0x3b8] sm:$0xff]  ;;  %v1057_v1 = vld [vmem:[#allocation2 + $0x6c8] sm:$0xff]  ;;  %v821_v5 = vld [vmem:[#allocation5 + $0x580] sm:$0xff]  ;;  %v1490_v6 = vsub.f32 %v1361_v48, %v1426_v51  ;;  %v1553_v7 = vand.u32 2147483647, %v1489_v38  ;;  %v252_v58 = vsub.f32 %v5405_v41, %v5411_v52  ;;  %v1312_v20 = vadd.f32 %v1311_v60, %v1248_v59 }
  0xa1   :  { %v504_v55 = vld [vmem:[#allocation5 + $0x3b8] sm:$0xff]  ;;  %v1122_v2 = vld [vmem:[#allocation5 + $0x6c8] sm:$0xff]  ;;  %v631_v11 = vand.u32 2147483647, %v567_v45  ;;  %v1362_v13 = vld [vmem:[#allocation2 + $0x830] sm:$0xff]  ;;  %v885_v23 = vsub.f32 %v756_v4, %v821_v5  ;;  %v1011_v25 = vadd.f32 %v1010_v0, %v947_v63  ;;  %v374_v28 = vadd.f32 %v373_v3, %v310_v61 }
  0xa2   :  { %v568_v10 = vsub.f32 %v439_v54, %v504_v55  ;;  %v1427_v14 = vld [vmem:[#allocation5 + $0x830] sm:$0xff]  ;;  %v440_v16 = vld [vmem:[#allocation2 + $0x3c0] sm:$0xff]  ;;  %v1186_v18 = vsub.f32 %v1057_v1, %v1122_v2  ;;  %v1249_v19 = vand.u32 2147483647, %v1185_v56  ;;  %v311_v21 = vand.u32 2147483647, %v247_v15 }
  0xa3   :  { %v505_v17 = vld [vmem:[#allocation5 + $0x3c0] sm:$0xff]  ;;  %v948_v24 = vand.u32 2147483647, %v884_v62  ;;  %v1058_v26 = vld [vmem:[#allocation2 + $0x6d0] sm:$0xff]  ;;  %v757_v29 = vld [vmem:[#allocation2 + $0x588] sm:$0xff]  ;;  %v1491_v31 = vsub.f32 %v1362_v13, %v1427_v14  ;;  %v1617_v33 = vadd.f32 %v1616_v8, %v1553_v7  ;;  %v695_v37 = vadd.f32 %v694_v12, %v631_v11 }
  0xa4   :  { %v1123_v27 = vld [vmem:[#allocation5 + $0x6d0] sm:$0xff]  ;;  %v822_v30 = vld [vmem:[#allocation5 + $0x588] sm:$0xff]  ;;  %v1554_v32 = vand.u32 2147483647, %v1490_v6  ;;  %v312_v34 = vand.u32 2147483647, %v248_v22  ;;  %v569_v35 = vsub.f32 %v440_v16, %v505_v17  ;;  %v1313_v43 = vadd.f32 %v1312_v20, %v1249_v19 }
  0xa5   :  { %v632_v36 = vand.u32 2147483647, %v568_v10  ;;  %v1363_v42 = vld [vmem:[#allocation2 + $0x838] sm:$0xff]  ;;  %v5425_v15 = vand.u32 2147483647, %v249_v44  ;;  %v441_v38 = vld [vmem:[#allocation2 + $0x3c8] sm:$0xff]  ;;  %v1187_v40 = vsub.f32 %v1058_v26, %v1123_v27  ;;  %v886_v46 = vsub.f32 %v757_v29, %v822_v30 }
  0xa6   :  { %v1428_v50 = vld [vmem:[#allocation5 + $0x838] sm:$0xff]  ;;  %v506_v39 = vld [vmem:[#allocation5 + $0x3c8] sm:$0xff]  ;;  %v1250_v41 = vand.u32 2147483647, %v1186_v18  ;;  %v5427_v45 = vand.u32 2147483647, %v250_v53  ;;  %v1012_v48 = vadd.f32 %v1011_v25, %v948_v24  ;;  %v375_v57 = vadd.f32 %v374_v28, %v311_v21 }
  0xa7   :  { %v949_v47 = vand.u32 2147483647, %v885_v23  ;;  %v1059_v51 = vld [vmem:[#allocation2 + $0x6d8] sm:$0xff]  ;;  %v758_v22 = vld [vmem:[#allocation2 + $0x590] sm:$0xff]  ;;  %v1492_v54 = vsub.f32 %v1363_v42, %v1428_v50  ;;  %v1555_v55 = vand.u32 2147483647, %v1491_v31  ;;  %v1618_v56 = vadd.f32 %v1617_v33, %v1554_v32 }
  0xa8   :  { %v1124_v49 = vld [vmem:[#allocation5 + $0x6d8] sm:$0xff]  ;;  %v823_v52 = vld [vmem:[#allocation5 + $0x590] sm:$0xff]  ;;  %v5429_v44 = vand.u32 2147483647, %v251_v9  ;;  %v570_v59 = vsub.f32 %v441_v38, %v506_v39  ;;  %v633_v60 = vand.u32 2147483647, %v569_v35  ;;  %v696_v61 = vadd.f32 %v695_v37, %v632_v36 }
  0xa9   :  { %v1364_v62 = vld [vmem:[#allocation2 + $0x840] sm:$0xff]  ;;  %v5431_v53 = vand.u32 2147483647, %v252_v58  ;;  %v442_v0 = vld [vmem:[#allocation2 + $0x3d0] sm:$0xff]  ;;  %v1188_v2 = vsub.f32 %v1059_v51, %v1124_v49  ;;  %v1251_v3 = vand.u32 2147483647, %v1187_v40  ;;  %v1314_v4 = vadd.f32 %v1313_v43, %v1250_v41 }
  0xaa   :  { %v1429_v63 = vld [vmem:[#allocation5 + $0x840] sm:$0xff]  ;;  %v507_v1 = vld [vmem:[#allocation5 + $0x3d0] sm:$0xff]  ;;  %v443_v5 = vld [vmem:[#allocation2 + $0x3d8] sm:$0xff]  ;;  %v887_v6 = vsub.f32 %v758_v22, %v823_v52  ;;  %v950_v7 = vand.u32 2147483647, %v886_v46  ;;  %v1013_v8 = vadd.f32 %v1012_v48, %v949_v47  ;;  %v376_v9 = vadd.f32 %v375_v57, %v312_v34 }
  0xab   :  { %v1060_v10 = vld [vmem:[#allocation2 + $0x6e0] sm:$0xff]  ;;  %v508_v13 = vld [vmem:[#allocation5 + $0x3d8] sm:$0xff]  ;;  %v1493_v17 = vsub.f32 %v1364_v62, %v1429_v63  ;;  %v1556_v18 = vand.u32 2147483647, %v1492_v54  ;;  %v1619_v58 = vadd.f32 %v1618_v56, %v1555_v55  ;;  %v445_v19 = vld [vmem:[#allocation2 + $0x3e8] sm:$0xff]  ;;  %v571_v20 = vsub.f32 %v442_v0, %v507_v1 }
  0xac   :  { %v1125_v11 = vld [vmem:[#allocation5 + $0x6e0] sm:$0xff]  ;;  %v759_v14 = vld [vmem:[#allocation2 + $0x598] sm:$0xff]  ;;  %v634_v21 = vand.u32 2147483647, %v570_v59  ;;  %v697_v23 = vadd.f32 %v696_v61, %v633_v60  ;;  %v1365_v24 = vld [vmem:[#allocation2 + $0x848] sm:$0xff]  ;;  %v1315_v31 = vadd.f32 %v1314_v4, %v1251_v3  ;;  %v572_v33 = vsub.f32 %v443_v5, %v508_v13 }
  0xad   :  { %v444_v12 = vld [vmem:[#allocation2 + $0x3e0] sm:$0xff]  ;;  %v824_v16 = vld [vmem:[#allocation5 + $0x598] sm:$0xff]  ;;  %v1430_v25 = vld [vmem:[#allocation5 + $0x848] sm:$0xff]  ;;  %v1189_v29 = vsub.f32 %v1060_v10, %v1125_v11  ;;  %v1252_v30 = vand.u32 2147483647, %v1188_v2  ;;  %v1014_v36 = vadd.f32 %v1013_v8, %v950_v7  ;;  %v377_v50 = vadd.f32 %v376_v9, %v5425_v15 }
  0xae   :  { %v446_v26 = vld [vmem:[#allocation2 + $0x3f0] sm:$0xff]  ;;  %v509_v27 = vld [vmem:[#allocation5 + $0x3e0] sm:$0xff]  ;;  %v510_v28 = vld [vmem:[#allocation5 + $0x3e8] sm:$0xff]  ;;  %v888_v34 = vsub.f32 %v759_v14, %v824_v16  ;;  %v951_v35 = vand.u32 2147483647, %v887_v6  ;;  %v1494_v40 = vsub.f32 %v1365_v24, %v1430_v25  ;;  %v1620_v43 = vadd.f32 %v1619_v58, %v1556_v18 }
  0xaf   :  { %v511_v32 = vld [vmem:[#allocation5 + $0x3f0] sm:$0xff]  ;;  %v1061_v37 = vld [vmem:[#allocation2 + $0x6e8] sm:$0xff]  ;;  %v760_v38 = vld [vmem:[#allocation2 + $0x5a0] sm:$0xff]  ;;  %v1557_v41 = vand.u32 2147483647, %v1493_v17  ;;  %v573_v46 = vsub.f32 %v444_v12, %v509_v27  ;;  %v574_v47 = vsub.f32 %v445_v19, %v510_v28  ;;  %v698_v51 = vadd.f32 %v697_v23, %v634_v21 }
  0xb0   :  { %v1126_v42 = vld [vmem:[#allocation5 + $0x6e8] sm:$0xff]  ;;  %v825_v39 = vld [vmem:[#allocation5 + $0x5a0] sm:$0xff]  ;;  %v635_v48 = vand.u32 2147483647, %v571_v20  ;;  %v1366_v49 = vld [vmem:[#allocation2 + $0x850] sm:$0xff]  ;;  %v575_v54 = vsub.f32 %v446_v26, %v511_v32  ;;  %v1316_v59 = vadd.f32 %v1315_v31, %v1252_v30  ;;  %v1015_v62 = vadd.f32 %v1014_v36, %v951_v35 }
  0xb1   :  { %v1431_v57 = vld [vmem:[#allocation5 + $0x850] sm:$0xff]  ;;  %v447_v22 = vld [vmem:[#allocation2 + $0x3f8] sm:$0xff]  ;;  %v1190_v55 = vsub.f32 %v1061_v37, %v1126_v42  ;;  %v1253_v56 = vand.u32 2147483647, %v1189_v29  ;;  %v636_v60 = vand.u32 2147483647, %v572_v33  ;;  %v889_v61 = vsub.f32 %v760_v38, %v825_v39 }
  0xb2   :  { %v512_v52 = vld [vmem:[#allocation5 + $0x3f8] sm:$0xff]  ;;  %v952_v15 = vand.u32 2147483647, %v888_v34  ;;  %v1062_v63 = vld [vmem:[#allocation2 + $0x6f0] sm:$0xff]  ;;  %v378_v1 = vadd.f32 %v377_v50, %v5427_v45  ;;  %v761_v2 = vld [vmem:[#allocation2 + $0x5a8] sm:$0xff]  ;;  %v1495_v4 = vsub.f32 %v1366_v49, %v1431_v57  ;;  %v1621_v6 = vadd.f32 %v1620_v43, %v1557_v41 }
  0xb3   :  { %v1127_v0 = vld [vmem:[#allocation5 + $0x6f0] sm:$0xff]  ;;  %v826_v3 = vld [vmem:[#allocation5 + $0x5a8] sm:$0xff]  ;;  %v1558_v5 = vand.u32 2147483647, %v1494_v40  ;;  %v576_v7 = vsub.f32 %v447_v22, %v512_v52  ;;  %v637_v8 = vand.u32 2147483647, %v573_v46  ;;  %v699_v11 = vadd.f32 %v698_v51, %v635_v48 }
  0xb4   :  { %v5435_v10 = vand.u32 2147483647, %v574_v47  ;;  %v1367_v9 = vld [vmem:[#allocation2 + $0x858] sm:$0xff]  ;;  %v5437_v13 = vand.u32 2147483647, %v575_v54  ;;  %v1191_v14 = vsub.f32 %v1062_v63, %v1127_v0  ;;  %v1317_v17 = vadd.f32 %v1316_v59, %v1253_v56  ;;  %v762_v18 = vld [vmem:[#allocation2 + $0x5b0] sm:$0xff] }
  0xb5   :  { %v1432_v12 = vld [vmem:[#allocation5 + $0x858] sm:$0xff]  ;;  %v1254_v16 = vand.u32 2147483647, %v1190_v55  ;;  %v890_v58 = vsub.f32 %v761_v2, %v826_v3  ;;  %v953_v45 = vand.u32 2147483647, %v889_v61  ;;  %v1016_v19 = vadd.f32 %v1015_v62, %v952_v15  ;;  %v764_v25 = vld [vmem:[#allocation2 + $0x5c0] sm:$0xff] }
  0xb6   :  { %v1063_v20 = vld [vmem:[#allocation2 + $0x6f8] sm:$0xff]  ;;  %v379_v23 = vadd.f32 %v378_v1, %v5429_v44  ;;  %v765_v26 = vld [vmem:[#allocation2 + $0x5c8] sm:$0xff]  ;;  %v827_v27 = vld [vmem:[#allocation5 + $0x5b0] sm:$0xff]  ;;  %v1496_v28 = vsub.f32 %v1367_v9, %v1432_v12  ;;  %v1559_v29 = vand.u32 2147483647, %v1495_v4  ;;  %v1622_v30 = vadd.f32 %v1621_v6, %v1558_v5 }
  0xb7   :  { %v1128_v21 = vld [vmem:[#allocation5 + $0x6f8] sm:$0xff]  ;;  %v5440_v31 = vand.u32 2147483647, %v576_v7  ;;  %v700_v32 = vadd.f32 %v699_v11, %v636_v60  ;;  %v766_v33 = vld [vmem:[#allocation2 + $0x5d0] sm:$0xff]  ;;  %v1368_v34 = vld [vmem:[#allocation2 + $0x860] sm:$0xff]  ;;  %v1318_v40 = vadd.f32 %v1317_v17, %v1254_v16  ;;  %v891_v43 = vsub.f32 %v762_v18, %v827_v27 }
  0xb8   :  { %v763_v24 = vld [vmem:[#allocation2 + $0x5b8] sm:$0xff]  ;;  %v1433_v35 = vld [vmem:[#allocation5 + $0x860] sm:$0xff]  ;;  %v830_v38 = vld [vmem:[#allocation5 + $0x5c8] sm:$0xff]  ;;  %v1192_v39 = vsub.f32 %v1063_v20, %v1128_v21  ;;  %v1255_v44 = vand.u32 2147483647, %v1191_v14  ;;  %v1017_v47 = vadd.f32 %v1016_v19, %v953_v45  ;;  %v5443_v49 = vadd.f32 %v379_v23, %v5431_v53 }
  0xb9   :  { %v767_v36 = vld [vmem:[#allocation2 + $0x5d8] sm:$0xff]  ;;  %v768_v37 = vld [vmem:[#allocation2 + $0x5e0] sm:$0xff]  ;;  %v831_v41 = vld [vmem:[#allocation5 + $0x5d0] sm:$0xff]  ;;  %v954_v46 = vand.u32 2147483647, %v890_v58  ;;  %v1497_v54 = vsub.f32 %v1368_v34, %v1433_v35  ;;  %v1623_v56 = vadd.f32 %v1622_v30, %v1559_v29  ;;  %v701_v59 = vadd.f32 %v700_v32, %v637_v8 }
  0xba   :  { %v828_v42 = vld [vmem:[#allocation5 + $0x5b8] sm:$0xff]  ;;  %v829_v50 = vld [vmem:[#allocation5 + $0x5c0] sm:$0xff]  ;;  %v769_v57 = vld [vmem:[#allocation2 + $0x5e8] sm:$0xff]  ;;  %v1560_v55 = vand.u32 2147483647, %v1496_v28  ;;  %v894_v62 = vsub.f32 %v765_v26, %v830_v38  ;;  %v895_v3 = vsub.f32 %v766_v33, %v831_v41  ;;  %v1319_v53 = vadd.f32 %v1318_v40, %v1255_v44 }
  0xbb   :  { %v1064_v48 = vld [vmem:[#allocation2 + $0x700] sm:$0xff]  ;;  %v832_v22 = vld [vmem:[#allocation5 + $0x5d8] sm:$0xff]  ;;  %v834_v60 = vld [vmem:[#allocation5 + $0x5e8] sm:$0xff]  ;;  %v892_v61 = vsub.f32 %v763_v24, %v828_v42  ;;  %v893_v15 = vsub.f32 %v764_v25, %v829_v50  ;;  %v1256_v5 = vand.u32 2147483647, %v1192_v39  ;;  %v1018_v9 = vadd.f32 %v1017_v47, %v954_v46 }
  0xbc   :  { %v1129_v51 = vld [vmem:[#allocation5 + $0x700] sm:$0xff]  ;;  %v1369_v63 = vld [vmem:[#allocation2 + $0x868] sm:$0xff]  ;;  %v770_v1 = vld [vmem:[#allocation2 + $0x5f0] sm:$0xff]  ;;  %v896_v6 = vsub.f32 %v767_v36, %v832_v22  ;;  %v955_v11 = vand.u32 2147483647, %v891_v43  ;;  %v898_v17 = vsub.f32 %v769_v57, %v834_v60  ;;  %v1624_v45 = vadd.f32 %v1623_v56, %v1560_v55 }
  0xbd   :  { %v833_v52 = vld [vmem:[#allocation5 + $0x5e0] sm:$0xff]  ;;  %v1434_v0 = vld [vmem:[#allocation5 + $0x868] sm:$0xff]  ;;  %v835_v2 = vld [vmem:[#allocation5 + $0x5f0] sm:$0xff]  ;;  %v1193_v4 = vsub.f32 %v1064_v48, %v1129_v51  ;;  %v1561_v58 = vand.u32 2147483647, %v1497_v54  ;;  %v702_v19 = vadd.f32 %v701_v59, %v5435_v10  ;;  %v1320_v29 = vadd.f32 %v1319_v53, %v1256_v5 }
  0xbe   :  { %v897_v7 = vsub.f32 %v768_v37, %v833_v52  ;;  %v1065_v12 = vld [vmem:[#allocation2 + $0x708] sm:$0xff]  ;;  %v771_v16 = vld [vmem:[#allocation2 + $0x5f8] sm:$0xff]  ;;  %v1498_v18 = vsub.f32 %v1369_v63, %v1434_v0  ;;  %v899_v20 = vsub.f32 %v770_v1, %v835_v2  ;;  %v956_v21 = vand.u32 2147483647, %v892_v61  ;;  %v1370_v24 = vld [vmem:[#allocation2 + $0x870] sm:$0xff] }
  0xbf   :  { %v1130_v14 = vld [vmem:[#allocation5 + $0x708] sm:$0xff]  ;;  %v836_v8 = vld [vmem:[#allocation5 + $0x5f8] sm:$0xff]  ;;  %v5446_v23 = vand.u32 2147483647, %v893_v15  ;;  %v1435_v25 = vld [vmem:[#allocation5 + $0x870] sm:$0xff]  ;;  %v1019_v34 = vadd.f32 %v1018_v9, %v955_v11  ;;  %v1625_v44 = vadd.f32 %v1624_v45, %v1561_v58  ;;  %v703_v40 = vadd.f32 %v702_v19, %v5437_v13 }
  0xc0   :  { %v5448_v26 = vand.u32 2147483647, %v894_v62  ;;  %v1194_v27 = vsub.f32 %v1065_v12, %v1130_v14  ;;  %v1257_v28 = vand.u32 2147483647, %v1193_v4  ;;  %v900_v30 = vsub.f32 %v771_v16, %v836_v8  ;;  %v1066_v35 = vld [vmem:[#allocation2 + $0x710] sm:$0xff]  ;;  %v5456_v37 = vld [vmem:[#allocation2 + $0x718] sm:$0xff] }
  0xc1   :  { %v5450_v32 = vand.u32 2147483647, %v895_v3  ;;  %v5452_v33 = vand.u32 2147483647, %v896_v6  ;;  %v1131_v36 = vld [vmem:[#allocation5 + $0x710] sm:$0xff]  ;;  %v5458_v42 = vld [vmem:[#allocation2 + $0x720] sm:$0xff]  ;;  %v1499_v38 = vsub.f32 %v1370_v24, %v1435_v25  ;;  %v1020_v15 = vadd.f32 %v1019_v34, %v956_v21 }
  0xc2   :  { %v5454_v10 = vand.u32 2147483647, %v897_v7  ;;  %v5460_v50 = vld [vmem:[#allocation2 + $0x728] sm:$0xff]  ;;  %v1562_v39 = vand.u32 2147483647, %v1498_v18  ;;  %v5467_v46 = vld [vmem:[#allocation2 + $0x730] sm:$0xff]  ;;  %v1195_v13 = vsub.f32 %v1066_v35, %v1131_v36  ;;  %v1321_v59 = vadd.f32 %v1320_v29, %v1257_v28 }
  0xc3   :  { %v5463_v41 = vand.u32 2147483647, %v898_v17  ;;  %v5465_v43 = vand.u32 2147483647, %v899_v20  ;;  %v5469_v47 = vld [vmem:[#allocation2 + $0x738] sm:$0xff]  ;;  %v5471_v57 = vld [vmem:[#allocation2 + $0x740] sm:$0xff]  ;;  %v5502_v9 = vadd.f32 %v703_v40, %v5440_v31  ;;  %v1021_v29 = vadd.f32 %v1020_v15, %v5446_v23 }
  0xc4   :  { %v1371_v48 = vld [vmem:[#allocation2 + $0x878] sm:$0xff]  ;;  %v5473_v22 = vld [vmem:[#allocation2 + $0x748] sm:$0xff]  ;;  %v5475_v54 = vld [vmem:[#allocation5 + $0x720] sm:$0xff]  ;;  %v1258_v56 = vand.u32 2147483647, %v1194_v27  ;;  %v1626_v11 = vadd.f32 %v1625_v44, %v1562_v39 }
  0xc5   :  { %8272 = vst [vmem:[#allocation11_spill] sm:$0xff] %v5465_v43  ;;  %v1436_v51 = vld [vmem:[#allocation5 + $0x878] sm:$0xff]  ;;  %v5477_v55 = vld [vmem:[#allocation5 + $0x728] sm:$0xff]  ;;  %v5479_v60 = vld [vmem:[#allocation2 + $0x880] sm:$0xff]  ;;  %v5481_v61 = vand.u32 2147483647, %v900_v30  ;;  %v1197_v8 = vsub.f32 %v5458_v42, %v5475_v54 }
  0xc6   :  { %v1132_v52 = vld [vmem:[#allocation5 + $0x718] sm:$0xff]  ;;  %v5483_v62 = vld [vmem:[#allocation5 + $0x730] sm:$0xff]  ;;  %v5487_v0 = vld [vmem:[#allocation2 + $0x888] sm:$0xff]  ;;  %v1500_v6 = vsub.f32 %v1371_v48, %v1436_v51  ;;  %v1563_v7 = vand.u32 2147483647, %v1499_v38  ;;  %v1198_v17 = vsub.f32 %v5460_v50, %v5477_v55  ;;  %v1322_v25 = vadd.f32 %v1321_v59, %v1258_v56 }
  0xc7   :  { %8273 = vst [vmem:[#allocation12_spill] sm:$0xff] %v5481_v61  ;;  %v5485_v63 = vld [vmem:[#allocation5 + $0x738] sm:$0xff]  ;;  %v5489_v1 = vld [vmem:[#allocation2 + $0x890] sm:$0xff]  ;;  %v5493_v3 = vld [vmem:[#allocation5 + $0x740] sm:$0xff]  ;;  %v1196_v16 = vsub.f32 %v5456_v37, %v1132_v52  ;;  %v1199_v20 = vsub.f32 %v5467_v46, %v5483_v62  ;;  %v1259_v24 = vand.u32 2147483647, %v1195_v13  ;;  %v1022_v62 = vadd.f32 %v1021_v29, %v5448_v26 }
  0xc8   :  { %v5491_v2 = vld [vmem:[#allocation2 + $0x750] sm:$0xff]  ;;  %v5495_v4 = vld [vmem:[#allocation5 + $0x748] sm:$0xff]  ;;  %v5497_v5 = vld [vmem:[#allocation2 + $0x898] sm:$0xff]  ;;  %v1564_v51 = vand.u32 2147483647, %v1500_v6  ;;  %v1627_v52 = vadd.f32 %v1626_v11, %v1563_v7 }
  0xc9   :  { %v5499_v53 = vld [vmem:[#allocation5 + $0x880] sm:$0xff]  ;;  %v5504_v12 = vld [vmem:[#allocation2 + $0x758] sm:$0xff]  ;;  %v5515_v58 = vld [vmem:[#allocation5 + $0x888] sm:$0xff]  ;;  %v1260_v15 = vand.u32 2147483647, %v1196_v16 }
  0xca   :  { %v5506_v14 = vld [vmem:[#allocation2 + $0x760] sm:$0xff]  ;;  %v5517_v45 = vld [vmem:[#allocation5 + $0x890] sm:$0xff]  ;;  %v5519_v31 = vld [vmem:[#allocation2 + $0x768] sm:$0xff]  ;;  %v1501_v50 = vsub.f32 %v5479_v60, %v5499_v53  ;;  %v1502_v46 = vsub.f32 %v5487_v0, %v5515_v58  ;;  %v1323_v0 = vadd.f32 %v1322_v25, %v1259_v24  ;;  %v1628_v25 = vadd.f32 %v1627_v52, %v1564_v51 }
  0xcb   :  { %v5513_v18 = vld [vmem:[#allocation2 + $0x8a0] sm:$0xff]  ;;  %v5521_v19 = vld [vmem:[#allocation5 + $0x750] sm:$0xff]  ;;  %v5527_v27 = vld [vmem:[#allocation5 + $0x898] sm:$0xff] }
  0xcc   :  { %8274 = vst [vmem:[#allocation13_spill] sm:$0xff] %v5513_v18  ;;  %v5529_v28 = vld [vmem:[#allocation5 + $0x8a0] sm:$0xff]  ;;  %v5532_v30 = vld [vmem:[#allocation2 + $0x770] sm:$0xff]  ;;  %v5534_v34 = vld [vmem:[#allocation2 + $0x778] sm:$0xff]  ;;  %v1203_v60 = vsub.f32 %v5491_v2, %v5521_v19  ;;  %v1261_v19 = vand.u32 2147483647, %v1197_v8 }
  0xcd   :  { %8275 = vst [vmem:[#allocation14_spill] sm:$0xff] %v5529_v28  ;;  %v5536_v35 = vld [vmem:[#allocation5 + $0x758] sm:$0xff]  ;;  %v5538_v36 = vld [vmem:[#allocation5 + $0x760] sm:$0xff]  ;;  %v5548_v23 = vld [vmem:[#allocation2 + $0x788] sm:$0xff]  ;;  %v1262_v28 = vand.u32 2147483647, %v1198_v17 }
  0xce   :  { %v5546_v38 = vld [vmem:[#allocation2 + $0x780] sm:$0xff]  ;;  %v5550_v39 = vld [vmem:[#allocation2 + $0x790] sm:$0xff]  ;;  %v5552_v44 = vld [vmem:[#allocation2 + $0x798] sm:$0xff]  ;;  %v1204_v2 = vsub.f32 %v5504_v12, %v5536_v35  ;;  %v1205_v16 = vsub.f32 %v5506_v14, %v5538_v36  ;;  %v5599_v18 = vand.u32 2147483647, %v1199_v20 }
  0xcf   :  { %v5554_v40 = vld [vmem:[#allocation5 + $0x768] sm:$0xff]  ;;  %v5560_v54 = vld [vmem:[#allocation2 + $0x7a0] sm:$0xff]  ;;  %v5564_v13 = vld [vmem:[#allocation5 + $0x770] sm:$0xff]  ;;  %v1565_v24 = vand.u32 2147483647, %v1501_v50 }
  0xd0   :  { %v5562_v55 = vld [vmem:[#allocation2 + $0x7a8] sm:$0xff]  ;;  %v5566_v56 = vld [vmem:[#allocation5 + $0x778] sm:$0xff]  ;;  %v5568_v59 = vld [vmem:[#allocation5 + $0x780] sm:$0xff]  ;;  %v1206_v43 = vsub.f32 %v5519_v31, %v5554_v40  ;;  %v1207_v26 = vsub.f32 %v5532_v30, %v5564_v13 }
  0xd1   :  { %v5576_v53 = vld [vmem:[#allocation2 + $0x7b0] sm:$0xff]  ;;  %v5578_v6 = vld [vmem:[#allocation2 + $0x7b8] sm:$0xff]  ;;  %v5580_v7 = vld [vmem:[#allocation2 + $0x7c0] sm:$0xff]  ;;  %v1208_v8 = vsub.f32 %v5534_v34, %v5566_v56  ;;  %v1209_v20 = vsub.f32 %v5546_v38, %v5568_v59  ;;  %v8276_v38 = vsub.f32 %v5469_v47, %v5485_v63  ;;  %v1023_v59 = vadd.f32 %v1022_v62, %v5450_v32 }
  0xd2   :  { %v5582_v11 = vld [vmem:[#allocation5 + $0x788] sm:$0xff]  ;;  %v5584_v58 = vld [vmem:[#allocation5 + $0x790] sm:$0xff]  ;;  %v5586_v48 = vld [vmem:[#allocation5 + $0x798] sm:$0xff]  ;;  %v1566_v63 = vand.u32 2147483647, %v1502_v46 }
  0xd3   :  { %v5593_v42 = vld [vmem:[#allocation2 + $0x7c8] sm:$0xff]  ;;  %v5595_v37 = vld [vmem:[#allocation2 + $0x7d0] sm:$0xff]  ;;  %v1149_v21 = vld [vmem:[#allocation5 + $0x7a0] sm:$0xff]  ;;  %v1210_v36 = vsub.f32 %v5548_v23, %v5582_v11  ;;  %v1211_v30 = vsub.f32 %v5550_v39, %v5584_v58  ;;  %v1212_v34 = vsub.f32 %v5552_v44, %v5586_v48  ;;  %v5632_v56 = vand.u32 2147483647, %v8276_v38 }
  0xd4   :  { %v1150_v61 = vld [vmem:[#allocation5 + $0x7a8] sm:$0xff]  ;;  %v5601_v12 = vld [vmem:[#allocation5 + $0x7b0] sm:$0xff]  ;;  %v5603_v35 = vld [vmem:[#allocation5 + $0x7b8] sm:$0xff]  ;;  %v1213_v52 = vsub.f32 %v5560_v54, %v1149_v21  ;;  %v1324_v23 = vadd.f32 %v1323_v0, %v1260_v15  ;;  %v5659_v46 = vand.u32 2147483647, %v1203_v60 }
  0xd5   :  { %v5605_v14 = vld [vmem:[#allocation5 + $0x7c0] sm:$0xff]  ;;  %v5611_v29 = vld [vmem:[#allocation2 + $0x7d8] sm:$0xff]  ;;  %v5613_v31 = vld [vmem:[#allocation5 + $0x7c8] sm:$0xff]  ;;  %v1214_v13 = vsub.f32 %v5562_v55, %v1150_v61  ;;  %v1215_v39 = vsub.f32 %v5576_v53, %v5601_v12  ;;  %v1216_v44 = vsub.f32 %v5578_v6, %v5603_v35  ;;  %v1629_v55 = vadd.f32 %v1628_v25, %v1565_v24 }
  0xd6   :  { %v5615_v17 = vld [vmem:[#allocation5 + $0x7d0] sm:$0xff]  ;;  %v5625_v50 = vld [vmem:[#allocation2 + $0x7e0] sm:$0xff]  ;;  %v1156_v40 = vld [vmem:[#allocation5 + $0x7d8] sm:$0xff]  ;;  %v1217_v48 = vsub.f32 %v5580_v7, %v5605_v14  ;;  %v1218_v61 = vsub.f32 %v5593_v42, %v5613_v31  ;;  %v8277_v7 = vsub.f32 %v5471_v57, %v5493_v3  ;;  %v8278_v42 = vsub.f32 %v5473_v22, %v5495_v4 }
  0xd7   :  { %v1157_v51 = vld [vmem:[#allocation5 + $0x7e0] sm:$0xff]  ;;  %v1093_v21 = vld [vmem:[#allocation2 + $0x7e8] sm:$0xff]  ;;  %v1219_v47 = vsub.f32 %v5595_v37, %v5615_v17  ;;  %v1094_v32 = vld [vmem:[#allocation2 + $0x7f0] sm:$0xff]  ;;  %v1220_v53 = vsub.f32 %v5611_v29, %v1156_v40  ;;  %v5661_v58 = vand.u32 2147483647, %v1204_v2  ;;  %v1325_v35 = vadd.f32 %v1324_v23, %v1261_v19 }
  0xd8   :  { %v1158_v54 = vld [vmem:[#allocation5 + $0x7e8] sm:$0xff]  ;;  %v5645_v15 = vld [vmem:[#allocation2 + $0x7f8] sm:$0xff]  ;;  %v1159_v62 = vld [vmem:[#allocation5 + $0x7f0] sm:$0xff]  ;;  %v1221_v6 = vsub.f32 %v5625_v50, %v1157_v51  ;;  %v5652_v11 = vand.u32 2147483647, %v8277_v7  ;;  %v1024_v14 = vadd.f32 %v1023_v59, %v5452_v33  ;;  %v8283_v4 = vsub.f32 %v5489_v1, %v5517_v45 }
  0xd9   :  { %v1160_v0 = vld [vmem:[#allocation5 + $0x7f8] sm:$0xff]  ;;  %v5657_v37 = vand.u32 2147483647, %v8278_v42  ;;  %v5663_v12 = vand.u32 2147483647, %v1205_v16  ;;  %v1630_v2 = vadd.f32 %v1629_v55, %v1566_v63  ;;  %v5679_v16 = vld [vmem:[#allocation2 + $0xa00] sm:$0xff]  ;;  %v1222_v19 = vsub.f32 %v1093_v21, %v1158_v54 }
  0xda   :  { %v5666_v24 = vand.u32 2147483647, %v1206_v43  ;;  %v5668_v25 = vand.u32 2147483647, %v1207_v26  ;;  %v5670_v57 = vand.u32 2147483647, %v1208_v8  ;;  %v1223_v26 = vsub.f32 %v1094_v32, %v1159_v62 }
  0xdb   :  { %v5672_v3 = vand.u32 2147483647, %v1209_v20  ;;  %v5674_v22 = vand.u32 2147483647, %v1210_v36  ;;  %v1567_v60 = vand.u32 2147483647, %v8283_v4  ;;  %v1224_v8 = vsub.f32 %v5645_v15, %v1160_v0 }
  0xdc   :  { %8279 = vst [vmem:[#allocation15_spill] sm:$0xff] %v5668_v25  ;;  %v5681_v29 = vand.u32 2147483647, %v1211_v30  ;;  %v5683_v33 = vand.u32 2147483647, %v1212_v34  ;;  %v1326_v17 = vadd.f32 %v1325_v35, %v1262_v28  ;;  %v5690_v20 = vld [vmem:[#allocation2 + $0x8a8] sm:$0xff]  ;;  %v1025_v30 = vadd.f32 %v1024_v14, %v5454_v10 }
  0xdd   :  { %8280 = vst [vmem:[#allocation16_spill] sm:$0xff] %v5670_v57  ;;  %v5685_v43 = vand.u32 2147483647, %v1213_v52  ;;  %v5688_v31 = vand.u32 2147483647, %v1214_v13  ;;  %v5692_v1 = vld [vmem:[#allocation5 + $0x8a8] sm:$0xff]  ;;  %v8293_v10 = vsub.f32 %v5497_v5, %v5527_v27  ;;  %v5744_v35 = vadd.f32 %v5502_v9, %v5443_v49 }
  0xde   :  { %8281 = vst [vmem:[#allocation17_spill] sm:$0xff] %v5672_v3  ;;  %v1681_v45 = vld [vmem:[#allocation2 + $0xa08] sm:$0xff]  ;;  %v1745_v36 = vld [vmem:[#allocation5 + $0xa00] sm:$0xff]  ;;  %v5695_v40 = vand.u32 2147483647, %v1215_v39  ;;  %v5701_v52 = vld [vmem:[#allocation2 + $0x8b0] sm:$0xff]  ;;  %v1327_v62 = vadd.f32 %v1326_v17, %v5599_v18  ;;  %v1026_v14 = vadd.f32 %v1025_v30, %v5463_v41 }
  0xdf   :  { %8282 = vst [vmem:[#allocation18_spill] sm:$0xff] %v5674_v22  ;;  %v1746_v50 = vld [vmem:[#allocation5 + $0xa08] sm:$0xff]  ;;  %v5697_v34 = vand.u32 2147483647, %v1216_v44  ;;  %v5699_v51 = vand.u32 2147483647, %v1217_v48  ;;  %v1631_v44 = vadd.f32 %v1630_v2, %v1567_v60  ;;  %v1809_v32 = vsub.f32 %v5679_v16, %v1745_v36 }
  0xe0   :  { %8284 = vst [vmem:[#allocation19_spill] sm:$0xff] %v5681_v29  ;;  %v5703_v13 = vld [vmem:[#allocation2 + $0x8b8] sm:$0xff]  ;;  %v5705_v28 = vld [vmem:[#allocation5 + $0x8b0] sm:$0xff]  ;;  %v5707_v38 = vand.u32 2147483647, %v1218_v61  ;;  %v5711_v59 = vld [vmem:[#allocation2 + $0x8c0] sm:$0xff]  ;;  %v1810_v15 = vsub.f32 %v1681_v45, %v1746_v50 }
  0xe1   :  { %8285 = vst [vmem:[#allocation20_spill] sm:$0xff] %v5683_v33  ;;  %v5709_v23 = vand.u32 2147483647, %v1219_v47  ;;  %v1568_v39 = vand.u32 2147483647, %v8293_v10  ;;  %v5720_v54 = vld [vmem:[#allocation2 + $0x8c8] sm:$0xff] }
  0xe2   :  { %8286 = vst [vmem:[#allocation21_spill] sm:$0xff] %v5685_v43  ;;  %v5716_v21 = vand.u32 2147483647, %v1220_v53  ;;  %v5718_v48 = vand.u32 2147483647, %v1221_v6  ;;  %v5722_v63 = vld [vmem:[#allocation2 + $0x8d0] sm:$0xff] }
  0xe3   :  { %8287 = vst [vmem:[#allocation22_spill] sm:$0xff] %v5688_v31  ;;  %v5724_v55 = vld [vmem:[#allocation2 + $0x8d8] sm:$0xff]  ;;  %v5728_v47 = vld [vmem:[#allocation5 + $0x8c0] sm:$0xff]  ;;  %v5731_v5 = vand.u32 2147483647, %v1222_v19  ;;  %v5738_v53 = vld [vmem:[#allocation2 + $0x8e8] sm:$0xff] }
  0xe4   :  { %8288 = vst [vmem:[#allocation23_spill] sm:$0xff] %v5695_v40  ;;  %v5726_v61 = vld [vmem:[#allocation5 + $0x8b8] sm:$0xff]  ;;  %v5733_v27 = vand.u32 2147483647, %v1223_v26  ;;  %v5736_v0 = vld [vmem:[#allocation2 + $0x8e0] sm:$0xff]  ;;  %v5740_v6 = vld [vmem:[#allocation2 + $0x8f0] sm:$0xff]  ;;  %v1506_v26 = vsub.f32 %v5690_v20, %v5692_v1 }
  0xe5   :  { %8289 = vst [vmem:[#allocation24_spill] sm:$0xff] %v5697_v34  ;;  %v1682_v7 = vld [vmem:[#allocation2 + $0xa10] sm:$0xff]  ;;  %v5747_v4 = vand.u32 2147483647, %v1224_v8  ;;  %v5749_v60 = vld [vmem:[#allocation2 + $0x8f8] sm:$0xff]  ;;  %v5751_v2 = vld [vmem:[#allocation2 + $0x900] sm:$0xff]  ;;  %v1507_v8 = vsub.f32 %v5701_v52, %v5705_v28  ;;  %v1508_v45 = vsub.f32 %v5703_v13, %v5726_v61  ;;  %v1509_v52 = vsub.f32 %v5711_v59, %v5728_v47 }
  0xe6   :  { %8290 = vst [vmem:[#allocation25_spill] sm:$0xff] %v5699_v51  ;;  %v1747_v42 = vld [vmem:[#allocation5 + $0xa10] sm:$0xff]  ;;  %v5753_v18 = vld [vmem:[#allocation5 + $0x8c8] sm:$0xff]  ;;  %v5757_v19 = vld [vmem:[#allocation5 + $0x8d8] sm:$0xff]  ;;  %v1873_v13 = vand.u32 2147483647, %v1809_v32 }
  0xe7   :  { %8291 = vst [vmem:[#allocation26_spill] sm:$0xff] %v5707_v38  ;;  %v5755_v16 = vld [vmem:[#allocation5 + $0x8d0] sm:$0xff]  ;;  %v5761_v17 = vld [vmem:[#allocation2 + $0x908] sm:$0xff]  ;;  %v5763_v49 = vld [vmem:[#allocation5 + $0x8e0] sm:$0xff]  ;;  %v1811_v28 = vsub.f32 %v1682_v7, %v1747_v42  ;;  %v1874_v61 = vand.u32 2147483647, %v1810_v15 }
  0xe8   :  { %8292 = vst [vmem:[#allocation27_spill] sm:$0xff] %v5709_v23  ;;  %v5765_v41 = vld [vmem:[#allocation5 + $0x8e8] sm:$0xff]  ;;  %v5767_v9 = vld [vmem:[#allocation5 + $0x8f0] sm:$0xff]  ;;  %v8299_v36 = vld [vmem:[#allocation13_spill] sm:$0xff]  ;;  %v1513_v15 = vsub.f32 %v5736_v0, %v5763_v49 }
  0xe9   :  { %8294 = vst [vmem:[#allocation28_spill] sm:$0xff] %v5716_v21  ;;  %v8300_v50 = vld [vmem:[#allocation14_spill] sm:$0xff]  ;;  %v5776_v20 = vld [vmem:[#allocation2 + $0x910] sm:$0xff]  ;;  %v5778_v1 = vld [vmem:[#allocation2 + $0x918] sm:$0xff]  ;;  %v1938_v51 = vadd.f32 %v1874_v61, %v1873_v13 }
  0xea   :  { %8295 = vst [vmem:[#allocation29_spill] sm:$0xff] %v5718_v48  ;;  %v8301_v30 = vsub.f32 %v8299_v36, %v8300_v50  ;;  %v5784_v48 = vld [vmem:[#allocation5 + $0x900] sm:$0xff]  ;;  %v1328_v36 = vadd.f32 %v1327_v62, %v5632_v56  ;;  %v5789_v50 = vld [vmem:[#allocation5 + $0x908] sm:$0xff]  ;;  %v1683_v21 = vld [vmem:[#allocation2 + $0xa18] sm:$0xff] }
  0xeb   :  { %8296 = vst [vmem:[#allocation30_spill] sm:$0xff] %v5731_v5  ;;  %v5782_v5 = vld [vmem:[#allocation5 + $0x8f8] sm:$0xff]  ;;  %v8302_v38 = vld [vmem:[#allocation11_spill] sm:$0xff]  ;;  %v5798_v47 = vld [vmem:[#allocation5 + $0x910] sm:$0xff] }
  0xec   :  { %8297 = vst [vmem:[#allocation31_spill] sm:$0xff] %v5733_v27  ;;  %v1569_v10 = vand.u32 2147483647, %v8301_v30  ;;  %v5780_v27 = vld [vmem:[#allocation2 + $0x920] sm:$0xff]  ;;  %v1512_v30 = vsub.f32 %v5724_v55, %v5757_v19  ;;  %v1748_v23 = vld [vmem:[#allocation5 + $0xa18] sm:$0xff]  ;;  %v1027_v59 = vadd.f32 %v1026_v14, %v8302_v38  ;;  %v5810_v55 = vld [vmem:[#allocation2 + $0x928] sm:$0xff]  ;;  %v1329_v34 = vadd.f32 %v1328_v36, %v5652_v11 }
  0xed   :  { %8298 = vst [vmem:[#allocation32_spill] sm:$0xff] %v5747_v4  ;;  %v1632_v4 = vadd.f32 %v1631_v44, %v1568_v39  ;;  %v1510_v39 = vsub.f32 %v5720_v54, %v5753_v18  ;;  %v1511_v44 = vsub.f32 %v5722_v63, %v5755_v16  ;;  %v5800_v32 = vld [vmem:[#allocation5 + $0x918] sm:$0xff]  ;;  %v5802_v56 = vld [vmem:[#allocation5 + $0x920] sm:$0xff]  ;;  %v5812_v62 = vld [vmem:[#allocation2 + $0x930] sm:$0xff]  ;;  %v1570_v14 = vand.u32 2147483647, %v1506_v26 }
  0xee   :  { %8303 = vst [vmem:[#allocation13_spill] sm:$0xff] %v5812_v62  ;;  %v5814_v38 = vld [vmem:[#allocation5 + $0x928] sm:$0xff]  ;;  %v5820_v18 = vld [vmem:[#allocation2 + $0x938] sm:$0xff]  ;;  %v5822_v16 = vld [vmem:[#allocation2 + $0x940] sm:$0xff]  ;;  %v1812_v63 = vsub.f32 %v1683_v21, %v1748_v23  ;;  %v1875_v54 = vand.u32 2147483647, %v1811_v28 }
  0xef   :  { %8304 = vst [vmem:[#allocation14_spill] sm:$0xff] %v5814_v38  ;;  %v1633_v0 = vadd.f32 %v1632_v4, %v1569_v10  ;;  %v5824_v19 = vld [vmem:[#allocation5 + $0x930] sm:$0xff]  ;;  %v5829_v7 = vld [vmem:[#allocation2 + $0x948] sm:$0xff]  ;;  %v1684_v42 = vld [vmem:[#allocation2 + $0xa20] sm:$0xff]  ;;  %v1571_v4 = vand.u32 2147483647, %v1507_v8 }
  0xf0   :  { %8305 = vst [vmem:[#allocation11_spill] sm:$0xff] %v5822_v16  ;;  %v5831_v40 = vld [vmem:[#allocation2 + $0x950] sm:$0xff]  ;;  %v1749_v49 = vld [vmem:[#allocation5 + $0xa20] sm:$0xff]  ;;  %v5840_v28 = vld [vmem:[#allocation2 + $0x958] sm:$0xff]  ;;  %v5850_v26 = vand.u32 2147483647, %v1508_v45 }
  0xf1   :  { %8306 = vst [vmem:[#allocation33_spill] sm:$0xff] %v5824_v19  ;;  %v8309_v23 = vld [vmem:[#allocation12_spill] sm:$0xff]  ;;  %v5842_v11 = vld [vmem:[#allocation2 + $0x960] sm:$0xff]  ;;  %v5844_v13 = vld [vmem:[#allocation5 + $0x938] sm:$0xff]  ;;  %v5862_v33 = vand.u32 2147483647, %v1510_v39  ;;  %v1634_v29 = vadd.f32 %v1633_v0, %v1570_v14  ;;  %v1813_v25 = vsub.f32 %v1684_v42, %v1749_v49 }
  0xf2   :  { %8307 = vst [vmem:[#allocation34_spill] sm:$0xff] %v5829_v7  ;;  %v1028_v21 = vadd.f32 %v1027_v59, %v8309_v23  ;;  %v5846_v61 = vld [vmem:[#allocation5 + $0x940] sm:$0xff]  ;;  %v5852_v31 = vld [vmem:[#allocation2 + $0x968] sm:$0xff]  ;;  %v5856_v43 = vld [vmem:[#allocation5 + $0x950] sm:$0xff]  ;;  %v5860_v23 = vand.u32 2147483647, %v1509_v52  ;;  %v1939_v59 = vadd.f32 %v1938_v51, %v1875_v54  ;;  %v1330_v52 = vadd.f32 %v1329_v34, %v5657_v37 }
  0xf3   :  { %8308 = vst [vmem:[#allocation35_spill] sm:$0xff] %v5831_v40  ;;  %v5854_v10 = vld [vmem:[#allocation5 + $0x948] sm:$0xff]  ;;  %v5866_v36 = vld [vmem:[#allocation2 + $0x970] sm:$0xff]  ;;  %v5868_v8 = vld [vmem:[#allocation5 + $0x958] sm:$0xff]  ;;  %v5872_v3 = vand.u32 2147483647, %v1511_v44  ;;  %v8324_v37 = vsub.f32 %v5738_v53, %v5765_v41 }
  0xf4   :  { %8310 = vst [vmem:[#allocation12_spill] sm:$0xff] %v5840_v28  ;;  %v5864_v22 = vld [vmem:[#allocation2 + $0xa28] sm:$0xff]  ;;  %v5870_v45 = vld [vmem:[#allocation5 + $0x960] sm:$0xff]  ;;  %v5874_v57 = vld [vmem:[#allocation2 + $0xa30] sm:$0xff]  ;;  %v1876_v38 = vand.u32 2147483647, %v1812_v63  ;;  %v5890_v63 = vadd.f32 %v1028_v21, %v5744_v35 }
  0xf5   :  { %8311 = vst [vmem:[#allocation36_spill] sm:$0xff] %v5842_v11  ;;  %v5877_v39 = vld [vmem:[#allocation5 + $0x968] sm:$0xff]  ;;  %v5879_v14 = vld [vmem:[#allocation5 + $0x970] sm:$0xff]  ;;  %v5885_v62 = vand.u32 2147483647, %v1512_v30  ;;  %v5887_v44 = vld [vmem:[#allocation2 + $0xa38] sm:$0xff] }
  0xf6   :  { %8312 = vst [vmem:[#allocation37_spill] sm:$0xff] %v5846_v61  ;;  %v5896_v51 = vand.u32 2147483647, %v1513_v15  ;;  %v5898_v54 = vld [vmem:[#allocation2 + $0xa40] sm:$0xff]  ;;  %v5900_v42 = vld [vmem:[#allocation5 + $0xa30] sm:$0xff]  ;;  %v5902_v30 = vld [vmem:[#allocation5 + $0xa38] sm:$0xff]  ;;  %v1635_v15 = vadd.f32 %v1634_v29, %v1571_v4  ;;  %v1940_v4 = vadd.f32 %v1939_v59, %v1876_v38 }
  0xf7   :  { %8313 = vst [vmem:[#allocation38_spill] sm:$0xff] %v5852_v31  ;;  %v5904_v49 = vld [vmem:[#allocation2 + $0xc00] sm:$0xff]  ;;  %v5913_v34 = vand.u32 2147483647, %v8324_v37  ;;  %v5915_v19 = vld [vmem:[#allocation2 + $0xa48] sm:$0xff]  ;;  %v5917_v0 = vld [vmem:[#allocation2 + $0xa50] sm:$0xff]  ;;  %v1331_v37 = vadd.f32 %v1330_v52, %v5659_v46 }
  0xf8   :  { %8314 = vst [vmem:[#allocation39_spill] sm:$0xff] %v5854_v10  ;;  %v2070_v40 = vld [vmem:[#allocation5 + $0xc08] sm:$0xff]  ;;  %v5919_v10 = vld [vmem:[#allocation2 + $0x978] sm:$0xff]  ;;  %v5927_v53 = vld [vmem:[#allocation5 + $0xa40] sm:$0xff]  ;;  %v1877_v41 = vand.u32 2147483647, %v1813_v25  ;;  %v1815_v25 = vsub.f32 %v5874_v57, %v5900_v42 }
  0xf9   :  { %8315 = vst [vmem:[#allocation40_spill] sm:$0xff] %v5856_v43  ;;  %v2069_v43 = vld [vmem:[#allocation5 + $0xc00] sm:$0xff]  ;;  %v5921_v7 = vld [vmem:[#allocation5 + $0x978] sm:$0xff]  ;;  %v5944_v31 = vld [vmem:[#allocation5 + $0xa50] sm:$0xff] }
  0xfa   :  { %8316 = vst [vmem:[#allocation41_spill] sm:$0xff] %v5866_v36  ;;  %v5925_v35 = vld [vmem:[#allocation2 + $0xa58] sm:$0xff]  ;;  %v5940_v21 = vld [vmem:[#allocation2 + $0xa60] sm:$0xff]  ;;  %v5948_v46 = vld [vmem:[#allocation2 + $0x988] sm:$0xff]  ;;  %v2133_v57 = vsub.f32 %v5904_v49, %v2069_v43  ;;  %v1941_v42 = vadd.f32 %v1940_v4, %v1877_v41 }
  0xfb   :  { %8317 = vst [vmem:[#allocation42_spill] sm:$0xff] %v5868_v8  ;;  %v8329_v8 = vsub.f32 %v5740_v6, %v5767_v9  ;;  %v5957_v6 = vld [vmem:[#allocation2 + $0xa68] sm:$0xff]  ;;  %v5959_v9 = vld [vmem:[#allocation2 + $0xa70] sm:$0xff]  ;;  %v5961_v59 = vld [vmem:[#allocation5 + $0xa58] sm:$0xff] }
  0xfc   :  { %8318 = vst [vmem:[#allocation43_spill] sm:$0xff] %v5870_v45  ;;  %v5931_v45 = vld [vmem:[#allocation2 + $0x980] sm:$0xff]  ;;  %v5974_v11 = vld [vmem:[#allocation2 + $0xa78] sm:$0xff]  ;;  %v2006_v36 = vld [vmem:[#allocation2 + $0xc10] sm:$0xff] }
  0xfd   :  { %8319 = vst [vmem:[#allocation44_spill] sm:$0xff] %v5872_v3  ;;  %v1750_v3 = vld [vmem:[#allocation5 + $0xa28] sm:$0xff]  ;;  %v5938_v28 = vand.u32 2147483647, %v8329_v8  ;;  %v2071_v43 = vld [vmem:[#allocation5 + $0xc10] sm:$0xff]  ;;  %v1332_v8 = vadd.f32 %v1331_v37, %v5661_v58  ;;  %v6014_v41 = vld [vmem:[#allocation2 + $0xa98] sm:$0xff] }
  0xfe   :  { %8320 = vst [vmem:[#allocation45_spill] sm:$0xff] %v5877_v39  ;;  %v1814_v29 = vsub.f32 %v5864_v22, %v1750_v3  ;;  %v5942_v39 = vld [vmem:[#allocation5 + $0xa48] sm:$0xff]  ;;  %v5950_v3 = vld [vmem:[#allocation5 + $0x980] sm:$0xff]  ;;  %v8333_v22 = vsub.f32 %v5749_v60, %v5782_v5  ;;  %v8335_v5 = vsub.f32 %v5751_v2, %v5784_v48  ;;  %v5988_v2 = vld [vmem:[#allocation5 + $0xa70] sm:$0xff] }
  0xff   :  { %8321 = vst [vmem:[#allocation46_spill] sm:$0xff] %v5879_v14  ;;  %v5976_v14 = vld [vmem:[#allocation5 + $0xa60] sm:$0xff]  ;;  %v5984_v49 = vld [vmem:[#allocation2 + $0xa88] sm:$0xff]  ;;  %v6012_v58 = vld [vmem:[#allocation5 + $0x990] sm:$0xff] }
 0x100   :  { %8322 = vst [vmem:[#allocation47_spill] sm:$0xff] %v5890_v63  ;;  %v2005_v63 = vld [vmem:[#allocation2 + $0xc08] sm:$0xff]  ;;  %v5955_v38 = vand.u32 2147483647, %v8333_v22  ;;  %v5971_v60 = vand.u32 2147483647, %v8335_v5  ;;  %v1636_v22 = vadd.f32 %v1635_v15, %v5850_v26 }
 0x101   :  { %8323 = vst [vmem:[#allocation48_spill] sm:$0xff] %v5896_v51  ;;  %v2134_v52 = vsub.f32 %v2005_v63, %v2070_v40  ;;  %v5980_v40 = vld [vmem:[#allocation5 + $0x988] sm:$0xff]  ;;  %v5982_v63 = vld [vmem:[#allocation2 + $0xa80] sm:$0xff]  ;;  %v1878_v5 = vand.u32 2147483647, %v1814_v29  ;;  %v6006_v26 = vld [vmem:[#allocation5 + $0xa78] sm:$0xff]  ;;  %v1333_v51 = vadd.f32 %v1332_v8, %v5663_v12 }
 0x102   :  { %8325 = vst [vmem:[#allocation49_spill] sm:$0xff] %v5913_v34  ;;  %v5986_v48 = vld [vmem:[#allocation5 + $0xa68] sm:$0xff]  ;;  %v6008_v34 = vld [vmem:[#allocation5 + $0xa80] sm:$0xff]  ;;  %v2007_v61 = vld [vmem:[#allocation2 + $0xc18] sm:$0xff]  ;;  %v1879_v15 = vand.u32 2147483647, %v1815_v25 }
 0x103   :  { %8326 = vst [vmem:[#allocation50_spill] sm:$0xff] %v5919_v10  ;;  %v6016_v4 = vld [vmem:[#allocation2 + $0xaa0] sm:$0xff]  ;;  %v6018_v37 = vld [vmem:[#allocation5 + $0xa88] sm:$0xff]  ;;  %v2198_v10 = vand.u32 2147483647, %v2134_v52  ;;  %v6038_v52 = vld [vmem:[#allocation2 + $0xab0] sm:$0xff] }
 0x104   :  { %8327 = vst [vmem:[#allocation51_spill] sm:$0xff] %v5921_v7  ;;  %v5995_v7 = vld [vmem:[#allocation2 + $0x990] sm:$0xff]  ;;  %v6025_v29 = vld [vmem:[#allocation2 + $0xaa8] sm:$0xff]  ;;  %v6063_v12 = vld [vmem:[#allocation5 + $0xab8] sm:$0xff] }
 0x105   :  { %8328 = vst [vmem:[#allocation52_spill] sm:$0xff] %v5931_v45  ;;  %v6027_v45 = vld [vmem:[#allocation5 + $0xa90] sm:$0xff]  ;;  %v2008_v16 = vld [vmem:[#allocation2 + $0xc20] sm:$0xff] }
 0x106   :  { %8330 = vst [vmem:[#allocation53_spill] sm:$0xff] %v5938_v28  ;;  %v6004_v28 = vld [vmem:[#allocation2 + $0xa90] sm:$0xff]  ;;  %v2073_v8 = vld [vmem:[#allocation5 + $0xc20] sm:$0xff] }
 0x107   :  { %8331 = vst [vmem:[#allocation54_spill] sm:$0xff] %v5948_v46  ;;  %v6049_v46 = vld [vmem:[#allocation5 + $0x998] sm:$0xff]  ;;  %v6061_v25 = vld [vmem:[#allocation5 + $0xab0] sm:$0xff] }
 0x108   :  { %8332 = vst [vmem:[#allocation55_spill] sm:$0xff] %v5950_v3  ;;  %v1637_v3 = vadd.f32 %v1636_v22, %v5860_v23  ;;  %v6040_v23 = vld [vmem:[#allocation5 + $0xa98] sm:$0xff]  ;;  %v6042_v22 = vld [vmem:[#allocation5 + $0xaa0] sm:$0xff] }
 0x109   :  { %8334 = vst [vmem:[#allocation56_spill] sm:$0xff] %v5955_v38 }
 0x10a   :  { %8336 = vst [vmem:[#allocation57_spill] sm:$0xff] %v5971_v60  ;;  %v8340_v60 = vsub.f32 %v5761_v17, %v5789_v50  ;;  %v2135_v50 = vsub.f32 %v2006_v36, %v2071_v43  ;;  %v2072_v17 = vld [vmem:[#allocation5 + $0xc18] sm:$0xff]  ;;  %v8344_v36 = vsub.f32 %v5776_v20, %v5798_v47  ;;  %v6053_v47 = vld [vmem:[#allocation5 + $0xaa8] sm:$0xff] }
 0x10b   :  { %8337 = vst [vmem:[#allocation58_spill] sm:$0xff] %v5980_v40  ;;  %v6047_v40 = vld [vmem:[#allocation2 + $0x998] sm:$0xff] }
 0x10c   :  { %8338 = vst [vmem:[#allocation59_spill] sm:$0xff] %v5984_v49  ;;  %v6002_v38 = vand.u32 2147483647, %v8340_v60  ;;  %v2197_v60 = vand.u32 2147483647, %v2133_v57  ;;  %v6059_v43 = vld [vmem:[#allocation2 + $0xab8] sm:$0xff] }
 0x10d   :  { %8339 = vst [vmem:[#allocation60_spill] sm:$0xff] %v5995_v7  ;;  %v6036_v57 = vand.u32 2147483647, %v8344_v36  ;;  %v1638_v36 = vadd.f32 %v1637_v3, %v5862_v33  ;;  %v8353_v3 = vsub.f32 %v5887_v44, %v5902_v30  ;;  %v6108_v30 = vld [vmem:[#allocation2 + $0x9a8] sm:$0xff]  ;;  %v6122_v44 = vld [vmem:[#allocation5 + $0xad0] sm:$0xff] }
 0x10e   :  { %8341 = vst [vmem:[#allocation61_spill] sm:$0xff] %v6002_v38  ;;  %v1942_v38 = vadd.f32 %v1941_v42, %v1878_v5  ;;  %v2136_v42 = vsub.f32 %v2007_v61, %v2072_v17  ;;  %v2199_v5 = vand.u32 2147483647, %v2135_v50  ;;  %v2262_v20 = vadd.f32 %v2198_v10, %v2197_v60  ;;  %v6079_v61 = vld [vmem:[#allocation2 + $0x9a0] sm:$0xff] }
 0x10f   :  { %8342 = vst [vmem:[#allocation62_spill] sm:$0xff] %v6012_v58  ;;  %v8348_v58 = vsub.f32 %v5778_v1, %v5800_v32  ;;  %v6081_v10 = vld [vmem:[#allocation5 + $0x9a0] sm:$0xff]  ;;  %v1334_v50 = vadd.f32 %v1333_v51, %v5666_v24  ;;  %v8354_v60 = vsub.f32 %v5780_v27, %v5802_v56  ;;  %v6100_v1 = vld [vmem:[#allocation2 + $0xad0] sm:$0xff]  ;;  %v6110_v24 = vld [vmem:[#allocation5 + $0x9a8] sm:$0xff] }
 0x110   :  { %8343 = vst [vmem:[#allocation63_spill] sm:$0xff] %v6018_v37  ;;  %v6085_v32 = vld [vmem:[#allocation5 + $0xac0] sm:$0xff]  ;;  %v1943_v17 = vadd.f32 %v1942_v38, %v1879_v15  ;;  %v6098_v37 = vld [vmem:[#allocation2 + $0xac8] sm:$0xff]  ;;  %v2137_v38 = vsub.f32 %v2008_v16, %v2073_v8  ;;  %v2200_v15 = vand.u32 2147483647, %v2136_v42  ;;  %v6129_v8 = vld [vmem:[#allocation2 + $0x9b0] sm:$0xff] }
 0x111   :  { %8345 = vst [vmem:[#allocation64_spill] sm:$0xff] %v6036_v57  ;;  %v6070_v7 = vand.u32 2147483647, %v8348_v58  ;;  %v6073_v57 = vld [vmem:[#allocation2 + $0xac0] sm:$0xff]  ;;  %v1880_v58 = vand.u32 2147483647, %v8353_v3  ;;  %v2263_v3 = vadd.f32 %v2262_v20, %v2199_v5  ;;  %v8362_v5 = vsub.f32 %v5917_v0, %v5944_v31 }
 0x112   :  { %8346 = vst [vmem:[#allocation65_spill] sm:$0xff] %v6047_v40  ;;  %v6096_v49 = vand.u32 2147483647, %v8354_v60  ;;  %v8356_v27 = vld [vmem:[#allocation14_spill] sm:$0xff]  ;;  %v2074_v16 = vld [vmem:[#allocation5 + $0xc28] sm:$0xff]  ;;  %v6131_v20 = vld [vmem:[#allocation5 + $0x9b0] sm:$0xff] }
 0x113   :  { %8347 = vst [vmem:[#allocation66_spill] sm:$0xff] %v6049_v46  ;;  %v8357_v56 = vsub.f32 %v5810_v55, %v8356_v27  ;;  %v6120_v46 = vld [vmem:[#allocation2 + $0xad8] sm:$0xff]  ;;  %v8360_v55 = vsub.f32 %v5898_v54, %v5927_v53  ;;  %v6141_v60 = vand.u32 2147483647, %v8362_v5  ;;  %v1944_v54 = vadd.f32 %v1943_v17, %v1880_v58  ;;  %v8363_v53 = vld [vmem:[#allocation15_spill] sm:$0xff]  ;;  %v2328_v31 = vld [vmem:[#allocation2 + $0xe00] sm:$0xff] }
 0x114   :  { %8349 = vst [vmem:[#allocation67_spill] sm:$0xff] %v6070_v7  ;;  %v6102_v7 = vld [vmem:[#allocation5 + $0xac8] sm:$0xff]  ;;  %v2201_v17 = vand.u32 2147483647, %v2137_v38  ;;  %v2393_v5 = vld [vmem:[#allocation5 + $0xe00] sm:$0xff]  ;;  %v2010_v38 = vld [vmem:[#allocation2 + $0xc30] sm:$0xff] }
 0x115   :  { %8350 = vst [vmem:[#allocation68_spill] sm:$0xff] %v6079_v61  ;;  %v6115_v51 = vand.u32 2147483647, %v8357_v56  ;;  %v1881_v27 = vand.u32 2147483647, %v8360_v55  ;;  %v2009_v56 = vld [vmem:[#allocation2 + $0xc28] sm:$0xff]  ;;  %v1335_v55 = vadd.f32 %v1334_v50, %v8363_v53  ;;  %v2264_v50 = vadd.f32 %v2263_v3, %v2200_v15 }
 0x116   :  { %8351 = vst [vmem:[#allocation69_spill] sm:$0xff] %v6081_v10  ;;  %v8365_v10 = vld [vmem:[#allocation33_spill] sm:$0xff]  ;;  %v2138_v58 = vsub.f32 %v2009_v56, %v2074_v16  ;;  %v2394_v53 = vld [vmem:[#allocation5 + $0xe08] sm:$0xff]  ;;  %v2075_v15 = vld [vmem:[#allocation5 + $0xc30] sm:$0xff]  ;;  %v8372_v16 = vsub.f32 %v5820_v18, %v5844_v13  ;;  %v8376_v18 = vsub.f32 %v5974_v11, %v6006_v26 }
 0x117   :  { %8352 = vst [vmem:[#allocation70_spill] sm:$0xff] %v6085_v32  ;;  %v6173_v3 = vld [vmem:[#allocation2 + $0x9b8] sm:$0xff]  ;;  %v6201_v0 = vld [vmem:[#allocation2 + $0xae8] sm:$0xff] }
 0x118   :  { %8355 = vst [vmem:[#allocation71_spill] sm:$0xff] %v6096_v49  ;;  %v8359_v49 = vld [vmem:[#allocation44_spill] sm:$0xff]  ;;  %v6175_v56 = vld [vmem:[#allocation5 + $0x9b8] sm:$0xff]  ;;  %v6197_v13 = vand.u32 2147483647, %v8376_v18  ;;  %v8380_v26 = vld [vmem:[#allocation11_spill] sm:$0xff] }
 0x119   :  { %8358 = vst [vmem:[#allocation14_spill] sm:$0xff] %v6115_v51  ;;  %v1639_v33 = vadd.f32 %v1638_v36, %v8359_v49  ;;  %v8361_v36 = vsub.f32 %v5915_v19, %v5942_v39  ;;  %v8364_v51 = vld [vmem:[#allocation13_spill] sm:$0xff]  ;;  %v8368_v19 = vsub.f32 %v5925_v35, %v5961_v59  ;;  %v8369_v35 = vsub.f32 %v5940_v21, %v5976_v14  ;;  %v6199_v14 = vld [vmem:[#allocation2 + $0x9c0] sm:$0xff] }
 0x11a   :  { %v8366_v61 = vsub.f32 %v8364_v51, %v8365_v10  ;;  %v6151_v49 = vld [vmem:[#allocation5 + $0xad8] sm:$0xff]  ;;  %v8370_v51 = vsub.f32 %v5957_v6, %v5986_v48  ;;  %8371 = vst [vmem:[#allocation15_spill] sm:$0xff] %v6175_v56  ;;  %v8374_v21 = vsub.f32 %v5959_v9, %v5988_v2  ;;  %v1945_v48 = vadd.f32 %v1944_v54, %v1881_v27  ;;  %v8395_v56 = vld [vmem:[#allocation39_spill] sm:$0xff] }
 0x11b   :  { %v1882_v42 = vand.u32 2147483647, %v8361_v36  ;;  %v6156_v39 = vand.u32 2147483647, %v8368_v19  ;;  %v2329_v36 = vld [vmem:[#allocation2 + $0xe08] sm:$0xff]  ;;  %v1640_v10 = vadd.f32 %v1639_v33, %v5885_v62  ;;  %v8375_v33 = vld [vmem:[#allocation16_spill] sm:$0xff]  ;;  %v8378_v9 = vsub.f32 %v5982_v63, %v6008_v34 }
 0x11c   :  { %v6149_v32 = vand.u32 2147483647, %v8366_v61  ;;  %v6166_v59 = vand.u32 2147483647, %v8369_v35  ;;  %v6171_v19 = vand.u32 2147483647, %v8370_v51  ;;  %v1336_v35 = vadd.f32 %v1335_v55, %v8375_v33 }
 0x11d   :  { %v6180_v62 = vand.u32 2147483647, %v8372_v16  ;;  %v6187_v6 = vand.u32 2147483647, %v8374_v21  ;;  %v6190_v51 = vld [vmem:[#allocation2 + $0xae0] sm:$0xff]  ;;  %8377 = vst [vmem:[#allocation33_spill] sm:$0xff] %v6197_v13  ;;  %v2457_v16 = vsub.f32 %v2328_v31, %v2393_v5  ;;  %v2458_v40 = vsub.f32 %v2329_v36, %v2394_v53 }
 0x11e   :  { %8367 = vst [vmem:[#allocation44_spill] sm:$0xff] %v6149_v32  ;;  %v6192_v61 = vld [vmem:[#allocation5 + $0xae0] sm:$0xff]  ;;  %v6206_v2 = vand.u32 2147483647, %v8378_v9  ;;  %v2139_v27 = vsub.f32 %v2010_v38, %v2075_v15  ;;  %v2202_v54 = vand.u32 2147483647, %v2138_v58  ;;  %v2265_v55 = vadd.f32 %v2264_v50, %v2201_v17 }
 0x11f   :  { %8373 = vst [vmem:[#allocation13_spill] sm:$0xff] %v6180_v62  ;;  %v2330_v21 = vld [vmem:[#allocation2 + $0xe10] sm:$0xff]  ;;  %v8381_v31 = vld [vmem:[#allocation37_spill] sm:$0xff]  ;;  %v8385_v62 = vld [vmem:[#allocation59_spill] sm:$0xff] }
 0x120   :  { %8379 = vst [vmem:[#allocation16_spill] sm:$0xff] %v6206_v2  ;;  %v2395_v33 = vld [vmem:[#allocation5 + $0xe10] sm:$0xff]  ;;  %v8382_v36 = vsub.f32 %v8380_v26, %v8381_v31  ;;  %v8386_v32 = vld [vmem:[#allocation63_spill] sm:$0xff]  ;;  %v2011_v38 = vld [vmem:[#allocation2 + $0xc38] sm:$0xff]  ;;  %v8389_v26 = vsub.f32 %v6004_v28, %v6027_v45  ;;  %v1946_v31 = vadd.f32 %v1945_v48, %v1882_v42  ;;  %v2522_v2 = vand.u32 2147483647, %v2458_v40 }
 0x121   :  { %v8384_v53 = vld [vmem:[#allocation48_spill] sm:$0xff]  ;;  %v8387_v34 = vsub.f32 %v8385_v62, %v8386_v32  ;;  %v2076_v58 = vld [vmem:[#allocation5 + $0xc38] sm:$0xff]  ;;  %v6221_v17 = vld [vmem:[#allocation2 + $0x9c8] sm:$0xff]  ;;  %v8391_v32 = vsub.f32 %v6014_v41, %v6040_v23  ;;  %v2266_v42 = vadd.f32 %v2265_v55, %v2202_v54  ;;  %v8401_v54 = vsub.f32 %v6025_v29, %v6053_v47 }
 0x122   :  { %v6213_v5 = vand.u32 2147483647, %v8382_v36  ;;  %v1641_v18 = vadd.f32 %v1640_v10, %v8384_v53  ;;  %v6223_v50 = vld [vmem:[#allocation5 + $0x9c0] sm:$0xff]  ;;  %v6225_v15 = vld [vmem:[#allocation5 + $0xae8] sm:$0xff]  ;;  %v6232_v10 = vand.u32 2147483647, %v8389_v26  ;;  %v2140_v23 = vsub.f32 %v2011_v38, %v2076_v58 }
 0x123   :  { %v6219_v63 = vand.u32 2147483647, %v8387_v34  ;;  %v6237_v62 = vand.u32 2147483647, %v8391_v32  ;;  %v8393_v36 = vld [vmem:[#allocation17_spill] sm:$0xff]  ;;  %v6240_v13 = vld [vmem:[#allocation5 + $0x9c8] sm:$0xff] }
 0x124   :  { %8383 = vst [vmem:[#allocation11_spill] sm:$0xff] %v6213_v5  ;;  %v1337_v53 = vadd.f32 %v1336_v35, %v8393_v36  ;;  %v2331_v34 = vld [vmem:[#allocation2 + $0xe18] sm:$0xff]  ;;  %v2459_v5 = vsub.f32 %v2330_v21, %v2395_v33  ;;  %v8394_v9 = vld [vmem:[#allocation34_spill] sm:$0xff]  ;;  %v6247_v26 = vld [vmem:[#allocation2 + $0xaf0] sm:$0xff]  ;;  %v2203_v32 = vand.u32 2147483647, %v2139_v27 }
 0x125   :  { %8388 = vst [vmem:[#allocation37_spill] sm:$0xff] %v6219_v63  ;;  %v2396_v11 = vld [vmem:[#allocation5 + $0xe18] sm:$0xff]  ;;  %v2521_v63 = vand.u32 2147483647, %v2457_v16  ;;  %v8396_v28 = vsub.f32 %v8394_v9, %v8395_v56  ;;  %v2012_v41 = vld [vmem:[#allocation2 + $0xc40] sm:$0xff]  ;;  %v8399_v16 = vsub.f32 %v6016_v4, %v6042_v22  ;;  %v6261_v27 = vld [vmem:[#allocation5 + $0xaf0] sm:$0xff]  ;;  %v1947_v4 = vadd.f32 %v1946_v31, %v6141_v60 }
 0x126   :  { %8390 = vst [vmem:[#allocation48_spill] sm:$0xff] %v6232_v10  ;;  %v8398_v35 = vld [vmem:[#allocation49_spill] sm:$0xff]  ;;  %v2077_v33 = vld [vmem:[#allocation5 + $0xc40] sm:$0xff]  ;;  %v6266_v55 = vand.u32 2147483647, %v8401_v54  ;;  %v2460_v22 = vsub.f32 %v2331_v34, %v2396_v11  ;;  %v2333_v40 = vld [vmem:[#allocation2 + $0xe28] sm:$0xff] }
 0x127   :  { %8392 = vst [vmem:[#allocation59_spill] sm:$0xff] %v6237_v62  ;;  %v6245_v45 = vand.u32 2147483647, %v8396_v28  ;;  %v1642_v21 = vadd.f32 %v1641_v18, %v8398_v35  ;;  %v6257_v56 = vand.u32 2147483647, %v8399_v16  ;;  %v2332_v9 = vld [vmem:[#allocation2 + $0xe20] sm:$0xff]  ;;  %v8403_v18 = vsub.f32 %v6038_v52, %v6061_v25 }
 0x128   :  { %v2397_v36 = vld [vmem:[#allocation5 + $0xe20] sm:$0xff]  ;;  %v6259_v28 = vld [vmem:[#allocation2 + $0x9d0] sm:$0xff]  ;;  %8402 = vst [vmem:[#allocation34_spill] sm:$0xff] %v6266_v55  ;;  %v2523_v29 = vand.u32 2147483647, %v2459_v5  ;;  %v2586_v47 = vadd.f32 %v2522_v2, %v2521_v63  ;;  %v2013_v54 = vld [vmem:[#allocation2 + $0xc48] sm:$0xff]  ;;  %v2267_v25 = vadd.f32 %v2266_v42, %v2203_v32  ;;  %v8411_v5 = vsub.f32 %v6059_v43, %v6063_v12 }
 0x129   :  { %8397 = vst [vmem:[#allocation63_spill] sm:$0xff] %v6245_v45  ;;  %v6271_v38 = vand.u32 2147483647, %v8403_v18  ;;  %v8405_v58 = vld [vmem:[#allocation18_spill] sm:$0xff]  ;;  %v6275_v16 = vld [vmem:[#allocation5 + $0x9d0] sm:$0xff]  ;;  %v2398_v45 = vld [vmem:[#allocation5 + $0xe28] sm:$0xff]  ;;  %v2461_v18 = vsub.f32 %v2332_v9, %v2397_v36 }
 0x12a   :  { %8400 = vst [vmem:[#allocation17_spill] sm:$0xff] %v6257_v56  ;;  %v1338_v35 = vadd.f32 %v1337_v53, %v8405_v58  ;;  %v2078_v55 = vld [vmem:[#allocation5 + $0xc48] sm:$0xff]  ;;  %v2141_v56 = vsub.f32 %v2012_v41, %v2077_v33  ;;  %v2204_v52 = vand.u32 2147483647, %v2140_v23  ;;  %v8407_v60 = vld [vmem:[#allocation40_spill] sm:$0xff]  ;;  %v8410_v53 = vld [vmem:[#allocation53_spill] sm:$0xff]  ;;  %v1948_v33 = vadd.f32 %v1947_v4, %v6156_v39 }
 0x12b   :  { %8404 = vst [vmem:[#allocation39_spill] sm:$0xff] %v6271_v38  ;;  %v8406_v38 = vld [vmem:[#allocation35_spill] sm:$0xff]  ;;  %v1643_v34 = vadd.f32 %v1642_v21, %v8410_v53  ;;  %v6290_v2 = vand.u32 2147483647, %v8411_v5  ;;  %v2334_v63 = vld [vmem:[#allocation2 + $0xe30] sm:$0xff]  ;;  %v6294_v32 = vld [vmem:[#allocation2 + $0xaf8] sm:$0xff]  ;;  %v2462_v21 = vsub.f32 %v2333_v40, %v2398_v45  ;;  %v2142_v5 = vsub.f32 %v2013_v54, %v2078_v55 }
 0x12c   :  { %v8408_v11 = vsub.f32 %v8406_v38, %v8407_v60  ;;  %v2399_v41 = vld [vmem:[#allocation5 + $0xe30] sm:$0xff]  ;;  %v6296_v42 = vld [vmem:[#allocation5 + $0xaf8] sm:$0xff]  ;;  %v2524_v9 = vand.u32 2147483647, %v2460_v22  ;;  %v8413_v36 = vld [vmem:[#allocation19_spill] sm:$0xff]  ;;  %v2587_v58 = vadd.f32 %v2586_v47, %v2523_v29  ;;  %v2268_v48 = vadd.f32 %v2267_v25, %v2204_v52 }
 0x12d   :  { %8412 = vst [vmem:[#allocation18_spill] sm:$0xff] %v6290_v2  ;;  %v1339_v38 = vadd.f32 %v1338_v35, %v8413_v36  ;;  %v8414_v60 = vld [vmem:[#allocation70_spill] sm:$0xff]  ;;  %v2079_v53 = vld [vmem:[#allocation5 + $0xc50] sm:$0xff]  ;;  %v2205_v23 = vand.u32 2147483647, %v2141_v56  ;;  %v2335_v2 = vld [vmem:[#allocation2 + $0xe38] sm:$0xff]  ;;  %v2463_v62 = vsub.f32 %v2334_v63, %v2399_v41  ;;  %v8420_v56 = vsub.f32 %v6098_v37, %v6102_v7 }
 0x12e   :  { %v6282_v31 = vand.u32 2147483647, %v8408_v11  ;;  %v8415_v43 = vsub.f32 %v6073_v57, %v8414_v60  ;;  %v2014_v11 = vld [vmem:[#allocation2 + $0xc50] sm:$0xff]  ;;  %v2525_v10 = vand.u32 2147483647, %v2461_v18  ;;  %v8417_v45 = vld [vmem:[#allocation42_spill] sm:$0xff]  ;;  %v8421_v54 = vsub.f32 %v6100_v1, %v6122_v44 }
 0x12f   :  { %v8416_v39 = vld [vmem:[#allocation12_spill] sm:$0xff]  ;;  %v6311_v57 = vld [vmem:[#allocation2 + $0xb00] sm:$0xff]  ;;  %v6318_v55 = vand.u32 2147483647, %v8420_v56  ;;  %v6320_v29 = vld [vmem:[#allocation2 + $0x9d8] sm:$0xff]  ;;  %v1949_v25 = vadd.f32 %v1948_v33, %v6166_v59  ;;  %v2143_v1 = vsub.f32 %v2014_v11, %v2079_v53  ;;  %v8431_v11 = vsub.f32 %v6201_v0, %v6225_v15 }
 0x130   :  { %8409 = vst [vmem:[#allocation49_spill] sm:$0xff] %v6282_v31  ;;  %v6303_v12 = vand.u32 2147483647, %v8415_v43  ;;  %v2400_v31 = vld [vmem:[#allocation5 + $0xe38] sm:$0xff]  ;;  %v8418_v40 = vsub.f32 %v8416_v39, %v8417_v45  ;;  %v8419_v22 = vld [vmem:[#allocation56_spill] sm:$0xff]  ;;  %v6331_v60 = vld [vmem:[#allocation2 + $0x9e0] sm:$0xff]  ;;  %v8423_v43 = vsub.f32 %v6120_v46, %v6151_v49  ;;  %v8429_v49 = vsub.f32 %v6190_v51, %v6192_v61 }
 0x131   :  { %v1644_v35 = vadd.f32 %v1643_v34, %v8419_v22  ;;  %v6322_v47 = vld [vmem:[#allocation5 + $0x9d8] sm:$0xff]  ;;  %v6327_v52 = vand.u32 2147483647, %v8421_v54  ;;  %v2526_v18 = vand.u32 2147483647, %v2462_v21  ;;  %v2588_v34 = vadd.f32 %v2587_v58, %v2524_v9  ;;  %v8422_v63 = vld [vmem:[#allocation20_spill] sm:$0xff] }
 0x132   :  { %v6308_v4 = vand.u32 2147483647, %v8418_v40  ;;  %v1340_v41 = vadd.f32 %v1339_v38, %v8422_v63  ;;  %v6333_v7 = vld [vmem:[#allocation5 + $0x9e0] sm:$0xff]  ;;  %v6340_v39 = vand.u32 2147483647, %v8423_v43  ;;  %v2464_v44 = vsub.f32 %v2335_v2, %v2400_v31  ;;  %v8425_v38 = vld [vmem:[#allocation36_spill] sm:$0xff] }
 0x133   :  { %v6335_v37 = vld [vmem:[#allocation5 + $0xb00] sm:$0xff]  ;;  %v2206_v45 = vand.u32 2147483647, %v2142_v5  ;;  %v2269_v40 = vadd.f32 %v2268_v48, %v2205_v23  ;;  %v2527_v58 = vand.u32 2147483647, %v2463_v62  ;;  %v2589_v21 = vadd.f32 %v2588_v34, %v2525_v10  ;;  %v8426_v22 = vld [vmem:[#allocation43_spill] sm:$0xff] }
 0x134   :  { %8424 = vst [vmem:[#allocation35_spill] sm:$0xff] %v6340_v39  ;;  %v2336_v59 = vld [vmem:[#allocation2 + $0xe40] sm:$0xff]  ;;  %v8427_v56 = vsub.f32 %v8425_v38, %v8426_v22  ;;  %v8428_v63 = vld [vmem:[#allocation57_spill] sm:$0xff]  ;;  %v6353_v31 = vand.u32 2147483647, %v8429_v49  ;;  %v6355_v23 = vld [vmem:[#allocation2 + $0x9e8] sm:$0xff]  ;;  %v1950_v5 = vadd.f32 %v1949_v25, %v6171_v19 }
 0x135   :  { %v2401_v33 = vld [vmem:[#allocation5 + $0xe40] sm:$0xff]  ;;  %v1645_v46 = vadd.f32 %v1644_v35, %v8428_v63  ;;  %v2015_v48 = vld [vmem:[#allocation2 + $0xc58] sm:$0xff]  ;;  %v6357_v10 = vld [vmem:[#allocation5 + $0x9e8] sm:$0xff]  ;;  %v6364_v53 = vand.u32 2147483647, %v8431_v11  ;;  %v2590_v35 = vadd.f32 %v2589_v21, %v2526_v18  ;;  %v2270_v62 = vadd.f32 %v2269_v40, %v2206_v45 }
 0x136   :  { %v6347_v54 = vand.u32 2147483647, %v8427_v56  ;;  %8430 = vst [vmem:[#allocation40_spill] sm:$0xff] %v6353_v31  ;;  %v2080_v2 = vld [vmem:[#allocation5 + $0xc58] sm:$0xff]  ;;  %v2465_v43 = vsub.f32 %v2336_v59, %v2401_v33  ;;  %v2528_v38 = vand.u32 2147483647, %v2464_v44  ;;  %v1546_v19 = vsub.f32 %v6355_v23, %v6357_v10 }
 0x137   :  { %8432 = vst [vmem:[#allocation53_spill] sm:$0xff] %v6364_v53  ;;  %v8433_v61 = vld [vmem:[#allocation21_spill] sm:$0xff]  ;;  %v6370_v22 = vld [vmem:[#allocation2 + $0x9f0] sm:$0xff]  ;;  %v2144_v63 = vsub.f32 %v2015_v48, %v2080_v2  ;;  %v2207_v49 = vand.u32 2147483647, %v2143_v1  ;;  %v2337_v0 = vld [vmem:[#allocation2 + $0xe48] sm:$0xff]  ;;  %v2591_v11 = vadd.f32 %v2590_v35, %v2527_v58 }
 0x138   :  { %v1341_v51 = vadd.f32 %v1340_v41, %v8433_v61  ;;  %v6372_v56 = vld [vmem:[#allocation5 + $0x9f0] sm:$0xff]  ;;  %v2402_v15 = vld [vmem:[#allocation5 + $0xe48] sm:$0xff]  ;;  %v8434_v25 = vld [vmem:[#allocation38_spill] sm:$0xff] }
 0x139   :  { %v8435_v18 = vld [vmem:[#allocation45_spill] sm:$0xff]  ;;  %v8438_v44 = vld [vmem:[#allocation46_spill] sm:$0xff]  ;;  %v8442_v2 = vld [vmem:[#allocation51_spill] sm:$0xff]  ;;  %v2271_v39 = vadd.f32 %v2270_v62, %v2207_v49  ;;  %v8463_v62 = vsub.f32 %v6108_v30, %v6110_v24 }
 0x13a   :  { %v8436_v41 = vsub.f32 %v8434_v25, %v8435_v18  ;;  %v8437_v59 = vld [vmem:[#allocation41_spill] sm:$0xff]  ;;  %v2016_v1 = vld [vmem:[#allocation2 + $0xc60] sm:$0xff]  ;;  %v8445_v23 = vld [vmem:[#allocation52_spill] sm:$0xff] }
 0x13b   :  { %v8439_v33 = vsub.f32 %v8437_v59, %v8438_v44  ;;  %v8440_v36 = vld [vmem:[#allocation61_spill] sm:$0xff]  ;;  %v2081_v45 = vld [vmem:[#allocation5 + $0xc60] sm:$0xff]  ;;  %v8446_v10 = vld [vmem:[#allocation55_spill] sm:$0xff]  ;;  %v1951_v44 = vadd.f32 %v1950_v5, %v6187_v6  ;;  %v1547_v6 = vsub.f32 %v6370_v22, %v6372_v56  ;;  %v6425_v49 = vand.u32 2147483647, %v8463_v62 }
 0x13c   :  { %v6379_v21 = vand.u32 2147483647, %v8436_v41  ;;  %v1646_v48 = vadd.f32 %v1645_v46, %v8440_v36  ;;  %v8441_v40 = vld [vmem:[#allocation50_spill] sm:$0xff]  ;;  %v8447_v34 = vsub.f32 %v8445_v23, %v8446_v10  ;;  %v8452_v36 = vld [vmem:[#allocation60_spill] sm:$0xff]  ;;  %v1419_v23 = vld [vmem:[#allocation2 + $0x9f8] sm:$0xff]  ;;  %v2145_v10 = vsub.f32 %v2016_v1, %v2081_v45 }
 0x13d   :  { %v6384_v61 = vand.u32 2147483647, %v8439_v33  ;;  %v8443_v58 = vsub.f32 %v8441_v40, %v8442_v2  ;;  %v8449_v18 = vld [vmem:[#allocation54_spill] sm:$0xff]  ;;  %v2466_v40 = vsub.f32 %v2337_v0, %v2402_v15  ;;  %v2529_v2 = vand.u32 2147483647, %v2465_v43  ;;  %v8456_v5 = vld [vmem:[#allocation65_spill] sm:$0xff] }
 0x13e   :  { %v6395_v25 = vand.u32 2147483647, %v8447_v34  ;;  %v8450_v41 = vld [vmem:[#allocation58_spill] sm:$0xff]  ;;  %v1484_v34 = vld [vmem:[#allocation5 + $0x9f8] sm:$0xff]  ;;  %v8459_v0 = vld [vmem:[#allocation68_spill] sm:$0xff]  ;;  %v8464_v22 = vsub.f32 %v6129_v8, %v6131_v20 }
 0x13f   :  { %v6390_v35 = vand.u32 2147483647, %v8443_v58  ;;  %v8451_v9 = vsub.f32 %v8449_v18, %v8450_v41  ;;  %v8453_v46 = vld [vmem:[#allocation62_spill] sm:$0xff]  ;;  %v2592_v58 = vadd.f32 %v2591_v11, %v2528_v38  ;;  %v2338_v18 = vld [vmem:[#allocation2 + $0xe50] sm:$0xff]  ;;  %v8460_v43 = vld [vmem:[#allocation69_spill] sm:$0xff] }
 0x140   :  { %8448 = vst [vmem:[#allocation70_spill] sm:$0xff] %v6395_v25  ;;  %v8454_v33 = vsub.f32 %v8452_v36, %v8453_v46  ;;  %v8455_v31 = vld [vmem:[#allocation22_spill] sm:$0xff]  ;;  %v2208_v25 = vand.u32 2147483647, %v2144_v63  ;;  %v8461_v38 = vsub.f32 %v8459_v0, %v8460_v43  ;;  %v2017_v11 = vld [vmem:[#allocation2 + $0xc68] sm:$0xff] }
 0x141   :  { %8444 = vst [vmem:[#allocation19_spill] sm:$0xff] %v6390_v35  ;;  %v6400_v59 = vand.u32 2147483647, %v8451_v9  ;;  %v1342_v35 = vadd.f32 %v1341_v51, %v8455_v31  ;;  %v2403_v9 = vld [vmem:[#allocation5 + $0xe50] sm:$0xff]  ;;  %v8457_v41 = vld [vmem:[#allocation66_spill] sm:$0xff]  ;;  %v2082_v63 = vld [vmem:[#allocation5 + $0xc68] sm:$0xff]  ;;  %v2593_v0 = vadd.f32 %v2592_v58, %v2529_v2 }
 0x142   :  { %v6406_v53 = vand.u32 2147483647, %v8454_v33  ;;  %v8458_v36 = vsub.f32 %v8456_v5, %v8457_v41  ;;  %v6419_v15 = vand.u32 2147483647, %v8461_v38  ;;  %v8462_v31 = vld [vmem:[#allocation64_spill] sm:$0xff]  ;;  %v8465_v1 = vld [vmem:[#allocation15_spill] sm:$0xff]  ;;  %v2467_v30 = vsub.f32 %v2338_v18, %v2403_v9 }
 0x143   :  { %v1647_v51 = vadd.f32 %v1646_v48, %v8462_v31  ;;  %v6430_v56 = vand.u32 2147483647, %v8464_v22  ;;  %v8466_v45 = vsub.f32 %v6173_v3, %v8465_v1  ;;  %v8468_v5 = vld [vmem:[#allocation33_spill] sm:$0xff]  ;;  %v8469_v48 = vsub.f32 %v6199_v14, %v6223_v50  ;;  %v8471_v43 = vld [vmem:[#allocation23_spill] sm:$0xff]  ;;  %v1714_v18 = vld [vmem:[#allocation2 + $0xb10] sm:$0xff] }
 0x144   :  { %v6414_v46 = vand.u32 2147483647, %v8458_v36  ;;  %v1952_v41 = vadd.f32 %v1951_v44, %v8468_v5  ;;  %v2530_v24 = vand.u32 2147483647, %v2466_v40  ;;  %v1343_v38 = vadd.f32 %v1342_v35, %v8471_v43  ;;  %v6444_v8 = vld [vmem:[#allocation2 + $0xb08] sm:$0xff]  ;;  %v2339_v22 = vld [vmem:[#allocation2 + $0xe58] sm:$0xff] }
 0x145   :  { %v6435_v33 = vand.u32 2147483647, %v8466_v45  ;;  %v6441_v36 = vand.u32 2147483647, %v8469_v48  ;;  %v6446_v20 = vld [vmem:[#allocation5 + $0xb08] sm:$0xff]  ;;  %v2146_v31 = vsub.f32 %v2017_v11, %v2082_v63  ;;  %v2272_v62 = vadd.f32 %v2271_v39, %v2208_v25  ;;  %v2404_v1 = vld [vmem:[#allocation5 + $0xe58] sm:$0xff] }
 0x146   :  { %v2209_v3 = vand.u32 2147483647, %v2145_v10  ;;  %v1548_v44 = vsub.f32 %v1419_v23, %v1484_v34  ;;  %v8472_v14 = vsub.f32 %v6221_v17, %v6240_v13  ;;  %v8474_v40 = vsub.f32 %v6259_v28, %v6275_v16  ;;  %v8476_v35 = vld [vmem:[#allocation67_spill] sm:$0xff]  ;;  %v6459_v9 = vld [vmem:[#allocation2 + $0xb18] sm:$0xff]  ;;  %v2018_v10 = vld [vmem:[#allocation2 + $0xc70] sm:$0xff] }
 0x147   :  { %8467 = vst [vmem:[#allocation12_spill] sm:$0xff] %v6435_v33  ;;  %v1648_v58 = vadd.f32 %v1647_v51, %v8476_v35  ;;  %v2083_v39 = vld [vmem:[#allocation5 + $0xc70] sm:$0xff]  ;;  %v8477_v25 = vsub.f32 %v6320_v29, %v6322_v47  ;;  %v8479_v13 = vsub.f32 %v6331_v60, %v6333_v7  ;;  %v6471_v28 = vand.u32 2147483647, %v1546_v19  ;;  %v6473_v16 = vld [vmem:[#allocation2 + $0xb20] sm:$0xff]  ;;  %v6478_v45 = vld [vmem:[#allocation5 + $0xb18] sm:$0xff] }
 0x148   :  { %8470 = vst [vmem:[#allocation42_spill] sm:$0xff] %v6441_v36  ;;  %v6451_v50 = vand.u32 2147483647, %v8472_v14  ;;  %v6456_v2 = vand.u32 2147483647, %v8474_v40  ;;  %v8482_v34 = vld [vmem:[#allocation16_spill] sm:$0xff]  ;;  %v2468_v5 = vsub.f32 %v2339_v22, %v2404_v1  ;;  %v2594_v47 = vadd.f32 %v2593_v0, %v2530_v24 }
 0x149   :  { %v6464_v23 = vand.u32 2147483647, %v8477_v25  ;;  %v6469_v17 = vand.u32 2147483647, %v8479_v13  ;;  %8481 = vst [vmem:[#allocation57_spill] sm:$0xff] %v6471_v28  ;;  %v1953_v51 = vadd.f32 %v1952_v41, %v8482_v34  ;;  %v1779_v63 = vld [vmem:[#allocation5 + $0xb10] sm:$0xff]  ;;  %v2147_v19 = vsub.f32 %v2018_v10, %v2083_v39 }
 0x14a   :  { %8473 = vst [vmem:[#allocation56_spill] sm:$0xff] %v6451_v50  ;;  %v6476_v11 = vand.u32 2147483647, %v1547_v6  ;;  %v2531_v29 = vand.u32 2147483647, %v2467_v30  ;;  %v8484_v48 = vld [vmem:[#allocation24_spill] sm:$0xff]  ;;  %v2273_v35 = vadd.f32 %v2272_v62, %v2209_v3  ;;  %v1842_v30 = vsub.f32 %v6444_v8, %v6446_v20 }
 0x14b   :  { %8475 = vst [vmem:[#allocation20_spill] sm:$0xff] %v6456_v2  ;;  %v1344_v43 = vadd.f32 %v1343_v38, %v8484_v48  ;;  %v6481_v14 = vld [vmem:[#allocation2 + $0xb28] sm:$0xff]  ;;  %v6483_v60 = vld [vmem:[#allocation2 + $0xb30] sm:$0xff]  ;;  %v1781_v7 = vld [vmem:[#allocation5 + $0xb20] sm:$0xff]  ;;  %v2210_v40 = vand.u32 2147483647, %v2146_v31  ;;  %v8487_v24 = vsub.f32 %v6247_v26, %v6261_v27  ;;  %v1843_v31 = vsub.f32 %v1714_v18, %v1779_v63 }
 0x14c   :  { %8478 = vst [vmem:[#allocation36_spill] sm:$0xff] %v6464_v23  ;;  %v2340_v25 = vld [vmem:[#allocation2 + $0xe60] sm:$0xff]  ;;  %v6485_v6 = vand.u32 2147483647, %v1548_v44  ;;  %v8486_v13 = vld [vmem:[#allocation71_spill] sm:$0xff]  ;;  %v2019_v38 = vld [vmem:[#allocation2 + $0xc78] sm:$0xff]  ;;  %v1844_v3 = vsub.f32 %v6459_v9, %v6478_v45  ;;  %v8488_v62 = vsub.f32 %v6294_v32, %v6296_v42  ;;  %v1845_v26 = vsub.f32 %v6473_v16, %v1781_v7 }
 0x14d   :  { %8480 = vst [vmem:[#allocation43_spill] sm:$0xff] %v6469_v17  ;;  %v2405_v41 = vld [vmem:[#allocation5 + $0xe60] sm:$0xff]  ;;  %v1649_v34 = vadd.f32 %v1648_v58, %v8486_v13  ;;  %v6493_v0 = vand.u32 2147483647, %v8487_v24  ;;  %v2084_v22 = vld [vmem:[#allocation5 + $0xc78] sm:$0xff]  ;;  %v1782_v1 = vld [vmem:[#allocation5 + $0xb28] sm:$0xff]  ;;  %v2595_v48 = vadd.f32 %v2594_v47, %v2531_v29  ;;  %v2274_v45 = vadd.f32 %v2273_v35, %v2210_v40 }
 0x14e   :  { %8483 = vst [vmem:[#allocation21_spill] sm:$0xff] %v6476_v11  ;;  %v6495_v10 = vld [vmem:[#allocation5 + $0xb30] sm:$0xff]  ;;  %v6502_v44 = vand.u32 2147483647, %v8488_v62  ;;  %v8489_v8 = vld [vmem:[#allocation37_spill] sm:$0xff]  ;;  %v2652_v58 = vld [vmem:[#allocation2 + $0x1000] sm:$0xff]  ;;  %v2469_v27 = vsub.f32 %v2340_v25, %v2405_v41  ;;  %v2148_v11 = vsub.f32 %v2019_v38, %v2084_v22 }
 0x14f   :  { %8485 = vst [vmem:[#allocation38_spill] sm:$0xff] %v6485_v6  ;;  %v1954_v20 = vadd.f32 %v1953_v51, %v8489_v8  ;;  %v2532_v39 = vand.u32 2147483647, %v2468_v5  ;;  %v2653_v13 = vld [vmem:[#allocation2 + $0x1008] sm:$0xff]  ;;  %v2717_v24 = vld [vmem:[#allocation5 + $0x1000] sm:$0xff]  ;;  %v8490_v18 = vld [vmem:[#allocation25_spill] sm:$0xff]  ;;  %v1846_v51 = vsub.f32 %v6481_v14, %v1782_v1  ;;  %v1847_v16 = vsub.f32 %v6483_v60, %v6495_v10 }
 0x150   :  { %v2718_v6 = vld [vmem:[#allocation5 + $0x1008] sm:$0xff]  ;;  %v1345_v63 = vadd.f32 %v1344_v43, %v8490_v18  ;;  %v2211_v9 = vand.u32 2147483647, %v2147_v19  ;;  %v8491_v42 = vld [vmem:[#allocation14_spill] sm:$0xff]  ;;  %v8492_v5 = vsub.f32 %v6311_v57, %v6335_v37  ;;  %v1719_v43 = vld [vmem:[#allocation2 + $0xb38] sm:$0xff]  ;;  %v2781_v41 = vsub.f32 %v2652_v58, %v2717_v24 }
 0x151   :  { %v2341_v28 = vld [vmem:[#allocation2 + $0xe68] sm:$0xff]  ;;  %v1650_v62 = vadd.f32 %v1649_v34, %v8491_v42  ;;  %v2020_v47 = vld [vmem:[#allocation2 + $0xc80] sm:$0xff]  ;;  %v1784_v25 = vld [vmem:[#allocation5 + $0xb38] sm:$0xff]  ;;  %v6516_v19 = vand.u32 2147483647, %v1842_v30  ;;  %v2782_v34 = vsub.f32 %v2653_v13, %v2718_v6  ;;  %v2596_v60 = vadd.f32 %v2595_v48, %v2532_v39 }
 0x152   :  { %v2406_v32 = vld [vmem:[#allocation5 + $0xe68] sm:$0xff]  ;;  %v6514_v29 = vand.u32 2147483647, %v8492_v5  ;;  %v2085_v7 = vld [vmem:[#allocation5 + $0xc80] sm:$0xff]  ;;  %v8493_v40 = vld [vmem:[#allocation48_spill] sm:$0xff]  ;;  %v2275_v5 = vadd.f32 %v2274_v45, %v2211_v9 }
 0x153   :  { %v1955_v35 = vadd.f32 %v1954_v20, %v8493_v40  ;;  %v6519_v38 = vand.u32 2147483647, %v1843_v31  ;;  %v2470_v14 = vsub.f32 %v2341_v28, %v2406_v32  ;;  %v2533_v22 = vand.u32 2147483647, %v2469_v27  ;;  %v2654_v1 = vld [vmem:[#allocation2 + $0x1010] sm:$0xff]  ;;  %v8494_v57 = vld [vmem:[#allocation26_spill] sm:$0xff] }
 0x154   :  { %v2719_v10 = vld [vmem:[#allocation5 + $0x1010] sm:$0xff]  ;;  %v1346_v37 = vadd.f32 %v1345_v63, %v8494_v57  ;;  %v1720_v8 = vld [vmem:[#allocation2 + $0xb40] sm:$0xff]  ;;  %v2149_v18 = vsub.f32 %v2020_v47, %v2085_v7  ;;  %v2212_v42 = vand.u32 2147483647, %v2148_v11  ;;  %v1848_v20 = vsub.f32 %v1719_v43, %v1784_v25  ;;  %v2021_v28 = vld [vmem:[#allocation2 + $0xc88] sm:$0xff] }
 0x155   :  { %v2342_v17 = vld [vmem:[#allocation2 + $0xe70] sm:$0xff]  ;;  %v6523_v58 = vand.u32 2147483647, %v1844_v3  ;;  %v6525_v6 = vand.u32 2147483647, %v1845_v26  ;;  %v2086_v31 = vld [vmem:[#allocation5 + $0xc88] sm:$0xff]  ;;  %v2783_v24 = vsub.f32 %v2654_v1, %v2719_v10  ;;  %v2597_v47 = vadd.f32 %v2596_v60, %v2533_v22 }
 0x156   :  { %v2407_v30 = vld [vmem:[#allocation5 + $0xe70] sm:$0xff]  ;;  %v1721_v27 = vld [vmem:[#allocation2 + $0xb48] sm:$0xff]  ;;  %v1785_v39 = vld [vmem:[#allocation5 + $0xb40] sm:$0xff]  ;;  %v2845_v63 = vand.u32 2147483647, %v2781_v41  ;;  %v2150_v25 = vsub.f32 %v2021_v28, %v2086_v31  ;;  %v2276_v57 = vadd.f32 %v2275_v5, %v2212_v42 }
 0x157   :  { %v8495_v23 = vld [vmem:[#allocation44_spill] sm:$0xff]  ;;  %8496 = vst [vmem:[#allocation45_spill] sm:$0xff] %v6523_v58  ;;  %v8498_v48 = vld [vmem:[#allocation59_spill] sm:$0xff]  ;;  %v2846_v32 = vand.u32 2147483647, %v2782_v34  ;;  %v2471_v9 = vsub.f32 %v2342_v17, %v2407_v30  ;;  %v2343_v50 = vld [vmem:[#allocation2 + $0xe78] sm:$0xff]  ;;  %v1849_v41 = vsub.f32 %v1720_v8, %v1785_v39 }
 0x158   :  { %v1651_v2 = vadd.f32 %v1650_v62, %v8495_v23  ;;  %8497 = vst [vmem:[#allocation41_spill] sm:$0xff] %v6525_v6  ;;  %v1956_v13 = vadd.f32 %v1955_v35, %v8498_v48  ;;  %v6528_v11 = vand.u32 2147483647, %v1846_v51  ;;  %v2534_v45 = vand.u32 2147483647, %v2470_v14  ;;  %v2655_v23 = vld [vmem:[#allocation2 + $0x1018] sm:$0xff] }
 0x159   :  { %v2720_v62 = vld [vmem:[#allocation5 + $0x1018] sm:$0xff]  ;;  %v8500_v3 = vld [vmem:[#allocation27_spill] sm:$0xff]  ;;  %v1722_v26 = vld [vmem:[#allocation2 + $0xb50] sm:$0xff]  ;;  %v2213_v40 = vand.u32 2147483647, %v2149_v18  ;;  %v2910_v18 = vadd.f32 %v2846_v32, %v2845_v63 }
 0x15a   :  { %8499 = vst [vmem:[#allocation46_spill] sm:$0xff] %v6528_v11  ;;  %v1347_v7 = vadd.f32 %v1346_v37, %v8500_v3  ;;  %v1786_v43 = vld [vmem:[#allocation5 + $0xb48] sm:$0xff]  ;;  %v2408_v36 = vld [vmem:[#allocation5 + $0xe78] sm:$0xff]  ;;  %v6532_v34 = vand.u32 2147483647, %v1847_v16  ;;  %v2022_v17 = vld [vmem:[#allocation2 + $0xc90] sm:$0xff]  ;;  %v2784_v48 = vsub.f32 %v2655_v23, %v2720_v62  ;;  %v2598_v3 = vadd.f32 %v2597_v47, %v2534_v45 }
 0x15b   :  { %v8501_v35 = vld [vmem:[#allocation13_spill] sm:$0xff]  ;;  %v6534_v51 = vand.u32 2147483647, %v1848_v20  ;;  %v2087_v14 = vld [vmem:[#allocation5 + $0xc90] sm:$0xff]  ;;  %v2847_v28 = vand.u32 2147483647, %v2783_v24  ;;  %v1850_v42 = vsub.f32 %v1721_v27, %v1786_v43  ;;  %v2472_v5 = vsub.f32 %v2343_v50, %v2408_v36 }
 0x15c   :  { %v1652_v1 = vadd.f32 %v1651_v2, %v8501_v35  ;;  %8502 = vst [vmem:[#allocation61_spill] sm:$0xff] %v6532_v34  ;;  %v1723_v22 = vld [vmem:[#allocation2 + $0xb58] sm:$0xff]  ;;  %v1787_v60 = vld [vmem:[#allocation5 + $0xb50] sm:$0xff]  ;;  %v2535_v31 = vand.u32 2147483647, %v2471_v9  ;;  %v2656_v2 = vld [vmem:[#allocation2 + $0x1020] sm:$0xff]  ;;  %v2151_v20 = vsub.f32 %v2022_v17, %v2087_v14 }
 0x15d   :  { %8503 = vst [vmem:[#allocation50_spill] sm:$0xff] %v6534_v51  ;;  %v1788_v10 = vld [vmem:[#allocation5 + $0xb58] sm:$0xff]  ;;  %v2721_v8 = vld [vmem:[#allocation5 + $0x1020] sm:$0xff]  ;;  %v8505_v16 = vld [vmem:[#allocation28_spill] sm:$0xff]  ;;  %v2214_v35 = vand.u32 2147483647, %v2150_v25  ;;  %v2277_v51 = vadd.f32 %v2276_v57, %v2213_v40  ;;  %v1851_v58 = vsub.f32 %v1722_v26, %v1787_v60  ;;  %v2911_v62 = vadd.f32 %v2910_v18, %v2847_v28 }
 0x15e   :  { %v8504_v37 = vld [vmem:[#allocation17_spill] sm:$0xff]  ;;  %v1348_v39 = vadd.f32 %v1347_v7, %v8505_v16  ;;  %v2344_v34 = vld [vmem:[#allocation2 + $0xe80] sm:$0xff]  ;;  %v8506_v6 = vld [vmem:[#allocation11_spill] sm:$0xff]  ;;  %v6539_v23 = vand.u32 2147483647, %v1849_v41  ;;  %v2785_v45 = vsub.f32 %v2656_v2, %v2721_v8  ;;  %v2599_v40 = vadd.f32 %v2598_v3, %v2535_v31 }
 0x15f   :  { %v1957_v30 = vadd.f32 %v1956_v13, %v8504_v37  ;;  %v2409_v11 = vld [vmem:[#allocation5 + $0xe80] sm:$0xff]  ;;  %v1653_v33 = vadd.f32 %v1652_v1, %v8506_v6  ;;  %v1852_v13 = vsub.f32 %v1723_v22, %v1788_v10  ;;  %v2023_v24 = vld [vmem:[#allocation2 + $0xc98] sm:$0xff]  ;;  %v1725_v50 = vld [vmem:[#allocation2 + $0xb68] sm:$0xff]  ;;  %v2848_v47 = vand.u32 2147483647, %v2784_v48 }
 0x160   :  { %v2088_v27 = vld [vmem:[#allocation5 + $0xc98] sm:$0xff]  ;;  %v1724_v36 = vld [vmem:[#allocation2 + $0xb60] sm:$0xff]  ;;  %v6542_v7 = vand.u32 2147483647, %v1850_v42  ;;  %v2473_v43 = vsub.f32 %v2344_v34, %v2409_v11  ;;  %v2536_v25 = vand.u32 2147483647, %v2472_v5  ;;  %v2278_v60 = vadd.f32 %v2277_v51, %v2214_v35 }
 0x161   :  { %v1789_v63 = vld [vmem:[#allocation5 + $0xb60] sm:$0xff]  ;;  %v2657_v6 = vld [vmem:[#allocation2 + $0x1028] sm:$0xff]  ;;  %v8509_v57 = vld [vmem:[#allocation29_spill] sm:$0xff]  ;;  %v2152_v14 = vsub.f32 %v2023_v24, %v2088_v27  ;;  %v2215_v22 = vand.u32 2147483647, %v2151_v20  ;;  %v2912_v20 = vadd.f32 %v2911_v62, %v2848_v47 }
 0x162   :  { %v8507_v32 = vld [vmem:[#allocation34_spill] sm:$0xff]  ;;  %8508 = vst [vmem:[#allocation51_spill] sm:$0xff] %v6542_v7  ;;  %v2722_v26 = vld [vmem:[#allocation5 + $0x1028] sm:$0xff]  ;;  %v1349_v1 = vadd.f32 %v1348_v39, %v8509_v57  ;;  %v6545_v41 = vld [vmem:[#allocation2 + $0xb70] sm:$0xff]  ;;  %v1853_v28 = vsub.f32 %v1724_v36, %v1789_v63  ;;  %v6548_v18 = vand.u32 2147483647, %v1851_v58  ;;  %v2600_v27 = vadd.f32 %v2599_v40, %v2536_v25 }
 0x163   :  { %v1958_v9 = vadd.f32 %v1957_v30, %v8507_v32  ;;  %v1790_v17 = vld [vmem:[#allocation5 + $0xb68] sm:$0xff]  ;;  %v6550_v11 = vand.u32 2147483647, %v1852_v13  ;;  %v2024_v34 = vld [vmem:[#allocation2 + $0xca0] sm:$0xff]  ;;  %v1727_v5 = vld [vmem:[#allocation2 + $0xb78] sm:$0xff]  ;;  %v2786_v16 = vsub.f32 %v2657_v6, %v2722_v26 }
 0x164   :  { %v2345_v10 = vld [vmem:[#allocation2 + $0xe88] sm:$0xff]  ;;  %8511 = vst [vmem:[#allocation52_spill] sm:$0xff] %v6548_v18  ;;  %v2089_v42 = vld [vmem:[#allocation5 + $0xca0] sm:$0xff]  ;;  %v1791_v31 = vld [vmem:[#allocation5 + $0xb70] sm:$0xff]  ;;  %v2849_v39 = vand.u32 2147483647, %v2785_v45  ;;  %v1854_v51 = vsub.f32 %v1725_v50, %v1790_v17 }
 0x165   :  { %v2410_v37 = vld [vmem:[#allocation5 + $0xe88] sm:$0xff]  ;;  %8512 = vst [vmem:[#allocation55_spill] sm:$0xff] %v6550_v11  ;;  %v1792_v3 = vld [vmem:[#allocation5 + $0xb78] sm:$0xff]  ;;  %v2537_v24 = vand.u32 2147483647, %v2473_v43  ;;  %v2723_v36 = vld [vmem:[#allocation5 + $0x1030] sm:$0xff]  ;;  %v2153_v32 = vsub.f32 %v2024_v34, %v2089_v42  ;;  %v1855_v45 = vsub.f32 %v6545_v41, %v1791_v31 }
 0x166   :  { %v8510_v30 = vld [vmem:[#allocation63_spill] sm:$0xff]  ;;  %v2474_v35 = vsub.f32 %v2345_v10, %v2410_v37  ;;  %v8514_v58 = vld [vmem:[#allocation30_spill] sm:$0xff]  ;;  %v2216_v57 = vand.u32 2147483647, %v2152_v14  ;;  %v2346_v11 = vld [vmem:[#allocation2 + $0xe90] sm:$0xff]  ;;  %v1856_v47 = vsub.f32 %v1727_v5, %v1792_v3 }
 0x167   :  { %v1654_v48 = vadd.f32 %v1653_v33, %v8510_v30  ;;  %v8513_v2 = vld [vmem:[#allocation39_spill] sm:$0xff]  ;;  %v2658_v33 = vld [vmem:[#allocation2 + $0x1030] sm:$0xff]  ;;  %v6554_v63 = vadd.f32 %v1349_v1, %v8514_v58  ;;  %v2279_v30 = vadd.f32 %v2278_v60, %v2215_v22  ;;  %v8515_v7 = vld [vmem:[#allocation49_spill] sm:$0xff]  ;;  %v6558_v50 = vand.u32 2147483647, %v1853_v28 }
 0x168   :  { %v1959_v8 = vadd.f32 %v1958_v9, %v8513_v2  ;;  %v2025_v13 = vld [vmem:[#allocation2 + $0xca8] sm:$0xff]  ;;  %v2411_v18 = vld [vmem:[#allocation5 + $0xe90] sm:$0xff]  ;;  %v2659_v43 = vld [vmem:[#allocation2 + $0x1038] sm:$0xff]  ;;  %v2787_v10 = vsub.f32 %v2658_v33, %v2723_v36  ;;  %v2850_v14 = vand.u32 2147483647, %v2786_v16  ;;  %v2913_v22 = vadd.f32 %v2912_v20, %v2849_v39 }
 0x169   :  { %v1655_v9 = vadd.f32 %v1654_v48, %v8515_v7  ;;  %8516 = vst [vmem:[#allocation54_spill] sm:$0xff] %v6558_v50  ;;  %v2090_v62 = vld [vmem:[#allocation5 + $0xca8] sm:$0xff]  ;;  %v2724_v25 = vld [vmem:[#allocation5 + $0x1038] sm:$0xff]  ;;  %v1728_v40 = vld [vmem:[#allocation2 + $0xb80] sm:$0xff]  ;;  %v6561_v60 = vand.u32 2147483647, %v1854_v51  ;;  %v2475_v37 = vsub.f32 %v2346_v11, %v2411_v18  ;;  %v2601_v48 = vadd.f32 %v2600_v27, %v2537_v24 }
 0x16a   :  { %v1793_v6 = vld [vmem:[#allocation5 + $0xb80] sm:$0xff]  ;;  %v2026_v17 = vld [vmem:[#allocation2 + $0xcb0] sm:$0xff]  ;;  %v2538_v7 = vand.u32 2147483647, %v2474_v35  ;;  %v1729_v28 = vld [vmem:[#allocation2 + $0xb88] sm:$0xff]  ;;  %v2154_v5 = vsub.f32 %v2025_v13, %v2090_v62  ;;  %v2280_v3 = vadd.f32 %v2279_v30, %v2216_v57  ;;  %v2788_v50 = vsub.f32 %v2659_v43, %v2724_v25 }
 0x16b   :  { %v8517_v26 = vld [vmem:[#allocation18_spill] sm:$0xff]  ;;  %v2091_v42 = vld [vmem:[#allocation5 + $0xcb0] sm:$0xff]  ;;  %v2217_v31 = vand.u32 2147483647, %v2153_v32  ;;  %v2347_v2 = vld [vmem:[#allocation2 + $0xe98] sm:$0xff]  ;;  %v1857_v33 = vsub.f32 %v1728_v40, %v1793_v6  ;;  %v2914_v13 = vadd.f32 %v2913_v22, %v2850_v14 }
 0x16c   :  { %v1960_v1 = vadd.f32 %v1959_v8, %v8517_v26  ;;  %v2660_v41 = vld [vmem:[#allocation2 + $0x1040] sm:$0xff]  ;;  %v2412_v58 = vld [vmem:[#allocation5 + $0xe98] sm:$0xff]  ;;  %v1656_v8 = vadd.f32 %v1655_v9, %v6308_v4  ;;  %v6564_v16 = vand.u32 2147483647, %v1855_v45  ;;  %v6566_v39 = vand.u32 2147483647, %v1856_v47 }
 0x16d   :  { %v2725_v34 = vld [vmem:[#allocation5 + $0x1040] sm:$0xff]  ;;  %v2661_v18 = vld [vmem:[#allocation2 + $0x1048] sm:$0xff]  ;;  %v2027_v35 = vld [vmem:[#allocation2 + $0xcb8] sm:$0xff]  ;;  %v2851_v36 = vand.u32 2147483647, %v2787_v10  ;;  %v2155_v32 = vsub.f32 %v2026_v17, %v2091_v42  ;;  %v2476_v57 = vsub.f32 %v2347_v2, %v2412_v58  ;;  %v2602_v62 = vadd.f32 %v2601_v48, %v2538_v7 }
 0x16e   :  { %8518 = vst [vmem:[#allocation58_spill] sm:$0xff] %v6566_v39  ;;  %v2726_v11 = vld [vmem:[#allocation5 + $0x1048] sm:$0xff]  ;;  %v1961_v51 = vadd.f32 %v1960_v1, %v6303_v12  ;;  %v2092_v24 = vld [vmem:[#allocation5 + $0xcb8] sm:$0xff]  ;;  %v2789_v27 = vsub.f32 %v2660_v41, %v2725_v34  ;;  %v2539_v30 = vand.u32 2147483647, %v2475_v37  ;;  %v2662_v4 = vld [vmem:[#allocation2 + $0x1050] sm:$0xff]  ;;  %v2281_v43 = vadd.f32 %v2280_v3, %v2217_v31 }
 0x16f   :  { %v1794_v20 = vld [vmem:[#allocation5 + $0xb88] sm:$0xff]  ;;  %v2727_v9 = vld [vmem:[#allocation5 + $0x1050] sm:$0xff]  ;;  %v2218_v45 = vand.u32 2147483647, %v2154_v5  ;;  %v2348_v47 = vld [vmem:[#allocation2 + $0xea0] sm:$0xff]  ;;  %v2790_v40 = vsub.f32 %v2661_v18, %v2726_v11  ;;  %v1657_v26 = vadd.f32 %v1656_v8, %v6347_v54  ;;  %v2156_v10 = vsub.f32 %v2027_v35, %v2092_v24 }
 0x170   :  { %v2413_v25 = vld [vmem:[#allocation5 + $0xea0] sm:$0xff]  ;;  %v2852_v6 = vand.u32 2147483647, %v2788_v50  ;;  %v1730_v12 = vld [vmem:[#allocation2 + $0xb90] sm:$0xff]  ;;  %v1858_v1 = vsub.f32 %v1729_v28, %v1794_v20  ;;  %v6570_v39 = vand.u32 2147483647, %v1857_v33  ;;  %v1962_v37 = vadd.f32 %v1961_v51, %v6318_v55 }
 0x171   :  { %v2663_v14 = vld [vmem:[#allocation2 + $0x1058] sm:$0xff]  ;;  %v1795_v22 = vld [vmem:[#allocation5 + $0xb90] sm:$0xff]  ;;  %v2028_v7 = vld [vmem:[#allocation2 + $0xcc0] sm:$0xff]  ;;  %v2791_v41 = vsub.f32 %v2662_v4, %v2727_v9  ;;  %v2853_v34 = vand.u32 2147483647, %v2789_v27  ;;  %v2915_v42 = vadd.f32 %v2914_v13, %v2851_v36  ;;  %v2477_v31 = vsub.f32 %v2348_v47, %v2413_v25 }
 0x172   :  { %v2728_v17 = vld [vmem:[#allocation5 + $0x1058] sm:$0xff]  ;;  %v2093_v48 = vld [vmem:[#allocation5 + $0xcc0] sm:$0xff]  ;;  %v2219_v5 = vand.u32 2147483647, %v2155_v32  ;;  %v2540_v50 = vand.u32 2147483647, %v2476_v57  ;;  %v2603_v3 = vadd.f32 %v2602_v62, %v2539_v30  ;;  %v2282_v28 = vadd.f32 %v2281_v43, %v2218_v45 }
 0x173   :  { %v2664_v54 = vld [vmem:[#allocation2 + $0x1060] sm:$0xff]  ;;  %v2349_v58 = vld [vmem:[#allocation2 + $0xea8] sm:$0xff]  ;;  %v2792_v33 = vsub.f32 %v2663_v14, %v2728_v17  ;;  %v2854_v18 = vand.u32 2147483647, %v2790_v40  ;;  %v2916_v11 = vadd.f32 %v2915_v42, %v2852_v6  ;;  %v1658_v20 = vadd.f32 %v1657_v26, %v6379_v21  ;;  %v1731_v55 = vld [vmem:[#allocation2 + $0xb98] sm:$0xff] }
 0x174   :  { %v2729_v2 = vld [vmem:[#allocation5 + $0x1060] sm:$0xff]  ;;  %v2414_v8 = vld [vmem:[#allocation5 + $0xea8] sm:$0xff]  ;;  %v1859_v51 = vsub.f32 %v1730_v12, %v1795_v22  ;;  %v6574_v35 = vand.u32 2147483647, %v1858_v1  ;;  %v2157_v24 = vsub.f32 %v2028_v7, %v2093_v48  ;;  %v1796_v13 = vld [vmem:[#allocation5 + $0xb98] sm:$0xff]  ;;  %v1963_v32 = vadd.f32 %v1962_v37, %v6327_v52 }
 0x175   :  { %v2665_v27 = vld [vmem:[#allocation2 + $0x1068] sm:$0xff]  ;;  %v2793_v62 = vsub.f32 %v2664_v54, %v2729_v2  ;;  %v2855_v4 = vand.u32 2147483647, %v2791_v41  ;;  %v2917_v9 = vadd.f32 %v2916_v11, %v2853_v34  ;;  %v2220_v45 = vand.u32 2147483647, %v2156_v10  ;;  %v2666_v21 = vld [vmem:[#allocation2 + $0x1070] sm:$0xff] }
 0x176   :  { %v2730_v36 = vld [vmem:[#allocation5 + $0x1068] sm:$0xff]  ;;  %v2478_v43 = vsub.f32 %v2349_v58, %v2414_v8  ;;  %v2541_v47 = vand.u32 2147483647, %v2477_v31  ;;  %v2604_v25 = vadd.f32 %v2603_v3, %v2540_v50  ;;  %v2731_v40 = vld [vmem:[#allocation5 + $0x1070] sm:$0xff]  ;;  %v1732_v6 = vld [vmem:[#allocation2 + $0xba0] sm:$0xff]  ;;  %v2283_v26 = vadd.f32 %v2282_v28, %v2219_v5 }
 0x177   :  { %v2029_v57 = vld [vmem:[#allocation2 + $0xcc8] sm:$0xff]  ;;  %v2350_v12 = vld [vmem:[#allocation2 + $0xeb0] sm:$0xff]  ;;  %v2794_v14 = vsub.f32 %v2665_v27, %v2730_v36  ;;  %v2856_v17 = vand.u32 2147483647, %v2792_v33  ;;  %v2918_v22 = vadd.f32 %v2917_v9, %v2854_v18  ;;  %v1659_v52 = vadd.f32 %v1658_v20, %v6384_v61  ;;  %v2667_v10 = vld [vmem:[#allocation2 + $0x1078] sm:$0xff] }
 0x178   :  { %v2094_v30 = vld [vmem:[#allocation5 + $0xcc8] sm:$0xff]  ;;  %v2415_v1 = vld [vmem:[#allocation5 + $0xeb0] sm:$0xff]  ;;  %v1860_v7 = vsub.f32 %v1731_v55, %v1796_v13  ;;  %v6578_v48 = vand.u32 2147483647, %v1859_v51  ;;  %v2732_v34 = vld [vmem:[#allocation5 + $0x1078] sm:$0xff]  ;;  %v2795_v5 = vsub.f32 %v2666_v21, %v2731_v40  ;;  %v2605_v61 = vadd.f32 %v2604_v25, %v2541_v47 }
 0x179   :  { %v1733_v37 = vld [vmem:[#allocation2 + $0xba8] sm:$0xff]  ;;  %v2158_v41 = vsub.f32 %v2029_v57, %v2094_v30  ;;  %v1797_v42 = vld [vmem:[#allocation5 + $0xba0] sm:$0xff]  ;;  %v6581_v54 = vld [vmem:[#allocation2 + $0xcd0] sm:$0xff]  ;;  %v2857_v2 = vand.u32 2147483647, %v2793_v62  ;;  %v2919_v28 = vadd.f32 %v2918_v22, %v2855_v4  ;;  %v2479_v8 = vsub.f32 %v2350_v12, %v2415_v1 }
 0x17a   :  { %8519 = vst [vmem:[#allocation60_spill] sm:$0xff] %v6578_v48  ;;  %v1798_v31 = vld [vmem:[#allocation5 + $0xba8] sm:$0xff]  ;;  %v2221_v58 = vand.u32 2147483647, %v2157_v24  ;;  %v2542_v33 = vand.u32 2147483647, %v2478_v43  ;;  %v2284_v55 = vadd.f32 %v2283_v26, %v2220_v45  ;;  %v2796_v36 = vsub.f32 %v2667_v10, %v2732_v34 }
 0x17b   :  { %v8520_v50 = vld [vmem:[#allocation35_spill] sm:$0xff]  ;;  %v2668_v18 = vld [vmem:[#allocation2 + $0x1080] sm:$0xff]  ;;  %v2095_v20 = vld [vmem:[#allocation5 + $0xcd0] sm:$0xff]  ;;  %v2858_v13 = vand.u32 2147483647, %v2794_v14  ;;  %v2920_v57 = vadd.f32 %v2919_v28, %v2856_v17  ;;  %v1862_v21 = vsub.f32 %v1733_v37, %v1798_v31 }
 0x17c   :  { %v1964_v3 = vadd.f32 %v1963_v32, %v8520_v50  ;;  %v2733_v11 = vld [vmem:[#allocation5 + $0x1080] sm:$0xff]  ;;  %v2351_v51 = vld [vmem:[#allocation2 + $0xeb8] sm:$0xff]  ;;  %v8521_v30 = vld [vmem:[#allocation19_spill] sm:$0xff]  ;;  %v1861_v50 = vsub.f32 %v1732_v6, %v1797_v42  ;;  %v6584_v62 = vand.u32 2147483647, %v1860_v7  ;;  %v2159_v26 = vsub.f32 %v6581_v54, %v2095_v20 }
 0x17d   :  { %v2416_v27 = vld [vmem:[#allocation5 + $0xeb8] sm:$0xff]  ;;  %v1660_v32 = vadd.f32 %v1659_v52, %v8521_v30  ;;  %v1734_v9 = vld [vmem:[#allocation2 + $0xbb0] sm:$0xff]  ;;  %v2669_v47 = vld [vmem:[#allocation2 + $0x1088] sm:$0xff]  ;;  %v2797_v40 = vsub.f32 %v2668_v18, %v2733_v11  ;;  %v2859_v12 = vand.u32 2147483647, %v2795_v5  ;;  %v2921_v45 = vadd.f32 %v2920_v57, %v2857_v2 }
 0x17e   :  { %8522 = vst [vmem:[#allocation62_spill] sm:$0xff] %v6584_v62  ;;  %v1799_v24 = vld [vmem:[#allocation5 + $0xbb0] sm:$0xff]  ;;  %v2734_v25 = vld [vmem:[#allocation5 + $0x1088] sm:$0xff]  ;;  %v2480_v1 = vsub.f32 %v2351_v51, %v2416_v27  ;;  %v2543_v14 = vand.u32 2147483647, %v2479_v8  ;;  %v2606_v17 = vadd.f32 %v2605_v61, %v2542_v33  ;;  %v6588_v22 = vld [vmem:[#allocation2 + $0xbb8] sm:$0xff]  ;;  %v2285_v6 = vadd.f32 %v2284_v55, %v2221_v58 }
 0x17f   :  { %v8523_v4 = vld [vmem:[#allocation40_spill] sm:$0xff]  ;;  %v2222_v52 = vand.u32 2147483647, %v2158_v41  ;;  %v2352_v37 = vld [vmem:[#allocation2 + $0xec0] sm:$0xff]  ;;  %v2860_v10 = vand.u32 2147483647, %v2796_v36  ;;  %v2922_v34 = vadd.f32 %v2921_v45, %v2858_v13  ;;  %v1863_v42 = vsub.f32 %v1734_v9, %v1799_v24 }
 0x180   :  { %v1965_v43 = vadd.f32 %v1964_v3, %v8523_v4  ;;  %v2417_v7 = vld [vmem:[#allocation5 + $0xec0] sm:$0xff]  ;;  %v6590_v31 = vand.u32 2147483647, %v1861_v50  ;;  %v6592_v3 = vand.u32 2147483647, %v1862_v21  ;;  %v2031_v5 = vld [vmem:[#allocation2 + $0xcd8] sm:$0xff]  ;;  %v2798_v28 = vsub.f32 %v2669_v47, %v2734_v25 }
 0x181   :  { %v2096_v2 = vld [vmem:[#allocation5 + $0xcd8] sm:$0xff]  ;;  %v8526_v54 = vld [vmem:[#allocation70_spill] sm:$0xff]  ;;  %v2670_v41 = vld [vmem:[#allocation2 + $0x1090] sm:$0xff]  ;;  %v2861_v11 = vand.u32 2147483647, %v2797_v40  ;;  %v2923_v20 = vadd.f32 %v2922_v34, %v2859_v12  ;;  %v2607_v50 = vadd.f32 %v2606_v17, %v2543_v14 }
 0x182   :  { %8524 = vst [vmem:[#allocation22_spill] sm:$0xff] %v6590_v31  ;;  %v1661_v18 = vadd.f32 %v1660_v32, %v8526_v54  ;;  %v6595_v8 = vld [vmem:[#allocation5 + $0xbb8] sm:$0xff]  ;;  %v2735_v58 = vld [vmem:[#allocation5 + $0x1090] sm:$0xff]  ;;  %v8528_v55 = vld [vmem:[#allocation31_spill] sm:$0xff]  ;;  %v2481_v32 = vsub.f32 %v2352_v37, %v2417_v7  ;;  %v2544_v9 = vand.u32 2147483647, %v2480_v1  ;;  %v2160_v24 = vsub.f32 %v2031_v5, %v2096_v2 }
 0x183   :  { %8525 = vst [vmem:[#allocation65_spill] sm:$0xff] %v6592_v3  ;;  %v8527_v33 = vld [vmem:[#allocation53_spill] sm:$0xff]  ;;  %v6600_v51 = vadd.f32 %v6554_v63, %v8528_v55  ;;  %v6602_v27 = vld [vmem:[#allocation2 + $0xbc0] sm:$0xff]  ;;  %v2353_v57 = vld [vmem:[#allocation2 + $0xec8] sm:$0xff]  ;;  %v2223_v4 = vand.u32 2147483647, %v2159_v26  ;;  %v2924_v47 = vadd.f32 %v2923_v20, %v2860_v10 }
 0x184   :  { %v1966_v61 = vadd.f32 %v1965_v43, %v8527_v33  ;;  %v6604_v36 = vld [vmem:[#allocation2 + $0xce0] sm:$0xff]  ;;  %v2418_v30 = vld [vmem:[#allocation5 + $0xec8] sm:$0xff]  ;;  %v2286_v43 = vadd.f32 %v2285_v6, %v2222_v52  ;;  %v6610_v34 = vand.u32 2147483647, %v1863_v42  ;;  %v2671_v54 = vld [vmem:[#allocation2 + $0x1098] sm:$0xff]  ;;  %v2799_v33 = vsub.f32 %v2670_v41, %v2735_v58 }
 0x185   :  { %v2097_v13 = vld [vmem:[#allocation5 + $0xce0] sm:$0xff]  ;;  %v2977_v25 = vld [vmem:[#allocation2 + $0x1208] sm:$0xff]  ;;  %v2862_v37 = vand.u32 2147483647, %v2798_v28  ;;  %v1662_v1 = vadd.f32 %v1661_v18, %v6400_v59  ;;  %v2482_v26 = vsub.f32 %v2353_v57, %v2418_v30  ;;  %v2736_v17 = vld [vmem:[#allocation5 + $0x1098] sm:$0xff]  ;;  %v2925_v52 = vadd.f32 %v2924_v47, %v2861_v11 }
 0x186   :  { %v2976_v21 = vld [vmem:[#allocation2 + $0x1200] sm:$0xff]  ;;  %v3042_v12 = vld [vmem:[#allocation5 + $0x1208] sm:$0xff]  ;;  %8529 = vst [vmem:[#allocation66_spill] sm:$0xff] %v6610_v34  ;;  %v1967_v14 = vadd.f32 %v1966_v61, %v6493_v0  ;;  %v2978_v6 = vld [vmem:[#allocation2 + $0x1210] sm:$0xff]  ;;  %v2545_v2 = vand.u32 2147483647, %v2481_v32  ;;  %v2608_v20 = vadd.f32 %v2607_v50, %v2544_v9  ;;  %v2161_v28 = vsub.f32 %v6604_v36, %v2097_v13 }
 0x187   :  { %v3041_v40 = vld [vmem:[#allocation5 + $0x1200] sm:$0xff]  ;;  %v3043_v7 = vld [vmem:[#allocation5 + $0x1210] sm:$0xff]  ;;  %v3106_v45 = vsub.f32 %v2977_v25, %v3042_v12  ;;  %v2033_v41 = vld [vmem:[#allocation2 + $0xce8] sm:$0xff]  ;;  %v2224_v59 = vand.u32 2147483647, %v2160_v24  ;;  %v2287_v18 = vadd.f32 %v2286_v43, %v2223_v4  ;;  %v2800_v47 = vsub.f32 %v2671_v54, %v2736_v17 }
 0x188   :  { %v6606_v63 = vld [vmem:[#allocation5 + $0xbc0] sm:$0xff]  ;;  %v2354_v10 = vld [vmem:[#allocation2 + $0xed0] sm:$0xff]  ;;  %v3105_v55 = vsub.f32 %v2976_v21, %v3041_v40  ;;  %v2979_v0 = vld [vmem:[#allocation2 + $0x1218] sm:$0xff]  ;;  %v2863_v32 = vand.u32 2147483647, %v2799_v33  ;;  %v2926_v9 = vadd.f32 %v2925_v52, %v2862_v37  ;;  %v3107_v50 = vsub.f32 %v2978_v6, %v3043_v7 }
 0x189   :  { %v2419_v5 = vld [vmem:[#allocation5 + $0xed0] sm:$0xff]  ;;  %v3044_v61 = vld [vmem:[#allocation5 + $0x1218] sm:$0xff]  ;;  %v2098_v11 = vld [vmem:[#allocation5 + $0xce8] sm:$0xff]  ;;  %v1663_v21 = vadd.f32 %v1662_v1, %v6406_v53  ;;  %v1968_v25 = vadd.f32 %v1967_v14, %v6502_v44  ;;  %v2546_v36 = vand.u32 2147483647, %v2482_v26  ;;  %v2609_v42 = vadd.f32 %v2608_v20, %v2545_v2 }
 0x18a   :  { %v6617_v58 = vld [vmem:[#allocation2 + $0xcf0] sm:$0xff]  ;;  %v2672_v57 = vld [vmem:[#allocation2 + $0x10a0] sm:$0xff]  ;;  %v2483_v12 = vsub.f32 %v2354_v10, %v2419_v5  ;;  %v2355_v4 = vld [vmem:[#allocation2 + $0xed8] sm:$0xff]  ;;  %v3108_v34 = vsub.f32 %v2979_v0, %v3044_v61  ;;  %v3169_v3 = vand.u32 2147483647, %v3105_v55  ;;  %v2162_v62 = vsub.f32 %v2033_v41, %v2098_v11 }
 0x18b   :  { %v2737_v30 = vld [vmem:[#allocation5 + $0x10a0] sm:$0xff]  ;;  %v2099_v40 = vld [vmem:[#allocation5 + $0xcf0] sm:$0xff]  ;;  %v2420_v43 = vld [vmem:[#allocation5 + $0xed8] sm:$0xff]  ;;  %v3170_v31 = vand.u32 2147483647, %v3106_v45  ;;  %v2288_v33 = vadd.f32 %v2287_v18, %v2224_v59  ;;  %v2927_v1 = vadd.f32 %v2926_v9, %v2863_v32  ;;  %v1664_v26 = vadd.f32 %v1663_v21, %v6414_v46 }
 0x18c   :  { %v2980_v13 = vld [vmem:[#allocation2 + $0x1220] sm:$0xff]  ;;  %v2225_v54 = vand.u32 2147483647, %v2161_v28  ;;  %v2801_v37 = vsub.f32 %v2672_v57, %v2737_v30  ;;  %v2673_v17 = vld [vmem:[#allocation2 + $0x10a8] sm:$0xff]  ;;  %v2864_v53 = vand.u32 2147483647, %v2800_v47  ;;  %v1969_v6 = vadd.f32 %v1968_v25, %v6514_v29 }
 0x18d   :  { %v3045_v24 = vld [vmem:[#allocation5 + $0x1220] sm:$0xff]  ;;  %v2738_v52 = vld [vmem:[#allocation5 + $0x10a8] sm:$0xff]  ;;  %v3171_v14 = vand.u32 2147483647, %v3107_v50  ;;  %v2163_v7 = vsub.f32 %v6617_v58, %v2099_v40  ;;  %v2484_v10 = vsub.f32 %v2355_v4, %v2420_v43  ;;  %v2035_v45 = vld [vmem:[#allocation2 + $0xcf8] sm:$0xff]  ;;  %v2610_v41 = vadd.f32 %v2609_v42, %v2546_v36 }
 0x18e   :  { %v3109_v44 = vsub.f32 %v2980_v13, %v3045_v24  ;;  %v2981_v5 = vld [vmem:[#allocation2 + $0x1228] sm:$0xff]  ;;  %v2100_v20 = vld [vmem:[#allocation5 + $0xcf8] sm:$0xff]  ;;  %v2547_v55 = vand.u32 2147483647, %v2483_v12  ;;  %v3172_v28 = vand.u32 2147483647, %v3108_v34  ;;  %v3234_v59 = vadd.f32 %v3170_v31, %v3169_v3 }
 0x18f   :  { %v3046_v2 = vld [vmem:[#allocation5 + $0x1228] sm:$0xff]  ;;  %v2226_v18 = vand.u32 2147483647, %v2162_v62  ;;  %v2289_v0 = vadd.f32 %v2288_v33, %v2225_v54  ;;  %v2356_v61 = vld [vmem:[#allocation2 + $0xee0] sm:$0xff]  ;;  %v2802_v57 = vsub.f32 %v2673_v17, %v2738_v52  ;;  %v2865_v30 = vand.u32 2147483647, %v2801_v37 }
 0x190   :  { %v2421_v11 = vld [vmem:[#allocation5 + $0xee0] sm:$0xff]  ;;  %v6624_v46 = vld [vmem:[#allocation2 + $0xbc8] sm:$0xff]  ;;  %v6626_v29 = vld [vmem:[#allocation2 + $0xbd0] sm:$0xff]  ;;  %v2928_v32 = vadd.f32 %v2927_v1, %v2864_v53  ;;  %v3110_v9 = vsub.f32 %v2981_v5, %v3046_v2  ;;  %v3173_v50 = vand.u32 2147483647, %v3109_v44  ;;  %v3235_v21 = vadd.f32 %v3234_v59, %v3171_v14 }
 0x191   :  { %v2674_v58 = vld [vmem:[#allocation2 + $0x10b0] sm:$0xff]  ;;  %v1665_v42 = vadd.f32 %v1664_v26, %v6419_v15  ;;  %v8530_v62 = vsub.f32 %v6588_v22, %v6595_v8  ;;  %v1970_v3 = vadd.f32 %v1969_v6, %v6516_v19  ;;  %v6635_v34 = vld [vmem:[#allocation2 + $0xd00] sm:$0xff]  ;;  %v2164_v25 = vsub.f32 %v2035_v45, %v2100_v20  ;;  %v6637_v36 = vld [vmem:[#allocation5 + $0xbc8] sm:$0xff] }
 0x192   :  { %v2739_v47 = vld [vmem:[#allocation5 + $0x10b0] sm:$0xff]  ;;  %v2101_v24 = vld [vmem:[#allocation5 + $0xd00] sm:$0xff]  ;;  %v2485_v4 = vsub.f32 %v2356_v61, %v2421_v11  ;;  %v2548_v43 = vand.u32 2147483647, %v2484_v10  ;;  %v2611_v15 = vadd.f32 %v2610_v41, %v2547_v55  ;;  %v3236_v54 = vadd.f32 %v3235_v21, %v3172_v28  ;;  %v2357_v8 = vld [vmem:[#allocation2 + $0xee8] sm:$0xff] }
 0x193   :  { %v6632_v31 = vand.u32 2147483647, %v8530_v62  ;;  %v2982_v40 = vld [vmem:[#allocation2 + $0x1230] sm:$0xff]  ;;  %v2227_v33 = vand.u32 2147483647, %v2163_v7  ;;  %v2290_v22 = vadd.f32 %v2289_v0, %v2226_v18  ;;  %v2422_v37 = vld [vmem:[#allocation5 + $0xee8] sm:$0xff]  ;;  %v2803_v17 = vsub.f32 %v2674_v58, %v2739_v47 }
 0x194   :  { %v3047_v12 = vld [vmem:[#allocation5 + $0x1230] sm:$0xff]  ;;  %v2866_v19 = vand.u32 2147483647, %v2802_v57  ;;  %v6641_v52 = vld [vmem:[#allocation2 + $0xbd8] sm:$0xff]  ;;  %v6643_v53 = vld [vmem:[#allocation2 + $0xbe0] sm:$0xff]  ;;  %v2929_v14 = vadd.f32 %v2928_v32, %v2865_v30  ;;  %v3237_v5 = vadd.f32 %v3236_v54, %v3173_v50  ;;  %v1666_v10 = vadd.f32 %v1665_v42, %v6425_v49 }
 0x195   :  { %8531 = vst [vmem:[#allocation68_spill] sm:$0xff] %v6632_v31  ;;  %v6639_v13 = vld [vmem:[#allocation5 + $0xbd0] sm:$0xff]  ;;  %v2675_v1 = vld [vmem:[#allocation2 + $0x10b8] sm:$0xff]  ;;  %v3111_v26 = vsub.f32 %v2982_v40, %v3047_v12  ;;  %v3174_v6 = vand.u32 2147483647, %v3110_v9  ;;  %v1971_v45 = vadd.f32 %v1970_v3, %v6519_v38  ;;  %v6651_v20 = vld [vmem:[#allocation2 + $0xd08] sm:$0xff]  ;;  %v2165_v0 = vsub.f32 %v6635_v34, %v2101_v24 }
 0x196   :  { %v2740_v44 = vld [vmem:[#allocation5 + $0x10b8] sm:$0xff]  ;;  %v6655_v59 = vld [vmem:[#allocation5 + $0xbe0] sm:$0xff]  ;;  %v2102_v18 = vld [vmem:[#allocation5 + $0xd08] sm:$0xff]  ;;  %v2486_v49 = vsub.f32 %v2357_v8, %v2422_v37  ;;  %v2549_v61 = vand.u32 2147483647, %v2485_v4  ;;  %v2612_v11 = vadd.f32 %v2611_v15, %v2548_v43  ;;  %v2291_v30 = vadd.f32 %v2290_v22, %v2227_v33 }
 0x197   :  { %v2983_v55 = vld [vmem:[#allocation2 + $0x1238] sm:$0xff]  ;;  %v2228_v57 = vand.u32 2147483647, %v2164_v25  ;;  %v2358_v58 = vld [vmem:[#allocation2 + $0xef0] sm:$0xff]  ;;  %v2804_v32 = vsub.f32 %v2675_v1, %v2740_v44  ;;  %v2867_v38 = vand.u32 2147483647, %v2803_v17  ;;  %v2930_v62 = vadd.f32 %v2929_v14, %v2866_v19 }
 0x198   :  { %v3048_v41 = vld [vmem:[#allocation5 + $0x1238] sm:$0xff]  ;;  %v2423_v47 = vld [vmem:[#allocation5 + $0xef0] sm:$0xff]  ;;  %v6658_v9 = vld [vmem:[#allocation2 + $0xbe8] sm:$0xff]  ;;  %v3175_v40 = vand.u32 2147483647, %v3111_v26  ;;  %v3238_v12 = vadd.f32 %v3237_v5, %v3174_v6  ;;  %v1667_v34 = vadd.f32 %v1666_v10, %v6430_v56  ;;  %v2166_v17 = vsub.f32 %v6651_v20, %v2102_v18 }
 0x199   :  { %v6653_v28 = vld [vmem:[#allocation5 + $0xbd8] sm:$0xff]  ;;  %v6660_v50 = vld [vmem:[#allocation2 + $0xbf0] sm:$0xff]  ;;  %v2676_v21 = vld [vmem:[#allocation2 + $0x10c0] sm:$0xff]  ;;  %v3112_v3 = vsub.f32 %v2983_v55, %v3048_v41  ;;  %v2487_v19 = vsub.f32 %v2358_v58, %v2423_v47  ;;  %v2550_v56 = vand.u32 2147483647, %v2486_v49  ;;  %v2613_v1 = vadd.f32 %v2612_v11, %v2549_v61 }
 0x19a   :  { %v2741_v42 = vld [vmem:[#allocation5 + $0x10c0] sm:$0xff]  ;;  %v8532_v4 = vld [vmem:[#allocation45_spill] sm:$0xff]  ;;  %v2038_v15 = vld [vmem:[#allocation2 + $0xd10] sm:$0xff]  ;;  %v2229_v44 = vand.u32 2147483647, %v2165_v0  ;;  %v2292_v14 = vadd.f32 %v2291_v30, %v2228_v57  ;;  %v2931_v41 = vadd.f32 %v2930_v62, %v2867_v38  ;;  %v3239_v25 = vadd.f32 %v3238_v12, %v3175_v40 }
 0x19b   :  { %v1972_v43 = vadd.f32 %v1971_v45, %v8532_v4  ;;  %v2984_v54 = vld [vmem:[#allocation2 + $0x1240] sm:$0xff]  ;;  %v6668_v22 = vld [vmem:[#allocation5 + $0xbe8] sm:$0xff]  ;;  %v6670_v8 = vld [vmem:[#allocation5 + $0xbf0] sm:$0xff]  ;;  %v2805_v5 = vsub.f32 %v2676_v21, %v2741_v42  ;;  %v2868_v10 = vand.u32 2147483647, %v2804_v32 }
 0x19c   :  { %v3049_v33 = vld [vmem:[#allocation5 + $0x1240] sm:$0xff]  ;;  %v2103_v37 = vld [vmem:[#allocation5 + $0xd10] sm:$0xff]  ;;  %v2359_v26 = vld [vmem:[#allocation2 + $0xef8] sm:$0xff]  ;;  %v3176_v24 = vand.u32 2147483647, %v3112_v3  ;;  %v2293_v42 = vadd.f32 %v2292_v14, %v2229_v44 }
 0x19d   :  { %v2424_v6 = vld [vmem:[#allocation5 + $0xef8] sm:$0xff]  ;;  %v2677_v45 = vld [vmem:[#allocation2 + $0x10c8] sm:$0xff]  ;;  %v3113_v4 = vsub.f32 %v2984_v54, %v3049_v33  ;;  %v8533_v2 = vld [vmem:[#allocation12_spill] sm:$0xff]  ;;  %v2167_v47 = vsub.f32 %v2038_v15, %v2103_v37  ;;  %v2551_v38 = vand.u32 2147483647, %v2487_v19  ;;  %v2932_v33 = vadd.f32 %v2931_v41, %v2868_v10 }
 0x19e   :  { %v2742_v55 = vld [vmem:[#allocation5 + $0x10c8] sm:$0xff]  ;;  %v1668_v7 = vadd.f32 %v1667_v34, %v8533_v2  ;;  %v6674_v31 = vld [vmem:[#allocation2 + $0xbf8] sm:$0xff]  ;;  %v2488_v32 = vsub.f32 %v2359_v26, %v2424_v6  ;;  %v2614_v2 = vadd.f32 %v2613_v1, %v2550_v56  ;;  %v2230_v21 = vand.u32 2147483647, %v2166_v17  ;;  %v2360_v62 = vld [vmem:[#allocation2 + $0xf00] sm:$0xff] }
 0x19f   :  { %v8534_v0 = vld [vmem:[#allocation41_spill] sm:$0xff]  ;;  %v2985_v61 = vld [vmem:[#allocation2 + $0x1248] sm:$0xff]  ;;  %v2425_v3 = vld [vmem:[#allocation5 + $0xf00] sm:$0xff]  ;;  %v2806_v40 = vsub.f32 %v2677_v45, %v2742_v55  ;;  %v2869_v12 = vand.u32 2147483647, %v2805_v5  ;;  %v3240_v18 = vadd.f32 %v3239_v25, %v3176_v24  ;;  %v8536_v37 = vsub.f32 %v6602_v27, %v6606_v63 }
 0x1a0   :  { %v1973_v49 = vadd.f32 %v1972_v43, %v8534_v0  ;;  %v3050_v11 = vld [vmem:[#allocation5 + $0x1248] sm:$0xff]  ;;  %v6681_v57 = vld [vmem:[#allocation5 + $0xbf8] sm:$0xff]  ;;  %v2678_v34 = vld [vmem:[#allocation2 + $0x10d0] sm:$0xff]  ;;  %v3177_v0 = vand.u32 2147483647, %v3113_v4  ;;  %v2489_v5 = vsub.f32 %v2360_v62, %v2425_v3  ;;  %v2615_v25 = vadd.f32 %v2614_v2, %v2551_v38 }
 0x1a1   :  { %v2039_v30 = vld [vmem:[#allocation2 + $0xd18] sm:$0xff]  ;;  %v2743_v54 = vld [vmem:[#allocation5 + $0x10d0] sm:$0xff]  ;;  %v3114_v43 = vsub.f32 %v2985_v61, %v3050_v11  ;;  %v8535_v20 = vld [vmem:[#allocation42_spill] sm:$0xff]  ;;  %v1872_v15 = vsub.f32 %v6674_v31, %v6681_v57  ;;  %v6689_v17 = vand.u32 2147483647, %v8536_v37  ;;  %v2933_v63 = vadd.f32 %v2932_v33, %v2869_v12 }
 0x1a2   :  { %v2104_v58 = vld [vmem:[#allocation5 + $0xd18] sm:$0xff]  ;;  %v1669_v48 = vadd.f32 %v1668_v7, %v8535_v20  ;;  %v8537_v19 = vld [vmem:[#allocation46_spill] sm:$0xff]  ;;  %v2986_v1 = vld [vmem:[#allocation2 + $0x1250] sm:$0xff]  ;;  %v2552_v10 = vand.u32 2147483647, %v2488_v32  ;;  %v2294_v7 = vadd.f32 %v2293_v42, %v2230_v21  ;;  %v2807_v41 = vsub.f32 %v2678_v34, %v2743_v54 }
 0x1a3   :  { %v1974_v56 = vadd.f32 %v1973_v49, %v8537_v19  ;;  %v3051_v44 = vld [vmem:[#allocation5 + $0x1250] sm:$0xff]  ;;  %v2040_v14 = vld [vmem:[#allocation2 + $0xd20] sm:$0xff]  ;;  %v2168_v6 = vsub.f32 %v2039_v30, %v2104_v58  ;;  %v2231_v24 = vand.u32 2147483647, %v2167_v47  ;;  %v2361_v45 = vld [vmem:[#allocation2 + $0xf08] sm:$0xff]  ;;  %v3241_v49 = vadd.f32 %v3240_v18, %v3177_v0 }
 0x1a4   :  { %v2105_v26 = vld [vmem:[#allocation5 + $0xd20] sm:$0xff]  ;;  %v2426_v55 = vld [vmem:[#allocation5 + $0xf08] sm:$0xff]  ;;  %v2870_v4 = vand.u32 2147483647, %v2806_v40  ;;  %v2679_v20 = vld [vmem:[#allocation2 + $0x10d8] sm:$0xff]  ;;  %v3115_v61 = vsub.f32 %v2986_v1, %v3051_v44  ;;  %v8539_v30 = vsub.f32 %v6624_v46, %v6637_v36  ;;  %v8540_v47 = vsub.f32 %v6626_v29, %v6639_v13 }
 0x1a5   :  { %v2744_v27 = vld [vmem:[#allocation5 + $0x10d8] sm:$0xff]  ;;  %v3178_v11 = vand.u32 2147483647, %v3114_v43  ;;  %v8538_v37 = vld [vmem:[#allocation56_spill] sm:$0xff]  ;;  %v2041_v62 = vld [vmem:[#allocation2 + $0xd28] sm:$0xff]  ;;  %v2169_v40 = vsub.f32 %v2040_v14, %v2105_v26  ;;  %v2490_v18 = vsub.f32 %v2361_v45, %v2426_v55  ;;  %v2295_v54 = vadd.f32 %v2294_v7, %v2231_v24 }
 0x1a6   :  { %v1670_v19 = vadd.f32 %v1669_v48, %v8538_v37  ;;  %v6696_v58 = vand.u32 2147483647, %v8539_v30  ;;  %v6701_v32 = vand.u32 2147483647, %v8540_v47  ;;  %v8541_v38 = vld [vmem:[#allocation61_spill] sm:$0xff]  ;;  %v2106_v3 = vld [vmem:[#allocation5 + $0xd28] sm:$0xff]  ;;  %v2616_v48 = vadd.f32 %v2615_v25, %v2552_v10 }
 0x1a7   :  { %v1975_v2 = vadd.f32 %v1974_v56, %v8541_v38  ;;  %v2987_v21 = vld [vmem:[#allocation2 + $0x1258] sm:$0xff]  ;;  %v2553_v12 = vand.u32 2147483647, %v2489_v5  ;;  %v2232_v34 = vand.u32 2147483647, %v2168_v6  ;;  %v2362_v46 = vld [vmem:[#allocation2 + $0xf10] sm:$0xff]  ;;  %v2808_v33 = vsub.f32 %v2679_v20, %v2744_v27 }
 0x1a8   :  { %v3052_v42 = vld [vmem:[#allocation5 + $0x1258] sm:$0xff]  ;;  %v2427_v36 = vld [vmem:[#allocation5 + $0xf10] sm:$0xff]  ;;  %v2871_v43 = vand.u32 2147483647, %v2807_v41  ;;  %v2680_v0 = vld [vmem:[#allocation2 + $0x10e0] sm:$0xff]  ;;  %v2934_v13 = vadd.f32 %v2933_v63, %v2870_v4  ;;  %v3242_v56 = vadd.f32 %v3241_v49, %v3178_v11  ;;  %v8543_v14 = vsub.f32 %v6641_v52, %v6653_v28 }
 0x1a9   :  { %v2745_v29 = vld [vmem:[#allocation5 + $0x10e0] sm:$0xff]  ;;  %v3116_v1 = vsub.f32 %v2987_v21, %v3052_v42  ;;  %v3179_v44 = vand.u32 2147483647, %v3115_v61  ;;  %v8542_v37 = vld [vmem:[#allocation20_spill] sm:$0xff]  ;;  %v8544_v6 = vsub.f32 %v6643_v53, %v6655_v59  ;;  %v2170_v41 = vsub.f32 %v2041_v62, %v2106_v3  ;;  %v2363_v52 = vld [vmem:[#allocation2 + $0xf18] sm:$0xff] }
 0x1aa   :  { %v1671_v30 = vadd.f32 %v1670_v19, %v8542_v37  ;;  %v6708_v26 = vand.u32 2147483647, %v8543_v14  ;;  %v8545_v10 = vld [vmem:[#allocation50_spill] sm:$0xff]  ;;  %v2042_v45 = vld [vmem:[#allocation2 + $0xd30] sm:$0xff]  ;;  %v2491_v4 = vsub.f32 %v2362_v46, %v2427_v36  ;;  %v2554_v20 = vand.u32 2147483647, %v2490_v18 }
 0x1ab   :  { %v6713_v5 = vand.u32 2147483647, %v8544_v6  ;;  %v1976_v25 = vadd.f32 %v1975_v2, %v8545_v10  ;;  %v2988_v24 = vld [vmem:[#allocation2 + $0x1260] sm:$0xff]  ;;  %v2107_v55 = vld [vmem:[#allocation5 + $0xd30] sm:$0xff]  ;;  %v2617_v27 = vadd.f32 %v2616_v48, %v2553_v12  ;;  %v2233_v63 = vand.u32 2147483647, %v2169_v40 }
 0x1ac   :  { %v3053_v7 = vld [vmem:[#allocation5 + $0x1260] sm:$0xff]  ;;  %v2296_v61 = vadd.f32 %v2295_v54, %v2232_v34  ;;  %v2428_v28 = vld [vmem:[#allocation5 + $0xf18] sm:$0xff]  ;;  %v2809_v11 = vsub.f32 %v2680_v0, %v2745_v29  ;;  %v2872_v49 = vand.u32 2147483647, %v2808_v33  ;;  %v2681_v19 = vld [vmem:[#allocation2 + $0x10e8] sm:$0xff]  ;;  %v2935_v59 = vadd.f32 %v2934_v13, %v2871_v43 }
 0x1ad   :  { %v2746_v53 = vld [vmem:[#allocation5 + $0x10e8] sm:$0xff]  ;;  %v3117_v47 = vsub.f32 %v2988_v24, %v3053_v7  ;;  %v3180_v38 = vand.u32 2147483647, %v3116_v1  ;;  %v3243_v2 = vadd.f32 %v3242_v56, %v3179_v44  ;;  %v8546_v21 = vld [vmem:[#allocation36_spill] sm:$0xff]  ;;  %v8547_v62 = vsub.f32 %v6658_v9, %v6668_v22  ;;  %v6728_v54 = vld [vmem:[#allocation2 + $0xd38] sm:$0xff] }
 0x1ae   :  { %v1672_v42 = vadd.f32 %v1671_v30, %v8546_v21  ;;  %v8548_v40 = vsub.f32 %v6660_v50, %v6670_v8  ;;  %v1977_v12 = vadd.f32 %v1976_v25, %v6539_v23  ;;  %v2989_v48 = vld [vmem:[#allocation2 + $0x1268] sm:$0xff]  ;;  %v6730_v46 = vld [vmem:[#allocation5 + $0xd38] sm:$0xff]  ;;  %v2171_v36 = vsub.f32 %v2042_v45, %v2107_v55  ;;  %v2364_v29 = vld [vmem:[#allocation2 + $0xf20] sm:$0xff] }
 0x1af   :  { %v6720_v3 = vand.u32 2147483647, %v8547_v62  ;;  %v3054_v34 = vld [vmem:[#allocation5 + $0x1268] sm:$0xff]  ;;  %v2492_v33 = vsub.f32 %v2363_v52, %v2428_v28  ;;  %v2555_v43 = vand.u32 2147483647, %v2491_v4  ;;  %v2618_v0 = vadd.f32 %v2617_v27, %v2554_v20  ;;  %v2429_v13 = vld [vmem:[#allocation5 + $0xf20] sm:$0xff] }
 0x1b0   :  { %v6725_v18 = vand.u32 2147483647, %v8548_v40  ;;  %v2234_v9 = vand.u32 2147483647, %v2170_v41  ;;  %v2297_v22 = vadd.f32 %v2296_v61, %v2233_v63  ;;  %v2810_v1 = vsub.f32 %v2681_v19, %v2746_v53  ;;  %v6732_v8 = vld [vmem:[#allocation2 + $0xd40] sm:$0xff]  ;;  %v6734_v44 = vld [vmem:[#allocation2 + $0xd48] sm:$0xff] }
 0x1b1   :  { %v2873_v50 = vand.u32 2147483647, %v2809_v11  ;;  %v2682_v23 = vld [vmem:[#allocation2 + $0x10f0] sm:$0xff]  ;;  %v2936_v37 = vadd.f32 %v2935_v59, %v2872_v49  ;;  %v3118_v30 = vsub.f32 %v2989_v48, %v3054_v34  ;;  %v3181_v14 = vand.u32 2147483647, %v3117_v47  ;;  %v8551_v24 = vld [vmem:[#allocation43_spill] sm:$0xff] }
 0x1b2   :  { %8549 = vst [vmem:[#allocation69_spill] sm:$0xff] %v6725_v18  ;;  %v2747_v56 = vld [vmem:[#allocation5 + $0x10f0] sm:$0xff]  ;;  %v3244_v6 = vadd.f32 %v3243_v2, %v3180_v38  ;;  %v1673_v7 = vadd.f32 %v1672_v42, %v8551_v24  ;;  %v6744_v45 = vand.u32 2147483647, %v1872_v15  ;;  %v8553_v55 = vld [vmem:[#allocation51_spill] sm:$0xff]  ;;  %v2109_v63 = vld [vmem:[#allocation5 + $0xd40] sm:$0xff]  ;;  %v2493_v28 = vsub.f32 %v2364_v29, %v2429_v13 }
 0x1b3   :  { %v8550_v10 = vld [vmem:[#allocation32_spill] sm:$0xff]  ;;  %v1978_v41 = vadd.f32 %v1977_v12, %v8553_v55  ;;  %v6749_v61 = vld [vmem:[#allocation5 + $0xd48] sm:$0xff]  ;;  %v2556_v11 = vand.u32 2147483647, %v2492_v33  ;;  %v2619_v49 = vadd.f32 %v2618_v0, %v2555_v43  ;;  %v2235_v31 = vand.u32 2147483647, %v2171_v36 }
 0x1b4   :  { %v6738_v25 = vadd.f32 %v6600_v51, %v8550_v10  ;;  %8552 = vst [vmem:[#allocation64_spill] sm:$0xff] %v6744_v45  ;;  %v6747_v4 = vld [vmem:[#allocation2 + $0xd50] sm:$0xff]  ;;  %v2172_v51 = vsub.f32 %v6728_v54, %v6730_v46  ;;  %v2298_v57 = vadd.f32 %v2297_v22, %v2234_v9  ;;  %v2365_v15 = vld [vmem:[#allocation2 + $0xf28] sm:$0xff]  ;;  %v2811_v53 = vsub.f32 %v2682_v23, %v2747_v56  ;;  %v6755_v47 = vld [vmem:[#allocation2 + $0xd58] sm:$0xff] }
 0x1b5   :  { %v2990_v20 = vld [vmem:[#allocation2 + $0x1270] sm:$0xff]  ;;  %v2430_v19 = vld [vmem:[#allocation5 + $0xf28] sm:$0xff]  ;;  %v2874_v59 = vand.u32 2147483647, %v2810_v1  ;;  %v6757_v38 = vld [vmem:[#allocation2 + $0xd60] sm:$0xff]  ;;  %v2937_v62 = vadd.f32 %v2936_v37, %v2873_v50  ;;  %v3245_v48 = vadd.f32 %v3244_v6, %v3181_v14  ;;  %v2173_v0 = vsub.f32 %v6732_v8, %v2109_v63 }
 0x1b6   :  { %v3055_v27 = vld [vmem:[#allocation5 + $0x1270] sm:$0xff]  ;;  %v6759_v2 = vld [vmem:[#allocation2 + $0xd68] sm:$0xff]  ;;  %v2683_v21 = vld [vmem:[#allocation2 + $0x10f8] sm:$0xff]  ;;  %v3182_v12 = vand.u32 2147483647, %v3118_v30  ;;  %v2174_v9 = vsub.f32 %v6734_v44, %v6749_v61  ;;  %v2494_v56 = vsub.f32 %v2365_v15, %v2430_v19  ;;  %v2620_v30 = vadd.f32 %v2619_v49, %v2556_v11 }
 0x1b7   :  { %v6751_v52 = vld [vmem:[#allocation5 + $0xd50] sm:$0xff]  ;;  %v2748_v42 = vld [vmem:[#allocation5 + $0x10f8] sm:$0xff]  ;;  %v3119_v40 = vsub.f32 %v2990_v20, %v3055_v27  ;;  %v2113_v13 = vld [vmem:[#allocation5 + $0xd60] sm:$0xff]  ;;  %v2557_v37 = vand.u32 2147483647, %v2493_v28  ;;  %v2299_v6 = vadd.f32 %v2298_v57, %v2235_v31 }
 0x1b8   :  { %v8554_v34 = vld [vmem:[#allocation57_spill] sm:$0xff]  ;;  %v8555_v46 = vld [vmem:[#allocation52_spill] sm:$0xff]  ;;  %v6770_v1 = vld [vmem:[#allocation5 + $0xd68] sm:$0xff]  ;;  %v2175_v23 = vsub.f32 %v6747_v4, %v6751_v52  ;;  %v2236_v14 = vand.u32 2147483647, %v2172_v51  ;;  %v2812_v24 = vsub.f32 %v2683_v21, %v2748_v42  ;;  %v3246_v63 = vadd.f32 %v3245_v48, %v3182_v12 }
 0x1b9   :  { %v6762_v54 = vadd.f32 %v1673_v7, %v8554_v34  ;;  %v1979_v36 = vadd.f32 %v1978_v41, %v8555_v46  ;;  %v6765_v33 = vld [vmem:[#allocation2 + $0xd70] sm:$0xff]  ;;  %v2112_v43 = vld [vmem:[#allocation5 + $0xd58] sm:$0xff]  ;;  %v2875_v7 = vand.u32 2147483647, %v2811_v53  ;;  %v2684_v44 = vld [vmem:[#allocation2 + $0x1100] sm:$0xff]  ;;  %v2938_v41 = vadd.f32 %v2937_v62, %v2874_v59 }
 0x1ba   :  { %v2991_v22 = vld [vmem:[#allocation2 + $0x1278] sm:$0xff]  ;;  %v6772_v50 = vld [vmem:[#allocation5 + $0xd70] sm:$0xff]  ;;  %v2749_v55 = vld [vmem:[#allocation5 + $0x1100] sm:$0xff]  ;;  %v3183_v27 = vand.u32 2147483647, %v3119_v40  ;;  %v2176_v46 = vsub.f32 %v6755_v47, %v2112_v43  ;;  %v2177_v4 = vsub.f32 %v6757_v38, %v2113_v13  ;;  %v2178_v52 = vsub.f32 %v6759_v2, %v6770_v1 }
 0x1bb   :  { %v3056_v29 = vld [vmem:[#allocation5 + $0x1278] sm:$0xff]  ;;  %v2366_v10 = vld [vmem:[#allocation2 + $0xf30] sm:$0xff]  ;;  %v8556_v61 = vld [vmem:[#allocation55_spill] sm:$0xff]  ;;  %v2558_v15 = vand.u32 2147483647, %v2494_v56  ;;  %v2621_v19 = vadd.f32 %v2620_v30, %v2557_v37  ;;  %v2300_v59 = vadd.f32 %v2299_v6, %v2236_v14  ;;  %v2813_v38 = vsub.f32 %v2684_v44, %v2749_v55 }
 0x1bc   :  { %v2431_v8 = vld [vmem:[#allocation5 + $0xf30] sm:$0xff]  ;;  %v3120_v20 = vsub.f32 %v2991_v22, %v3056_v29  ;;  %v1980_v34 = vadd.f32 %v1979_v36, %v8556_v61  ;;  %v2992_v51 = vld [vmem:[#allocation2 + $0x1280] sm:$0xff]  ;;  %v6781_v11 = vld [vmem:[#allocation2 + $0xd78] sm:$0xff]  ;;  %v2237_v53 = vand.u32 2147483647, %v2173_v0  ;;  %v2939_v36 = vadd.f32 %v2938_v41, %v2875_v7 }
 0x1bd   :  { %v3057_v28 = vld [vmem:[#allocation5 + $0x1280] sm:$0xff]  ;;  %v6783_v49 = vld [vmem:[#allocation5 + $0xd78] sm:$0xff]  ;;  %v2495_v57 = vsub.f32 %v2366_v10, %v2431_v8  ;;  %v2876_v42 = vand.u32 2147483647, %v2812_v24  ;;  %v6789_v2 = vld [vmem:[#allocation2 + $0xd88] sm:$0xff]  ;;  %v3247_v29 = vadd.f32 %v3246_v63, %v3183_v27  ;;  %v2622_v41 = vadd.f32 %v2621_v19, %v2558_v15 }
 0x1be   :  { %v2367_v47 = vld [vmem:[#allocation2 + $0xf38] sm:$0xff]  ;;  %v6787_v62 = vld [vmem:[#allocation2 + $0xd80] sm:$0xff]  ;;  %v2685_v12 = vld [vmem:[#allocation2 + $0x1108] sm:$0xff]  ;;  %v3121_v43 = vsub.f32 %v2992_v51, %v3057_v28  ;;  %v3184_v22 = vand.u32 2147483647, %v3120_v20  ;;  %v2301_v27 = vadd.f32 %v2300_v59, %v2237_v53 }
 0x1bf   :  { %v2432_v21 = vld [vmem:[#allocation5 + $0xf38] sm:$0xff]  ;;  %v6791_v40 = vld [vmem:[#allocation5 + $0xd80] sm:$0xff]  ;;  %v2750_v48 = vld [vmem:[#allocation5 + $0x1108] sm:$0xff]  ;;  %v2238_v37 = vand.u32 2147483647, %v2174_v9  ;;  %v2940_v56 = vadd.f32 %v2939_v36, %v2876_v42 }
 0x1c0   :  { %v8557_v13 = vld [vmem:[#allocation54_spill] sm:$0xff]  ;;  %v6794_v0 = vld [vmem:[#allocation2 + $0xd90] sm:$0xff]  ;;  %v6798_v30 = vand.u32 2147483647, %v2175_v23  ;;  %v2993_v14 = vld [vmem:[#allocation2 + $0x1288] sm:$0xff]  ;;  %v2496_v44 = vsub.f32 %v2367_v47, %v2432_v21  ;;  %v2814_v23 = vsub.f32 %v2685_v12, %v2750_v48  ;;  %v3248_v45 = vadd.f32 %v3247_v29, %v3184_v22 }
 0x1c1   :  { %v1981_v1 = vadd.f32 %v1980_v34, %v8557_v13  ;;  %v3058_v6 = vld [vmem:[#allocation5 + $0x1288] sm:$0xff]  ;;  %v6800_v10 = vld [vmem:[#allocation2 + $0xd98] sm:$0xff]  ;;  %v6804_v24 = vld [vmem:[#allocation5 + $0xd90] sm:$0xff]  ;;  %v6806_v7 = vand.u32 2147483647, %v2176_v46 }
 0x1c2   :  { %v6802_v8 = vld [vmem:[#allocation5 + $0xd88] sm:$0xff]  ;;  %v2559_v55 = vand.u32 2147483647, %v2495_v57  ;;  %v6808_v20 = vand.u32 2147483647, %v2177_v4  ;;  %v2368_v63 = vld [vmem:[#allocation2 + $0xf40] sm:$0xff]  ;;  %v3122_v31 = vsub.f32 %v2993_v14, %v3058_v6  ;;  %v2181_v4 = vsub.f32 %v6787_v62, %v6791_v40 }
 0x1c3   :  { %v2433_v9 = vld [vmem:[#allocation5 + $0xf40] sm:$0xff]  ;;  %v2877_v61 = vand.u32 2147483647, %v2813_v38  ;;  %v6812_v51 = vld [vmem:[#allocation5 + $0xd98] sm:$0xff]  ;;  %v2686_v28 = vld [vmem:[#allocation2 + $0x1110] sm:$0xff]  ;;  %v1982_v57 = vadd.f32 %v1981_v1, %v6561_v60  ;;  %v2182_v19 = vsub.f32 %v6789_v2, %v6802_v8  ;;  %v2302_v62 = vadd.f32 %v2301_v27, %v2238_v37 }
 0x1c4   :  { %v6810_v34 = vld [vmem:[#allocation2 + $0xda0] sm:$0xff]  ;;  %v2751_v13 = vld [vmem:[#allocation5 + $0x1110] sm:$0xff]  ;;  %v3185_v46 = vand.u32 2147483647, %v3121_v43  ;;  %v6821_v53 = vand.u32 2147483647, %v2178_v52  ;;  %v2497_v12 = vsub.f32 %v2368_v63, %v2433_v9  ;;  %v2623_v60 = vadd.f32 %v2622_v41, %v2559_v55 }
 0x1c5   :  { %v6815_v15 = vld [vmem:[#allocation5 + $0xda0] sm:$0xff]  ;;  %v2994_v59 = vld [vmem:[#allocation2 + $0x1290] sm:$0xff]  ;;  %v2369_v38 = vld [vmem:[#allocation2 + $0xf48] sm:$0xff]  ;;  %v2560_v48 = vand.u32 2147483647, %v2496_v44  ;;  %v2184_v43 = vsub.f32 %v6800_v10, %v6812_v51  ;;  %v2815_v40 = vsub.f32 %v2686_v28, %v2751_v13  ;;  %v2941_v6 = vadd.f32 %v2940_v56, %v2877_v61 }
 0x1c6   :  { %v3059_v47 = vld [vmem:[#allocation5 + $0x1290] sm:$0xff]  ;;  %v2434_v42 = vld [vmem:[#allocation5 + $0xf48] sm:$0xff]  ;;  %v3300_v36 = vld [vmem:[#allocation2 + $0x1400] sm:$0xff]  ;;  %v2878_v22 = vand.u32 2147483647, %v2814_v23  ;;  %v3249_v18 = vadd.f32 %v3248_v45, %v3185_v46  ;;  %v1983_v63 = vadd.f32 %v1982_v57, %v6564_v16  ;;  %v8558_v55 = vsub.f32 %v6765_v33, %v6772_v50 }
 0x1c7   :  { %v3301_v2 = vld [vmem:[#allocation2 + $0x1408] sm:$0xff]  ;;  %v3365_v52 = vld [vmem:[#allocation5 + $0x1400] sm:$0xff]  ;;  %v2687_v1 = vld [vmem:[#allocation2 + $0x1118] sm:$0xff]  ;;  %v3123_v8 = vsub.f32 %v2994_v59, %v3059_v47  ;;  %v3186_v21 = vand.u32 2147483647, %v3122_v31  ;;  %v2498_v41 = vsub.f32 %v2369_v38, %v2434_v42  ;;  %v2624_v56 = vadd.f32 %v2623_v60, %v2560_v48 }
 0x1c8   :  { %v3366_v29 = vld [vmem:[#allocation5 + $0x1408] sm:$0xff]  ;;  %v2752_v14 = vld [vmem:[#allocation5 + $0x1118] sm:$0xff]  ;;  %v6833_v37 = vand.u32 2147483647, %v8558_v55  ;;  %v2370_v23 = vld [vmem:[#allocation2 + $0xf50] sm:$0xff]  ;;  %v3429_v61 = vsub.f32 %v3300_v36, %v3365_v52  ;;  %v8559_v16 = vsub.f32 %v6781_v11, %v6783_v49  ;;  %v2303_v46 = vadd.f32 %v2302_v62, %v6798_v30 }
 0x1c9   :  { %v2995_v27 = vld [vmem:[#allocation2 + $0x1298] sm:$0xff]  ;;  %v2435_v28 = vld [vmem:[#allocation5 + $0xf50] sm:$0xff]  ;;  %v2561_v13 = vand.u32 2147483647, %v2497_v12  ;;  %v3430_v31 = vsub.f32 %v3301_v2, %v3366_v29  ;;  %v2816_v57 = vsub.f32 %v2687_v1, %v2752_v14  ;;  %v2879_v33 = vand.u32 2147483647, %v2815_v40 }
 0x1ca   :  { %v3060_v9 = vld [vmem:[#allocation5 + $0x1298] sm:$0xff]  ;;  %v6838_v45 = vand.u32 2147483647, %v8559_v16  ;;  %v3302_v50 = vld [vmem:[#allocation2 + $0x1410] sm:$0xff]  ;;  %v2688_v47 = vld [vmem:[#allocation2 + $0x1120] sm:$0xff]  ;;  %v2942_v42 = vadd.f32 %v2941_v6, %v2878_v22  ;;  %v3250_v12 = vadd.f32 %v3249_v18, %v3186_v21  ;;  %v2499_v2 = vsub.f32 %v2370_v23, %v2435_v28 }
 0x1cb   :  { %v3367_v59 = vld [vmem:[#allocation5 + $0x1410] sm:$0xff]  ;;  %v2753_v38 = vld [vmem:[#allocation5 + $0x1120] sm:$0xff]  ;;  %v3124_v55 = vsub.f32 %v2995_v27, %v3060_v9  ;;  %v3187_v44 = vand.u32 2147483647, %v3123_v8  ;;  %v6842_v36 = vand.u32 2147483647, %v2181_v4  ;;  %v2625_v62 = vadd.f32 %v2624_v56, %v2561_v13 }
 0x1cc   :  { %v8560_v48 = vld [vmem:[#allocation58_spill] sm:$0xff]  ;;  %v2562_v11 = vand.u32 2147483647, %v2498_v41  ;;  %v2371_v29 = vld [vmem:[#allocation2 + $0xf58] sm:$0xff]  ;;  %v3431_v40 = vsub.f32 %v3302_v50, %v3367_v59  ;;  %v3493_v1 = vand.u32 2147483647, %v3429_v61  ;;  %v2304_v22 = vadd.f32 %v2303_v46, %v6806_v7 }
 0x1cd   :  { %v1984_v60 = vadd.f32 %v1983_v63, %v8560_v48  ;;  %v2996_v49 = vld [vmem:[#allocation2 + $0x12a0] sm:$0xff]  ;;  %v2436_v30 = vld [vmem:[#allocation5 + $0xf58] sm:$0xff]  ;;  %v3494_v14 = vand.u32 2147483647, %v3430_v31  ;;  %v6844_v16 = vand.u32 2147483647, %v2182_v19  ;;  %v2817_v6 = vsub.f32 %v2688_v47, %v2753_v38 }
 0x1ce   :  { %v3061_v52 = vld [vmem:[#allocation5 + $0x12a0] sm:$0xff]  ;;  %v2880_v18 = vand.u32 2147483647, %v2816_v57  ;;  %v3303_v21 = vld [vmem:[#allocation2 + $0x1418] sm:$0xff]  ;;  %v2057_v4 = vld [vmem:[#allocation2 + $0xda8] sm:$0xff]  ;;  %v2943_v41 = vadd.f32 %v2942_v42, %v2879_v33  ;;  %v3251_v28 = vadd.f32 %v3250_v12, %v3187_v44  ;;  %v8561_v56 = vsub.f32 %v6794_v0, %v6804_v24 }
 0x1cf   :  { %v3368_v8 = vld [vmem:[#allocation5 + $0x1418] sm:$0xff]  ;;  %v2689_v63 = vld [vmem:[#allocation2 + $0x1128] sm:$0xff]  ;;  %v3125_v9 = vsub.f32 %v2996_v49, %v3061_v52  ;;  %v3188_v23 = vand.u32 2147483647, %v3124_v55  ;;  %v1985_v13 = vadd.f32 %v1984_v60, %v6570_v39  ;;  %v2500_v61 = vsub.f32 %v2371_v29, %v2436_v30  ;;  %v2372_v50 = vld [vmem:[#allocation2 + $0xf60] sm:$0xff] }
 0x1d0   :  { %v2754_v27 = vld [vmem:[#allocation5 + $0x1128] sm:$0xff]  ;;  %v6851_v19 = vand.u32 2147483647, %v8561_v56  ;;  %v2563_v7 = vand.u32 2147483647, %v2499_v2  ;;  %v2437_v59 = vld [vmem:[#allocation5 + $0xf60] sm:$0xff]  ;;  %v2626_v47 = vadd.f32 %v2625_v62, %v2562_v11  ;;  %v3432_v38 = vsub.f32 %v3303_v21, %v3368_v8 }
 0x1d1   :  { %v2997_v31 = vld [vmem:[#allocation2 + $0x12a8] sm:$0xff]  ;;  %v3495_v33 = vand.u32 2147483647, %v3431_v40  ;;  %v3558_v42 = vadd.f32 %v3494_v14, %v3493_v1  ;;  %v6856_v39 = vand.u32 2147483647, %v2184_v43  ;;  %v2305_v0 = vadd.f32 %v2304_v22, %v6808_v20  ;;  %v3304_v55 = vld [vmem:[#allocation2 + $0x1420] sm:$0xff] }
 0x1d2   :  { %v3062_v46 = vld [vmem:[#allocation5 + $0x12a8] sm:$0xff]  ;;  %v2818_v24 = vsub.f32 %v2689_v63, %v2754_v27  ;;  %v2881_v44 = vand.u32 2147483647, %v2817_v6  ;;  %v3369_v12 = vld [vmem:[#allocation5 + $0x1420] sm:$0xff]  ;;  %v2058_v48 = vld [vmem:[#allocation2 + $0xdb0] sm:$0xff]  ;;  %v2944_v49 = vadd.f32 %v2943_v41, %v2880_v18  ;;  %v3252_v29 = vadd.f32 %v3251_v28, %v3188_v23 }
 0x1d3   :  { %v2122_v57 = vld [vmem:[#allocation5 + $0xda8] sm:$0xff]  ;;  %v2690_v60 = vld [vmem:[#allocation2 + $0x1130] sm:$0xff]  ;;  %v3126_v52 = vsub.f32 %v2997_v31, %v3062_v46  ;;  %v3189_v11 = vand.u32 2147483647, %v3125_v9  ;;  %v8562_v62 = vsub.f32 %v6810_v34, %v6815_v15  ;;  %v2501_v51 = vsub.f32 %v2372_v50, %v2437_v59  ;;  %v2059_v9 = vld [vmem:[#allocation2 + $0xdb8] sm:$0xff] }
 0x1d4   :  { %v2755_v2 = vld [vmem:[#allocation5 + $0x1130] sm:$0xff]  ;;  %v2186_v30 = vsub.f32 %v2057_v4, %v2122_v57  ;;  %v2564_v43 = vand.u32 2147483647, %v2500_v61  ;;  %v2373_v14 = vld [vmem:[#allocation2 + $0xf68] sm:$0xff]  ;;  %v2627_v6 = vadd.f32 %v2626_v47, %v2563_v7  ;;  %v3433_v21 = vsub.f32 %v3304_v55, %v3369_v12  ;;  %v2691_v23 = vld [vmem:[#allocation2 + $0x1138] sm:$0xff] }
 0x1d5   :  { %v6862_v10 = vand.u32 2147483647, %v8562_v62  ;;  %v2998_v20 = vld [vmem:[#allocation2 + $0x12b0] sm:$0xff]  ;;  %v2438_v22 = vld [vmem:[#allocation5 + $0xf68] sm:$0xff]  ;;  %v3496_v8 = vand.u32 2147483647, %v3432_v38  ;;  %v3559_v18 = vadd.f32 %v3558_v42, %v3495_v33  ;;  %v1986_v63 = vadd.f32 %v1985_v13, %v6574_v35 }
 0x1d6   :  { %v3063_v40 = vld [vmem:[#allocation5 + $0x12b0] sm:$0xff]  ;;  %v2306_v4 = vadd.f32 %v2305_v0, %v6821_v53  ;;  %v2819_v27 = vsub.f32 %v2690_v60, %v2755_v2  ;;  %v2882_v41 = vand.u32 2147483647, %v2818_v24  ;;  %v3305_v34 = vld [vmem:[#allocation2 + $0x1428] sm:$0xff]  ;;  %v2756_v28 = vld [vmem:[#allocation5 + $0x1138] sm:$0xff]  ;;  %v2945_v56 = vadd.f32 %v2944_v49, %v2881_v44 }
 0x1d7   :  { %v2123_v1 = vld [vmem:[#allocation5 + $0xdb0] sm:$0xff]  ;;  %v3370_v15 = vld [vmem:[#allocation5 + $0x1428] sm:$0xff]  ;;  %v3127_v61 = vsub.f32 %v2998_v20, %v3063_v40  ;;  %v3190_v31 = vand.u32 2147483647, %v3126_v52  ;;  %v3253_v46 = vadd.f32 %v3252_v29, %v3189_v11  ;;  %v6866_v7 = vand.u32 2147483647, %v2186_v30 }
 0x1d8   :  { %v2187_v57 = vsub.f32 %v2058_v48, %v2123_v1  ;;  %v2502_v50 = vsub.f32 %v2373_v14, %v2438_v22  ;;  %v2565_v59 = vand.u32 2147483647, %v2501_v51  ;;  %v2999_v47 = vld [vmem:[#allocation2 + $0x12b8] sm:$0xff]  ;;  %v2374_v53 = vld [vmem:[#allocation2 + $0xf70] sm:$0xff]  ;;  %v2628_v33 = vadd.f32 %v2627_v6, %v2564_v43  ;;  %v2060_v52 = vld [vmem:[#allocation2 + $0xdc0] sm:$0xff] }
 0x1d9   :  { %v3064_v35 = vld [vmem:[#allocation5 + $0x12b8] sm:$0xff]  ;;  %v2439_v38 = vld [vmem:[#allocation5 + $0xf70] sm:$0xff]  ;;  %v3434_v42 = vsub.f32 %v3305_v34, %v3370_v15  ;;  %v3497_v0 = vand.u32 2147483647, %v3433_v21  ;;  %v3560_v24 = vadd.f32 %v3559_v18, %v3496_v8  ;;  %v2307_v44 = vadd.f32 %v2306_v4, %v6833_v37  ;;  %v2692_v11 = vld [vmem:[#allocation2 + $0x1140] sm:$0xff] }
 0x1da   :  { %v2124_v13 = vld [vmem:[#allocation5 + $0xdb8] sm:$0xff]  ;;  %v8563_v55 = vld [vmem:[#allocation60_spill] sm:$0xff]  ;;  %v2820_v60 = vsub.f32 %v2691_v23, %v2756_v28  ;;  %v2883_v2 = vand.u32 2147483647, %v2819_v27  ;;  %v2757_v29 = vld [vmem:[#allocation5 + $0x1140] sm:$0xff]  ;;  %v2946_v30 = vadd.f32 %v2945_v56, %v2882_v41  ;;  %v3128_v62 = vsub.f32 %v2999_v47, %v3064_v35 }
 0x1db   :  { %v1987_v12 = vadd.f32 %v1986_v63, %v8563_v55  ;;  %v3306_v48 = vld [vmem:[#allocation2 + $0x1430] sm:$0xff]  ;;  %v3191_v51 = vand.u32 2147483647, %v3127_v61  ;;  %v3254_v20 = vadd.f32 %v3253_v46, %v3190_v31  ;;  %v2188_v40 = vsub.f32 %v2059_v9, %v2124_v13  ;;  %v3000_v22 = vld [vmem:[#allocation2 + $0x12c0] sm:$0xff]  ;;  %v2375_v37 = vld [vmem:[#allocation2 + $0xf78] sm:$0xff] }
 0x1dc   :  { %v3371_v49 = vld [vmem:[#allocation5 + $0x1430] sm:$0xff]  ;;  %v6870_v43 = vand.u32 2147483647, %v2187_v57  ;;  %v2503_v1 = vsub.f32 %v2374_v53, %v2439_v38  ;;  %v2566_v14 = vand.u32 2147483647, %v2502_v50  ;;  %v3065_v6 = vld [vmem:[#allocation5 + $0x12c0] sm:$0xff]  ;;  %v2629_v18 = vadd.f32 %v2628_v33, %v2565_v59 }
 0x1dd   :  { %v2125_v21 = vld [vmem:[#allocation5 + $0xdc0] sm:$0xff]  ;;  %v2440_v8 = vld [vmem:[#allocation5 + $0xf78] sm:$0xff]  ;;  %v3435_v63 = vsub.f32 %v3306_v48, %v3371_v49  ;;  %v3498_v4 = vand.u32 2147483647, %v3434_v42  ;;  %v3561_v27 = vadd.f32 %v3560_v24, %v3497_v0  ;;  %v2308_v41 = vadd.f32 %v2307_v44, %v6838_v45  ;;  %v2061_v61 = vld [vmem:[#allocation2 + $0xdc8] sm:$0xff] }
 0x1de   :  { %v8564_v34 = vld [vmem:[#allocation62_spill] sm:$0xff]  ;;  %v2821_v23 = vsub.f32 %v2692_v11, %v2757_v29  ;;  %v2884_v28 = vand.u32 2147483647, %v2820_v60  ;;  %v3307_v9 = vld [vmem:[#allocation2 + $0x1438] sm:$0xff]  ;;  %v2693_v31 = vld [vmem:[#allocation2 + $0x1148] sm:$0xff]  ;;  %v2947_v57 = vadd.f32 %v2946_v30, %v2883_v2  ;;  %v3129_v50 = vsub.f32 %v3000_v22, %v3065_v6 }
 0x1df   :  { %v1988_v15 = vadd.f32 %v1987_v12, %v8564_v34  ;;  %v3372_v56 = vld [vmem:[#allocation5 + $0x1438] sm:$0xff]  ;;  %v2758_v46 = vld [vmem:[#allocation5 + $0x1148] sm:$0xff]  ;;  %v3192_v47 = vand.u32 2147483647, %v3128_v62  ;;  %v3255_v35 = vadd.f32 %v3254_v20, %v3191_v51  ;;  %v2189_v13 = vsub.f32 %v2060_v52, %v2125_v21  ;;  %v2376_v45 = vld [vmem:[#allocation2 + $0xf80] sm:$0xff] }
 0x1e0   :  { %v6874_v59 = vand.u32 2147483647, %v2188_v40  ;;  %v2504_v53 = vsub.f32 %v2375_v37, %v2440_v8  ;;  %v2567_v38 = vand.u32 2147483647, %v2503_v1  ;;  %v3001_v33 = vld [vmem:[#allocation2 + $0x12c8] sm:$0xff]  ;;  %v2441_v24 = vld [vmem:[#allocation5 + $0xf80] sm:$0xff]  ;;  %v2630_v55 = vadd.f32 %v2629_v18, %v2566_v14 }
 0x1e1   :  { %v3066_v42 = vld [vmem:[#allocation5 + $0x12c8] sm:$0xff]  ;;  %v3436_v12 = vsub.f32 %v3307_v9, %v3372_v56  ;;  %v3499_v44 = vand.u32 2147483647, %v3435_v63  ;;  %v3562_v60 = vadd.f32 %v3561_v27, %v3498_v4  ;;  %v8565_v48 = vld [vmem:[#allocation22_spill] sm:$0xff]  ;;  %v2309_v2 = vadd.f32 %v2308_v41, %v6842_v36  ;;  %v2062_v62 = vld [vmem:[#allocation2 + $0xdd0] sm:$0xff] }
 0x1e2   :  { %v2126_v0 = vld [vmem:[#allocation5 + $0xdc8] sm:$0xff]  ;;  %v1989_v49 = vadd.f32 %v1988_v15, %v8565_v48  ;;  %v2822_v11 = vsub.f32 %v2693_v31, %v2758_v46  ;;  %v2885_v29 = vand.u32 2147483647, %v2821_v23  ;;  %v3308_v52 = vld [vmem:[#allocation2 + $0x1440] sm:$0xff]  ;;  %v2694_v51 = vld [vmem:[#allocation2 + $0x1150] sm:$0xff]  ;;  %v2948_v40 = vadd.f32 %v2947_v57, %v2884_v28 }
 0x1e3   :  { %v3373_v30 = vld [vmem:[#allocation5 + $0x1440] sm:$0xff]  ;;  %v2759_v20 = vld [vmem:[#allocation5 + $0x1150] sm:$0xff]  ;;  %v3130_v1 = vsub.f32 %v3001_v33, %v3066_v42  ;;  %v3193_v22 = vand.u32 2147483647, %v3129_v50  ;;  %v3256_v6 = vadd.f32 %v3255_v35, %v3192_v47  ;;  %v2190_v21 = vsub.f32 %v2061_v61, %v2126_v0  ;;  %v2377_v36 = vld [vmem:[#allocation2 + $0xf88] sm:$0xff] }
 0x1e4   :  { %v6878_v14 = vand.u32 2147483647, %v2189_v13  ;;  %v2505_v37 = vsub.f32 %v2376_v45, %v2441_v24  ;;  %v2568_v8 = vand.u32 2147483647, %v2504_v53  ;;  %v3002_v18 = vld [vmem:[#allocation2 + $0x12d0] sm:$0xff]  ;;  %v2442_v27 = vld [vmem:[#allocation5 + $0xf88] sm:$0xff]  ;;  %v2631_v34 = vadd.f32 %v2630_v55, %v2567_v38 }
 0x1e5   :  { %v3067_v63 = vld [vmem:[#allocation5 + $0x12d0] sm:$0xff]  ;;  %v3437_v15 = vsub.f32 %v3308_v52, %v3373_v30  ;;  %v3500_v41 = vand.u32 2147483647, %v3436_v12  ;;  %v3563_v23 = vadd.f32 %v3562_v60, %v3499_v44  ;;  %v8566_v9 = vld [vmem:[#allocation65_spill] sm:$0xff]  ;;  %v2310_v28 = vadd.f32 %v2309_v2, %v6844_v16  ;;  %v3309_v61 = vld [vmem:[#allocation2 + $0x1448] sm:$0xff] }
 0x1e6   :  { %v2127_v4 = vld [vmem:[#allocation5 + $0xdd0] sm:$0xff]  ;;  %v1990_v56 = vadd.f32 %v1989_v49, %v8566_v9  ;;  %v2823_v31 = vsub.f32 %v2694_v51, %v2759_v20  ;;  %v2886_v46 = vand.u32 2147483647, %v2822_v11  ;;  %v3374_v57 = vld [vmem:[#allocation5 + $0x1448] sm:$0xff]  ;;  %v2063_v50 = vld [vmem:[#allocation2 + $0xdd8] sm:$0xff]  ;;  %v2949_v13 = vadd.f32 %v2948_v40, %v2885_v29 }
 0x1e7   :  { %v2695_v47 = vld [vmem:[#allocation2 + $0x1158] sm:$0xff]  ;;  %v3131_v53 = vsub.f32 %v3002_v18, %v3067_v63  ;;  %v3194_v33 = vand.u32 2147483647, %v3130_v1  ;;  %v3257_v42 = vadd.f32 %v3256_v6, %v3193_v22  ;;  %v2191_v0 = vsub.f32 %v2062_v62, %v2127_v4  ;;  %v2378_v16 = vld [vmem:[#allocation2 + $0xf90] sm:$0xff]  ;;  %v8567_v52 = vld [vmem:[#allocation66_spill] sm:$0xff] }
 0x1e8   :  { %v2760_v35 = vld [vmem:[#allocation5 + $0x1158] sm:$0xff]  ;;  %v6882_v38 = vand.u32 2147483647, %v2190_v21  ;;  %v2506_v45 = vsub.f32 %v2377_v36, %v2442_v27  ;;  %v2569_v24 = vand.u32 2147483647, %v2505_v37  ;;  %v2443_v60 = vld [vmem:[#allocation5 + $0xf90] sm:$0xff]  ;;  %v2632_v48 = vadd.f32 %v2631_v34, %v2568_v8 }
 0x1e9   :  { %v3003_v55 = vld [vmem:[#allocation2 + $0x12d8] sm:$0xff]  ;;  %v3438_v49 = vsub.f32 %v3309_v61, %v3374_v57  ;;  %v3501_v2 = vand.u32 2147483647, %v3437_v15  ;;  %v3564_v11 = vadd.f32 %v3563_v23, %v3500_v41  ;;  %v1991_v30 = vadd.f32 %v1990_v56, %v8567_v52  ;;  %v3310_v62 = vld [vmem:[#allocation2 + $0x1450] sm:$0xff]  ;;  %v2064_v1 = vld [vmem:[#allocation2 + $0xde0] sm:$0xff] }
 0x1ea   :  { %v3068_v12 = vld [vmem:[#allocation5 + $0x12d8] sm:$0xff]  ;;  %v2311_v29 = vadd.f32 %v2310_v28, %v6851_v19  ;;  %v2824_v51 = vsub.f32 %v2695_v47, %v2760_v35  ;;  %v2887_v20 = vand.u32 2147483647, %v2823_v31  ;;  %v3375_v40 = vld [vmem:[#allocation5 + $0x1450] sm:$0xff]  ;;  %v2696_v22 = vld [vmem:[#allocation2 + $0x1160] sm:$0xff]  ;;  %v2950_v21 = vadd.f32 %v2949_v13, %v2886_v46 }
 0x1eb   :  { %v2128_v44 = vld [vmem:[#allocation5 + $0xdd8] sm:$0xff]  ;;  %v2761_v6 = vld [vmem:[#allocation5 + $0x1160] sm:$0xff]  ;;  %v3132_v37 = vsub.f32 %v3003_v55, %v3068_v12  ;;  %v3195_v18 = vand.u32 2147483647, %v3131_v53  ;;  %v3258_v63 = vadd.f32 %v3257_v42, %v3194_v33  ;;  %v6886_v8 = vand.u32 2147483647, %v2191_v0 }
 0x1ec   :  { %v2192_v4 = vsub.f32 %v2063_v50, %v2128_v44  ;;  %v2507_v36 = vsub.f32 %v2378_v16, %v2443_v60  ;;  %v2570_v27 = vand.u32 2147483647, %v2506_v45  ;;  %v3004_v34 = vld [vmem:[#allocation2 + $0x12e0] sm:$0xff]  ;;  %v2379_v19 = vld [vmem:[#allocation2 + $0xf98] sm:$0xff]  ;;  %v2633_v9 = vadd.f32 %v2632_v48, %v2569_v24  ;;  %v8568_v61 = vld [vmem:[#allocation68_spill] sm:$0xff] }
 0x1ed   :  { %v3069_v15 = vld [vmem:[#allocation5 + $0x12e0] sm:$0xff]  ;;  %v2444_v23 = vld [vmem:[#allocation5 + $0xf98] sm:$0xff]  ;;  %v3439_v56 = vsub.f32 %v3310_v62, %v3375_v40  ;;  %v3502_v28 = vand.u32 2147483647, %v3438_v49  ;;  %v3565_v31 = vadd.f32 %v3564_v11, %v3501_v2  ;;  %v1992_v57 = vadd.f32 %v1991_v30, %v8568_v61  ;;  %v2065_v53 = vld [vmem:[#allocation2 + $0xde8] sm:$0xff] }
 0x1ee   :  { %v2129_v41 = vld [vmem:[#allocation5 + $0xde0] sm:$0xff]  ;;  %v2312_v46 = vadd.f32 %v2311_v29, %v6856_v39  ;;  %v2825_v47 = vsub.f32 %v2696_v22, %v2761_v6  ;;  %v2888_v35 = vand.u32 2147483647, %v2824_v51  ;;  %v3311_v50 = vld [vmem:[#allocation2 + $0x1458] sm:$0xff]  ;;  %v2697_v33 = vld [vmem:[#allocation2 + $0x1168] sm:$0xff]  ;;  %v2951_v0 = vadd.f32 %v2950_v21, %v2887_v20 }
 0x1ef   :  { %v3376_v13 = vld [vmem:[#allocation5 + $0x1458] sm:$0xff]  ;;  %v2762_v42 = vld [vmem:[#allocation5 + $0x1168] sm:$0xff]  ;;  %v3133_v45 = vsub.f32 %v3004_v34, %v3069_v15  ;;  %v3196_v55 = vand.u32 2147483647, %v3132_v37  ;;  %v3259_v12 = vadd.f32 %v3258_v63, %v3195_v18  ;;  %v2193_v44 = vsub.f32 %v2064_v1, %v2129_v41  ;;  %v2380_v39 = vld [vmem:[#allocation2 + $0xfa0] sm:$0xff] }
 0x1f0   :  { %v6890_v24 = vand.u32 2147483647, %v2192_v4  ;;  %v2508_v16 = vsub.f32 %v2379_v19, %v2444_v23  ;;  %v2571_v60 = vand.u32 2147483647, %v2507_v36  ;;  %v3005_v48 = vld [vmem:[#allocation2 + $0x12e8] sm:$0xff]  ;;  %v2445_v11 = vld [vmem:[#allocation5 + $0xfa0] sm:$0xff]  ;;  %v2634_v52 = vadd.f32 %v2633_v9, %v2570_v27 }
 0x1f1   :  { %v3070_v49 = vld [vmem:[#allocation5 + $0x12e8] sm:$0xff]  ;;  %v3440_v30 = vsub.f32 %v3311_v50, %v3376_v13  ;;  %v3503_v29 = vand.u32 2147483647, %v3439_v56  ;;  %v3566_v51 = vadd.f32 %v3565_v31, %v3502_v28  ;;  %v1993_v62 = vadd.f32 %v1992_v57, %v6689_v17  ;;  %v3312_v1 = vld [vmem:[#allocation2 + $0x1460] sm:$0xff]  ;;  %v2066_v21 = vld [vmem:[#allocation2 + $0xdf0] sm:$0xff] }
 0x1f2   :  { %v2130_v2 = vld [vmem:[#allocation5 + $0xde8] sm:$0xff]  ;;  %v2313_v20 = vadd.f32 %v2312_v46, %v6862_v10  ;;  %v2826_v40 = vsub.f32 %v2697_v33, %v2762_v42  ;;  %v2889_v22 = vand.u32 2147483647, %v2825_v47  ;;  %v3377_v6 = vld [vmem:[#allocation5 + $0x1460] sm:$0xff]  ;;  %v2698_v37 = vld [vmem:[#allocation2 + $0x1170] sm:$0xff]  ;;  %v2952_v63 = vadd.f32 %v2951_v0, %v2888_v35 }
 0x1f3   :  { %v2763_v18 = vld [vmem:[#allocation5 + $0x1170] sm:$0xff]  ;;  %v3134_v4 = vsub.f32 %v3005_v48, %v3070_v49  ;;  %v3197_v36 = vand.u32 2147483647, %v3133_v45  ;;  %v3260_v34 = vadd.f32 %v3259_v12, %v3196_v55  ;;  %v2194_v15 = vsub.f32 %v2065_v53, %v2130_v2  ;;  %v2381_v10 = vld [vmem:[#allocation2 + $0xfa8] sm:$0xff]  ;;  %v2067_v33 = vld [vmem:[#allocation2 + $0xdf8] sm:$0xff] }
 0x1f4   :  { %v6894_v27 = vand.u32 2147483647, %v2193_v44  ;;  %v2509_v41 = vsub.f32 %v2380_v39, %v2445_v11  ;;  %v2572_v19 = vand.u32 2147483647, %v2508_v16  ;;  %v3006_v23 = vld [vmem:[#allocation2 + $0x12f0] sm:$0xff]  ;;  %v2446_v56 = vld [vmem:[#allocation5 + $0xfa8] sm:$0xff]  ;;  %v2635_v28 = vadd.f32 %v2634_v52, %v2571_v60 }
 0x1f5   :  { %v3071_v17 = vld [vmem:[#allocation5 + $0x12f0] sm:$0xff]  ;;  %v3441_v31 = vsub.f32 %v3312_v1, %v3377_v6  ;;  %v3504_v61 = vand.u32 2147483647, %v3440_v30  ;;  %v3567_v57 = vadd.f32 %v3566_v51, %v3503_v29  ;;  %v1994_v46 = vadd.f32 %v1993_v62, %v6696_v58  ;;  %v3313_v13 = vld [vmem:[#allocation2 + $0x1468] sm:$0xff]  ;;  %v2699_v42 = vld [vmem:[#allocation2 + $0x1178] sm:$0xff] }
 0x1f6   :  { %v2131_v9 = vld [vmem:[#allocation5 + $0xdf0] sm:$0xff]  ;;  %v2314_v47 = vadd.f32 %v2313_v20, %v6866_v7  ;;  %v2827_v35 = vsub.f32 %v2698_v37, %v2763_v18  ;;  %v2890_v50 = vand.u32 2147483647, %v2826_v40  ;;  %v3378_v53 = vld [vmem:[#allocation5 + $0x1468] sm:$0xff]  ;;  %v2764_v0 = vld [vmem:[#allocation5 + $0x1178] sm:$0xff]  ;;  %v2953_v45 = vadd.f32 %v2952_v63, %v2889_v22 }
 0x1f7   :  { %v3135_v55 = vsub.f32 %v3006_v23, %v3071_v17  ;;  %v3198_v12 = vand.u32 2147483647, %v3134_v4  ;;  %v3261_v44 = vadd.f32 %v3260_v34, %v3197_v36  ;;  %v2195_v16 = vsub.f32 %v2066_v21, %v2131_v9  ;;  %v3007_v2 = vld [vmem:[#allocation2 + $0x12f8] sm:$0xff]  ;;  %v2382_v7 = vld [vmem:[#allocation2 + $0xfb0] sm:$0xff]  ;;  %v2700_v21 = vld [vmem:[#allocation2 + $0x1180] sm:$0xff] }
 0x1f8   :  { %v6898_v60 = vand.u32 2147483647, %v2194_v15  ;;  %v2510_v48 = vsub.f32 %v2381_v10, %v2446_v56  ;;  %v2573_v49 = vand.u32 2147483647, %v2509_v41  ;;  %v3072_v58 = vld [vmem:[#allocation5 + $0x12f8] sm:$0xff]  ;;  %v2447_v11 = vld [vmem:[#allocation5 + $0xfb0] sm:$0xff]  ;;  %v2636_v52 = vadd.f32 %v2635_v28, %v2572_v19 }
 0x1f9   :  { %v2132_v39 = vld [vmem:[#allocation5 + $0xdf8] sm:$0xff]  ;;  %v3442_v30 = vsub.f32 %v3313_v13, %v3378_v53  ;;  %v3505_v29 = vand.u32 2147483647, %v3441_v31  ;;  %v3568_v51 = vadd.f32 %v3567_v57, %v3504_v61  ;;  %v1995_v62 = vadd.f32 %v1994_v46, %v6701_v32  ;;  %v3314_v1 = vld [vmem:[#allocation2 + $0x1470] sm:$0xff]  ;;  %v2765_v37 = vld [vmem:[#allocation5 + $0x1180] sm:$0xff] }
 0x1fa   :  { %v2315_v20 = vadd.f32 %v2314_v47, %v6870_v43  ;;  %v2828_v40 = vsub.f32 %v2699_v42, %v2764_v0  ;;  %v2891_v22 = vand.u32 2147483647, %v2827_v35  ;;  %v3379_v6 = vld [vmem:[#allocation5 + $0x1470] sm:$0xff]  ;;  %v2954_v18 = vadd.f32 %v2953_v45, %v2890_v50  ;;  %v3008_v23 = vld [vmem:[#allocation2 + $0x1300] sm:$0xff]  ;;  %v2383_v32 = vld [vmem:[#allocation2 + $0xfb8] sm:$0xff] }
 0x1fb   :  { %v3136_v63 = vsub.f32 %v3007_v2, %v3072_v58  ;;  %v3199_v4 = vand.u32 2147483647, %v3135_v55  ;;  %v3262_v36 = vadd.f32 %v3261_v44, %v3198_v12  ;;  %v2196_v34 = vsub.f32 %v2067_v33, %v2132_v39  ;;  %v3073_v17 = vld [vmem:[#allocation5 + $0x1300] sm:$0xff]  ;;  %v2448_v9 = vld [vmem:[#allocation5 + $0xfb8] sm:$0xff]  ;;  %v2701_v50 = vld [vmem:[#allocation2 + $0x1188] sm:$0xff] }
 0x1fc   :  { %v6902_v15 = vand.u32 2147483647, %v2195_v16  ;;  %v2511_v41 = vsub.f32 %v2382_v7, %v2447_v11  ;;  %v2574_v19 = vand.u32 2147483647, %v2510_v48  ;;  %v2637_v43 = vadd.f32 %v2636_v52, %v2573_v49  ;;  %v3315_v47 = vld [vmem:[#allocation2 + $0x1478] sm:$0xff]  ;;  %v2766_v13 = vld [vmem:[#allocation5 + $0x1188] sm:$0xff] }
 0x1fd   :  { %v3443_v10 = vsub.f32 %v3314_v1, %v3379_v6  ;;  %v3506_v56 = vand.u32 2147483647, %v3442_v30  ;;  %v3569_v28 = vadd.f32 %v3568_v51, %v3505_v29  ;;  %v1996_v31 = vadd.f32 %v1995_v62, %v6708_v26  ;;  %v3380_v35 = vld [vmem:[#allocation5 + $0x1478] sm:$0xff]  ;;  %v3009_v26 = vld [vmem:[#allocation2 + $0x1308] sm:$0xff]  ;;  %v2449_v49 = vld [vmem:[#allocation5 + $0xfc0] sm:$0xff] }
 0x1fe   :  { %v2316_v61 = vadd.f32 %v2315_v20, %v6874_v59  ;;  %v2829_v57 = vsub.f32 %v2700_v21, %v2765_v37  ;;  %v2892_v46 = vand.u32 2147483647, %v2828_v40  ;;  %v2955_v53 = vadd.f32 %v2954_v18, %v2891_v22  ;;  %v8569_v45 = vld [vmem:[#allocation21_spill] sm:$0xff]  ;;  %v3074_v48 = vld [vmem:[#allocation5 + $0x1308] sm:$0xff]  ;;  %v2384_v59 = vld [vmem:[#allocation2 + $0xfc0] sm:$0xff] }
 0x1ff   :  { %v3137_v33 = vsub.f32 %v3008_v23, %v3073_v17  ;;  %v3200_v42 = vand.u32 2147483647, %v3136_v63  ;;  %v3263_v0 = vadd.f32 %v3262_v36, %v3199_v4  ;;  %v1675_v55 = vadd.f32 %v6762_v54, %v8569_v45  ;;  %v3316_v51 = vld [vmem:[#allocation2 + $0x1480] sm:$0xff]  ;;  %v6912_v62 = vld [vmem:[#allocation2 + $0xfc8] sm:$0xff]  ;;  %v6914_v20 = vld [vmem:[#allocation2 + $0xfd0] sm:$0xff] }
 0x200   :  { %v6908_v12 = vand.u32 2147483647, %v2196_v34  ;;  %v2512_v44 = vsub.f32 %v2383_v32, %v2448_v9  ;;  %v2575_v16 = vand.u32 2147483647, %v2511_v41  ;;  %v2638_v2 = vadd.f32 %v2637_v43, %v2574_v19  ;;  %v3381_v54 = vld [vmem:[#allocation5 + $0x1480] sm:$0xff]  ;;  %v2702_v40 = vld [vmem:[#allocation2 + $0x1190] sm:$0xff] }
 0x201   :  { %v3444_v58 = vsub.f32 %v3315_v47, %v3380_v35  ;;  %v3507_v39 = vand.u32 2147483647, %v3443_v10  ;;  %v3570_v7 = vadd.f32 %v3569_v28, %v3506_v56  ;;  %v1997_v11 = vadd.f32 %v1996_v31, %v6713_v5  ;;  %v2767_v22 = vld [vmem:[#allocation5 + $0x1190] sm:$0xff]  ;;  %v8570_v18 = vld [vmem:[#allocation47_spill] sm:$0xff]  ;;  %v8571_v5 = vld [vmem:[#allocation38_spill] sm:$0xff] }
 0x202   :  { %v2317_v52 = vadd.f32 %v2316_v61, %v6878_v14  ;;  %v2830_v30 = vsub.f32 %v2701_v50, %v2766_v13  ;;  %v2893_v29 = vand.u32 2147483647, %v2829_v57  ;;  %v2956_v1 = vadd.f32 %v2955_v53, %v2892_v46  ;;  %v6923_v4 = vld [vmem:[#allocation2 + $0xfd8] sm:$0xff]  ;;  %v3010_v41 = vld [vmem:[#allocation2 + $0x1310] sm:$0xff]  ;;  %v2450_v23 = vld [vmem:[#allocation5 + $0xfc8] sm:$0xff] }
 0x203   :  { %v3138_v6 = vsub.f32 %v3009_v26, %v3074_v48  ;;  %v3201_v21 = vand.u32 2147483647, %v3137_v33  ;;  %v3264_v37 = vadd.f32 %v3263_v0, %v3200_v42  ;;  %v6918_v63 = vadd.f32 %v6738_v25, %v8570_v18  ;;  %v3075_v19 = vld [vmem:[#allocation5 + $0x1310] sm:$0xff]  ;;  %v2452_v32 = vld [vmem:[#allocation5 + $0xfd8] sm:$0xff]  ;;  %v6929_v31 = vld [vmem:[#allocation2 + $0xfe0] sm:$0xff] }
 0x204   :  { %v6921_v14 = vadd.f32 %v1675_v55, %v8571_v5  ;;  %v2513_v36 = vsub.f32 %v2384_v59, %v2449_v49  ;;  %v2576_v34 = vand.u32 2147483647, %v2512_v44  ;;  %v2451_v17 = vld [vmem:[#allocation5 + $0xfd0] sm:$0xff]  ;;  %v2639_v9 = vadd.f32 %v2638_v2, %v2575_v16  ;;  %v3317_v46 = vld [vmem:[#allocation2 + $0x1488] sm:$0xff]  ;;  %v2453_v35 = vld [vmem:[#allocation5 + $0xfe0] sm:$0xff] }
 0x205   :  { %v3445_v43 = vsub.f32 %v3316_v51, %v3381_v54  ;;  %v3508_v10 = vand.u32 2147483647, %v3444_v58  ;;  %v3571_v56 = vadd.f32 %v3570_v7, %v3507_v39  ;;  %v6926_v28 = vadd.f32 %v1997_v11, %v6720_v3  ;;  %v3382_v47 = vld [vmem:[#allocation5 + $0x1488] sm:$0xff]  ;;  %v2703_v50 = vld [vmem:[#allocation2 + $0x1198] sm:$0xff]  ;;  %v2390_v48 = vld [vmem:[#allocation2 + $0xff0] sm:$0xff] }
 0x206   :  { %v2318_v25 = vadd.f32 %v2317_v52, %v6882_v38  ;;  %v2831_v61 = vsub.f32 %v2702_v40, %v2767_v22  ;;  %v2894_v57 = vand.u32 2147483647, %v2830_v30  ;;  %v2768_v13 = vld [vmem:[#allocation5 + $0x1198] sm:$0xff]  ;;  %v2957_v53 = vadd.f32 %v2956_v1, %v2893_v29  ;;  %v2389_v45 = vld [vmem:[#allocation2 + $0xfe8] sm:$0xff]  ;;  %v2455_v49 = vld [vmem:[#allocation5 + $0xff0] sm:$0xff] }
 0x207   :  { %v3139_v33 = vsub.f32 %v3010_v41, %v3075_v19  ;;  %v3202_v42 = vand.u32 2147483647, %v3138_v6  ;;  %v3265_v0 = vadd.f32 %v3264_v37, %v3201_v21  ;;  %v2514_v55 = vsub.f32 %v6912_v62, %v2450_v23  ;;  %v3011_v16 = vld [vmem:[#allocation2 + $0x1318] sm:$0xff]  ;;  %v2454_v59 = vld [vmem:[#allocation5 + $0xfe8] sm:$0xff]  ;;  %v3318_v51 = vld [vmem:[#allocation2 + $0x1490] sm:$0xff] }
 0x208   :  { %v2515_v3 = vsub.f32 %v6914_v20, %v2451_v17  ;;  %v2516_v38 = vsub.f32 %v6923_v4, %v2452_v32  ;;  %v2577_v44 = vand.u32 2147483647, %v2513_v36  ;;  %v3076_v26 = vld [vmem:[#allocation5 + $0x1318] sm:$0xff]  ;;  %v2640_v2 = vadd.f32 %v2639_v9, %v2576_v34  ;;  %v3383_v54 = vld [vmem:[#allocation5 + $0x1490] sm:$0xff]  ;;  %v2704_v62 = vld [vmem:[#allocation2 + $0x11a0] sm:$0xff] }
 0x209   :  { %v3446_v58 = vsub.f32 %v3317_v46, %v3382_v47  ;;  %v3509_v39 = vand.u32 2147483647, %v3445_v43  ;;  %v3572_v7 = vadd.f32 %v3571_v56, %v3508_v10  ;;  %v2319_v11 = vadd.f32 %v2318_v25, %v6886_v8  ;;  %v2769_v20 = vld [vmem:[#allocation5 + $0x11a0] sm:$0xff]  ;;  %v2391_v34 = vld [vmem:[#allocation2 + $0xff8] sm:$0xff] }
 0x20a   :  { %v2517_v52 = vsub.f32 %v6929_v31, %v2453_v35  ;;  %v2832_v30 = vsub.f32 %v2703_v50, %v2768_v13  ;;  %v2895_v29 = vand.u32 2147483647, %v2831_v61  ;;  %v2958_v40 = vadd.f32 %v2957_v53, %v2894_v57  ;;  %v3012_v4 = vld [vmem:[#allocation2 + $0x1320] sm:$0xff]  ;;  %v2456_v8 = vld [vmem:[#allocation5 + $0xff8] sm:$0xff]  ;;  %v2705_v31 = vld [vmem:[#allocation2 + $0x11a8] sm:$0xff] }
 0x20b   :  { %v3140_v22 = vsub.f32 %v3011_v16, %v3076_v26  ;;  %v3203_v1 = vand.u32 2147483647, %v3139_v33  ;;  %v3266_v6 = vadd.f32 %v3265_v0, %v3202_v42  ;;  %v2518_v21 = vsub.f32 %v2389_v45, %v2454_v59  ;;  %v3077_v36 = vld [vmem:[#allocation5 + $0x1320] sm:$0xff]  ;;  %v3319_v56 = vld [vmem:[#allocation2 + $0x1498] sm:$0xff]  ;;  %v2770_v61 = vld [vmem:[#allocation5 + $0x11a8] sm:$0xff] }
 0x20c   :  { %v2519_v37 = vsub.f32 %v2390_v48, %v2455_v49  ;;  %v2578_v18 = vand.u32 2147483647, %v2514_v55  ;;  %v2579_v5 = vand.u32 2147483647, %v2515_v3  ;;  %v2641_v41 = vadd.f32 %v2640_v2, %v2577_v44  ;;  %v3384_v25 = vld [vmem:[#allocation5 + $0x1498] sm:$0xff]  ;;  %v3078_v0 = vld [vmem:[#allocation5 + $0x1328] sm:$0xff] }
 0x20d   :  { %v3447_v19 = vsub.f32 %v3318_v51, %v3383_v54  ;;  %v3510_v23 = vand.u32 2147483647, %v3446_v58  ;;  %v3573_v17 = vadd.f32 %v3572_v7, %v3509_v39  ;;  %v2320_v32 = vadd.f32 %v2319_v11, %v6890_v24  ;;  %v8572_v50 = vld [vmem:[#allocation69_spill] sm:$0xff]  ;;  %v3013_v24 = vld [vmem:[#allocation2 + $0x1328] sm:$0xff]  ;;  %v2706_v55 = vld [vmem:[#allocation2 + $0x11b0] sm:$0xff] }
 0x20e   :  { %v6937_v9 = vand.u32 2147483647, %v2516_v38  ;;  %v2833_v43 = vsub.f32 %v2704_v62, %v2769_v20  ;;  %v2896_v10 = vand.u32 2147483647, %v2832_v30  ;;  %v2959_v57 = vadd.f32 %v2958_v40, %v2895_v29  ;;  %v2771_v3 = vld [vmem:[#allocation5 + $0x11b0] sm:$0xff]  ;;  %v3385_v2 = vld [vmem:[#allocation5 + $0x14a0] sm:$0xff] }
 0x20f   :  { %v3141_v46 = vsub.f32 %v3012_v4, %v3077_v36  ;;  %v3204_v47 = vand.u32 2147483647, %v3140_v22  ;;  %v3267_v35 = vadd.f32 %v3266_v6, %v3203_v1  ;;  %v1999_v13 = vadd.f32 %v6926_v28, %v8572_v50  ;;  %v3320_v28 = vld [vmem:[#allocation2 + $0x14a0] sm:$0xff]  ;;  %v2707_v58 = vld [vmem:[#allocation2 + $0x11b8] sm:$0xff]  ;;  %v8573_v51 = vld [vmem:[#allocation64_spill] sm:$0xff] }
 0x210   :  { %v2520_v53 = vsub.f32 %v2391_v34, %v2456_v8  ;;  %v6941_v33 = vand.u32 2147483647, %v2517_v52  ;;  %v6943_v42 = vand.u32 2147483647, %v2518_v21  ;;  %v2642_v45 = vadd.f32 %v2641_v41, %v2578_v18  ;;  %v2772_v39 = vld [vmem:[#allocation5 + $0x11b8] sm:$0xff]  ;;  %v3014_v40 = vld [vmem:[#allocation2 + $0x1330] sm:$0xff] }
 0x211   :  { %v3448_v38 = vsub.f32 %v3319_v56, %v3384_v25  ;;  %v3511_v44 = vand.u32 2147483647, %v3447_v19  ;;  %v3574_v16 = vadd.f32 %v3573_v17, %v3510_v23  ;;  %v2321_v26 = vadd.f32 %v2320_v32, %v6894_v27  ;;  %v2708_v27 = vld [vmem:[#allocation2 + $0x11c0] sm:$0xff]  ;;  %v3079_v22 = vld [vmem:[#allocation5 + $0x1330] sm:$0xff]  ;;  %v2709_v6 = vld [vmem:[#allocation2 + $0x11c8] sm:$0xff] }
 0x212   :  { %v6946_v48 = vand.u32 2147483647, %v2519_v37  ;;  %v2834_v59 = vsub.f32 %v2705_v31, %v2770_v61  ;;  %v2897_v49 = vand.u32 2147483647, %v2833_v43  ;;  %v2960_v7 = vadd.f32 %v2959_v57, %v2896_v10  ;;  %v2773_v21 = vld [vmem:[#allocation5 + $0x11c0] sm:$0xff]  ;;  %v2774_v37 = vld [vmem:[#allocation5 + $0x11c8] sm:$0xff] }
 0x213   :  { %v3142_v11 = vsub.f32 %v3013_v24, %v3078_v0  ;;  %v3205_v52 = vand.u32 2147483647, %v3141_v46  ;;  %v3268_v30 = vadd.f32 %v3267_v35, %v3204_v47  ;;  %v1677_v29 = vadd.f32 %v6921_v14, %v6918_v63  ;;  %v2710_v8 = vld [vmem:[#allocation2 + $0x11d0] sm:$0xff]  ;;  %v3321_v14 = vld [vmem:[#allocation2 + $0x14a8] sm:$0xff]  ;;  %v2711_v23 = vld [vmem:[#allocation2 + $0x11d8] sm:$0xff] }
 0x214   :  { %v2000_v54 = vadd.f32 %v1999_v13, %v8573_v51  ;;  %v6951_v62 = vand.u32 2147483647, %v2520_v53  ;;  %v2835_v20 = vsub.f32 %v2706_v55, %v2771_v3  ;;  %v2643_v1 = vadd.f32 %v2642_v45, %v2579_v5  ;;  %v3386_v19 = vld [vmem:[#allocation5 + $0x14a8] sm:$0xff]  ;;  %v2775_v17 = vld [vmem:[#allocation5 + $0x11d0] sm:$0xff]  ;;  %v2776_v32 = vld [vmem:[#allocation5 + $0x11d8] sm:$0xff] }
 0x215   :  { %v3449_v18 = vsub.f32 %v3320_v28, %v3385_v2  ;;  %v3512_v4 = vand.u32 2147483647, %v3448_v38  ;;  %v3575_v36 = vadd.f32 %v3574_v16, %v3511_v44  ;;  %v2322_v34 = vadd.f32 %v2321_v26, %v6898_v60  ;;  %v2712_v31 = vld [vmem:[#allocation2 + $0x11e0] sm:$0xff]  ;;  %v3015_v47 = vld [vmem:[#allocation2 + $0x1338] sm:$0xff]  ;;  %v2713_v50 = vld [vmem:[#allocation2 + $0x11e8] sm:$0xff] }
 0x216   :  { %v2836_v41 = vsub.f32 %v2707_v58, %v2772_v39  ;;  %v2898_v63 = vand.u32 2147483647, %v2834_v59  ;;  %v2961_v43 = vadd.f32 %v2960_v7, %v2897_v49  ;;  %v3143_v10 = vsub.f32 %v3014_v40, %v3079_v22  ;;  %v3080_v60 = vld [vmem:[#allocation5 + $0x1338] sm:$0xff]  ;;  %v2777_v13 = vld [vmem:[#allocation5 + $0x11e0] sm:$0xff]  ;;  %v2778_v53 = vld [vmem:[#allocation5 + $0x11e8] sm:$0xff] }
 0x217   :  { %v3206_v56 = vand.u32 2147483647, %v3142_v11  ;;  %v3269_v5 = vadd.f32 %v3268_v30, %v3205_v52  ;;  %v6954_v25 = vadd.f32 %v2000_v54, %v1677_v29  ;;  %v2837_v61 = vsub.f32 %v2708_v27, %v2773_v21  ;;  %v3016_v16 = vld [vmem:[#allocation2 + $0x1340] sm:$0xff]  ;;  %v3322_v26 = vld [vmem:[#allocation2 + $0x14b0] sm:$0xff]  ;;  %v3690_v11 = vld [vmem:[#allocation5 + $0x1608] sm:$0xff] }
 0x218   :  { %v2838_v57 = vsub.f32 %v2709_v6, %v2774_v37  ;;  %v2899_v46 = vand.u32 2147483647, %v2835_v20  ;;  %v2644_v35 = vadd.f32 %v2643_v1, %v6937_v9  ;;  %v3450_v24 = vsub.f32 %v3321_v14, %v3386_v19  ;;  %v3387_v59 = vld [vmem:[#allocation5 + $0x14b0] sm:$0xff]  ;;  %v3624_v49 = vld [vmem:[#allocation2 + $0x1600] sm:$0xff]  ;;  %v3625_v9 = vld [vmem:[#allocation2 + $0x1608] sm:$0xff] }
 0x219   :  { %v3513_v0 = vand.u32 2147483647, %v3449_v18  ;;  %v3576_v45 = vadd.f32 %v3575_v36, %v3512_v4  ;;  %v2323_v55 = vadd.f32 %v2322_v34, %v6902_v15  ;;  %v2839_v3 = vsub.f32 %v2710_v8, %v2775_v17  ;;  %v3689_v7 = vld [vmem:[#allocation5 + $0x1600] sm:$0xff]  ;;  %v2714_v52 = vld [vmem:[#allocation2 + $0x11f0] sm:$0xff]  ;;  %v2715_v20 = vld [vmem:[#allocation2 + $0x11f8] sm:$0xff] }
 0x21a   :  { %v2840_v38 = vsub.f32 %v2711_v23, %v2776_v32  ;;  %v2900_v44 = vand.u32 2147483647, %v2836_v41  ;;  %v2962_v28 = vadd.f32 %v2961_v43, %v2898_v63  ;;  %v3144_v2 = vsub.f32 %v3015_v47, %v3080_v60  ;;  %v3081_v54 = vld [vmem:[#allocation5 + $0x1340] sm:$0xff]  ;;  %v2779_v40 = vld [vmem:[#allocation5 + $0x11f0] sm:$0xff]  ;;  %v2780_v22 = vld [vmem:[#allocation5 + $0x11f8] sm:$0xff] }
 0x21b   :  { %v3207_v58 = vand.u32 2147483647, %v3143_v10  ;;  %v3270_v39 = vadd.f32 %v3269_v5, %v3206_v56  ;;  %v2841_v30 = vsub.f32 %v2712_v31, %v2777_v13  ;;  %v2842_v29 = vsub.f32 %v2713_v50, %v2778_v53  ;;  %v3323_v4 = vld [vmem:[#allocation2 + $0x14b8] sm:$0xff]  ;;  %v3626_v23 = vld [vmem:[#allocation2 + $0x1610] sm:$0xff]  ;;  %v3017_v56 = vld [vmem:[#allocation2 + $0x1348] sm:$0xff] }
 0x21c   :  { %v6958_v51 = vand.u32 2147483647, %v2837_v61  ;;  %v6960_v15 = vand.u32 2147483647, %v2838_v57  ;;  %v2645_v27 = vadd.f32 %v2644_v35, %v6941_v33  ;;  %v3451_v1 = vsub.f32 %v3322_v26, %v3387_v59  ;;  %v3388_v36 = vld [vmem:[#allocation5 + $0x14b8] sm:$0xff]  ;;  %v3691_v33 = vld [vmem:[#allocation5 + $0x1610] sm:$0xff] }
 0x21d   :  { %v3514_v6 = vand.u32 2147483647, %v3450_v24  ;;  %v3577_v21 = vadd.f32 %v3576_v45, %v3513_v0  ;;  %v6963_v37 = vand.u32 2147483647, %v2839_v3  ;;  %v6965_v18 = vand.u32 2147483647, %v2840_v38 }
 0x21e   :  { %v3753_v34 = vsub.f32 %v3624_v49, %v3689_v7  ;;  %v3754_v8 = vsub.f32 %v3625_v9, %v3690_v11  ;;  %v2963_v41 = vadd.f32 %v2962_v28, %v2899_v46  ;;  %v3145_v63 = vsub.f32 %v3016_v16, %v3081_v54  ;;  %v3082_v5 = vld [vmem:[#allocation5 + $0x1348] sm:$0xff]  ;;  %v3018_v61 = vld [vmem:[#allocation2 + $0x1350] sm:$0xff]  ;;  %v6973_v50 = vld [vmem:[#allocation2 + $0x1358] sm:$0xff] }
 0x21f   :  { %v3208_v14 = vand.u32 2147483647, %v3144_v2  ;;  %v3271_v19 = vadd.f32 %v3270_v39, %v3207_v58  ;;  %v2843_v17 = vsub.f32 %v2714_v52, %v2779_v40  ;;  %v2844_v32 = vsub.f32 %v2715_v20, %v2780_v22  ;;  %v3083_v57 = vld [vmem:[#allocation5 + $0x1350] sm:$0xff]  ;;  %v3324_v13 = vld [vmem:[#allocation2 + $0x14c0] sm:$0xff]  ;;  %v6977_v16 = vld [vmem:[#allocation2 + $0x1368] sm:$0xff] }
 0x220   :  { %v6967_v43 = vand.u32 2147483647, %v2841_v30  ;;  %v6969_v10 = vand.u32 2147483647, %v2842_v29  ;;  %v2646_v31 = vadd.f32 %v2645_v27, %v6943_v42  ;;  %v3452_v47 = vsub.f32 %v3323_v4, %v3388_v36  ;;  %v3389_v53 = vld [vmem:[#allocation5 + $0x14c0] sm:$0xff]  ;;  %v3627_v49 = vld [vmem:[#allocation2 + $0x1618] sm:$0xff] }
 0x221   :  { %v3515_v60 = vand.u32 2147483647, %v3451_v1  ;;  %v3578_v46 = vadd.f32 %v3577_v21, %v3514_v6  ;;  %v2324_v35 = vadd.f32 %v2323_v55, %v6908_v12  ;;  %v3755_v24 = vsub.f32 %v3626_v23, %v3691_v33  ;;  %v6975_v38 = vld [vmem:[#allocation2 + $0x1360] sm:$0xff]  ;;  %v3692_v28 = vld [vmem:[#allocation5 + $0x1618] sm:$0xff]  ;;  %v3022_v55 = vld [vmem:[#allocation2 + $0x1370] sm:$0xff] }
 0x222   :  { %v3817_v0 = vand.u32 2147483647, %v3753_v34  ;;  %v3818_v45 = vand.u32 2147483647, %v3754_v8  ;;  %v2964_v3 = vadd.f32 %v2963_v41, %v2900_v44  ;;  %v3146_v42 = vsub.f32 %v3017_v56, %v3082_v5  ;;  %v3084_v58 = vld [vmem:[#allocation5 + $0x1358] sm:$0xff]  ;;  %v3085_v7 = vld [vmem:[#allocation5 + $0x1360] sm:$0xff] }
 0x223   :  { %v3209_v26 = vand.u32 2147483647, %v3145_v63  ;;  %v3272_v59 = vadd.f32 %v3271_v19, %v3208_v14  ;;  %v6979_v2 = vand.u32 2147483647, %v2843_v17  ;;  %v6981_v12 = vand.u32 2147483647, %v2844_v32 }
 0x224   :  { %v3147_v39 = vsub.f32 %v3018_v61, %v3083_v57  ;;  %v2647_v9 = vadd.f32 %v2646_v31, %v6946_v48  ;;  %v3086_v44 = vld [vmem:[#allocation5 + $0x1368] sm:$0xff]  ;;  %v3087_v11 = vld [vmem:[#allocation5 + $0x1370] sm:$0xff]  ;;  %v3453_v52 = vsub.f32 %v3324_v13, %v3389_v53  ;;  %v3516_v30 = vand.u32 2147483647, %v3452_v47  ;;  %v3023_v27 = vld [vmem:[#allocation2 + $0x1378] sm:$0xff] }
 0x225   :  { %v3579_v29 = vadd.f32 %v3578_v46, %v3515_v60  ;;  %v6985_v54 = vadd.f32 %v2324_v35, %v6954_v25  ;;  %v3325_v20 = vld [vmem:[#allocation2 + $0x14c8] sm:$0xff]  ;;  %v3756_v22 = vsub.f32 %v3627_v49, %v3692_v28  ;;  %v3819_v1 = vand.u32 2147483647, %v3755_v24  ;;  %v3088_v4 = vld [vmem:[#allocation5 + $0x1378] sm:$0xff]  ;;  %v3628_v8 = vld [vmem:[#allocation2 + $0x1620] sm:$0xff] }
 0x226   :  { %v3390_v40 = vld [vmem:[#allocation5 + $0x14c8] sm:$0xff]  ;;  %v3882_v6 = vadd.f32 %v3818_v45, %v3817_v0  ;;  %v2965_v21 = vadd.f32 %v2964_v3, %v6958_v51  ;;  %v3148_v48 = vsub.f32 %v6973_v50, %v3084_v58  ;;  %v3210_v36 = vand.u32 2147483647, %v3146_v42  ;;  %v3693_v41 = vld [vmem:[#allocation5 + $0x1620] sm:$0xff]  ;;  %v3026_v51 = vld [vmem:[#allocation2 + $0x1390] sm:$0xff] }
 0x227   :  { %v3273_v34 = vadd.f32 %v3272_v59, %v3209_v26  ;;  %v3024_v63 = vld [vmem:[#allocation2 + $0x1380] sm:$0xff]  ;;  %v6989_v14 = vld [vmem:[#allocation2 + $0x1388] sm:$0xff]  ;;  %v3149_v19 = vsub.f32 %v6975_v38, %v3085_v7  ;;  %v3150_v23 = vsub.f32 %v6977_v16, %v3086_v44  ;;  %v3151_v33 = vsub.f32 %v3022_v55, %v3087_v11  ;;  %v3091_v5 = vld [vmem:[#allocation5 + $0x1390] sm:$0xff] }
 0x228   :  { %v3089_v25 = vld [vmem:[#allocation5 + $0x1380] sm:$0xff]  ;;  %v3211_v17 = vand.u32 2147483647, %v3147_v39  ;;  %v6994_v32 = vadd.f32 %v2647_v9, %v6951_v62  ;;  %v3090_v56 = vld [vmem:[#allocation5 + $0x1388] sm:$0xff]  ;;  %v3454_v31 = vsub.f32 %v3325_v20, %v3390_v40  ;;  %v3517_v61 = vand.u32 2147483647, %v3453_v52 }
 0x229   :  { %v3580_v57 = vadd.f32 %v3579_v29, %v3516_v30  ;;  %v6996_v47 = vld [vmem:[#allocation2 + $0x1398] sm:$0xff]  ;;  %v3152_v60 = vsub.f32 %v3023_v27, %v3088_v4  ;;  %v3326_v46 = vld [vmem:[#allocation2 + $0x14d0] sm:$0xff]  ;;  %v3757_v50 = vsub.f32 %v3628_v8, %v3693_v41  ;;  %v3820_v13 = vand.u32 2147483647, %v3756_v22  ;;  %v6999_v0 = vld [vmem:[#allocation2 + $0x13a0] sm:$0xff] }
 0x22a   :  { %v3391_v35 = vld [vmem:[#allocation5 + $0x14d0] sm:$0xff]  ;;  %v3883_v53 = vadd.f32 %v3882_v6, %v3819_v1  ;;  %v2966_v24 = vadd.f32 %v2965_v21, %v6960_v15  ;;  %v3153_v62 = vsub.f32 %v3024_v63, %v3089_v25  ;;  %v3212_v45 = vand.u32 2147483647, %v3148_v48  ;;  %v7001_v38 = vld [vmem:[#allocation2 + $0x14d8] sm:$0xff]  ;;  %v3629_v16 = vld [vmem:[#allocation2 + $0x1628] sm:$0xff] }
 0x22b   :  { %v3274_v3 = vadd.f32 %v3273_v34, %v3210_v36  ;;  %v3694_v42 = vld [vmem:[#allocation5 + $0x1628] sm:$0xff]  ;;  %v3092_v59 = vld [vmem:[#allocation5 + $0x1398] sm:$0xff]  ;;  %v3154_v49 = vsub.f32 %v6989_v14, %v3090_v56  ;;  %v3155_v28 = vsub.f32 %v3026_v51, %v3091_v5  ;;  %v7006_v55 = vand.u32 2147483647, %v3149_v19  ;;  %v7010_v15 = vld [vmem:[#allocation2 + $0x14e0] sm:$0xff] }
 0x22c   :  { %v7003_v26 = vld [vmem:[#allocation2 + $0x13a8] sm:$0xff]  ;;  %v7008_v58 = vand.u32 2147483647, %v3150_v23  ;;  %v7012_v39 = vld [vmem:[#allocation2 + $0x13b0] sm:$0xff]  ;;  %v7014_v9 = vld [vmem:[#allocation5 + $0x13a0] sm:$0xff]  ;;  %v3455_v11 = vsub.f32 %v3326_v46, %v3391_v35  ;;  %v3581_v30 = vadd.f32 %v3580_v57, %v3517_v61  ;;  %v3758_v1 = vsub.f32 %v3629_v16, %v3694_v42 }
 0x22d   :  { %v7016_v7 = vand.u32 2147483647, %v3151_v33  ;;  %v3392_v44 = vld [vmem:[#allocation5 + $0x14d8] sm:$0xff]  ;;  %v3518_v52 = vand.u32 2147483647, %v3454_v31  ;;  %v7020_v27 = vld [vmem:[#allocation2 + $0x13c0] sm:$0xff]  ;;  %v3884_v21 = vadd.f32 %v3883_v53, %v3820_v13  ;;  %v2967_v4 = vadd.f32 %v2966_v24, %v6963_v37 }
 0x22e   :  { %v7018_v29 = vld [vmem:[#allocation2 + $0x13b8] sm:$0xff]  ;;  %v3094_v20 = vld [vmem:[#allocation5 + $0x13a8] sm:$0xff]  ;;  %v7022_v40 = vand.u32 2147483647, %v3152_v60  ;;  %v7024_v22 = vld [vmem:[#allocation5 + $0x14e0] sm:$0xff]  ;;  %v3156_v41 = vsub.f32 %v6996_v47, %v3092_v59  ;;  %v3275_v14 = vadd.f32 %v3274_v3, %v3211_v17  ;;  %v3157_v37 = vsub.f32 %v6999_v0, %v7014_v9 }
 0x22f   :  { %v3821_v6 = vand.u32 2147483647, %v3757_v50  ;;  %v7027_v48 = vld [vmem:[#allocation2 + $0x13c8] sm:$0xff]  ;;  %v7029_v36 = vld [vmem:[#allocation2 + $0x13d0] sm:$0xff]  ;;  %v7031_v34 = vld [vmem:[#allocation2 + $0x13d8] sm:$0xff]  ;;  %v3456_v31 = vsub.f32 %v7001_v38, %v3392_v44  ;;  %v3158_v17 = vsub.f32 %v7003_v26, %v3094_v20  ;;  %v3457_v60 = vsub.f32 %v7010_v15, %v7024_v22 }
 0x230   :  { %v3095_v8 = vld [vmem:[#allocation5 + $0x13b0] sm:$0xff]  ;;  %v7034_v63 = vand.u32 2147483647, %v3153_v62  ;;  %v7036_v23 = vld [vmem:[#allocation2 + $0x13e0] sm:$0xff]  ;;  %v3096_v33 = vld [vmem:[#allocation5 + $0x13b8] sm:$0xff]  ;;  %v3582_v35 = vadd.f32 %v3581_v30, %v3518_v52  ;;  %v2968_v38 = vadd.f32 %v2967_v4, %v6965_v18  ;;  %v3276_v26 = vadd.f32 %v3275_v14, %v3212_v45 }
 0x231   :  { %v3630_v25 = vld [vmem:[#allocation2 + $0x1630] sm:$0xff]  ;;  %v3097_v51 = vld [vmem:[#allocation5 + $0x13c0] sm:$0xff]  ;;  %v7040_v56 = vand.u32 2147483647, %v3154_v49  ;;  %v7042_v5 = vand.u32 2147483647, %v3155_v28  ;;  %v3159_v24 = vsub.f32 %v7012_v39, %v3095_v8  ;;  %v3885_v3 = vadd.f32 %v3884_v21, %v3821_v6 }
 0x232   :  { %v3695_v19 = vld [vmem:[#allocation5 + $0x1630] sm:$0xff]  ;;  %v3098_v61 = vld [vmem:[#allocation5 + $0x13c8] sm:$0xff]  ;;  %v3100_v47 = vld [vmem:[#allocation5 + $0x13d8] sm:$0xff]  ;;  %v3519_v46 = vand.u32 2147483647, %v3455_v11  ;;  %v3160_v16 = vsub.f32 %v7018_v29, %v3096_v33  ;;  %v3161_v42 = vsub.f32 %v7020_v27, %v3097_v51  ;;  %v3277_v8 = vadd.f32 %v3276_v26, %v7006_v55 }
 0x233   :  { %v3099_v57 = vld [vmem:[#allocation5 + $0x13d0] sm:$0xff]  ;;  %v3037_v50 = vld [vmem:[#allocation2 + $0x13e8] sm:$0xff]  ;;  %v3101_v13 = vld [vmem:[#allocation5 + $0x13e0] sm:$0xff]  ;;  %v3759_v0 = vsub.f32 %v3630_v25, %v3695_v19  ;;  %v3822_v62 = vand.u32 2147483647, %v3758_v1  ;;  %v3162_v28 = vsub.f32 %v7027_v48, %v3098_v61  ;;  %v3164_v9 = vsub.f32 %v7031_v34, %v3100_v47 }
 0x234   :  { %v3102_v53 = vld [vmem:[#allocation5 + $0x13e8] sm:$0xff]  ;;  %v3631_v59 = vld [vmem:[#allocation2 + $0x1638] sm:$0xff]  ;;  %v3163_v15 = vsub.f32 %v7029_v36, %v3099_v57  ;;  %v7055_v44 = vand.u32 2147483647, %v3156_v41  ;;  %v3038_v39 = vld [vmem:[#allocation2 + $0x13f0] sm:$0xff]  ;;  %v3165_v52 = vsub.f32 %v7036_v23, %v3101_v13  ;;  %v3583_v20 = vadd.f32 %v3582_v35, %v3519_v46 }
 0x235   :  { %v3696_v49 = vld [vmem:[#allocation5 + $0x1638] sm:$0xff]  ;;  %v3103_v11 = vld [vmem:[#allocation5 + $0x13f0] sm:$0xff]  ;;  %v3166_v18 = vsub.f32 %v3037_v50, %v3102_v53  ;;  %v3329_v30 = vld [vmem:[#allocation2 + $0x14e8] sm:$0xff]  ;;  %v3520_v29 = vand.u32 2147483647, %v3456_v31  ;;  %v3886_v4 = vadd.f32 %v3885_v3, %v3822_v62  ;;  %v2969_v48 = vadd.f32 %v2968_v38, %v6967_v43 }
 0x236   :  { %v3039_v27 = vld [vmem:[#allocation2 + $0x13f8] sm:$0xff]  ;;  %v7058_v22 = vand.u32 2147483647, %v3157_v37  ;;  %v3394_v1 = vld [vmem:[#allocation5 + $0x14e8] sm:$0xff]  ;;  %v3760_v6 = vsub.f32 %v3631_v59, %v3696_v49  ;;  %v3823_v21 = vand.u32 2147483647, %v3759_v0  ;;  %v3167_v25 = vsub.f32 %v3038_v39, %v3103_v11 }
 0x237   :  { %v3104_v45 = vld [vmem:[#allocation5 + $0x13f8] sm:$0xff]  ;;  %v7061_v36 = vand.u32 2147483647, %v3158_v17  ;;  %v7063_v34 = vand.u32 2147483647, %v3159_v24  ;;  %v3632_v41 = vld [vmem:[#allocation2 + $0x1640] sm:$0xff]  ;;  %v3458_v31 = vsub.f32 %v3329_v30, %v3394_v1  ;;  %v3584_v61 = vadd.f32 %v3583_v20, %v3520_v29 }
 0x238   :  { %v3697_v14 = vld [vmem:[#allocation5 + $0x1640] sm:$0xff]  ;;  %v7066_v19 = vand.u32 2147483647, %v3160_v16  ;;  %v7068_v23 = vand.u32 2147483647, %v3161_v42  ;;  %v3330_v37 = vld [vmem:[#allocation2 + $0x14f0] sm:$0xff]  ;;  %v3887_v35 = vadd.f32 %v3886_v4, %v3823_v21  ;;  %v2970_v50 = vadd.f32 %v2969_v48, %v6969_v10 }
 0x239   :  { %8574 = vst [vmem:[#allocation15_spill] sm:$0xff] %v7061_v36  ;;  %v7070_v33 = vand.u32 2147483647, %v3162_v28  ;;  %v7072_v51 = vand.u32 2147483647, %v3163_v15  ;;  %v7076_v47 = vld [vmem:[#allocation2 + $0x14f8] sm:$0xff]  ;;  %v3761_v17 = vsub.f32 %v3632_v41, %v3697_v14  ;;  %v3168_v13 = vsub.f32 %v3039_v27, %v3104_v45 }
 0x23a   :  { %8575 = vst [vmem:[#allocation33_spill] sm:$0xff] %v7063_v34  ;;  %v3521_v43 = vand.u32 2147483647, %v3457_v60  ;;  %v7074_v57 = vand.u32 2147483647, %v3164_v9  ;;  %v3395_v55 = vld [vmem:[#allocation5 + $0x14f0] sm:$0xff]  ;;  %v3278_v24 = vadd.f32 %v3277_v8, %v7008_v58  ;;  %v7100_v58 = vadd.f32 %v6994_v32, %v6985_v54 }
 0x23b   :  { %8576 = vst [vmem:[#allocation23_spill] sm:$0xff] %v7066_v19  ;;  %v3824_v46 = vand.u32 2147483647, %v3760_v6  ;;  %v7079_v53 = vand.u32 2147483647, %v3165_v52  ;;  %v7082_v0 = vld [vmem:[#allocation2 + $0x1500] sm:$0xff]  ;;  %v3459_v15 = vsub.f32 %v3330_v37, %v3395_v55  ;;  %v2971_v6 = vadd.f32 %v2970_v50, %v6979_v2 }
 0x23c   :  { %8577 = vst [vmem:[#allocation67_spill] sm:$0xff] %v7068_v23  ;;  %v7084_v62 = vld [vmem:[#allocation2 + $0x1508] sm:$0xff]  ;;  %v7086_v60 = vld [vmem:[#allocation5 + $0x14f8] sm:$0xff]  ;;  %v7088_v16 = vand.u32 2147483647, %v3166_v18  ;;  %v7090_v42 = vld [vmem:[#allocation2 + $0x1510] sm:$0xff]  ;;  %v3585_v39 = vadd.f32 %v3584_v61, %v3521_v43  ;;  %v3279_v4 = vadd.f32 %v3278_v24, %v7016_v7 }
 0x23d   :  { %8578 = vst [vmem:[#allocation16_spill] sm:$0xff] %v7070_v33  ;;  %v3633_v3 = vld [vmem:[#allocation2 + $0x1648] sm:$0xff]  ;;  %v7092_v26 = vld [vmem:[#allocation2 + $0x1518] sm:$0xff]  ;;  %v7094_v10 = vld [vmem:[#allocation5 + $0x1500] sm:$0xff]  ;;  %v3522_v9 = vand.u32 2147483647, %v3458_v31  ;;  %v3888_v1 = vadd.f32 %v3887_v35, %v3824_v46  ;;  %v3460_v41 = vsub.f32 %v7076_v47, %v7086_v60 }
 0x23e   :  { %8579 = vst [vmem:[#allocation24_spill] sm:$0xff] %v7072_v51  ;;  %v3698_v38 = vld [vmem:[#allocation5 + $0x1648] sm:$0xff]  ;;  %v3948_v49 = vld [vmem:[#allocation2 + $0x1800] sm:$0xff]  ;;  %v7104_v30 = vand.u32 2147483647, %v3167_v25  ;;  %v7108_v20 = vld [vmem:[#allocation2 + $0x1530] sm:$0xff]  ;;  %v3461_v7 = vsub.f32 %v7082_v0, %v7094_v10 }
 0x23f   :  { %8580 = vst [vmem:[#allocation71_spill] sm:$0xff] %v7074_v57  ;;  %v7096_v59 = vld [vmem:[#allocation5 + $0x1508] sm:$0xff]  ;;  %v7102_v28 = vld [vmem:[#allocation2 + $0x1520] sm:$0xff]  ;;  %v7110_v27 = vld [vmem:[#allocation5 + $0x1510] sm:$0xff]  ;;  %v3762_v54 = vsub.f32 %v3633_v3, %v3698_v38  ;;  %v3825_v32 = vand.u32 2147483647, %v3761_v17  ;;  %v3586_v24 = vadd.f32 %v3585_v39, %v3522_v9 }
 0x240   :  { %8581 = vst [vmem:[#allocation37_spill] sm:$0xff] %v7079_v53  ;;  %v3949_v11 = vld [vmem:[#allocation2 + $0x1808] sm:$0xff]  ;;  %v4013_v52 = vld [vmem:[#allocation5 + $0x1800] sm:$0xff]  ;;  %v7112_v45 = vld [vmem:[#allocation5 + $0x1518] sm:$0xff]  ;;  %v7115_v21 = vand.u32 2147483647, %v3168_v13  ;;  %v3462_v61 = vsub.f32 %v7084_v62, %v7096_v59  ;;  %v3463_v35 = vsub.f32 %v7090_v42, %v7110_v27  ;;  %v2972_v42 = vadd.f32 %v2971_v6, %v6981_v12 }
 0x241   :  { %8582 = vst [vmem:[#allocation25_spill] sm:$0xff] %v7088_v16  ;;  %v4014_v18 = vld [vmem:[#allocation5 + $0x1808] sm:$0xff]  ;;  %v7118_v48 = vld [vmem:[#allocation2 + $0x1538] sm:$0xff]  ;;  %v7120_v8 = vld [vmem:[#allocation5 + $0x1520] sm:$0xff]  ;;  %v4077_v55 = vsub.f32 %v3948_v49, %v4013_v52  ;;  %v3523_v13 = vand.u32 2147483647, %v3459_v15  ;;  %v3280_v52 = vadd.f32 %v3279_v4, %v7022_v40 }
 0x242   :  { %8583 = vst [vmem:[#allocation14_spill] sm:$0xff] %v7104_v30  ;;  %v7106_v29 = vld [vmem:[#allocation2 + $0x1528] sm:$0xff]  ;;  %v3634_v14 = vld [vmem:[#allocation2 + $0x1650] sm:$0xff]  ;;  %v7124_v37 = vld [vmem:[#allocation2 + $0x1540] sm:$0xff]  ;;  %v4078_v17 = vsub.f32 %v3949_v11, %v4014_v18  ;;  %v3826_v49 = vand.u32 2147483647, %v3762_v54  ;;  %v3889_v11 = vadd.f32 %v3888_v1, %v3825_v32 }
 0x243   :  { %8584 = vst [vmem:[#allocation48_spill] sm:$0xff] %v7115_v21  ;;  %v3699_v25 = vld [vmem:[#allocation5 + $0x1650] sm:$0xff]  ;;  %v7126_v31 = vld [vmem:[#allocation2 + $0x1548] sm:$0xff]  ;;  %v7138_v47 = vld [vmem:[#allocation5 + $0x1538] sm:$0xff]  ;;  %v4141_v32 = vand.u32 2147483647, %v4077_v55  ;;  %v3281_v4 = vadd.f32 %v3280_v52, %v7034_v63 }
 0x244   :  { %v7128_v43 = vld [vmem:[#allocation5 + $0x1528] sm:$0xff]  ;;  %v7130_v2 = vld [vmem:[#allocation5 + $0x1530] sm:$0xff]  ;;  %v7144_v0 = vld [vmem:[#allocation2 + $0x1558] sm:$0xff]  ;;  %v3763_v59 = vsub.f32 %v3634_v14, %v3699_v25  ;;  %v4142_v1 = vand.u32 2147483647, %v4078_v17  ;;  %v3587_v25 = vadd.f32 %v3586_v24, %v3523_v13  ;;  %v3890_v13 = vadd.f32 %v3889_v11, %v3826_v49 }
 0x245   :  { %v7136_v46 = vld [vmem:[#allocation2 + $0x1550] sm:$0xff]  ;;  %v7146_v38 = vld [vmem:[#allocation5 + $0x1540] sm:$0xff]  ;;  %v7148_v62 = vld [vmem:[#allocation5 + $0x1548] sm:$0xff]  ;;  %v3524_v14 = vand.u32 2147483647, %v3460_v41  ;;  %v7187_v24 = vadd.f32 %v2972_v42, %v7100_v58  ;;  %v3282_v52 = vadd.f32 %v3281_v4, %v7040_v56 }
 0x246   :  { %v3950_v60 = vld [vmem:[#allocation2 + $0x1810] sm:$0xff]  ;;  %v3635_v18 = vld [vmem:[#allocation2 + $0x1658] sm:$0xff]  ;;  %v7160_v50 = vld [vmem:[#allocation2 + $0x1560] sm:$0xff]  ;;  %v3827_v41 = vand.u32 2147483647, %v3763_v59  ;;  %v4206_v42 = vadd.f32 %v4142_v1, %v4141_v32 }
 0x247   :  { %v4015_v3 = vld [vmem:[#allocation5 + $0x1810] sm:$0xff]  ;;  %v3700_v27 = vld [vmem:[#allocation5 + $0x1658] sm:$0xff]  ;;  %8585 = vst [vmem:[#allocation26_spill] sm:$0xff] %v7160_v50  ;;  %v7162_v10 = vld [vmem:[#allocation2 + $0x1568] sm:$0xff]  ;;  %v3525_v53 = vand.u32 2147483647, %v3461_v7  ;;  %v8603_v7 = vsub.f32 %v7102_v28, %v7120_v8 }
 0x248   :  { %v7154_v15 = vld [vmem:[#allocation5 + $0x1550] sm:$0xff]  ;;  %8586 = vst [vmem:[#allocation44_spill] sm:$0xff] %v7162_v10  ;;  %v7164_v54 = vld [vmem:[#allocation5 + $0x1558] sm:$0xff]  ;;  %v4079_v40 = vsub.f32 %v3950_v60, %v4015_v3  ;;  %v7172_v39 = vld [vmem:[#allocation2 + $0x1660] sm:$0xff]  ;;  %v3764_v3 = vsub.f32 %v3635_v18, %v3700_v27  ;;  %v7200_v59 = vand.u32 2147483647, %v3462_v61  ;;  %v3588_v27 = vadd.f32 %v3587_v25, %v3524_v14 }
 0x249   :  { %v7174_v9 = vld [vmem:[#allocation2 + $0x1668] sm:$0xff]  ;;  %v3951_v21 = vld [vmem:[#allocation2 + $0x1818] sm:$0xff]  ;;  %v7176_v16 = vld [vmem:[#allocation2 + $0x1570] sm:$0xff]  ;;  %8590 = vst [vmem:[#allocation17_spill] sm:$0xff] %v7187_v24  ;;  %v7210_v18 = vand.u32 2147483647, %v3463_v35  ;;  %v3891_v25 = vadd.f32 %v3890_v13, %v3827_v41  ;;  %v8606_v13 = vsub.f32 %v7106_v29, %v7128_v43 }
 0x24a   :  { %v4016_v30 = vld [vmem:[#allocation5 + $0x1818] sm:$0xff]  ;;  %8587 = vst [vmem:[#allocation59_spill] sm:$0xff] %v7176_v16  ;;  %v7178_v12 = vld [vmem:[#allocation5 + $0x1560] sm:$0xff]  ;;  %v7180_v55 = vld [vmem:[#allocation5 + $0x1568] sm:$0xff]  ;;  %v4143_v11 = vand.u32 2147483647, %v4079_v40 }
 0x24b   :  { %8588 = vst [vmem:[#allocation27_spill] sm:$0xff] %v7178_v12  ;;  %v7184_v60 = vld [vmem:[#allocation2 + $0x1670] sm:$0xff]  ;;  %v7192_v57 = vld [vmem:[#allocation2 + $0x1678] sm:$0xff]  ;;  %v3701_v51 = vld [vmem:[#allocation5 + $0x1660] sm:$0xff]  ;;  %v4080_v63 = vsub.f32 %v3951_v21, %v4016_v30  ;;  %v3828_v14 = vand.u32 2147483647, %v3764_v3 }
 0x24c   :  { %8589 = vst [vmem:[#allocation13_spill] sm:$0xff] %v7180_v55  ;;  %v7194_v33 = vld [vmem:[#allocation5 + $0x1668] sm:$0xff]  ;;  %v7196_v17 = vld [vmem:[#allocation2 + $0x1578] sm:$0xff]  ;;  %v7198_v23 = vld [vmem:[#allocation5 + $0x1570] sm:$0xff]  ;;  %v3765_v35 = vsub.f32 %v7172_v39, %v3701_v51  ;;  %v8597_v55 = vsub.f32 %v7092_v26, %v7112_v45  ;;  %v4207_v41 = vadd.f32 %v4206_v42, %v4143_v11 }
 0x24d   :  { %8591 = vst [vmem:[#allocation28_spill] sm:$0xff] %v7198_v23  ;;  %v7202_v49 = vld [vmem:[#allocation2 + $0x1680] sm:$0xff]  ;;  %v7204_v58 = vld [vmem:[#allocation5 + $0x1670] sm:$0xff]  ;;  %v7212_v6 = vld [vmem:[#allocation2 + $0x1688] sm:$0xff]  ;;  %v3766_v1 = vsub.f32 %v7174_v9, %v7194_v33  ;;  %v4144_v3 = vand.u32 2147483647, %v4080_v63  ;;  %v3589_v23 = vadd.f32 %v3588_v27, %v3525_v53  ;;  %v3892_v42 = vadd.f32 %v3891_v25, %v3828_v14 }
 0x24e   :  { %8592 = vst [vmem:[#allocation11_spill] sm:$0xff] %v7202_v49  ;;  %v7214_v61 = vld [vmem:[#allocation2 + $0x1690] sm:$0xff]  ;;  %v7216_v24 = vld [vmem:[#allocation5 + $0x1678] sm:$0xff]  ;;  %v3952_v19 = vld [vmem:[#allocation2 + $0x1820] sm:$0xff]  ;;  %v7235_v10 = vand.u32 2147483647, %v8597_v55 }
 0x24f   :  { %8593 = vst [vmem:[#allocation34_spill] sm:$0xff] %v7212_v6  ;;  %v4017_v34 = vld [vmem:[#allocation5 + $0x1820] sm:$0xff]  ;;  %v7220_v21 = vld [vmem:[#allocation5 + $0x1578] sm:$0xff]  ;;  %v7239_v12 = vld [vmem:[#allocation5 + $0x1688] sm:$0xff]  ;;  %v7262_v33 = vand.u32 2147483647, %v8603_v7  ;;  %v3283_v7 = vadd.f32 %v3282_v52, %v7042_v5  ;;  %v4208_v53 = vadd.f32 %v4207_v41, %v4144_v3 }
 0x250   :  { %8594 = vst [vmem:[#allocation29_spill] sm:$0xff] %v7214_v61  ;;  %v7218_v30 = vld [vmem:[#allocation2 + $0x1580] sm:$0xff]  ;;  %v7222_v40 = vld [vmem:[#allocation2 + $0x1698] sm:$0xff]  ;;  %v7241_v51 = vld [vmem:[#allocation5 + $0x1690] sm:$0xff]  ;;  %v4081_v55 = vsub.f32 %v3952_v19, %v4017_v34  ;;  %v3829_v8 = vand.u32 2147483647, %v3765_v35 }
 0x251   :  { %8595 = vst [vmem:[#allocation63_spill] sm:$0xff] %v7222_v40  ;;  %v7224_v32 = vld [vmem:[#allocation5 + $0x1680] sm:$0xff]  ;;  %v7245_v9 = vld [vmem:[#allocation2 + $0x1588] sm:$0xff]  ;;  %v7251_v4 = vld [vmem:[#allocation2 + $0x16b0] sm:$0xff]  ;;  %v3284_v40 = vadd.f32 %v3283_v7, %v7055_v44 }
 0x252   :  { %8596 = vst [vmem:[#allocation39_spill] sm:$0xff] %v7224_v32  ;;  %v7237_v36 = vld [vmem:[#allocation2 + $0x16a0] sm:$0xff]  ;;  %v7249_v39 = vld [vmem:[#allocation2 + $0x16a8] sm:$0xff]  ;;  %v7253_v26 = vld [vmem:[#allocation5 + $0x1698] sm:$0xff]  ;;  %v7288_v32 = vand.u32 2147483647, %v8606_v13 }
 0x253   :  { %8598 = vst [vmem:[#allocation30_spill] sm:$0xff] %v7235_v10  ;;  %v7247_v56 = vld [vmem:[#allocation5 + $0x1580] sm:$0xff]  ;;  %v7264_v16 = vld [vmem:[#allocation2 + $0x16b8] sm:$0xff]  ;;  %v3953_v45 = vld [vmem:[#allocation2 + $0x1828] sm:$0xff]  ;;  %v4145_v13 = vand.u32 2147483647, %v4081_v55  ;;  %v8613_v55 = vsub.f32 %v7108_v20, %v7130_v2  ;;  %v8615_v20 = vsub.f32 %v7118_v48, %v7138_v47 }
 0x254   :  { %8599 = vst [vmem:[#allocation49_spill] sm:$0xff] %v7239_v12  ;;  %v7266_v50 = vld [vmem:[#allocation5 + $0x16a0] sm:$0xff]  ;;  %v4018_v34 = vld [vmem:[#allocation5 + $0x1828] sm:$0xff]  ;;  %v7274_v11 = vld [vmem:[#allocation5 + $0x16b0] sm:$0xff] }
 0x255   :  { %8600 = vst [vmem:[#allocation18_spill] sm:$0xff] %v7241_v51  ;;  %v7270_v19 = vld [vmem:[#allocation5 + $0x1588] sm:$0xff]  ;;  %v7281_v27 = vld [vmem:[#allocation2 + $0x1590] sm:$0xff]  ;;  %v7290_v49 = vld [vmem:[#allocation2 + $0x16c0] sm:$0xff]  ;;  %v4082_v43 = vsub.f32 %v3953_v45, %v4018_v34  ;;  %v7324_v3 = vand.u32 2147483647, %v8613_v55  ;;  %v3893_v34 = vadd.f32 %v3892_v42, %v3829_v8  ;;  %v4209_v48 = vadd.f32 %v4208_v53, %v4145_v13 }
 0x256   :  { %8601 = vst [vmem:[#allocation35_spill] sm:$0xff] %v7251_v4  ;;  %v7272_v63 = vld [vmem:[#allocation5 + $0x16a8] sm:$0xff]  ;;  %v7294_v12 = vld [vmem:[#allocation5 + $0x16b8] sm:$0xff]  ;;  %v7300_v52 = vld [vmem:[#allocation2 + $0x16d0] sm:$0xff]  ;;  %v7340_v2 = vand.u32 2147483647, %v8615_v20  ;;  %v8616_v55 = vsub.f32 %v7124_v37, %v7146_v38  ;;  %v8617_v37 = vsub.f32 %v7126_v31, %v7148_v62  ;;  %v3285_v13 = vadd.f32 %v3284_v40, %v7058_v22 }
 0x257   :  { %8602 = vst [vmem:[#allocation19_spill] sm:$0xff] %v7253_v26  ;;  %v7292_v28 = vld [vmem:[#allocation2 + $0x16c8] sm:$0xff]  ;;  %v7298_v5 = vld [vmem:[#allocation2 + $0x1598] sm:$0xff]  ;;  %v7302_v14 = vld [vmem:[#allocation5 + $0x16c0] sm:$0xff]  ;;  %v3590_v26 = vadd.f32 %v3589_v23, %v7200_v59  ;;  %v3830_v59 = vand.u32 2147483647, %v3766_v1 }
 0x258   :  { %8604 = vst [vmem:[#allocation40_spill] sm:$0xff] %v7264_v16  ;;  %v7304_v25 = vld [vmem:[#allocation5 + $0x16c8] sm:$0xff]  ;;  %v7308_v10 = vld [vmem:[#allocation2 + $0x15a0] sm:$0xff]  ;;  %v7310_v51 = vld [vmem:[#allocation5 + $0x1590] sm:$0xff]  ;;  %v4146_v16 = vand.u32 2147483647, %v4082_v43 }
 0x259   :  { %8605 = vst [vmem:[#allocation70_spill] sm:$0xff] %v7274_v11  ;;  %v3954_v6 = vld [vmem:[#allocation2 + $0x1830] sm:$0xff]  ;;  %v7319_v45 = vld [vmem:[#allocation5 + $0x1598] sm:$0xff]  ;;  %v7331_v35 = vld [vmem:[#allocation2 + $0x15a8] sm:$0xff]  ;;  %v7357_v1 = vand.u32 2147483647, %v8616_v55  ;;  %v3894_v43 = vadd.f32 %v3893_v34, %v3830_v59 }
 0x25a   :  { %8607 = vst [vmem:[#allocation53_spill] sm:$0xff] %v7290_v49  ;;  %v4019_v29 = vld [vmem:[#allocation5 + $0x1830] sm:$0xff]  ;;  %v7333_v61 = vld [vmem:[#allocation5 + $0x15a0] sm:$0xff]  ;;  %v7335_v11 = vld [vmem:[#allocation5 + $0x15a8] sm:$0xff]  ;;  %v7371_v38 = vand.u32 2147483647, %v8617_v37  ;;  %v4210_v4 = vadd.f32 %v4209_v48, %v4146_v16 }
 0x25b   :  { %8608 = vst [vmem:[#allocation31_spill] sm:$0xff] %v7292_v28  ;;  %v7326_v41 = vld [vmem:[#allocation5 + $0x16d0] sm:$0xff]  ;;  %v7348_v44 = vld [vmem:[#allocation2 + $0x15b8] sm:$0xff]  ;;  %v4272_v47 = vld [vmem:[#allocation2 + $0x1a00] sm:$0xff]  ;;  %v8619_v28 = vsub.f32 %v7136_v46, %v7154_v15  ;;  %v8621_v46 = vsub.f32 %v7144_v0, %v7164_v54 }
 0x25c   :  { %8609 = vst [vmem:[#allocation45_spill] sm:$0xff] %v7294_v12  ;;  %v7346_v8 = vld [vmem:[#allocation2 + $0x15b0] sm:$0xff]  ;;  %v3955_v7 = vld [vmem:[#allocation2 + $0x1838] sm:$0xff]  ;;  %v4083_v12 = vsub.f32 %v3954_v6, %v4019_v29  ;;  %v4273_v42 = vld [vmem:[#allocation2 + $0x1a08] sm:$0xff] }
 0x25d   :  { %8610 = vst [vmem:[#allocation12_spill] sm:$0xff] %v7300_v52  ;;  %v4020_v23 = vld [vmem:[#allocation5 + $0x1838] sm:$0xff]  ;;  %v4338_v49 = vld [vmem:[#allocation5 + $0x1a08] sm:$0xff]  ;;  %v7362_v6 = vld [vmem:[#allocation5 + $0x15b0] sm:$0xff]  ;;  %v7382_v20 = vand.u32 2147483647, %v8619_v28 }
 0x25e   :  { %8611 = vst [vmem:[#allocation41_spill] sm:$0xff] %v7302_v14  ;;  %v4337_v14 = vld [vmem:[#allocation5 + $0x1a00] sm:$0xff]  ;;  %v7364_v53 = vld [vmem:[#allocation5 + $0x15b8] sm:$0xff]  ;;  %v4084_v29 = vsub.f32 %v3955_v7, %v4020_v23  ;;  %v4339_v31 = vld [vmem:[#allocation5 + $0x1a10] sm:$0xff]  ;;  %v4147_v52 = vand.u32 2147483647, %v4083_v12 }
 0x25f   :  { %8612 = vst [vmem:[#allocation42_spill] sm:$0xff] %v7304_v25  ;;  %v3591_v25 = vadd.f32 %v3590_v26, %v7210_v18  ;;  %v8618_v18 = vsub.f32 %v7184_v60, %v7204_v58  ;;  %v3956_v62 = vld [vmem:[#allocation2 + $0x1840] sm:$0xff]  ;;  %v4401_v60 = vsub.f32 %v4272_v47, %v4337_v14  ;;  %v4402_v58 = vsub.f32 %v4273_v42, %v4338_v49  ;;  %v4275_v59 = vld [vmem:[#allocation2 + $0x1a18] sm:$0xff]  ;;  %v8625_v12 = vld [vmem:[#allocation27_spill] sm:$0xff] }
 0x260   :  { %8614 = vst [vmem:[#allocation46_spill] sm:$0xff] %v7326_v41  ;;  %v4274_v41 = vld [vmem:[#allocation2 + $0x1a10] sm:$0xff]  ;;  %v4021_v37 = vld [vmem:[#allocation5 + $0x1840] sm:$0xff]  ;;  %v7391_v15 = vand.u32 2147483647, %v8621_v46  ;;  %v4340_v34 = vld [vmem:[#allocation5 + $0x1a18] sm:$0xff]  ;;  %v8628_v49 = vsub.f32 %v7192_v57, %v7216_v24 }
 0x261   :  { %v3831_v26 = vand.u32 2147483647, %v8618_v18  ;;  %8620 = vst [vmem:[#allocation56_spill] sm:$0xff] %v7382_v20  ;;  %v8623_v28 = vld [vmem:[#allocation30_spill] sm:$0xff]  ;;  %v4403_v47 = vsub.f32 %v4274_v41, %v4339_v31  ;;  %v8629_v18 = vld [vmem:[#allocation15_spill] sm:$0xff]  ;;  %v8630_v0 = vld [vmem:[#allocation44_spill] sm:$0xff] }
 0x262   :  { %8622 = vst [vmem:[#allocation61_spill] sm:$0xff] %v7391_v15  ;;  %v3592_v23 = vadd.f32 %v3591_v25, %v8623_v28  ;;  %v8624_v7 = vld [vmem:[#allocation26_spill] sm:$0xff]  ;;  %v3832_v42 = vand.u32 2147483647, %v8628_v49  ;;  %v3286_v40 = vadd.f32 %v3285_v13, %v8629_v18  ;;  %v8631_v54 = vld [vmem:[#allocation13_spill] sm:$0xff]  ;;  %v4085_v25 = vsub.f32 %v3956_v62, %v4021_v37  ;;  %v8633_v24 = vld [vmem:[#allocation59_spill] sm:$0xff] }
 0x263   :  { %v8626_v16 = vsub.f32 %v8624_v7, %v8625_v12  ;;  %v3895_v48 = vadd.f32 %v3894_v43, %v3831_v26  ;;  %v8632_v46 = vsub.f32 %v8630_v0, %v8631_v54  ;;  %v4148_v28 = vand.u32 2147483647, %v4084_v29  ;;  %v4276_v55 = vld [vmem:[#allocation2 + $0x1a20] sm:$0xff]  ;;  %v3957_v7 = vld [vmem:[#allocation2 + $0x1848] sm:$0xff]  ;;  %v8634_v26 = vld [vmem:[#allocation28_spill] sm:$0xff] }
 0x264   :  { %v4341_v15 = vld [vmem:[#allocation5 + $0x1a20] sm:$0xff]  ;;  %v4022_v12 = vld [vmem:[#allocation5 + $0x1848] sm:$0xff]  ;;  %v4465_v20 = vand.u32 2147483647, %v4401_v60  ;;  %v4466_v57 = vand.u32 2147483647, %v4402_v58  ;;  %v8635_v41 = vsub.f32 %v8633_v24, %v8634_v26  ;;  %v8636_v13 = vsub.f32 %v7196_v17, %v7220_v21 }
 0x265   :  { %v7397_v14 = vand.u32 2147483647, %v8626_v16  ;;  %v7406_v22 = vand.u32 2147483647, %v8632_v46  ;;  %v4211_v16 = vadd.f32 %v4210_v4, %v4147_v52  ;;  %v8637_v29 = vsub.f32 %v7218_v30, %v7247_v56  ;;  %v3356_v52 = vld [vmem:[#allocation2 + $0x15c0] sm:$0xff]  ;;  %v8639_v60 = vld [vmem:[#allocation11_spill] sm:$0xff] }
 0x266   :  { %v7411_v43 = vand.u32 2147483647, %v8635_v41  ;;  %v7416_v31 = vand.u32 2147483647, %v8636_v13  ;;  %v3593_v4 = vadd.f32 %v3592_v23, %v7262_v33  ;;  %v3421_v37 = vld [vmem:[#allocation5 + $0x15c0] sm:$0xff]  ;;  %v8640_v58 = vld [vmem:[#allocation39_spill] sm:$0xff]  ;;  %v3896_v49 = vadd.f32 %v3895_v48, %v3832_v42 }
 0x267   :  { %8627 = vst [vmem:[#allocation20_spill] sm:$0xff] %v7397_v14  ;;  %v4404_v14 = vsub.f32 %v4275_v59, %v4340_v34  ;;  %v7421_v62 = vand.u32 2147483647, %v8637_v29  ;;  %v8641_v59 = vsub.f32 %v8639_v60, %v8640_v58  ;;  %v4405_v18 = vsub.f32 %v4276_v55, %v4341_v15  ;;  %v8642_v54 = vld [vmem:[#allocation33_spill] sm:$0xff]  ;;  %v4277_v23 = vld [vmem:[#allocation2 + $0x1a28] sm:$0xff]  ;;  %v4023_v29 = vld [vmem:[#allocation5 + $0x1850] sm:$0xff] }
 0x268   :  { %v4467_v0 = vand.u32 2147483647, %v4403_v47  ;;  %v3287_v17 = vadd.f32 %v3286_v40, %v8642_v54  ;;  %v8643_v21 = vsub.f32 %v7245_v9, %v7270_v19  ;;  %v8645_v30 = vsub.f32 %v7281_v27, %v7310_v51  ;;  %v4342_v24 = vld [vmem:[#allocation5 + $0x1a28] sm:$0xff]  ;;  %v8649_v51 = vld [vmem:[#allocation34_spill] sm:$0xff]  ;;  %v8650_v27 = vld [vmem:[#allocation49_spill] sm:$0xff] }
 0x269   :  { %8638 = vst [vmem:[#allocation50_spill] sm:$0xff] %v7421_v62  ;;  %v3833_v34 = vand.u32 2147483647, %v8641_v59  ;;  %v4086_v56 = vsub.f32 %v3957_v7, %v4022_v12  ;;  %v3357_v26 = vld [vmem:[#allocation2 + $0x15c8] sm:$0xff]  ;;  %v4149_v42 = vand.u32 2147483647, %v4085_v25  ;;  %v4212_v55 = vadd.f32 %v4211_v16, %v4148_v28 }
 0x26a   :  { %v7431_v46 = vand.u32 2147483647, %v8643_v21  ;;  %v7436_v33 = vand.u32 2147483647, %v8645_v30  ;;  %v3422_v41 = vld [vmem:[#allocation5 + $0x15c8] sm:$0xff]  ;;  %v4530_v48 = vadd.f32 %v4466_v57, %v4465_v20  ;;  %v3485_v40 = vsub.f32 %v3356_v52, %v3421_v37  ;;  %v3958_v12 = vld [vmem:[#allocation2 + $0x1850] sm:$0xff] }
 0x26b   :  { %v4468_v15 = vand.u32 2147483647, %v4404_v14  ;;  %v8647_v9 = vsub.f32 %v7298_v5, %v7319_v45  ;;  %v3594_v47 = vadd.f32 %v3593_v4, %v7288_v32  ;;  %v8651_v13 = vsub.f32 %v8649_v51, %v8650_v27  ;;  %v3358_v60 = vld [vmem:[#allocation2 + $0x15d0] sm:$0xff]  ;;  %v3359_v58 = vld [vmem:[#allocation2 + $0x15d8] sm:$0xff]  ;;  %v8652_v57 = vld [vmem:[#allocation23_spill] sm:$0xff] }
 0x26c   :  { %8644 = vst [vmem:[#allocation36_spill] sm:$0xff] %v7431_v46  ;;  %v3423_v25 = vld [vmem:[#allocation5 + $0x15d0] sm:$0xff]  ;;  %v3897_v28 = vadd.f32 %v3896_v49, %v3833_v34  ;;  %v4406_v14 = vsub.f32 %v4277_v23, %v4342_v24  ;;  %v4469_v20 = vand.u32 2147483647, %v4405_v18  ;;  %v4531_v16 = vadd.f32 %v4530_v48, %v4467_v0  ;;  %v3360_v21 = vld [vmem:[#allocation2 + $0x15e0] sm:$0xff]  ;;  %v7458_v34 = vld [vmem:[#allocation2 + $0x15e8] sm:$0xff] }
 0x26d   :  { %8646 = vst [vmem:[#allocation32_spill] sm:$0xff] %v7436_v33  ;;  %v7441_v19 = vand.u32 2147483647, %v8647_v9  ;;  %v3834_v7 = vand.u32 2147483647, %v8651_v13  ;;  %v3288_v52 = vadd.f32 %v3287_v17, %v8652_v57  ;;  %v3486_v5 = vsub.f32 %v3357_v26, %v3422_v41  ;;  %v4278_v59 = vld [vmem:[#allocation2 + $0x1a30] sm:$0xff] }
 0x26e   :  { %v8653_v45 = vsub.f32 %v7308_v10, %v7333_v61  ;;  %v8655_v4 = vsub.f32 %v7331_v35, %v7335_v11  ;;  %v4343_v54 = vld [vmem:[#allocation5 + $0x1a30] sm:$0xff]  ;;  %v3424_v49 = vld [vmem:[#allocation5 + $0x15d8] sm:$0xff]  ;;  %v4087_v18 = vsub.f32 %v3958_v12, %v4023_v29  ;;  %v4150_v0 = vand.u32 2147483647, %v4086_v56  ;;  %v8660_v24 = vld [vmem:[#allocation18_spill] sm:$0xff] }
 0x26f   :  { %8648 = vst [vmem:[#allocation43_spill] sm:$0xff] %v7441_v19  ;;  %v4213_v17 = vadd.f32 %v4212_v55, %v4149_v42  ;;  %v4532_v30 = vadd.f32 %v4531_v16, %v4468_v15  ;;  %v3487_v23 = vsub.f32 %v3358_v60, %v3423_v25  ;;  %v8657_v10 = vsub.f32 %v7346_v8, %v7362_v6  ;;  %v8659_v35 = vld [vmem:[#allocation29_spill] sm:$0xff]  ;;  %v3362_v51 = vld [vmem:[#allocation2 + $0x15f0] sm:$0xff]  ;;  %v3425_v27 = vld [vmem:[#allocation5 + $0x15e0] sm:$0xff] }
 0x270   :  { %v7451_v32 = vand.u32 2147483647, %v8653_v45  ;;  %v7456_v37 = vand.u32 2147483647, %v8655_v4  ;;  %v3595_v11 = vadd.f32 %v3594_v47, %v7324_v3  ;;  %v8661_v26 = vsub.f32 %v8659_v35, %v8660_v24  ;;  %v3959_v48 = vld [vmem:[#allocation2 + $0x1858] sm:$0xff]  ;;  %v3426_v13 = vld [vmem:[#allocation5 + $0x15e8] sm:$0xff] }
 0x271   :  { %v7463_v61 = vand.u32 2147483647, %v8657_v10  ;;  %v4024_v9 = vld [vmem:[#allocation5 + $0x1858] sm:$0xff]  ;;  %v3898_v56 = vadd.f32 %v3897_v28, %v3834_v7  ;;  %v4407_v42 = vsub.f32 %v4278_v59, %v4343_v54  ;;  %v4470_v55 = vand.u32 2147483647, %v4406_v14  ;;  %v8662_v12 = vld [vmem:[#allocation67_spill] sm:$0xff] }
 0x272   :  { %8654 = vst [vmem:[#allocation51_spill] sm:$0xff] %v7451_v32  ;;  %v3835_v41 = vand.u32 2147483647, %v8661_v26  ;;  %v4533_v15 = vadd.f32 %v4532_v30, %v4469_v20  ;;  %v3289_v29 = vadd.f32 %v3288_v52, %v8662_v12  ;;  %v3488_v8 = vsub.f32 %v3359_v58, %v3424_v49  ;;  %v4279_v60 = vld [vmem:[#allocation2 + $0x1a38] sm:$0xff]  ;;  %v3427_v16 = vld [vmem:[#allocation5 + $0x15f0] sm:$0xff]  ;;  %v3960_v45 = vld [vmem:[#allocation2 + $0x1860] sm:$0xff] }
 0x273   :  { %8656 = vst [vmem:[#allocation57_spill] sm:$0xff] %v7456_v37  ;;  %v8663_v6 = vsub.f32 %v7348_v44, %v7364_v53  ;;  %v7475_v47 = vand.u32 2147483647, %v3485_v40  ;;  %v4344_v25 = vld [vmem:[#allocation5 + $0x1a38] sm:$0xff]  ;;  %v7477_v57 = vand.u32 2147483647, %v3486_v5  ;;  %v4088_v7 = vsub.f32 %v3959_v48, %v4024_v9 }
 0x274   :  { %8658 = vst [vmem:[#allocation52_spill] sm:$0xff] %v7463_v61  ;;  %v4151_v28 = vand.u32 2147483647, %v4087_v18  ;;  %v4214_v14 = vadd.f32 %v4213_v17, %v4150_v0  ;;  %v3489_v20 = vsub.f32 %v3360_v21, %v3425_v27  ;;  %v3490_v52 = vsub.f32 %v7458_v34, %v3426_v13  ;;  %v8667_v4 = vld [vmem:[#allocation63_spill] sm:$0xff]  ;;  %v4025_v40 = vld [vmem:[#allocation5 + $0x1860] sm:$0xff]  ;;  %v3363_v30 = vld [vmem:[#allocation2 + $0x15f8] sm:$0xff] }
 0x275   :  { %v7473_v3 = vand.u32 2147483647, %v8663_v6  ;;  %8665 = vst [vmem:[#allocation54_spill] sm:$0xff] %v7475_v47  ;;  %v3596_v58 = vadd.f32 %v3595_v11, %v7340_v2  ;;  %v8668_v44 = vld [vmem:[#allocation19_spill] sm:$0xff]  ;;  %v4280_v54 = vld [vmem:[#allocation2 + $0x1a40] sm:$0xff]  ;;  %v3428_v10 = vld [vmem:[#allocation5 + $0x15f8] sm:$0xff]  ;;  %v3899_v5 = vadd.f32 %v3898_v56, %v3835_v41  ;;  %v4408_v35 = vsub.f32 %v4279_v60, %v4344_v25 }
 0x276   :  { %8666 = vst [vmem:[#allocation58_spill] sm:$0xff] %v7477_v57  ;;  %v8669_v53 = vsub.f32 %v8667_v4, %v8668_v44  ;;  %v4345_v49 = vld [vmem:[#allocation5 + $0x1a40] sm:$0xff]  ;;  %v4471_v24 = vand.u32 2147483647, %v4407_v42  ;;  %v4534_v26 = vadd.f32 %v4533_v15, %v4470_v55  ;;  %v8670_v18 = vld [vmem:[#allocation16_spill] sm:$0xff]  ;;  %v3491_v21 = vsub.f32 %v3362_v51, %v3427_v16  ;;  %v4281_v2 = vld [vmem:[#allocation2 + $0x1a48] sm:$0xff] }
 0x277   :  { %8664 = vst [vmem:[#allocation55_spill] sm:$0xff] %v7473_v3  ;;  %v3290_v0 = vadd.f32 %v3289_v29, %v8670_v18  ;;  %v7485_v17 = vand.u32 2147483647, %v3487_v23  ;;  %v7487_v34 = vand.u32 2147483647, %v3488_v8  ;;  %v4346_v11 = vld [vmem:[#allocation5 + $0x1a48] sm:$0xff]  ;;  %v4089_v13 = vsub.f32 %v3960_v45, %v4025_v40 }
 0x278   :  { %v3836_v59 = vand.u32 2147483647, %v8669_v53  ;;  %v7489_v48 = vld [vmem:[#allocation2 + $0x16d8] sm:$0xff]  ;;  %v3961_v9 = vld [vmem:[#allocation2 + $0x1868] sm:$0xff]  ;;  %v4152_v12 = vand.u32 2147483647, %v4088_v7  ;;  %v4215_v6 = vadd.f32 %v4214_v14, %v4151_v28  ;;  %v4409_v41 = vsub.f32 %v4280_v54, %v4345_v49 }
 0x279   :  { %8671 = vst [vmem:[#allocation60_spill] sm:$0xff] %v7485_v17  ;;  %v4026_v27 = vld [vmem:[#allocation5 + $0x1868] sm:$0xff]  ;;  %v3492_v56 = vsub.f32 %v3363_v30, %v3428_v10  ;;  %v7491_v42 = vand.u32 2147483647, %v3489_v20  ;;  %v3597_v55 = vadd.f32 %v3596_v58, %v7357_v1  ;;  %v8674_v23 = vsub.f32 %v7237_v36, %v7266_v50  ;;  %v4282_v15 = vld [vmem:[#allocation2 + $0x1a50] sm:$0xff]  ;;  %v7497_v8 = vld [vmem:[#allocation2 + $0x16e0] sm:$0xff] }
 0x27a   :  { %8672 = vst [vmem:[#allocation62_spill] sm:$0xff] %v7487_v34  ;;  %v4347_v29 = vld [vmem:[#allocation5 + $0x1a50] sm:$0xff]  ;;  %v7499_v60 = vld [vmem:[#allocation5 + $0x16d8] sm:$0xff]  ;;  %v7501_v25 = vld [vmem:[#allocation5 + $0x16e0] sm:$0xff]  ;;  %v3900_v16 = vadd.f32 %v3899_v5, %v3836_v59  ;;  %v4410_v45 = vsub.f32 %v4281_v2, %v4346_v11  ;;  %v4472_v7 = vand.u32 2147483647, %v4408_v35  ;;  %v4535_v28 = vadd.f32 %v4534_v26, %v4471_v24 }
 0x27b   :  { %8673 = vst [vmem:[#allocation22_spill] sm:$0xff] %v7491_v42  ;;  %v3837_v51 = vand.u32 2147483647, %v8674_v23  ;;  %v8675_v14 = vld [vmem:[#allocation24_spill] sm:$0xff]  ;;  %v7504_v4 = vand.u32 2147483647, %v3490_v52  ;;  %v4090_v36 = vsub.f32 %v3961_v9, %v4026_v27  ;;  %v4216_v59 = vadd.f32 %v4215_v6, %v4152_v12 }
 0x27c   :  { %v3291_v20 = vadd.f32 %v3290_v0, %v8675_v14  ;;  %v7506_v1 = vand.u32 2147483647, %v3491_v21  ;;  %v4283_v50 = vld [vmem:[#allocation2 + $0x1a58] sm:$0xff]  ;;  %v7508_v44 = vld [vmem:[#allocation2 + $0x16e8] sm:$0xff]  ;;  %v7510_v53 = vld [vmem:[#allocation2 + $0x16f0] sm:$0xff]  ;;  %v4411_v30 = vsub.f32 %v4282_v15, %v4347_v29  ;;  %v3598_v52 = vadd.f32 %v3597_v55, %v7371_v38 }
 0x27d   :  { %8676 = vst [vmem:[#allocation65_spill] sm:$0xff] %v7504_v4  ;;  %v4348_v58 = vld [vmem:[#allocation5 + $0x1a58] sm:$0xff]  ;;  %v3962_v40 = vld [vmem:[#allocation2 + $0x1870] sm:$0xff]  ;;  %v4153_v49 = vand.u32 2147483647, %v4089_v13  ;;  %v8679_v24 = vsub.f32 %v7249_v39, %v7272_v63  ;;  %v4284_v18 = vld [vmem:[#allocation2 + $0x1a60] sm:$0xff]  ;;  %v3901_v27 = vadd.f32 %v3900_v16, %v3837_v51  ;;  %v4536_v12 = vadd.f32 %v4535_v28, %v4472_v7 }
 0x27e   :  { %8677 = vst [vmem:[#allocation66_spill] sm:$0xff] %v7506_v1  ;;  %v4027_v54 = vld [vmem:[#allocation5 + $0x1870] sm:$0xff]  ;;  %v4473_v10 = vand.u32 2147483647, %v4409_v41  ;;  %v7512_v5 = vand.u32 2147483647, %v3492_v56  ;;  %v4412_v13 = vsub.f32 %v4283_v50, %v4348_v58 }
 0x27f   :  { %v3838_v26 = vand.u32 2147483647, %v8679_v24  ;;  %v4349_v0 = vld [vmem:[#allocation5 + $0x1a60] sm:$0xff]  ;;  %v7520_v21 = vld [vmem:[#allocation2 + $0x16f8] sm:$0xff]  ;;  %v7524_v11 = vld [vmem:[#allocation5 + $0x16e8] sm:$0xff]  ;;  %v4091_v63 = vsub.f32 %v3962_v40, %v4027_v54  ;;  %v4217_v35 = vadd.f32 %v4216_v59, %v4153_v49 }
 0x280   :  { %8678 = vst [vmem:[#allocation68_spill] sm:$0xff] %v7512_v5  ;;  %v7522_v2 = vld [vmem:[#allocation2 + $0x1700] sm:$0xff]  ;;  %v7526_v9 = vld [vmem:[#allocation5 + $0x16f0] sm:$0xff]  ;;  %v4474_v38 = vand.u32 2147483647, %v4410_v45  ;;  %v8680_v6 = vld [vmem:[#allocation71_spill] sm:$0xff]  ;;  %v4413_v51 = vsub.f32 %v4284_v18, %v4349_v0  ;;  %v4537_v45 = vadd.f32 %v4536_v12, %v4473_v10 }
 0x281   :  { %v3292_v41 = vadd.f32 %v3291_v20, %v8680_v6  ;;  %v7529_v56 = vld [vmem:[#allocation5 + $0x16f8] sm:$0xff]  ;;  %v4154_v55 = vand.u32 2147483647, %v4090_v36  ;;  %v4285_v23 = vld [vmem:[#allocation2 + $0x1a68] sm:$0xff]  ;;  %v7533_v29 = vld [vmem:[#allocation5 + $0x1700] sm:$0xff] }
 0x282   :  { %v4350_v15 = vld [vmem:[#allocation5 + $0x1a68] sm:$0xff]  ;;  %v3963_v14 = vld [vmem:[#allocation2 + $0x1878] sm:$0xff]  ;;  %v4475_v16 = vand.u32 2147483647, %v4411_v30  ;;  %v8681_v7 = vld [vmem:[#allocation56_spill] sm:$0xff]  ;;  %v4538_v39 = vadd.f32 %v4537_v45, %v4474_v38 }
 0x283   :  { %v4028_v24 = vld [vmem:[#allocation5 + $0x1878] sm:$0xff]  ;;  %v3599_v28 = vadd.f32 %v3598_v52, %v8681_v7  ;;  %v7536_v20 = vld [vmem:[#allocation2 + $0x1708] sm:$0xff]  ;;  %v7538_v50 = vld [vmem:[#allocation2 + $0x1710] sm:$0xff]  ;;  %v3902_v52 = vadd.f32 %v3901_v27, %v3838_v26  ;;  %v4414_v12 = vsub.f32 %v4285_v23, %v4350_v15  ;;  %v4476_v7 = vand.u32 2147483647, %v4412_v13 }
 0x284   :  { %v7540_v58 = vld [vmem:[#allocation5 + $0x1708] sm:$0xff]  ;;  %v8683_v6 = vld [vmem:[#allocation70_spill] sm:$0xff]  ;;  %v7549_v30 = vld [vmem:[#allocation2 + $0x1718] sm:$0xff]  ;;  %v4092_v26 = vsub.f32 %v3963_v14, %v4028_v24  ;;  %v4155_v38 = vand.u32 2147483647, %v4091_v63  ;;  %v4539_v45 = vadd.f32 %v4538_v39, %v4475_v16 }
 0x285   :  { %v8682_v54 = vld [vmem:[#allocation35_spill] sm:$0xff]  ;;  %v7551_v10 = vld [vmem:[#allocation5 + $0x1710] sm:$0xff]  ;;  %v8685_v5 = vld [vmem:[#allocation37_spill] sm:$0xff]  ;;  %v4477_v15 = vand.u32 2147483647, %v4413_v51 }
 0x286   :  { %v8684_v49 = vsub.f32 %v8682_v54, %v8683_v6  ;;  %v4286_v18 = vld [vmem:[#allocation2 + $0x1a70] sm:$0xff]  ;;  %v3293_v1 = vadd.f32 %v3292_v41, %v8685_v5  ;;  %v7554_v36 = vld [vmem:[#allocation2 + $0x1720] sm:$0xff]  ;;  %v7556_v4 = vld [vmem:[#allocation2 + $0x1728] sm:$0xff]  ;;  %v4218_v41 = vadd.f32 %v4217_v35, %v4154_v55  ;;  %v4478_v16 = vand.u32 2147483647, %v4414_v12 }
 0x287   :  { %v4351_v0 = vld [vmem:[#allocation5 + $0x1a70] sm:$0xff]  ;;  %v7558_v40 = vld [vmem:[#allocation5 + $0x1718] sm:$0xff]  ;;  %v7568_v13 = vld [vmem:[#allocation5 + $0x1720] sm:$0xff]  ;;  %v4540_v61 = vadd.f32 %v4539_v45, %v4476_v7 }
 0x288   :  { %v3839_v59 = vand.u32 2147483647, %v8684_v49  ;;  %v7564_v27 = vld [vmem:[#allocation2 + $0x1730] sm:$0xff]  ;;  %v7566_v23 = vld [vmem:[#allocation2 + $0x1738] sm:$0xff]  ;;  %v7570_v5 = vld [vmem:[#allocation5 + $0x1728] sm:$0xff]  ;;  %v4415_v47 = vsub.f32 %v4286_v18, %v4351_v0 }
 0x289   :  { %8686 = vst [vmem:[#allocation21_spill] sm:$0xff] %v7566_v23  ;;  %v7572_v49 = vld [vmem:[#allocation5 + $0x1730] sm:$0xff]  ;;  %v8688_v6 = vld [vmem:[#allocation45_spill] sm:$0xff]  ;;  %v3964_v17 = vld [vmem:[#allocation2 + $0x1880] sm:$0xff]  ;;  %v4541_v12 = vadd.f32 %v4540_v61, %v4477_v15 }
 0x28a   :  { %v8687_v24 = vld [vmem:[#allocation40_spill] sm:$0xff]  ;;  %v4029_v57 = vld [vmem:[#allocation5 + $0x1880] sm:$0xff]  ;;  %v8690_v3 = vld [vmem:[#allocation61_spill] sm:$0xff]  ;;  %v3903_v39 = vadd.f32 %v3902_v52, %v3839_v59  ;;  %v4156_v59 = vand.u32 2147483647, %v4092_v26  ;;  %v4219_v52 = vadd.f32 %v4218_v41, %v4155_v38 }
 0x28b   :  { %v8689_v42 = vsub.f32 %v8687_v24, %v8688_v6  ;;  %v3600_v63 = vadd.f32 %v3599_v28, %v8690_v3  ;;  %v7582_v35 = vld [vmem:[#allocation5 + $0x1738] sm:$0xff]  ;;  %v7591_v0 = vld [vmem:[#allocation2 + $0x1740] sm:$0xff]  ;;  %v4093_v28 = vsub.f32 %v3964_v17, %v4029_v57  ;;  %v7595_v7 = vld [vmem:[#allocation2 + $0x1748] sm:$0xff]  ;;  %v4479_v18 = vand.u32 2147483647, %v4415_v47 }
 0x28c   :  { %8691 = vst [vmem:[#allocation47_spill] sm:$0xff] %v7582_v35  ;;  %v4287_v55 = vld [vmem:[#allocation2 + $0x1a78] sm:$0xff]  ;;  %v7593_v3 = vld [vmem:[#allocation5 + $0x1740] sm:$0xff]  ;;  %v3965_v6 = vld [vmem:[#allocation2 + $0x1888] sm:$0xff]  ;;  %v4542_v19 = vadd.f32 %v4541_v12, %v4478_v16  ;;  %v8706_v12 = vsub.f32 %v7489_v48, %v7499_v60 }
 0x28d   :  { %v3840_v34 = vand.u32 2147483647, %v8689_v42  ;;  %v4352_v51 = vld [vmem:[#allocation5 + $0x1a78] sm:$0xff]  ;;  %8693 = vst [vmem:[#allocation38_spill] sm:$0xff] %v7591_v0  ;;  %v4030_v45 = vld [vmem:[#allocation5 + $0x1888] sm:$0xff]  ;;  %v8695_v42 = vld [vmem:[#allocation20_spill] sm:$0xff] }
 0x28e   :  { %v8692_v54 = vld [vmem:[#allocation25_spill] sm:$0xff]  ;;  %8694 = vst [vmem:[#allocation69_spill] sm:$0xff] %v7593_v3  ;;  %v4416_v24 = vsub.f32 %v4287_v55, %v4352_v51  ;;  %v3601_v14 = vadd.f32 %v3600_v63, %v8695_v42  ;;  %v7602_v32 = vld [vmem:[#allocation2 + $0x1750] sm:$0xff]  ;;  %v4288_v41 = vld [vmem:[#allocation2 + $0x1a80] sm:$0xff]  ;;  %v4157_v47 = vand.u32 2147483647, %v4093_v28  ;;  %v4543_v23 = vadd.f32 %v4542_v19, %v4479_v18 }
 0x28f   :  { %v3294_v37 = vadd.f32 %v3293_v1, %v8692_v54  ;;  %v8696_v57 = vld [vmem:[#allocation53_spill] sm:$0xff]  ;;  %v3904_v38 = vadd.f32 %v3903_v39, %v3840_v34  ;;  %v4353_v15 = vld [vmem:[#allocation5 + $0x1a80] sm:$0xff]  ;;  %v7610_v54 = vld [vmem:[#allocation5 + $0x1748] sm:$0xff]  ;;  %v8708_v28 = vsub.f32 %v7508_v44, %v7524_v11  ;;  %v8711_v11 = vsub.f32 %v7510_v53, %v7526_v9 }
 0x290   :  { %v8697_v17 = vld [vmem:[#allocation41_spill] sm:$0xff]  ;;  %v8699_v1 = vld [vmem:[#allocation14_spill] sm:$0xff]  ;;  %v8700_v63 = vld [vmem:[#allocation31_spill] sm:$0xff]  ;;  %v4417_v3 = vsub.f32 %v4288_v41, %v4353_v15  ;;  %v4480_v0 = vand.u32 2147483647, %v4416_v24  ;;  %v3602_v62 = vadd.f32 %v3601_v14, %v7406_v22  ;;  %v8713_v41 = vsub.f32 %v7520_v21, %v7529_v56 }
 0x291   :  { %v8698_v26 = vsub.f32 %v8696_v57, %v8697_v17  ;;  %v3295_v33 = vadd.f32 %v3294_v37, %v8699_v1  ;;  %v7608_v46 = vld [vmem:[#allocation2 + $0x1758] sm:$0xff]  ;;  %v8701_v55 = vld [vmem:[#allocation42_spill] sm:$0xff]  ;;  %v8703_v35 = vld [vmem:[#allocation12_spill] sm:$0xff]  ;;  %v7631_v1 = vand.u32 2147483647, %v8706_v12 }
 0x292   :  { %v8702_v51 = vsub.f32 %v8700_v63, %v8701_v55  ;;  %v8704_v57 = vld [vmem:[#allocation46_spill] sm:$0xff]  ;;  %v7624_v16 = vld [vmem:[#allocation5 + $0x1750] sm:$0xff]  ;;  %v7626_v37 = vld [vmem:[#allocation5 + $0x1758] sm:$0xff]  ;;  %v4220_v63 = vadd.f32 %v4219_v52, %v4156_v59  ;;  %v7648_v59 = vand.u32 2147483647, %v8708_v28  ;;  %v4544_v60 = vadd.f32 %v4543_v23, %v4480_v0 }
 0x293   :  { %v3841_v61 = vand.u32 2147483647, %v8698_v26  ;;  %v8705_v17 = vsub.f32 %v8703_v35, %v8704_v57  ;;  %v7622_v39 = vld [vmem:[#allocation2 + $0x1760] sm:$0xff]  ;;  %v4094_v26 = vsub.f32 %v3965_v6, %v4030_v45  ;;  %v7633_v55 = vld [vmem:[#allocation2 + $0x1768] sm:$0xff]  ;;  %v8707_v35 = vsub.f32 %v7497_v8, %v7501_v25  ;;  %v3966_v57 = vld [vmem:[#allocation2 + $0x1890] sm:$0xff] }
 0x294   :  { %v3842_v42 = vand.u32 2147483647, %v8702_v51  ;;  %v7641_v48 = vld [vmem:[#allocation5 + $0x1760] sm:$0xff]  ;;  %v4289_v25 = vld [vmem:[#allocation2 + $0x1a88] sm:$0xff]  ;;  %v8709_v6 = vld [vmem:[#allocation48_spill] sm:$0xff]  ;;  %v4221_v28 = vadd.f32 %v4220_v63, %v4157_v47  ;;  %v8715_v47 = vsub.f32 %v7522_v2, %v7533_v29  ;;  %v8718_v2 = vsub.f32 %v7536_v20, %v7540_v58 }
 0x295   :  { %v7620_v34 = vand.u32 2147483647, %v8705_v17  ;;  %v7638_v51 = vand.u32 2147483647, %v8707_v35  ;;  %v4031_v17 = vld [vmem:[#allocation5 + $0x1890] sm:$0xff]  ;;  %v3905_v8 = vadd.f32 %v3904_v38, %v3841_v61  ;;  %v4354_v52 = vld [vmem:[#allocation5 + $0x1a88] sm:$0xff]  ;;  %v7651_v45 = vadd.f32 %v3295_v33, %v8709_v6 }
 0x296   :  { %v7653_v24 = vld [vmem:[#allocation2 + $0x1770] sm:$0xff]  ;;  %v7655_v19 = vld [vmem:[#allocation2 + $0x1778] sm:$0xff]  ;;  %v7657_v22 = vld [vmem:[#allocation5 + $0x1768] sm:$0xff]  ;;  %v7666_v18 = vand.u32 2147483647, %v8711_v11  ;;  %v4095_v12 = vsub.f32 %v3966_v57, %v4031_v17  ;;  %v4418_v44 = vsub.f32 %v4289_v25, %v4354_v52 }
 0x297   :  { %8710 = vst [vmem:[#allocation64_spill] sm:$0xff] %v7651_v45  ;;  %v7668_v61 = vld [vmem:[#allocation2 + $0x1780] sm:$0xff]  ;;  %v7670_v33 = vld [vmem:[#allocation5 + $0x1770] sm:$0xff]  ;;  %v7672_v38 = vld [vmem:[#allocation5 + $0x1778] sm:$0xff]  ;;  %v7677_v15 = vand.u32 2147483647, %v8713_v41  ;;  %v3603_v45 = vadd.f32 %v3602_v62, %v7411_v43  ;;  %v3906_v63 = vadd.f32 %v3905_v8, %v3842_v42  ;;  %v8720_v42 = vsub.f32 %v7538_v50, %v7551_v10 }
 0x298   :  { %8712 = vst [vmem:[#allocation30_spill] sm:$0xff] %v7666_v18  ;;  %v4158_v35 = vand.u32 2147483647, %v4094_v26  ;;  %v7679_v6 = vld [vmem:[#allocation2 + $0x1788] sm:$0xff]  ;;  %v3967_v9 = vld [vmem:[#allocation2 + $0x1898] sm:$0xff]  ;;  %v7684_v18 = vld [vmem:[#allocation2 + $0x1790] sm:$0xff]  ;;  %v8722_v41 = vsub.f32 %v7549_v30, %v7558_v40 }
 0x299   :  { %8714 = vst [vmem:[#allocation26_spill] sm:$0xff] %v7677_v15  ;;  %v4032_v11 = vld [vmem:[#allocation5 + $0x1898] sm:$0xff]  ;;  %v4481_v14 = vand.u32 2147483647, %v4417_v3  ;;  %v7686_v21 = vld [vmem:[#allocation5 + $0x1780] sm:$0xff]  ;;  %v4290_v17 = vld [vmem:[#allocation2 + $0x1a90] sm:$0xff]  ;;  %v3604_v30 = vadd.f32 %v3603_v45, %v7416_v31 }
 0x29a   :  { %v7693_v26 = vand.u32 2147483647, %v8715_v47  ;;  %v7695_v57 = vld [vmem:[#allocation2 + $0x18a0] sm:$0xff]  ;;  %v4355_v3 = vld [vmem:[#allocation5 + $0x1a90] sm:$0xff]  ;;  %v7697_v23 = vld [vmem:[#allocation2 + $0x1798] sm:$0xff]  ;;  %v4096_v20 = vsub.f32 %v3967_v9, %v4032_v11  ;;  %v3907_v9 = vadd.f32 %v3906_v63, %v7620_v34  ;;  %v8730_v34 = vsub.f32 %v7564_v27, %v7572_v49 }
 0x29b   :  { %8717 = vst [vmem:[#allocation15_spill] sm:$0xff] %v7697_v23  ;;  %v7699_v43 = vld [vmem:[#allocation5 + $0x1788] sm:$0xff]  ;;  %v7708_v29 = vand.u32 2147483647, %v8718_v2  ;;  %v7713_v8 = vand.u32 2147483647, %v8720_v42  ;;  %v4222_v2 = vadd.f32 %v4221_v28, %v4158_v35  ;;  %v4419_v53 = vsub.f32 %v4290_v17, %v4355_v3 }
 0x29c   :  { %8716 = vst [vmem:[#allocation27_spill] sm:$0xff] %v7693_v26  ;;  %v7715_v25 = vld [vmem:[#allocation2 + $0x18a8] sm:$0xff]  ;;  %v7717_v52 = vld [vmem:[#allocation5 + $0x1790] sm:$0xff]  ;;  %v7722_v47 = vand.u32 2147483647, %v8722_v41  ;;  %v4033_v62 = vld [vmem:[#allocation5 + $0x18a0] sm:$0xff]  ;;  %v4545_v40 = vadd.f32 %v4544_v60, %v4481_v14  ;;  %v8725_v35 = vsub.f32 %v7554_v36, %v7568_v13  ;;  %v8728_v36 = vsub.f32 %v7556_v4, %v7570_v5 }
 0x29d   :  { %8719 = vst [vmem:[#allocation44_spill] sm:$0xff] %v7708_v29  ;;  %v7724_v0 = vld [vmem:[#allocation2 + $0x18b0] sm:$0xff]  ;;  %v4159_v58 = vand.u32 2147483647, %v4095_v12  ;;  %v7726_v56 = vld [vmem:[#allocation5 + $0x1798] sm:$0xff]  ;;  %v7732_v42 = vld [vmem:[#allocation5 + $0x18a8] sm:$0xff] }
 0x29e   :  { %8721 = vst [vmem:[#allocation13_spill] sm:$0xff] %v7713_v8  ;;  %v7730_v10 = vld [vmem:[#allocation2 + $0x18b8] sm:$0xff]  ;;  %v4482_v8 = vand.u32 2147483647, %v4418_v44  ;;  %v7735_v41 = vld [vmem:[#allocation2 + $0x17a0] sm:$0xff]  ;;  %v7747_v50 = vld [vmem:[#allocation2 + $0x18c8] sm:$0xff]  ;;  %v4098_v27 = vsub.f32 %v7715_v25, %v7732_v42 }
 0x29f   :  { %8723 = vst [vmem:[#allocation59_spill] sm:$0xff] %v7722_v47  ;;  %v7742_v28 = vand.u32 2147483647, %v8725_v35  ;;  %v7745_v11 = vld [vmem:[#allocation2 + $0x18c0] sm:$0xff]  ;;  %v7749_v44 = vld [vmem:[#allocation5 + $0x18b0] sm:$0xff]  ;;  %v4291_v60 = vld [vmem:[#allocation2 + $0x1a98] sm:$0xff]  ;;  %v4097_v35 = vsub.f32 %v7695_v57, %v4033_v62  ;;  %v4223_v49 = vadd.f32 %v4222_v2, %v4159_v58 }
 0x2a0   :  { %8724 = vst [vmem:[#allocation28_spill] sm:$0xff] %v7726_v56  ;;  %v4356_v31 = vld [vmem:[#allocation5 + $0x1a98] sm:$0xff]  ;;  %v7751_v45 = vld [vmem:[#allocation2 + $0x17a8] sm:$0xff]  ;;  %v7758_v13 = vand.u32 2147483647, %v8728_v36  ;;  %v7765_v17 = vld [vmem:[#allocation2 + $0x18d0] sm:$0xff] }
 0x2a1   :  { %8726 = vst [vmem:[#allocation11_spill] sm:$0xff] %v7742_v28  ;;  %v7763_v63 = vand.u32 2147483647, %v8730_v34  ;;  %v7767_v3 = vld [vmem:[#allocation5 + $0x18b8] sm:$0xff]  ;;  %v7770_v12 = vld [vmem:[#allocation5 + $0x17a0] sm:$0xff]  ;;  %v7776_v4 = vld [vmem:[#allocation5 + $0x18c8] sm:$0xff]  ;;  %v4420_v62 = vsub.f32 %v4291_v60, %v4356_v31 }
 0x2a2   :  { %8727 = vst [vmem:[#allocation39_spill] sm:$0xff] %v7747_v50  ;;  %v7774_v28 = vld [vmem:[#allocation5 + $0x18c0] sm:$0xff]  ;;  %v4160_v5 = vand.u32 2147483647, %v4096_v20  ;;  %v7780_v36 = vld [vmem:[#allocation2 + $0x17b0] sm:$0xff]  ;;  %v7782_v34 = vld [vmem:[#allocation5 + $0x17a8] sm:$0xff]  ;;  %v3908_v20 = vadd.f32 %v3907_v9, %v7631_v1 }
 0x2a3   :  { %8729 = vst [vmem:[#allocation33_spill] sm:$0xff] %v7758_v13  ;;  %v4483_v14 = vand.u32 2147483647, %v4419_v53  ;;  %v4546_v13 = vadd.f32 %v4545_v40, %v4482_v8  ;;  %v8735_v47 = vld [vmem:[#allocation50_spill] sm:$0xff]  ;;  %v8736_v26 = vld [vmem:[#allocation21_spill] sm:$0xff]  ;;  %v8737_v15 = vld [vmem:[#allocation47_spill] sm:$0xff]  ;;  %v3806_v31 = vsub.f32 %v7751_v45, %v7782_v34 }
 0x2a4   :  { %8731 = vst [vmem:[#allocation34_spill] sm:$0xff] %v7763_v63  ;;  %v7784_v63 = vld [vmem:[#allocation5 + $0x18d0] sm:$0xff]  ;;  %v3605_v29 = vadd.f32 %v3604_v30, %v8735_v47  ;;  %v8738_v56 = vsub.f32 %v8736_v26, %v8737_v15  ;;  %v7795_v58 = vld [vmem:[#allocation2 + $0x18d8] sm:$0xff]  ;;  %v4292_v42 = vld [vmem:[#allocation2 + $0x1aa0] sm:$0xff]  ;;  %v8744_v30 = vsub.f32 %v7595_v7, %v7610_v54  ;;  %v8747_v54 = vsub.f32 %v7608_v46, %v7626_v37 }
 0x2a5   :  { %8732 = vst [vmem:[#allocation49_spill] sm:$0xff] %v7774_v28  ;;  %v4357_v23 = vld [vmem:[#allocation5 + $0x1aa0] sm:$0xff]  ;;  %v7799_v57 = vld [vmem:[#allocation2 + $0x17b8] sm:$0xff]  ;;  %v7803_v8 = vld [vmem:[#allocation5 + $0x17b0] sm:$0xff]  ;;  %v4547_v50 = vadd.f32 %v4546_v13, %v4483_v14 }
 0x2a6   :  { %8733 = vst [vmem:[#allocation23_spill] sm:$0xff] %v7776_v4  ;;  %v7792_v25 = vand.u32 2147483647, %v8738_v56  ;;  %v7801_v53 = vld [vmem:[#allocation2 + $0x17c0] sm:$0xff]  ;;  %v8741_v26 = vld [vmem:[#allocation69_spill] sm:$0xff]  ;;  %v7816_v9 = vld [vmem:[#allocation2 + $0x17c8] sm:$0xff]  ;;  %v3807_v28 = vsub.f32 %v7780_v36, %v7803_v8 }
 0x2a7   :  { %8734 = vst [vmem:[#allocation29_spill] sm:$0xff] %v7784_v63  ;;  %v8740_v56 = vld [vmem:[#allocation38_spill] sm:$0xff]  ;;  %v7818_v60 = vld [vmem:[#allocation5 + $0x17b8] sm:$0xff]  ;;  %v7828_v40 = vld [vmem:[#allocation5 + $0x17c8] sm:$0xff]  ;;  %v4484_v4 = vand.u32 2147483647, %v4420_v62 }
 0x2a8   :  { %8739 = vst [vmem:[#allocation18_spill] sm:$0xff] %v7792_v25  ;;  %v8742_v47 = vsub.f32 %v8740_v56, %v8741_v26  ;;  %v7822_v2 = vld [vmem:[#allocation5 + $0x18d8] sm:$0xff]  ;;  %v4161_v26 = vand.u32 2147483647, %v4097_v35  ;;  %v7826_v15 = vld [vmem:[#allocation5 + $0x17c0] sm:$0xff]  ;;  %v4421_v25 = vsub.f32 %v4292_v42, %v4357_v23  ;;  %v8745_v45 = vld [vmem:[#allocation36_spill] sm:$0xff]  ;;  %v8746_v35 = vsub.f32 %v7602_v32, %v7624_v16 }
 0x2a9   :  { %v3606_v34 = vadd.f32 %v3605_v29, %v8745_v45  ;;  %v4293_v56 = vld [vmem:[#allocation2 + $0x1aa8] sm:$0xff]  ;;  %v3808_v7 = vsub.f32 %v7799_v57, %v7818_v60  ;;  %v7849_v23 = vand.u32 2147483647, %v8747_v54  ;;  %v8748_v29 = vsub.f32 %v7622_v39, %v7641_v48  ;;  %v4596_v16 = vld [vmem:[#allocation2 + $0x1c00] sm:$0xff]  ;;  %v7864_v39 = vld [vmem:[#allocation5 + $0x17d0] sm:$0xff] }
 0x2aa   :  { %v7810_v1 = vand.u32 2147483647, %v8742_v47  ;;  %v4224_v47 = vadd.f32 %v4223_v49, %v4160_v5  ;;  %v7841_v5 = vand.u32 2147483647, %v8746_v35  ;;  %v3909_v49 = vadd.f32 %v3908_v20, %v7638_v51  ;;  %v4358_v63 = vld [vmem:[#allocation5 + $0x1aa8] sm:$0xff]  ;;  %v4661_v37 = vld [vmem:[#allocation5 + $0x1c00] sm:$0xff] }
 0x2ab   :  { %v7854_v14 = vand.u32 2147483647, %v8748_v29  ;;  %v3809_v51 = vsub.f32 %v7801_v53, %v7826_v15  ;;  %v3810_v13 = vsub.f32 %v7816_v9, %v7828_v40  ;;  %v4162_v36 = vand.u32 2147483647, %v4098_v27  ;;  %v4597_v46 = vld [vmem:[#allocation2 + $0x1c08] sm:$0xff]  ;;  %v7862_v20 = vld [vmem:[#allocation2 + $0x17d0] sm:$0xff] }
 0x2ac   :  { %8743 = vst [vmem:[#allocation67_spill] sm:$0xff] %v7810_v1  ;;  %v7833_v1 = vand.u32 2147483647, %v8744_v30  ;;  %v4225_v57 = vadd.f32 %v4224_v47, %v4161_v26  ;;  %v4662_v62 = vld [vmem:[#allocation5 + $0x1c08] sm:$0xff]  ;;  %v8749_v48 = vsub.f32 %v7633_v55, %v7657_v22  ;;  %v4422_v8 = vsub.f32 %v4293_v56, %v4358_v63  ;;  %v8750_v15 = vld [vmem:[#allocation32_spill] sm:$0xff]  ;;  %v7883_v54 = vld [vmem:[#allocation2 + $0x17d8] sm:$0xff] }
 0x2ad   :  { %v4485_v30 = vand.u32 2147483647, %v4421_v25  ;;  %v4548_v53 = vadd.f32 %v4547_v50, %v4484_v4  ;;  %v3607_v60 = vadd.f32 %v3606_v34, %v8750_v15  ;;  %v8751_v27 = vsub.f32 %v7653_v24, %v7670_v33  ;;  %v4294_v55 = vld [vmem:[#allocation2 + $0x1ab0] sm:$0xff]  ;;  %v7885_v63 = vld [vmem:[#allocation5 + $0x17d8] sm:$0xff]  ;;  %v8760_v15 = vld [vmem:[#allocation43_spill] sm:$0xff] }
 0x2ae   :  { %v7869_v42 = vand.u32 2147483647, %v8749_v48  ;;  %v8752_v47 = vsub.f32 %v7655_v19, %v7672_v38  ;;  %v3910_v35 = vadd.f32 %v3909_v49, %v7648_v59  ;;  %v4359_v22 = vld [vmem:[#allocation5 + $0x1ab0] sm:$0xff]  ;;  %v8753_v50 = vsub.f32 %v7668_v61, %v7686_v21  ;;  %v8773_v40 = vld [vmem:[#allocation49_spill] sm:$0xff] }
 0x2af   :  { %v7875_v26 = vand.u32 2147483647, %v8751_v27  ;;  %v8754_v24 = vsub.f32 %v7679_v6, %v7699_v43  ;;  %v4725_v19 = vsub.f32 %v4596_v16, %v4661_v37  ;;  %v4726_v38 = vsub.f32 %v4597_v46, %v4662_v62  ;;  %v4598_v49 = vld [vmem:[#allocation2 + $0x1c10] sm:$0xff]  ;;  %v3684_v6 = vld [vmem:[#allocation2 + $0x17e0] sm:$0xff]  ;;  %v7907_v43 = vld [vmem:[#allocation2 + $0x17e8] sm:$0xff] }
 0x2b0   :  { %v7880_v45 = vand.u32 2147483647, %v8752_v47  ;;  %v7890_v4 = vand.u32 2147483647, %v8753_v50  ;;  %v3811_v59 = vsub.f32 %v7862_v20, %v7864_v39  ;;  %v8755_v25 = vsub.f32 %v7684_v18, %v7717_v52  ;;  %v4663_v29 = vld [vmem:[#allocation5 + $0x1c10] sm:$0xff]  ;;  %v3749_v16 = vld [vmem:[#allocation5 + $0x17e0] sm:$0xff] }
 0x2b1   :  { %v7895_v33 = vand.u32 2147483647, %v8754_v24  ;;  %v8756_v61 = vsub.f32 %v7724_v0, %v7749_v44  ;;  %v4226_v34 = vadd.f32 %v4225_v57, %v4162_v36  ;;  %v7909_v46 = vld [vmem:[#allocation5 + $0x17e8] sm:$0xff]  ;;  %v8758_v62 = vld [vmem:[#allocation28_spill] sm:$0xff]  ;;  %v4423_v18 = vsub.f32 %v4294_v55, %v4359_v22  ;;  %v8764_v27 = vld [vmem:[#allocation30_spill] sm:$0xff] }
 0x2b2   :  { %v7902_v56 = vand.u32 2147483647, %v8755_v25  ;;  %v8757_v37 = vld [vmem:[#allocation15_spill] sm:$0xff]  ;;  %v4486_v52 = vand.u32 2147483647, %v4422_v8  ;;  %v4549_v48 = vadd.f32 %v4548_v53, %v4485_v30  ;;  %v3608_v0 = vadd.f32 %v3607_v60, %v8760_v15  ;;  %v4295_v50 = vld [vmem:[#allocation2 + $0x1ab8] sm:$0xff] }
 0x2b3   :  { %v4163_v21 = vand.u32 2147483647, %v8756_v61  ;;  %v8759_v20 = vsub.f32 %v8757_v37, %v8758_v62  ;;  %v8761_v44 = vsub.f32 %v7735_v41, %v7770_v12  ;;  %v7922_v57 = vand.u32 2147483647, %v3806_v31  ;;  %v4360_v24 = vld [vmem:[#allocation5 + $0x1ab8] sm:$0xff]  ;;  %v7925_v25 = vld [vmem:[#allocation2 + $0x17f0] sm:$0xff] }
 0x2b4   :  { %v3911_v47 = vadd.f32 %v3910_v35, %v8764_v27  ;;  %v7927_v61 = vand.u32 2147483647, %v3807_v28  ;;  %v4727_v55 = vsub.f32 %v4598_v49, %v4663_v29  ;;  %v4789_v8 = vand.u32 2147483647, %v4725_v19  ;;  %v4599_v35 = vld [vmem:[#allocation2 + $0x1c18] sm:$0xff]  ;;  %v3751_v37 = vld [vmem:[#allocation5 + $0x17f0] sm:$0xff] }
 0x2b5   :  { %v7914_v39 = vand.u32 2147483647, %v8759_v20  ;;  %v7920_v36 = vand.u32 2147483647, %v8761_v44  ;;  %8763 = vst [vmem:[#allocation19_spill] sm:$0xff] %v7922_v57  ;;  %v3812_v53 = vsub.f32 %v7883_v54, %v7885_v63  ;;  %v8767_v41 = vsub.f32 %v7730_v10, %v7767_v3  ;;  %v4664_v22 = vld [vmem:[#allocation5 + $0x1c18] sm:$0xff] }
 0x2b6   :  { %8765 = vst [vmem:[#allocation16_spill] sm:$0xff] %v7927_v61  ;;  %v4790_v30 = vand.u32 2147483647, %v4726_v38  ;;  %v7931_v60 = vand.u32 2147483647, %v3808_v7  ;;  %v4227_v31 = vadd.f32 %v4226_v34, %v4163_v21  ;;  %v4296_v28 = vld [vmem:[#allocation2 + $0x1ac0] sm:$0xff]  ;;  %v4424_v20 = vsub.f32 %v4295_v50, %v4360_v24 }
 0x2b7   :  { %8762 = vst [vmem:[#allocation63_spill] sm:$0xff] %v7920_v36  ;;  %v4164_v12 = vand.u32 2147483647, %v8767_v41  ;;  %v7936_v62 = vand.u32 2147483647, %v3809_v51  ;;  %v4550_v19 = vadd.f32 %v4549_v48, %v4486_v52  ;;  %v3813_v38 = vsub.f32 %v3684_v6, %v3749_v16  ;;  %v8770_v10 = vld [vmem:[#allocation26_spill] sm:$0xff] }
 0x2b8   :  { %8766 = vst [vmem:[#allocation24_spill] sm:$0xff] %v7931_v60  ;;  %v4487_v49 = vand.u32 2147483647, %v4423_v18  ;;  %v3814_v54 = vsub.f32 %v7907_v43, %v7909_v46  ;;  %v7943_v7 = vand.u32 2147483647, %v3810_v13  ;;  %v3912_v3 = vadd.f32 %v3911_v47, %v8770_v10  ;;  %v4361_v63 = vld [vmem:[#allocation5 + $0x1ac0] sm:$0xff] }
 0x2b9   :  { %8768 = vst [vmem:[#allocation71_spill] sm:$0xff] %v7936_v62  ;;  %v4600_v21 = vld [vmem:[#allocation2 + $0x1c20] sm:$0xff]  ;;  %v8771_v51 = vld [vmem:[#allocation51_spill] sm:$0xff]  ;;  %v3687_v15 = vld [vmem:[#allocation2 + $0x17f8] sm:$0xff]  ;;  %v4728_v18 = vsub.f32 %v4599_v35, %v4664_v22  ;;  %v4791_v52 = vand.u32 2147483647, %v4727_v55  ;;  %v4854_v6 = vadd.f32 %v4790_v30, %v4789_v8  ;;  %v3815_v16 = vsub.f32 %v7925_v25, %v3751_v37 }
 0x2ba   :  { %8769 = vst [vmem:[#allocation56_spill] sm:$0xff] %v7943_v7  ;;  %v4665_v34 = vld [vmem:[#allocation5 + $0x1c20] sm:$0xff]  ;;  %v3609_v29 = vadd.f32 %v3608_v0, %v8771_v51  ;;  %v3752_v44 = vld [vmem:[#allocation5 + $0x17f8] sm:$0xff]  ;;  %v7948_v43 = vand.u32 2147483647, %v3811_v59  ;;  %v8774_v9 = vsub.f32 %v7745_v11, %v8773_v40  ;;  %v4228_v46 = vadd.f32 %v4227_v31, %v4164_v12  ;;  %v4601_v48 = vld [vmem:[#allocation2 + $0x1c28] sm:$0xff] }
 0x2bb   :  { %v4666_v27 = vld [vmem:[#allocation5 + $0x1c28] sm:$0xff]  ;;  %v4425_v24 = vsub.f32 %v4296_v28, %v4361_v63  ;;  %v4488_v0 = vand.u32 2147483647, %v4424_v20  ;;  %v4551_v41 = vadd.f32 %v4550_v19, %v4487_v49  ;;  %v4729_v10 = vsub.f32 %v4600_v21, %v4665_v34  ;;  %v4602_v30 = vld [vmem:[#allocation2 + $0x1c30] sm:$0xff]  ;;  %v8778_v11 = vld [vmem:[#allocation57_spill] sm:$0xff] }
 0x2bc   :  { %8772 = vst [vmem:[#allocation35_spill] sm:$0xff] %v7948_v43  ;;  %v4165_v13 = vand.u32 2147483647, %v8774_v9  ;;  %v4297_v47 = vld [vmem:[#allocation2 + $0x1ac8] sm:$0xff]  ;;  %v3816_v35 = vsub.f32 %v3687_v15, %v3752_v44  ;;  %v7953_v55 = vand.u32 2147483647, %v3812_v53  ;;  %v3610_v37 = vadd.f32 %v3609_v29, %v8778_v11 }
 0x2bd   :  { %v4362_v50 = vld [vmem:[#allocation5 + $0x1ac8] sm:$0xff]  ;;  %v7955_v8 = vand.u32 2147483647, %v3813_v38  ;;  %v4667_v22 = vld [vmem:[#allocation5 + $0x1c30] sm:$0xff]  ;;  %v7959_v12 = vld [vmem:[#allocation2 + $0x18e0] sm:$0xff]  ;;  %v4730_v51 = vsub.f32 %v4601_v48, %v4666_v27  ;;  %v4855_v20 = vadd.f32 %v4854_v6, %v4791_v52  ;;  %v4552_v52 = vadd.f32 %v4551_v41, %v4488_v0 }
 0x2be   :  { %8775 = vst [vmem:[#allocation70_spill] sm:$0xff] %v7953_v55  ;;  %v8777_v59 = vld [vmem:[#allocation27_spill] sm:$0xff]  ;;  %v7961_v31 = vld [vmem:[#allocation5 + $0x18e0] sm:$0xff]  ;;  %v4792_v28 = vand.u32 2147483647, %v4728_v18  ;;  %v4229_v21 = vadd.f32 %v4228_v46, %v4165_v13  ;;  %v4426_v34 = vsub.f32 %v4297_v47, %v4362_v50  ;;  %v4668_v15 = vld [vmem:[#allocation5 + $0x1c38] sm:$0xff] }
 0x2bf   :  { %8776 = vst [vmem:[#allocation37_spill] sm:$0xff] %v7955_v8  ;;  %v3913_v25 = vadd.f32 %v3912_v3, %v8777_v59  ;;  %v7963_v49 = vand.u32 2147483647, %v3814_v54  ;;  %v8780_v19 = vld [vmem:[#allocation39_spill] sm:$0xff]  ;;  %v4603_v3 = vld [vmem:[#allocation2 + $0x1c38] sm:$0xff]  ;;  %v7970_v29 = vld [vmem:[#allocation2 + $0x18f0] sm:$0xff]  ;;  %v4731_v54 = vsub.f32 %v4602_v30, %v4667_v22 }
 0x2c0   :  { %v8781_v53 = vld [vmem:[#allocation23_spill] sm:$0xff]  ;;  %v7972_v40 = vld [vmem:[#allocation2 + $0x18f8] sm:$0xff]  ;;  %v4298_v9 = vld [vmem:[#allocation2 + $0x1ad0] sm:$0xff]  ;;  %v4489_v18 = vand.u32 2147483647, %v4425_v24  ;;  %v4732_v0 = vsub.f32 %v4603_v3, %v4668_v15  ;;  %v4856_v41 = vadd.f32 %v4855_v20, %v4792_v28 }
 0x2c1   :  { %8779 = vst [vmem:[#allocation40_spill] sm:$0xff] %v7963_v49  ;;  %v8782_v63 = vsub.f32 %v8780_v19, %v8781_v53  ;;  %v7968_v44 = vld [vmem:[#allocation2 + $0x18e8] sm:$0xff]  ;;  %v4363_v48 = vld [vmem:[#allocation5 + $0x1ad0] sm:$0xff]  ;;  %v4793_v6 = vand.u32 2147483647, %v4729_v10  ;;  %v4604_v50 = vld [vmem:[#allocation2 + $0x1c40] sm:$0xff] }
 0x2c2   :  { %v7974_v27 = vand.u32 2147483647, %v3815_v16  ;;  %v7976_v59 = vand.u32 2147483647, %v3816_v35  ;;  %v8785_v13 = vld [vmem:[#allocation44_spill] sm:$0xff]  ;;  %v4669_v11 = vld [vmem:[#allocation5 + $0x1c40] sm:$0xff]  ;;  %v4427_v22 = vsub.f32 %v4298_v9, %v4363_v48  ;;  %v4553_v8 = vadd.f32 %v4552_v52, %v4489_v18 }
 0x2c3   :  { %v4166_v38 = vand.u32 2147483647, %v8782_v63  ;;  %v3914_v46 = vadd.f32 %v3913_v25, %v8785_v13  ;;  %v8786_v19 = vld [vmem:[#allocation52_spill] sm:$0xff]  ;;  %v7982_v63 = vld [vmem:[#allocation5 + $0x18e8] sm:$0xff]  ;;  %v7986_v24 = vld [vmem:[#allocation5 + $0x18f8] sm:$0xff]  ;;  %v4733_v55 = vsub.f32 %v4604_v50, %v4669_v11 }
 0x2c4   :  { %8783 = vst [vmem:[#allocation45_spill] sm:$0xff] %v7974_v27  ;;  %v3611_v53 = vadd.f32 %v3610_v37, %v8786_v19  ;;  %v7984_v32 = vld [vmem:[#allocation5 + $0x18f0] sm:$0xff]  ;;  %v4794_v16 = vand.u32 2147483647, %v4730_v51  ;;  %v8787_v10 = vld [vmem:[#allocation29_spill] sm:$0xff]  ;;  %v4605_v47 = vld [vmem:[#allocation2 + $0x1c48] sm:$0xff]  ;;  %v4857_v51 = vadd.f32 %v4856_v41, %v4793_v6 }
 0x2c5   :  { %8784 = vst [vmem:[#allocation61_spill] sm:$0xff] %v7976_v59  ;;  %v8788_v35 = vsub.f32 %v7765_v17, %v8787_v10  ;;  %v4230_v30 = vadd.f32 %v4229_v21, %v4166_v38  ;;  %v4490_v13 = vand.u32 2147483647, %v4426_v34  ;;  %v4670_v59 = vld [vmem:[#allocation5 + $0x1c48] sm:$0xff]  ;;  %v7991_v27 = vld [vmem:[#allocation2 + $0x1900] sm:$0xff]  ;;  %v4299_v19 = vld [vmem:[#allocation2 + $0x1ad8] sm:$0xff]  ;;  %v4106_v17 = vsub.f32 %v7968_v44, %v7982_v63 }
 0x2c6   :  { %v7993_v37 = vld [vmem:[#allocation2 + $0x1908] sm:$0xff]  ;;  %v4364_v49 = vld [vmem:[#allocation5 + $0x1ad8] sm:$0xff]  ;;  %v4795_v3 = vand.u32 2147483647, %v4731_v54  ;;  %v7996_v15 = vld [vmem:[#allocation2 + $0x1910] sm:$0xff]  ;;  %v4858_v11 = vadd.f32 %v4857_v51, %v4794_v16  ;;  %v8791_v44 = vsub.f32 %v7795_v58, %v7822_v2 }
 0x2c7   :  { %v4167_v25 = vand.u32 2147483647, %v8788_v35  ;;  %v8789_v28 = vld [vmem:[#allocation13_spill] sm:$0xff]  ;;  %v4606_v34 = vld [vmem:[#allocation2 + $0x1c50] sm:$0xff]  ;;  %v8790_v48 = vld [vmem:[#allocation55_spill] sm:$0xff]  ;;  %v4428_v10 = vsub.f32 %v4299_v19, %v4364_v49  ;;  %v4554_v7 = vadd.f32 %v4553_v8, %v4490_v13 }
 0x2c8   :  { %v3915_v20 = vadd.f32 %v3914_v46, %v8789_v28  ;;  %v4671_v9 = vld [vmem:[#allocation5 + $0x1c50] sm:$0xff]  ;;  %v3612_v18 = vadd.f32 %v3611_v53, %v8790_v48  ;;  %v8005_v52 = vld [vmem:[#allocation5 + $0x1900] sm:$0xff]  ;;  %v8007_v54 = vld [vmem:[#allocation5 + $0x1908] sm:$0xff]  ;;  %v4734_v46 = vsub.f32 %v4605_v47, %v4670_v59  ;;  %v4796_v50 = vand.u32 2147483647, %v4732_v0 }
 0x2c9   :  { %v8009_v6 = vld [vmem:[#allocation5 + $0x1910] sm:$0xff]  ;;  %v4168_v63 = vand.u32 2147483647, %v8791_v44  ;;  %v4231_v41 = vadd.f32 %v4230_v30, %v4167_v25  ;;  %v4491_v35 = vand.u32 2147483647, %v4427_v22  ;;  %v4607_v28 = vld [vmem:[#allocation2 + $0x1c58] sm:$0xff]  ;;  %v4735_v62 = vsub.f32 %v4606_v34, %v4671_v9 }
 0x2ca   :  { %v4672_v21 = vld [vmem:[#allocation5 + $0x1c58] sm:$0xff]  ;;  %v8016_v53 = vld [vmem:[#allocation2 + $0x1920] sm:$0xff]  ;;  %v4797_v59 = vand.u32 2147483647, %v4733_v55  ;;  %v4859_v47 = vadd.f32 %v4858_v11, %v4795_v3  ;;  %v8792_v0 = vld [vmem:[#allocation59_spill] sm:$0xff]  ;;  %v4109_v58 = vsub.f32 %v7991_v27, %v8005_v52  ;;  %v4110_v2 = vsub.f32 %v7993_v37, %v8007_v54 }
 0x2cb   :  { %v8014_v38 = vld [vmem:[#allocation2 + $0x1918] sm:$0xff]  ;;  %v4300_v48 = vld [vmem:[#allocation2 + $0x1ae0] sm:$0xff]  ;;  %v3916_v16 = vadd.f32 %v3915_v20, %v8792_v0  ;;  %v8019_v51 = vld [vmem:[#allocation2 + $0x1928] sm:$0xff]  ;;  %v4736_v3 = vsub.f32 %v4607_v28, %v4672_v21  ;;  %v4798_v20 = vand.u32 2147483647, %v4734_v46  ;;  %v8794_v27 = vsub.f32 %v7959_v12, %v7961_v31 }
 0x2cc   :  { %v4365_v43 = vld [vmem:[#allocation5 + $0x1ae0] sm:$0xff]  ;;  %v8028_v13 = vld [vmem:[#allocation5 + $0x1918] sm:$0xff]  ;;  %v8032_v19 = vld [vmem:[#allocation5 + $0x1928] sm:$0xff]  ;;  %v4860_v34 = vadd.f32 %v4859_v47, %v4796_v50  ;;  %v4232_v9 = vadd.f32 %v4231_v41, %v4168_v63  ;;  %v4492_v54 = vand.u32 2147483647, %v4428_v10 }
 0x2cd   :  { %v4608_v25 = vld [vmem:[#allocation2 + $0x1c60] sm:$0xff]  ;;  %v4169_v37 = vand.u32 2147483647, %v8794_v27  ;;  %v4429_v52 = vsub.f32 %v4300_v48, %v4365_v43  ;;  %v4609_v11 = vld [vmem:[#allocation2 + $0x1c68] sm:$0xff]  ;;  %v4799_v60 = vand.u32 2147483647, %v4735_v62  ;;  %v4112_v21 = vsub.f32 %v8014_v38, %v8028_v13 }
 0x2ce   :  { %v4673_v30 = vld [vmem:[#allocation5 + $0x1c60] sm:$0xff]  ;;  %v4674_v44 = vld [vmem:[#allocation5 + $0x1c68] sm:$0xff]  ;;  %v4861_v61 = vadd.f32 %v4860_v34, %v4797_v59  ;;  %v4114_v43 = vsub.f32 %v8019_v51, %v8032_v19  ;;  %v4610_v31 = vld [vmem:[#allocation2 + $0x1c70] sm:$0xff]  ;;  %v4800_v41 = vand.u32 2147483647, %v4736_v3  ;;  %v8799_v3 = vsub.f32 %v7972_v40, %v7986_v24 }
 0x2cf   :  { %v8793_v22 = vld [vmem:[#allocation54_spill] sm:$0xff]  ;;  %v4301_v0 = vld [vmem:[#allocation2 + $0x1ae8] sm:$0xff]  ;;  %v4737_v49 = vsub.f32 %v4608_v25, %v4673_v30  ;;  %v4675_v46 = vld [vmem:[#allocation5 + $0x1c70] sm:$0xff]  ;;  %v4738_v62 = vsub.f32 %v4609_v11, %v4674_v44  ;;  %v4233_v28 = vadd.f32 %v4232_v9, %v4169_v37  ;;  %v4493_v48 = vand.u32 2147483647, %v4429_v52 }
 0x2d0   :  { %v3613_v8 = vadd.f32 %v3612_v18, %v8793_v22  ;;  %v8030_v55 = vld [vmem:[#allocation5 + $0x1920] sm:$0xff]  ;;  %v4366_v18 = vld [vmem:[#allocation5 + $0x1ae8] sm:$0xff]  ;;  %v4555_v22 = vadd.f32 %v4554_v7, %v4491_v35  ;;  %v8044_v50 = vld [vmem:[#allocation2 + $0x1930] sm:$0xff]  ;;  %v4170_v7 = vand.u32 2147483647, %v4106_v17  ;;  %v4862_v10 = vadd.f32 %v4861_v61, %v4798_v20 }
 0x2d1   :  { %v8795_v57 = vld [vmem:[#allocation11_spill] sm:$0xff]  ;;  %v4113_v12 = vsub.f32 %v8016_v53, %v8030_v55  ;;  %v8046_v63 = vld [vmem:[#allocation5 + $0x1930] sm:$0xff]  ;;  %v4430_v38 = vsub.f32 %v4301_v0, %v4366_v18  ;;  %v4611_v59 = vld [vmem:[#allocation2 + $0x1c78] sm:$0xff]  ;;  %v4739_v30 = vsub.f32 %v4610_v31, %v4675_v46  ;;  %v4801_v13 = vand.u32 2147483647, %v4737_v49 }
 0x2d2   :  { %v3917_v36 = vadd.f32 %v3916_v16, %v8795_v57  ;;  %v8796_v57 = vld [vmem:[#allocation58_spill] sm:$0xff]  ;;  %v4676_v53 = vld [vmem:[#allocation5 + $0x1c78] sm:$0xff]  ;;  %v4302_v47 = vld [vmem:[#allocation2 + $0x1af0] sm:$0xff]  ;;  %v4556_v25 = vadd.f32 %v4555_v22, %v4492_v54  ;;  %v4863_v55 = vadd.f32 %v4862_v10, %v4799_v60  ;;  %v4115_v17 = vsub.f32 %v8044_v50, %v8046_v63 }
 0x2d3   :  { %v3614_v35 = vadd.f32 %v3613_v8, %v8796_v57  ;;  %v4367_v16 = vld [vmem:[#allocation5 + $0x1af0] sm:$0xff]  ;;  %v8797_v34 = vld [vmem:[#allocation33_spill] sm:$0xff]  ;;  %v8798_v61 = vsub.f32 %v7970_v29, %v7984_v32  ;;  %v8058_v20 = vand.u32 2147483647, %v8799_v3  ;;  %v4612_v37 = vld [vmem:[#allocation2 + $0x1c80] sm:$0xff]  ;;  %v4740_v60 = vsub.f32 %v4611_v59, %v4676_v53 }
 0x2d4   :  { %v3918_v27 = vadd.f32 %v3917_v36, %v8797_v34  ;;  %v4677_v9 = vld [vmem:[#allocation5 + $0x1c80] sm:$0xff]  ;;  %v3987_v52 = vld [vmem:[#allocation2 + $0x1938] sm:$0xff]  ;;  %v8060_v49 = vand.u32 2147483647, %v4109_v58  ;;  %v4802_v36 = vand.u32 2147483647, %v4738_v62  ;;  %v4864_v11 = vadd.f32 %v4863_v55, %v4800_v41 }
 0x2d5   :  { %v4171_v8 = vand.u32 2147483647, %v8798_v61  ;;  %v4052_v54 = vld [vmem:[#allocation5 + $0x1938] sm:$0xff]  ;;  %v8062_v44 = vand.u32 2147483647, %v4110_v2  ;;  %v4234_v0 = vadd.f32 %v4233_v28, %v4170_v7  ;;  %v4431_v18 = vsub.f32 %v4302_v47, %v4367_v16  ;;  %v4613_v29 = vld [vmem:[#allocation2 + $0x1c88] sm:$0xff] }
 0x2d6   :  { %v4494_v32 = vand.u32 2147483647, %v4430_v38  ;;  %v4678_v22 = vld [vmem:[#allocation5 + $0x1c88] sm:$0xff]  ;;  %v4303_v31 = vld [vmem:[#allocation2 + $0x1af8] sm:$0xff]  ;;  %v4557_v24 = vadd.f32 %v4556_v25, %v4493_v48  ;;  %v4741_v46 = vsub.f32 %v4612_v37, %v4677_v9  ;;  %v4803_v50 = vand.u32 2147483647, %v4739_v30 }
 0x2d7   :  { %v4368_v40 = vld [vmem:[#allocation5 + $0x1af8] sm:$0xff]  ;;  %v4865_v63 = vadd.f32 %v4864_v11, %v4801_v13  ;;  %v8800_v10 = vld [vmem:[#allocation60_spill] sm:$0xff]  ;;  %v8801_v58 = vld [vmem:[#allocation34_spill] sm:$0xff]  ;;  %v8802_v62 = vsub.f32 %v7996_v15, %v8009_v6  ;;  %v8071_v7 = vand.u32 2147483647, %v4112_v21  ;;  %v4116_v53 = vsub.f32 %v3987_v52, %v4052_v54 }
 0x2d8   :  { %v3615_v57 = vadd.f32 %v3614_v35, %v8800_v10  ;;  %v3919_v34 = vadd.f32 %v3918_v27, %v8801_v58  ;;  %v4614_v41 = vld [vmem:[#allocation2 + $0x1c90] sm:$0xff]  ;;  %v3988_v38 = vld [vmem:[#allocation2 + $0x1940] sm:$0xff]  ;;  %v4742_v48 = vsub.f32 %v4613_v29, %v4678_v22  ;;  %v4804_v47 = vand.u32 2147483647, %v4740_v60  ;;  %v3989_v25 = vld [vmem:[#allocation2 + $0x1948] sm:$0xff] }
 0x2d9   :  { %v8069_v2 = vand.u32 2147483647, %v8802_v62  ;;  %v4679_v28 = vld [vmem:[#allocation5 + $0x1c90] sm:$0xff]  ;;  %v4053_v59 = vld [vmem:[#allocation5 + $0x1940] sm:$0xff]  ;;  %v4866_v16 = vadd.f32 %v4865_v63, %v4802_v36  ;;  %v4054_v30 = vld [vmem:[#allocation5 + $0x1948] sm:$0xff]  ;;  %v4235_v13 = vadd.f32 %v4234_v0, %v4171_v8  ;;  %v4432_v55 = vsub.f32 %v4303_v31, %v4368_v40 }
 0x2da   :  { %v8073_v35 = vand.u32 2147483647, %v4113_v12  ;;  %v4495_v27 = vand.u32 2147483647, %v4431_v18  ;;  %v8075_v15 = vld [vmem:[#allocation2 + $0x1950] sm:$0xff]  ;;  %v4304_v6 = vld [vmem:[#allocation2 + $0x1b00] sm:$0xff]  ;;  %v4558_v61 = vadd.f32 %v4557_v24, %v4494_v32  ;;  %v4743_v3 = vsub.f32 %v4614_v41, %v4679_v28 }
 0x2db   :  { %v4369_v21 = vld [vmem:[#allocation5 + $0x1b00] sm:$0xff]  ;;  %v4805_v37 = vand.u32 2147483647, %v4741_v46  ;;  %v4867_v9 = vadd.f32 %v4866_v16, %v4803_v50  ;;  %v3991_v36 = vld [vmem:[#allocation2 + $0x1958] sm:$0xff]  ;;  %v4117_v22 = vsub.f32 %v3988_v38, %v4053_v59  ;;  %v8082_v12 = vand.u32 2147483647, %v4114_v43 }
 0x2dc   :  { %v8803_v11 = vld [vmem:[#allocation62_spill] sm:$0xff]  ;;  %v4615_v8 = vld [vmem:[#allocation2 + $0x1c98] sm:$0xff]  ;;  %v3993_v18 = vld [vmem:[#allocation2 + $0x1968] sm:$0xff]  ;;  %v4118_v32 = vsub.f32 %v3989_v25, %v4054_v30  ;;  %v8084_v40 = vand.u32 2147483647, %v4115_v17  ;;  %v4433_v58 = vsub.f32 %v4304_v6, %v4369_v21  ;;  %v4559_v62 = vadd.f32 %v4558_v61, %v4495_v27 }
 0x2dd   :  { %v3616_v52 = vadd.f32 %v3615_v57, %v8803_v11  ;;  %v8804_v54 = vld [vmem:[#allocation18_spill] sm:$0xff]  ;;  %v4680_v0 = vld [vmem:[#allocation5 + $0x1c98] sm:$0xff]  ;;  %v4055_v31 = vld [vmem:[#allocation5 + $0x1950] sm:$0xff]  ;;  %v4806_v24 = vand.u32 2147483647, %v4742_v48  ;;  %v4868_v46 = vadd.f32 %v4867_v9, %v4804_v47  ;;  %v4236_v57 = vadd.f32 %v4235_v13, %v8058_v20 }
 0x2de   :  { %v3920_v60 = vadd.f32 %v3919_v34, %v8804_v54  ;;  %v3992_v29 = vld [vmem:[#allocation2 + $0x1960] sm:$0xff]  ;;  %v4056_v50 = vld [vmem:[#allocation5 + $0x1958] sm:$0xff]  ;;  %v8086_v10 = vand.u32 2147483647, %v4116_v53  ;;  %v4496_v34 = vand.u32 2147483647, %v4432_v55  ;;  %v4744_v41 = vsub.f32 %v4615_v8, %v4680_v0 }
 0x2df   :  { %v4057_v63 = vld [vmem:[#allocation5 + $0x1960] sm:$0xff]  ;;  %v4058_v51 = vld [vmem:[#allocation5 + $0x1968] sm:$0xff]  ;;  %v4807_v28 = vand.u32 2147483647, %v4743_v3  ;;  %v4869_v38 = vadd.f32 %v4868_v46, %v4805_v37  ;;  %v3994_v16 = vld [vmem:[#allocation2 + $0x1970] sm:$0xff]  ;;  %v4119_v53 = vsub.f32 %v8075_v15, %v4055_v31  ;;  %v4120_v55 = vsub.f32 %v3991_v36, %v4056_v50 }
 0x2e0   :  { %v4305_v19 = vld [vmem:[#allocation2 + $0x1b08] sm:$0xff]  ;;  %v8805_v59 = vld [vmem:[#allocation22_spill] sm:$0xff]  ;;  %v8094_v25 = vand.u32 2147483647, %v4117_v22  ;;  %v4121_v6 = vsub.f32 %v3992_v29, %v4057_v63  ;;  %v8096_v21 = vand.u32 2147483647, %v4118_v32  ;;  %v4122_v11 = vsub.f32 %v3993_v18, %v4058_v51 }
 0x2e1   :  { %v4370_v43 = vld [vmem:[#allocation5 + $0x1b08] sm:$0xff]  ;;  %v8090_v17 = vadd.f32 %v3616_v52, %v8805_v59  ;;  %v4616_v20 = vld [vmem:[#allocation2 + $0x1ca0] sm:$0xff]  ;;  %v4870_v27 = vadd.f32 %v4869_v38, %v4806_v24  ;;  %v4059_v9 = vld [vmem:[#allocation5 + $0x1970] sm:$0xff]  ;;  %v4237_v52 = vadd.f32 %v4236_v57, %v8060_v49  ;;  %v4560_v31 = vadd.f32 %v4559_v62, %v4496_v34 }
 0x2e2   :  { %v8806_v48 = vld [vmem:[#allocation67_spill] sm:$0xff]  ;;  %v4681_v30 = vld [vmem:[#allocation5 + $0x1ca0] sm:$0xff]  ;;  %v4434_v54 = vsub.f32 %v4305_v19, %v4370_v43  ;;  %v4306_v8 = vld [vmem:[#allocation2 + $0x1b10] sm:$0xff]  ;;  %v4808_v36 = vand.u32 2147483647, %v4744_v41  ;;  %v4123_v51 = vsub.f32 %v3994_v16, %v4059_v9 }
 0x2e3   :  { %v3921_v47 = vadd.f32 %v3920_v60, %v8806_v48  ;;  %v4920_v13 = vld [vmem:[#allocation2 + $0x1e00] sm:$0xff]  ;;  %v4921_v61 = vld [vmem:[#allocation2 + $0x1e08] sm:$0xff]  ;;  %v4497_v60 = vand.u32 2147483647, %v4433_v58  ;;  %v4371_v0 = vld [vmem:[#allocation5 + $0x1b10] sm:$0xff]  ;;  %v4745_v46 = vsub.f32 %v4616_v20, %v4681_v30  ;;  %v4871_v29 = vadd.f32 %v4870_v27, %v4807_v28 }
 0x2e4   :  { %v4985_v3 = vld [vmem:[#allocation5 + $0x1e00] sm:$0xff]  ;;  %v4986_v37 = vld [vmem:[#allocation5 + $0x1e08] sm:$0xff]  ;;  %v8100_v24 = vand.u32 2147483647, %v4119_v53  ;;  %v4618_v50 = vld [vmem:[#allocation2 + $0x1cb0] sm:$0xff]  ;;  %v4238_v62 = vadd.f32 %v4237_v52, %v8062_v44  ;;  %v4435_v41 = vsub.f32 %v4306_v8, %v4371_v0 }
 0x2e5   :  { %v4617_v15 = vld [vmem:[#allocation2 + $0x1ca8] sm:$0xff]  ;;  %v3922_v32 = vadd.f32 %v3921_v47, %v7833_v1  ;;  %v4683_v63 = vld [vmem:[#allocation5 + $0x1cb0] sm:$0xff]  ;;  %v5049_v38 = vsub.f32 %v4920_v13, %v4985_v3  ;;  %v5050_v18 = vsub.f32 %v4921_v61, %v4986_v37  ;;  %v8102_v49 = vand.u32 2147483647, %v4120_v55  ;;  %v4619_v28 = vld [vmem:[#allocation2 + $0x1cb8] sm:$0xff] }
 0x2e6   :  { %v4682_v22 = vld [vmem:[#allocation5 + $0x1ca8] sm:$0xff]  ;;  %v8104_v57 = vand.u32 2147483647, %v4121_v6  ;;  %v4922_v19 = vld [vmem:[#allocation2 + $0x1e10] sm:$0xff]  ;;  %v8106_v34 = vand.u32 2147483647, %v4122_v11  ;;  %v4561_v53 = vadd.f32 %v4560_v31, %v4497_v60  ;;  %v4747_v20 = vsub.f32 %v4618_v50, %v4683_v63 }
 0x2e7   :  { %v4746_v58 = vsub.f32 %v4617_v15, %v4682_v22  ;;  %v4987_v43 = vld [vmem:[#allocation5 + $0x1e10] sm:$0xff]  ;;  %v4498_v1 = vand.u32 2147483647, %v4434_v54  ;;  %v4684_v59 = vld [vmem:[#allocation5 + $0x1cb8] sm:$0xff]  ;;  %v4809_v16 = vand.u32 2147483647, %v4745_v46  ;;  %v4872_v30 = vadd.f32 %v4871_v29, %v4808_v36 }
 0x2e8   :  { %v4307_v48 = vld [vmem:[#allocation2 + $0x1b18] sm:$0xff]  ;;  %v3923_v13 = vadd.f32 %v3922_v32, %v7841_v5  ;;  %v4620_v27 = vld [vmem:[#allocation2 + $0x1cc0] sm:$0xff]  ;;  %v5051_v3 = vsub.f32 %v4922_v19, %v4987_v43  ;;  %v5113_v44 = vand.u32 2147483647, %v5049_v38  ;;  %v5114_v37 = vand.u32 2147483647, %v5050_v18 }
 0x2e9   :  { %v4372_v47 = vld [vmem:[#allocation5 + $0x1b18] sm:$0xff]  ;;  %v4685_v61 = vld [vmem:[#allocation5 + $0x1cc0] sm:$0xff]  ;;  %v8808_v11 = vld [vmem:[#allocation64_spill] sm:$0xff]  ;;  %v8118_v54 = vand.u32 2147483647, %v4123_v51  ;;  %v4748_v60 = vsub.f32 %v4619_v28, %v4684_v59  ;;  %v4239_v31 = vadd.f32 %v4238_v62, %v8069_v2  ;;  %v4562_v38 = vadd.f32 %v4561_v53, %v4498_v1 }
 0x2ea   :  { %v8110_v55 = vld [vmem:[#allocation2 + $0x1978] sm:$0xff]  ;;  %v4810_v15 = vand.u32 2147483647, %v4746_v58  ;;  %v4308_v46 = vld [vmem:[#allocation2 + $0x1b20] sm:$0xff]  ;;  %v4436_v36 = vsub.f32 %v4307_v48, %v4372_v47  ;;  %v4499_v29 = vand.u32 2147483647, %v4435_v41  ;;  %v4749_v18 = vsub.f32 %v4620_v27, %v4685_v61 }
 0x2eb   :  { %v8112_v6 = vld [vmem:[#allocation5 + $0x1978] sm:$0xff]  ;;  %v4621_v32 = vld [vmem:[#allocation2 + $0x1cc8] sm:$0xff]  ;;  %v4373_v63 = vld [vmem:[#allocation5 + $0x1b20] sm:$0xff]  ;;  %v4811_v51 = vand.u32 2147483647, %v4747_v20  ;;  %v4873_v19 = vadd.f32 %v4872_v30, %v4809_v16  ;;  %v3924_v28 = vadd.f32 %v3923_v13, %v7849_v23  ;;  %v4240_v20 = vadd.f32 %v4239_v31, %v8071_v7 }
 0x2ec   :  { %v8807_v9 = vld [vmem:[#allocation17_spill] sm:$0xff]  ;;  %v4686_v50 = vld [vmem:[#allocation5 + $0x1cc8] sm:$0xff]  ;;  %v4924_v43 = vld [vmem:[#allocation2 + $0x1e20] sm:$0xff]  ;;  %v4812_v48 = vand.u32 2147483647, %v4748_v60  ;;  %v4437_v30 = vsub.f32 %v4308_v46, %v4373_v63 }
 0x2ed   :  { %v8116_v52 = vadd.f32 %v8808_v11, %v8807_v9  ;;  %v4923_v22 = vld [vmem:[#allocation2 + $0x1e18] sm:$0xff]  ;;  %v4989_v58 = vld [vmem:[#allocation5 + $0x1e20] sm:$0xff]  ;;  %v4622_v59 = vld [vmem:[#allocation2 + $0x1cd0] sm:$0xff]  ;;  %v5115_v11 = vand.u32 2147483647, %v5051_v3  ;;  %v4750_v41 = vsub.f32 %v4621_v32, %v4686_v50  ;;  %v4874_v47 = vadd.f32 %v4873_v19, %v4810_v15 }
 0x2ee   :  { %v4988_v8 = vld [vmem:[#allocation5 + $0x1e18] sm:$0xff]  ;;  %v4687_v9 = vld [vmem:[#allocation5 + $0x1cd0] sm:$0xff]  ;;  %v4309_v62 = vld [vmem:[#allocation2 + $0x1b28] sm:$0xff]  ;;  %v4500_v27 = vand.u32 2147483647, %v4436_v36  ;;  %v5053_v61 = vsub.f32 %v4924_v43, %v4989_v58  ;;  %v8130_v32 = vadd.f32 %v3924_v28, %v7854_v14 }
 0x2ef   :  { %8809 = vst [vmem:[#allocation25_spill] sm:$0xff] %v8116_v52  ;;  %v8810_v5 = vld [vmem:[#allocation65_spill] sm:$0xff]  ;;  %v4925_v1 = vld [vmem:[#allocation2 + $0x1e28] sm:$0xff]  ;;  %v4751_v3 = vsub.f32 %v4622_v59, %v4687_v9  ;;  %v4991_v2 = vld [vmem:[#allocation5 + $0x1e30] sm:$0xff]  ;;  %v4814_v52 = vand.u32 2147483647, %v4750_v41 }
 0x2f0   :  { %v8122_v0 = vadd.f32 %v8090_v17, %v8810_v5  ;;  %v5052_v17 = vsub.f32 %v4923_v22, %v4988_v8  ;;  %v5178_v5 = vadd.f32 %v5114_v37, %v5113_v44  ;;  %v4990_v53 = vld [vmem:[#allocation5 + $0x1e28] sm:$0xff]  ;;  %v4623_v23 = vld [vmem:[#allocation2 + $0x1cd8] sm:$0xff]  ;;  %v4563_v22 = vadd.f32 %v4562_v38, %v4499_v29  ;;  %v4926_v8 = vld [vmem:[#allocation2 + $0x1e30] sm:$0xff] }
 0x2f1   :  { %v4374_v16 = vld [vmem:[#allocation5 + $0x1b28] sm:$0xff]  ;;  %v4688_v13 = vld [vmem:[#allocation5 + $0x1cd8] sm:$0xff]  ;;  %v4813_v44 = vand.u32 2147483647, %v4749_v18  ;;  %v4875_v37 = vadd.f32 %v4874_v47, %v4811_v51  ;;  %v4310_v60 = vld [vmem:[#allocation2 + $0x1b30] sm:$0xff]  ;;  %v5054_v19 = vsub.f32 %v4925_v1, %v4990_v53  ;;  %v4241_v18 = vadd.f32 %v4240_v20, %v8073_v35 }
 0x2f2   :  { %v4624_v15 = vld [vmem:[#allocation2 + $0x1ce0] sm:$0xff]  ;;  %v5116_v7 = vand.u32 2147483647, %v5052_v17  ;;  %v5179_v31 = vadd.f32 %v5178_v5, %v5115_v11  ;;  %v4375_v46 = vld [vmem:[#allocation5 + $0x1b30] sm:$0xff]  ;;  %v4438_v36 = vsub.f32 %v4309_v62, %v4374_v16  ;;  %v4752_v63 = vsub.f32 %v4623_v23, %v4688_v13  ;;  %v4927_v29 = vld [vmem:[#allocation2 + $0x1e38] sm:$0xff] }
 0x2f3   :  { %v4689_v50 = vld [vmem:[#allocation5 + $0x1ce0] sm:$0xff]  ;;  %v4876_v43 = vadd.f32 %v4875_v37, %v4812_v48  ;;  %v4992_v38 = vld [vmem:[#allocation5 + $0x1e38] sm:$0xff]  ;;  %v4501_v51 = vand.u32 2147483647, %v4437_v30  ;;  %v4625_v58 = vld [vmem:[#allocation2 + $0x1ce8] sm:$0xff]  ;;  %v5055_v14 = vsub.f32 %v4926_v8, %v4991_v2  ;;  %v4564_v47 = vadd.f32 %v4563_v22, %v4500_v27 }
 0x2f4   :  { %v4690_v59 = vld [vmem:[#allocation5 + $0x1ce8] sm:$0xff]  ;;  %v5117_v28 = vand.u32 2147483647, %v5053_v61  ;;  %v8133_v9 = vld [vmem:[#allocation2 + $0x1b38] sm:$0xff]  ;;  %v4753_v1 = vsub.f32 %v4624_v15, %v4689_v50  ;;  %v4815_v17 = vand.u32 2147483647, %v4751_v3  ;;  %v4439_v41 = vsub.f32 %v4310_v60, %v4375_v46 }
 0x2f5   :  { %v4877_v11 = vadd.f32 %v4876_v43, %v4813_v44  ;;  %v4928_v5 = vld [vmem:[#allocation2 + $0x1e40] sm:$0xff]  ;;  %v4376_v53 = vld [vmem:[#allocation5 + $0x1b38] sm:$0xff]  ;;  %v4626_v48 = vld [vmem:[#allocation2 + $0x1cf0] sm:$0xff]  ;;  %v5056_v23 = vsub.f32 %v4927_v29, %v4992_v38  ;;  %v5118_v13 = vand.u32 2147483647, %v5054_v19  ;;  %v5180_v35 = vadd.f32 %v5179_v31, %v5116_v7 }
 0x2f6   :  { %v4993_v62 = vld [vmem:[#allocation5 + $0x1e40] sm:$0xff]  ;;  %v4691_v16 = vld [vmem:[#allocation5 + $0x1cf0] sm:$0xff]  ;;  %v4502_v20 = vand.u32 2147483647, %v4438_v36  ;;  %v4754_v30 = vsub.f32 %v4625_v58, %v4690_v59  ;;  %v4816_v37 = vand.u32 2147483647, %v4752_v63  ;;  %v4242_v27 = vadd.f32 %v4241_v18, %v8082_v12 }
 0x2f7   :  { %v4878_v2 = vadd.f32 %v4877_v11, %v4814_v52  ;;  %v4929_v61 = vld [vmem:[#allocation2 + $0x1e48] sm:$0xff]  ;;  %v4627_v22 = vld [vmem:[#allocation2 + $0x1cf8] sm:$0xff]  ;;  %v5057_v44 = vsub.f32 %v4928_v5, %v4993_v62  ;;  %v5119_v15 = vand.u32 2147483647, %v5055_v14  ;;  %v5181_v50 = vadd.f32 %v5180_v35, %v5117_v28  ;;  %v8136_v43 = vld [vmem:[#allocation2 + $0x1b40] sm:$0xff] }
 0x2f8   :  { %v4994_v8 = vld [vmem:[#allocation5 + $0x1e48] sm:$0xff]  ;;  %v4692_v3 = vld [vmem:[#allocation5 + $0x1cf8] sm:$0xff]  ;;  %v4565_v60 = vadd.f32 %v4564_v47, %v4501_v51  ;;  %v4755_v46 = vsub.f32 %v4626_v48, %v4691_v16  ;;  %v4817_v29 = vand.u32 2147483647, %v4753_v1  ;;  %v4930_v7 = vld [vmem:[#allocation2 + $0x1e50] sm:$0xff]  ;;  %v4440_v52 = vsub.f32 %v8133_v9, %v4376_v53 }
 0x2f9   :  { %v4879_v19 = vadd.f32 %v4878_v2, %v4815_v17  ;;  %v4995_v31 = vld [vmem:[#allocation5 + $0x1e50] sm:$0xff]  ;;  %v4377_v36 = vld [vmem:[#allocation5 + $0x1b40] sm:$0xff]  ;;  %v5058_v58 = vsub.f32 %v4929_v61, %v4994_v8  ;;  %v5120_v12 = vand.u32 2147483647, %v5056_v23  ;;  %v5182_v18 = vadd.f32 %v5181_v50, %v5118_v13  ;;  %v4931_v5 = vld [vmem:[#allocation2 + $0x1e58] sm:$0xff] }
 0x2fa   :  { %v4628_v63 = vld [vmem:[#allocation2 + $0x1d00] sm:$0xff]  ;;  %v4503_v59 = vand.u32 2147483647, %v4439_v41  ;;  %v4756_v11 = vsub.f32 %v4627_v22, %v4692_v3  ;;  %v4818_v14 = vand.u32 2147483647, %v4754_v30  ;;  %v4996_v62 = vld [vmem:[#allocation5 + $0x1e58] sm:$0xff]  ;;  %v4243_v51 = vadd.f32 %v4242_v27, %v8084_v40 }
 0x2fb   :  { %v4693_v38 = vld [vmem:[#allocation5 + $0x1d00] sm:$0xff]  ;;  %v4880_v28 = vadd.f32 %v4879_v19, %v4816_v37  ;;  %v4629_v47 = vld [vmem:[#allocation2 + $0x1d08] sm:$0xff]  ;;  %v5059_v17 = vsub.f32 %v4930_v7, %v4995_v31  ;;  %v5121_v48 = vand.u32 2147483647, %v5057_v44  ;;  %v5183_v16 = vadd.f32 %v5182_v18, %v5119_v15  ;;  %v4630_v37 = vld [vmem:[#allocation2 + $0x1d10] sm:$0xff] }
 0x2fc   :  { %v4694_v1 = vld [vmem:[#allocation5 + $0x1d08] sm:$0xff]  ;;  %v4566_v9 = vadd.f32 %v4565_v60, %v4502_v20  ;;  %v4757_v53 = vsub.f32 %v4628_v63, %v4693_v38  ;;  %v4819_v2 = vand.u32 2147483647, %v4755_v46  ;;  %v4932_v13 = vld [vmem:[#allocation2 + $0x1e60] sm:$0xff]  ;;  %v4441_v30 = vsub.f32 %v8136_v43, %v4377_v36  ;;  %v4695_v8 = vld [vmem:[#allocation5 + $0x1d10] sm:$0xff] }
 0x2fd   :  { %v8140_v35 = vld [vmem:[#allocation2 + $0x1b48] sm:$0xff]  ;;  %v4881_v23 = vadd.f32 %v4880_v28, %v4817_v29  ;;  %v4997_v41 = vld [vmem:[#allocation5 + $0x1e60] sm:$0xff]  ;;  %v5060_v22 = vsub.f32 %v4931_v5, %v4996_v62  ;;  %v5122_v40 = vand.u32 2147483647, %v5058_v58  ;;  %v5184_v27 = vadd.f32 %v5183_v16, %v5120_v12  ;;  %v4631_v60 = vld [vmem:[#allocation2 + $0x1d18] sm:$0xff] }
 0x2fe   :  { %v4378_v61 = vld [vmem:[#allocation5 + $0x1b48] sm:$0xff]  ;;  %v4504_v3 = vand.u32 2147483647, %v4440_v52  ;;  %v4758_v50 = vsub.f32 %v4629_v47, %v4694_v1  ;;  %v4820_v44 = vand.u32 2147483647, %v4756_v11  ;;  %v4244_v20 = vadd.f32 %v4243_v51, %v8086_v10  ;;  %v4696_v46 = vld [vmem:[#allocation5 + $0x1d18] sm:$0xff] }
 0x2ff   :  { %v4882_v15 = vadd.f32 %v4881_v23, %v4818_v14  ;;  %v4933_v19 = vld [vmem:[#allocation2 + $0x1e68] sm:$0xff]  ;;  %v5061_v29 = vsub.f32 %v4932_v13, %v4997_v41  ;;  %v5123_v31 = vand.u32 2147483647, %v5059_v17  ;;  %v5185_v63 = vadd.f32 %v5184_v27, %v5121_v48  ;;  %v8144_v38 = vld [vmem:[#allocation2 + $0x1b50] sm:$0xff]  ;;  %v4632_v14 = vld [vmem:[#allocation2 + $0x1d20] sm:$0xff] }
 0x300   :  { %v4998_v7 = vld [vmem:[#allocation5 + $0x1e68] sm:$0xff]  ;;  %v4567_v43 = vadd.f32 %v4566_v9, %v4503_v59  ;;  %v4759_v36 = vsub.f32 %v4630_v37, %v4695_v8  ;;  %v4821_v18 = vand.u32 2147483647, %v4757_v53  ;;  %v4934_v12 = vld [vmem:[#allocation2 + $0x1e70] sm:$0xff]  ;;  %v4442_v11 = vsub.f32 %v8140_v35, %v4378_v61  ;;  %v4697_v5 = vld [vmem:[#allocation5 + $0x1d20] sm:$0xff] }
 0x301   :  { %v4883_v58 = vadd.f32 %v4882_v15, %v4819_v2  ;;  %v4999_v52 = vld [vmem:[#allocation5 + $0x1e70] sm:$0xff]  ;;  %v5062_v62 = vsub.f32 %v4933_v19, %v4998_v7  ;;  %v5124_v10 = vand.u32 2147483647, %v5060_v22  ;;  %v5186_v51 = vadd.f32 %v5185_v63, %v5122_v40  ;;  %v4935_v16 = vld [vmem:[#allocation2 + $0x1e78] sm:$0xff]  ;;  %v4633_v9 = vld [vmem:[#allocation2 + $0x1d28] sm:$0xff] }
 0x302   :  { %v4379_v28 = vld [vmem:[#allocation5 + $0x1b50] sm:$0xff]  ;;  %v4505_v47 = vand.u32 2147483647, %v4441_v30  ;;  %v4760_v1 = vsub.f32 %v4631_v60, %v4696_v46  ;;  %v4822_v17 = vand.u32 2147483647, %v4758_v50  ;;  %v5000_v23 = vld [vmem:[#allocation5 + $0x1e78] sm:$0xff]  ;;  %v4245_v59 = vadd.f32 %v4244_v20, %v8094_v25 }
 0x303   :  { %v4884_v48 = vadd.f32 %v4883_v58, %v4820_v44  ;;  %v4698_v53 = vld [vmem:[#allocation5 + $0x1d28] sm:$0xff]  ;;  %v5063_v2 = vsub.f32 %v4934_v12, %v4999_v52  ;;  %v5125_v13 = vand.u32 2147483647, %v5061_v29  ;;  %v5187_v41 = vadd.f32 %v5186_v51, %v5123_v31  ;;  %v8148_v37 = vld [vmem:[#allocation2 + $0x1b58] sm:$0xff]  ;;  %v4936_v40 = vld [vmem:[#allocation2 + $0x1e80] sm:$0xff] }
 0x304   :  { %v4568_v35 = vadd.f32 %v4567_v43, %v4504_v3  ;;  %v4761_v61 = vsub.f32 %v4632_v14, %v4697_v5  ;;  %v4823_v8 = vand.u32 2147483647, %v4759_v36  ;;  %v5001_v30 = vld [vmem:[#allocation5 + $0x1e80] sm:$0xff]  ;;  %v4380_v27 = vld [vmem:[#allocation5 + $0x1b58] sm:$0xff]  ;;  %v4443_v50 = vsub.f32 %v8144_v38, %v4379_v28  ;;  %v4634_v44 = vld [vmem:[#allocation2 + $0x1d30] sm:$0xff] }
 0x305   :  { %v4885_v22 = vadd.f32 %v4884_v48, %v4821_v18  ;;  %v4699_v15 = vld [vmem:[#allocation5 + $0x1d30] sm:$0xff]  ;;  %v5064_v19 = vsub.f32 %v4935_v16, %v5000_v23  ;;  %v5126_v25 = vand.u32 2147483647, %v5062_v62  ;;  %v5188_v7 = vadd.f32 %v5187_v41, %v5124_v10  ;;  %v4937_v31 = vld [vmem:[#allocation2 + $0x1e88] sm:$0xff]  ;;  %v4635_v43 = vld [vmem:[#allocation2 + $0x1d38] sm:$0xff] }
 0x306   :  { %v4506_v20 = vand.u32 2147483647, %v4442_v11  ;;  %v4762_v60 = vsub.f32 %v4633_v9, %v4698_v53  ;;  %v4824_v46 = vand.u32 2147483647, %v4760_v1  ;;  %v5002_v63 = vld [vmem:[#allocation5 + $0x1e88] sm:$0xff]  ;;  %v4246_v3 = vadd.f32 %v4245_v59, %v8096_v21  ;;  %v4700_v36 = vld [vmem:[#allocation5 + $0x1d38] sm:$0xff] }
 0x307   :  { %v4886_v29 = vadd.f32 %v4885_v22, %v4822_v17  ;;  %v5065_v18 = vsub.f32 %v4936_v40, %v5001_v30  ;;  %v5127_v58 = vand.u32 2147483647, %v5063_v2  ;;  %v5189_v12 = vadd.f32 %v5188_v7, %v5125_v13  ;;  %v8152_v52 = vld [vmem:[#allocation2 + $0x1b60] sm:$0xff]  ;;  %v4938_v62 = vld [vmem:[#allocation2 + $0x1e90] sm:$0xff]  ;;  %v4939_v2 = vld [vmem:[#allocation2 + $0x1e98] sm:$0xff] }
 0x308   :  { %v4569_v38 = vadd.f32 %v4568_v35, %v4505_v47  ;;  %v4763_v28 = vsub.f32 %v4634_v44, %v4699_v15  ;;  %v4825_v14 = vand.u32 2147483647, %v4761_v61  ;;  %v5003_v11 = vld [vmem:[#allocation5 + $0x1e90] sm:$0xff]  ;;  %v8154_v10 = vld [vmem:[#allocation5 + $0x1b60] sm:$0xff]  ;;  %v4444_v51 = vsub.f32 %v8148_v37, %v4380_v27  ;;  %v5004_v47 = vld [vmem:[#allocation5 + $0x1e98] sm:$0xff] }
 0x309   :  { %v4887_v5 = vadd.f32 %v4886_v29, %v4823_v8  ;;  %v4636_v1 = vld [vmem:[#allocation2 + $0x1d40] sm:$0xff]  ;;  %v5066_v21 = vsub.f32 %v4937_v31, %v5002_v63  ;;  %v5128_v48 = vand.u32 2147483647, %v5064_v19  ;;  %v5190_v16 = vadd.f32 %v5189_v12, %v5126_v25  ;;  %v4637_v41 = vld [vmem:[#allocation2 + $0x1d48] sm:$0xff]  ;;  %v4638_v25 = vld [vmem:[#allocation2 + $0x1d50] sm:$0xff] }
 0x30a   :  { %v4701_v17 = vld [vmem:[#allocation5 + $0x1d40] sm:$0xff]  ;;  %v4507_v23 = vand.u32 2147483647, %v4443_v50  ;;  %v4764_v59 = vsub.f32 %v4635_v43, %v4700_v36  ;;  %v4826_v9 = vand.u32 2147483647, %v4762_v60  ;;  %v4247_v13 = vadd.f32 %v4246_v3, %v8100_v24  ;;  %v4702_v35 = vld [vmem:[#allocation5 + $0x1d48] sm:$0xff] }
 0x30b   :  { %v4888_v53 = vadd.f32 %v4887_v5, %v4824_v46  ;;  %v5067_v61 = vsub.f32 %v4938_v62, %v5003_v11  ;;  %v5129_v8 = vand.u32 2147483647, %v5065_v18  ;;  %v5191_v22 = vadd.f32 %v5190_v16, %v5127_v58  ;;  %v4940_v44 = vld [vmem:[#allocation2 + $0x1ea0] sm:$0xff]  ;;  %v8158_v19 = vld [vmem:[#allocation2 + $0x1b68] sm:$0xff]  ;;  %v4703_v7 = vld [vmem:[#allocation5 + $0x1d50] sm:$0xff] }
 0x30c   :  { %v4570_v40 = vadd.f32 %v4569_v38, %v4506_v20  ;;  %v4765_v37 = vsub.f32 %v4636_v1, %v4701_v17  ;;  %v4827_v30 = vand.u32 2147483647, %v4763_v28  ;;  %v5005_v15 = vld [vmem:[#allocation5 + $0x1ea0] sm:$0xff]  ;;  %v4445_v50 = vsub.f32 %v8152_v52, %v8154_v10  ;;  %v4941_v20 = vld [vmem:[#allocation2 + $0x1ea8] sm:$0xff]  ;;  %v4639_v58 = vld [vmem:[#allocation2 + $0x1d58] sm:$0xff] }
 0x30d   :  { %v4889_v27 = vadd.f32 %v4888_v53, %v4825_v14  ;;  %v5068_v60 = vsub.f32 %v4939_v2, %v5004_v47  ;;  %v5130_v24 = vand.u32 2147483647, %v5066_v21  ;;  %v5192_v46 = vadd.f32 %v5191_v22, %v5128_v48  ;;  %v5006_v43 = vld [vmem:[#allocation5 + $0x1ea8] sm:$0xff]  ;;  %v4704_v12 = vld [vmem:[#allocation5 + $0x1d58] sm:$0xff]  ;;  %v4942_v10 = vld [vmem:[#allocation2 + $0x1eb0] sm:$0xff] }
 0x30e   :  { %v4508_v29 = vand.u32 2147483647, %v4444_v51  ;;  %v4766_v31 = vsub.f32 %v4637_v41, %v4702_v35  ;;  %v4828_v63 = vand.u32 2147483647, %v4764_v59  ;;  %v4248_v36 = vadd.f32 %v4247_v13, %v8102_v49  ;;  %v4382_v18 = vld [vmem:[#allocation5 + $0x1b68] sm:$0xff]  ;;  %v5007_v1 = vld [vmem:[#allocation5 + $0x1eb0] sm:$0xff] }
 0x30f   :  { %v4890_v3 = vadd.f32 %v4889_v27, %v4826_v9  ;;  %v5069_v38 = vsub.f32 %v4940_v44, %v5005_v15  ;;  %v5131_v28 = vand.u32 2147483647, %v5067_v61  ;;  %v5193_v14 = vadd.f32 %v5192_v46, %v5129_v8  ;;  %v4640_v17 = vld [vmem:[#allocation2 + $0x1d60] sm:$0xff]  ;;  %v4943_v47 = vld [vmem:[#allocation2 + $0x1eb8] sm:$0xff]  ;;  %v4318_v13 = vld [vmem:[#allocation2 + $0x1b70] sm:$0xff] }
 0x310   :  { %v4571_v52 = vadd.f32 %v4570_v40, %v4507_v23  ;;  %v4767_v5 = vsub.f32 %v4638_v25, %v4703_v7  ;;  %v4829_v62 = vand.u32 2147483647, %v4765_v37  ;;  %v3926_v51 = vadd.f32 %v8130_v32, %v7869_v42  ;;  %v4705_v59 = vld [vmem:[#allocation5 + $0x1d60] sm:$0xff]  ;;  %v5008_v23 = vld [vmem:[#allocation5 + $0x1eb8] sm:$0xff]  ;;  %v4383_v41 = vld [vmem:[#allocation5 + $0x1b70] sm:$0xff] }
 0x311   :  { %v4891_v11 = vadd.f32 %v4890_v3, %v4827_v30  ;;  %v5070_v21 = vsub.f32 %v4941_v20, %v5006_v43  ;;  %v5132_v48 = vand.u32 2147483647, %v5068_v60  ;;  %v5194_v16 = vadd.f32 %v5193_v14, %v5130_v24  ;;  %v4944_v30 = vld [vmem:[#allocation2 + $0x1ec0] sm:$0xff]  ;;  %v4641_v44 = vld [vmem:[#allocation2 + $0x1d68] sm:$0xff] }
 0x312   :  { %v4446_v49 = vsub.f32 %v8158_v19, %v4382_v18  ;;  %v4768_v9 = vsub.f32 %v4639_v58, %v4704_v12  ;;  %v4830_v53 = vand.u32 2147483647, %v4766_v31  ;;  %v4509_v35 = vand.u32 2147483647, %v4445_v50  ;;  %v5009_v27 = vld [vmem:[#allocation5 + $0x1ec0] sm:$0xff]  ;;  %v4706_v15 = vld [vmem:[#allocation5 + $0x1d68] sm:$0xff] }
 0x313   :  { %v4892_v2 = vadd.f32 %v4891_v11, %v4828_v63  ;;  %v5071_v61 = vsub.f32 %v4942_v10, %v5007_v1  ;;  %v5133_v8 = vand.u32 2147483647, %v5069_v38  ;;  %v5195_v22 = vadd.f32 %v5194_v16, %v5131_v28  ;;  %v3996_v46 = vld [vmem:[#allocation2 + $0x1980] sm:$0xff]  ;;  %v4945_v3 = vld [vmem:[#allocation2 + $0x1ec8] sm:$0xff]  ;;  %v4384_v38 = vld [vmem:[#allocation5 + $0x1b78] sm:$0xff] }
 0x314   :  { %v4249_v42 = vadd.f32 %v4248_v36, %v8104_v57  ;;  %v4572_v32 = vadd.f32 %v4571_v52, %v4508_v29  ;;  %v4831_v40 = vand.u32 2147483647, %v4767_v5  ;;  %v4769_v19 = vsub.f32 %v4640_v17, %v4705_v59  ;;  %v5010_v20 = vld [vmem:[#allocation5 + $0x1ec8] sm:$0xff]  ;;  %v4061_v57 = vld [vmem:[#allocation5 + $0x1980] sm:$0xff]  ;;  %v4319_v29 = vld [vmem:[#allocation2 + $0x1b78] sm:$0xff] }
 0x315   :  { %v4893_v37 = vadd.f32 %v4892_v2, %v4829_v62  ;;  %v5072_v25 = vsub.f32 %v4943_v47, %v5008_v23  ;;  %v5134_v7 = vand.u32 2147483647, %v5070_v21  ;;  %v5196_v60 = vadd.f32 %v5195_v22, %v5132_v48  ;;  %v4946_v5 = vld [vmem:[#allocation2 + $0x1ed0] sm:$0xff]  ;;  %v3997_v59 = vld [vmem:[#allocation2 + $0x1988] sm:$0xff] }
 0x316   :  { %v3927_v24 = vadd.f32 %v3926_v51, %v7875_v26  ;;  %v4447_v50 = vsub.f32 %v4318_v13, %v4383_v41  ;;  %v4832_v31 = vand.u32 2147483647, %v4768_v9  ;;  %v4510_v43 = vand.u32 2147483647, %v4446_v49  ;;  %v5011_v26 = vld [vmem:[#allocation5 + $0x1ed0] sm:$0xff]  ;;  %v4062_v9 = vld [vmem:[#allocation5 + $0x1988] sm:$0xff] }
 0x317   :  { %v4894_v63 = vadd.f32 %v4893_v37, %v4830_v53  ;;  %v5073_v36 = vsub.f32 %v4944_v30, %v5009_v27  ;;  %v5135_v18 = vand.u32 2147483647, %v5071_v61  ;;  %v5197_v58 = vadd.f32 %v5196_v60, %v5133_v8  ;;  %v4642_v62 = vld [vmem:[#allocation2 + $0x1d70] sm:$0xff]  ;;  %v4320_v53 = vld [vmem:[#allocation2 + $0x1b80] sm:$0xff] }
 0x318   :  { %v4250_v12 = vadd.f32 %v4249_v42, %v8106_v34  ;;  %v4573_v28 = vadd.f32 %v4572_v32, %v4509_v35  ;;  %v4770_v14 = vsub.f32 %v4641_v44, %v4706_v15  ;;  %v4707_v11 = vld [vmem:[#allocation5 + $0x1d70] sm:$0xff]  ;;  %v4833_v10 = vand.u32 2147483647, %v4769_v19  ;;  %v4385_v35 = vld [vmem:[#allocation5 + $0x1b80] sm:$0xff]  ;;  %v5012_v42 = vld [vmem:[#allocation5 + $0x1ed8] sm:$0xff] }
 0x319   :  { %v4895_v52 = vadd.f32 %v4894_v63, %v4831_v40  ;;  %v5074_v1 = vsub.f32 %v4945_v3, %v5010_v20  ;;  %v5136_v51 = vand.u32 2147483647, %v5072_v25  ;;  %v5198_v17 = vadd.f32 %v5197_v58, %v5134_v7  ;;  %v4643_v32 = vld [vmem:[#allocation2 + $0x1d78] sm:$0xff]  ;;  %v8812_v27 = vld [vmem:[#allocation66_spill] sm:$0xff]  ;;  %v3998_v60 = vld [vmem:[#allocation2 + $0x1990] sm:$0xff] }
 0x31a   :  { %v3928_v21 = vadd.f32 %v3927_v24, %v7880_v45  ;;  %v4125_v48 = vsub.f32 %v3996_v46, %v4061_v57  ;;  %v8811_v16 = vsub.f32 %v8110_v55, %v8112_v6  ;;  %v4448_v2 = vsub.f32 %v4319_v29, %v4384_v38  ;;  %v4947_v45 = vld [vmem:[#allocation2 + $0x1ed8] sm:$0xff]  ;;  %v5013_v7 = vld [vmem:[#allocation5 + $0x1ee0] sm:$0xff]  ;;  %v4063_v24 = vld [vmem:[#allocation5 + $0x1990] sm:$0xff] }
 0x31b   :  { %v4896_v34 = vadd.f32 %v4895_v52, %v4832_v31  ;;  %v5075_v47 = vsub.f32 %v4946_v5, %v5011_v26  ;;  %v5137_v23 = vand.u32 2147483647, %v5073_v36  ;;  %v5199_v13 = vadd.f32 %v5198_v17, %v5135_v18  ;;  %v4708_v40 = vld [vmem:[#allocation5 + $0x1d78] sm:$0xff]  ;;  %v4321_v46 = vld [vmem:[#allocation2 + $0x1b88] sm:$0xff]  ;;  %v4644_v58 = vld [vmem:[#allocation2 + $0x1d80] sm:$0xff] }
 0x31c   :  { %v4188_v49 = vand.u32 2147483647, %v8811_v16  ;;  %v4251_v41 = vadd.f32 %v4250_v12, %v8118_v54  ;;  %v4511_v61 = vand.u32 2147483647, %v4447_v50  ;;  %v4574_v8 = vadd.f32 %v4573_v28, %v4510_v43  ;;  %v4948_v54 = vld [vmem:[#allocation2 + $0x1ee0] sm:$0xff]  ;;  %v4386_v57 = vld [vmem:[#allocation5 + $0x1b88] sm:$0xff] }
 0x31d   :  { %v4771_v22 = vsub.f32 %v4642_v62, %v4707_v11  ;;  %v4834_v55 = vand.u32 2147483647, %v4770_v14  ;;  %v4897_v6 = vadd.f32 %v4896_v34, %v4833_v10  ;;  %v5138_v37 = vand.u32 2147483647, %v5074_v1  ;;  %v4949_v18 = vld [vmem:[#allocation2 + $0x1ee8] sm:$0xff]  ;;  %v8813_v52 = vld [vmem:[#allocation68_spill] sm:$0xff] }
 0x31e   :  { %v5200_v30 = vadd.f32 %v5199_v13, %v5136_v51  ;;  %v3619_v44 = vadd.f32 %v8122_v0, %v8812_v27  ;;  %v3929_v15 = vadd.f32 %v3928_v21, %v7890_v4  ;;  %v4126_v19 = vsub.f32 %v3997_v59, %v4062_v9  ;;  %v5014_v0 = vld [vmem:[#allocation5 + $0x1ee8] sm:$0xff]  ;;  %v4709_v4 = vld [vmem:[#allocation5 + $0x1d80] sm:$0xff]  ;;  %v3999_v62 = vld [vmem:[#allocation2 + $0x1998] sm:$0xff] }
 0x31f   :  { %v4189_v25 = vand.u32 2147483647, %v4125_v48  ;;  %v4449_v50 = vsub.f32 %v4320_v53, %v4385_v35  ;;  %v5076_v31 = vsub.f32 %v4947_v45, %v5012_v42  ;;  %v5139_v63 = vand.u32 2147483647, %v5075_v47  ;;  %v4950_v1 = vld [vmem:[#allocation2 + $0x1ef0] sm:$0xff]  ;;  %v4064_v17 = vld [vmem:[#allocation5 + $0x1998] sm:$0xff] }
 0x320   :  { %v5201_v3 = vadd.f32 %v5200_v30, %v5137_v23  ;;  %v4252_v20 = vadd.f32 %v4251_v41, %v4188_v49  ;;  %v4512_v29 = vand.u32 2147483647, %v4448_v2  ;;  %v4575_v43 = vadd.f32 %v4574_v8, %v4511_v61  ;;  %v5015_v51 = vld [vmem:[#allocation5 + $0x1ef0] sm:$0xff]  ;;  %v4951_v23 = vld [vmem:[#allocation2 + $0x1ef8] sm:$0xff]  ;;  %v4000_v41 = vld [vmem:[#allocation2 + $0x19a0] sm:$0xff] }
 0x321   :  { %v4772_v36 = vsub.f32 %v4643_v32, %v4708_v40  ;;  %v4835_v12 = vand.u32 2147483647, %v4771_v22  ;;  %v4898_v38 = vadd.f32 %v4897_v6, %v4834_v55  ;;  %v5077_v28 = vsub.f32 %v4948_v54, %v5013_v7  ;;  %v4322_v21 = vld [vmem:[#allocation2 + $0x1b90] sm:$0xff]  ;;  %v5016_v13 = vld [vmem:[#allocation5 + $0x1ef8] sm:$0xff]  ;;  %v4710_v35 = vld [vmem:[#allocation5 + $0x1d88] sm:$0xff] }
 0x322   :  { %v5202_v14 = vadd.f32 %v5201_v3, %v5138_v37  ;;  %v8178_v5 = vadd.f32 %v3619_v44, %v8813_v52  ;;  %v3930_v26 = vadd.f32 %v3929_v15, %v7895_v33  ;;  %v4127_v11 = vsub.f32 %v3998_v60, %v4063_v24  ;;  %v4387_v48 = vld [vmem:[#allocation5 + $0x1b90] sm:$0xff]  ;;  %v4645_v33 = vld [vmem:[#allocation2 + $0x1d88] sm:$0xff]  ;;  %v4065_v32 = vld [vmem:[#allocation5 + $0x19a0] sm:$0xff] }
 0x323   :  { %v4190_v10 = vand.u32 2147483647, %v4126_v19  ;;  %v4450_v16 = vsub.f32 %v4321_v46, %v4386_v57  ;;  %v5078_v49 = vsub.f32 %v4949_v18, %v5014_v0  ;;  %v5140_v34 = vand.u32 2147483647, %v5076_v31  ;;  %v4952_v37 = vld [vmem:[#allocation2 + $0x1f00] sm:$0xff]  ;;  %v4323_v27 = vld [vmem:[#allocation2 + $0x1b98] sm:$0xff] }
 0x324   :  { %v5203_v59 = vadd.f32 %v5202_v14, %v5139_v63  ;;  %v4253_v9 = vadd.f32 %v4252_v20, %v4189_v25  ;;  %v4513_v53 = vand.u32 2147483647, %v4449_v50  ;;  %v4576_v2 = vadd.f32 %v4575_v43, %v4512_v29  ;;  %v5017_v30 = vld [vmem:[#allocation5 + $0x1f00] sm:$0xff]  ;;  %v4388_v44 = vld [vmem:[#allocation5 + $0x1b98] sm:$0xff]  ;;  %v4953_v50 = vld [vmem:[#allocation2 + $0x1f08] sm:$0xff] }
 0x325   :  { %v4773_v47 = vsub.f32 %v4644_v58, %v4709_v4  ;;  %v4836_v61 = vand.u32 2147483647, %v4772_v36  ;;  %v4899_v8 = vadd.f32 %v4898_v38, %v4835_v12  ;;  %v5079_v22 = vsub.f32 %v4950_v1, %v5015_v51  ;;  %v5018_v31 = vld [vmem:[#allocation5 + $0x1f08] sm:$0xff]  ;;  %v4711_v3 = vld [vmem:[#allocation5 + $0x1d90] sm:$0xff]  ;;  %v4389_v14 = vld [vmem:[#allocation5 + $0x1ba0] sm:$0xff] }
 0x326   :  { %v5141_v45 = vand.u32 2147483647, %v5077_v28  ;;  %v3931_v42 = vadd.f32 %v3930_v26, %v7902_v56  ;;  %v4128_v40 = vsub.f32 %v3999_v62, %v4064_v17  ;;  %v4191_v55 = vand.u32 2147483647, %v4127_v11  ;;  %v4001_v63 = vld [vmem:[#allocation2 + $0x19a8] sm:$0xff]  ;;  %v4646_v56 = vld [vmem:[#allocation2 + $0x1d90] sm:$0xff] }
 0x327   :  { %v4451_v6 = vsub.f32 %v4322_v21, %v4387_v48  ;;  %v4514_v15 = vand.u32 2147483647, %v4450_v16  ;;  %v5080_v19 = vsub.f32 %v4951_v23, %v5016_v13  ;;  %v5142_v25 = vand.u32 2147483647, %v5078_v49  ;;  %v4066_v18 = vld [vmem:[#allocation5 + $0x19a8] sm:$0xff]  ;;  %v4954_v12 = vld [vmem:[#allocation2 + $0x1f10] sm:$0xff] }
 0x328   :  { %v5204_v54 = vadd.f32 %v5203_v59, %v5140_v34  ;;  %v4254_v7 = vadd.f32 %v4253_v9, %v4190_v10  ;;  %v4577_v60 = vadd.f32 %v4576_v2, %v4513_v53  ;;  %v4774_v24 = vsub.f32 %v4645_v33, %v4710_v35  ;;  %v5019_v38 = vld [vmem:[#allocation5 + $0x1f10] sm:$0xff]  ;;  %v4324_v28 = vld [vmem:[#allocation2 + $0x1ba0] sm:$0xff]  ;;  %v4955_v21 = vld [vmem:[#allocation2 + $0x1f18] sm:$0xff] }
 0x329   :  { %v4837_v46 = vand.u32 2147483647, %v4773_v47  ;;  %v4900_v20 = vadd.f32 %v4899_v8, %v4836_v61  ;;  %v5081_v57 = vsub.f32 %v4952_v37, %v5017_v30  ;;  %v5143_v29 = vand.u32 2147483647, %v5079_v22  ;;  %v5020_v48 = vld [vmem:[#allocation5 + $0x1f18] sm:$0xff]  ;;  %v4002_v16 = vld [vmem:[#allocation2 + $0x19b0] sm:$0xff] }
 0x32a   :  { %v5205_v43 = vadd.f32 %v5204_v54, %v5141_v45  ;;  %v3932_v36 = vadd.f32 %v3931_v42, %v7914_v39  ;;  %v4129_v0 = vsub.f32 %v4000_v41, %v4065_v32  ;;  %v4192_v58 = vand.u32 2147483647, %v4128_v40  ;;  %v4647_v39 = vld [vmem:[#allocation2 + $0x1d98] sm:$0xff]  ;;  %v8814_v2 = vld [vmem:[#allocation63_spill] sm:$0xff]  ;;  %v4067_v23 = vld [vmem:[#allocation5 + $0x19b0] sm:$0xff] }
 0x32b   :  { %v4452_v4 = vsub.f32 %v4323_v27, %v4388_v44  ;;  %v4515_v52 = vand.u32 2147483647, %v4451_v6  ;;  %v5082_v26 = vsub.f32 %v4953_v50, %v5018_v31  ;;  %v5144_v62 = vand.u32 2147483647, %v5080_v19  ;;  %v4712_v49 = vld [vmem:[#allocation5 + $0x1d98] sm:$0xff]  ;;  %v4956_v35 = vld [vmem:[#allocation2 + $0x1f20] sm:$0xff] }
 0x32c   :  { %v5206_v11 = vadd.f32 %v5205_v43, %v5142_v25  ;;  %v4255_v10 = vadd.f32 %v4254_v7, %v4191_v55  ;;  %v4578_v1 = vadd.f32 %v4577_v60, %v4514_v15  ;;  %v4775_v51 = vsub.f32 %v4646_v56, %v4711_v3  ;;  %v5021_v61 = vld [vmem:[#allocation5 + $0x1f20] sm:$0xff]  ;;  %v4325_v8 = vld [vmem:[#allocation2 + $0x1ba8] sm:$0xff]  ;;  %v4003_v15 = vld [vmem:[#allocation2 + $0x19b8] sm:$0xff] }
 0x32d   :  { %v4838_v17 = vand.u32 2147483647, %v4774_v24  ;;  %v4901_v34 = vadd.f32 %v4900_v20, %v4837_v46  ;;  %v5083_v59 = vsub.f32 %v4954_v12, %v5019_v38  ;;  %v5145_v9 = vand.u32 2147483647, %v5081_v57  ;;  %v4390_v22 = vld [vmem:[#allocation5 + $0x1ba8] sm:$0xff]  ;;  %v4648_v19 = vld [vmem:[#allocation2 + $0x1da0] sm:$0xff] }
 0x32e   :  { %v5207_v53 = vadd.f32 %v5206_v11, %v5143_v29  ;;  %v3933_v47 = vadd.f32 %v3932_v36, %v8814_v2  ;;  %v4130_v13 = vsub.f32 %v4001_v63, %v4066_v18  ;;  %v4193_v41 = vand.u32 2147483647, %v4129_v0  ;;  %v4957_v27 = vld [vmem:[#allocation2 + $0x1f28] sm:$0xff]  ;;  %v4713_v25 = vld [vmem:[#allocation5 + $0x1da0] sm:$0xff]  ;;  %v4068_v31 = vld [vmem:[#allocation5 + $0x19b8] sm:$0xff] }
 0x32f   :  { %v4453_v33 = vsub.f32 %v4324_v28, %v4389_v14  ;;  %v4516_v45 = vand.u32 2147483647, %v4452_v4  ;;  %v5084_v42 = vsub.f32 %v4955_v21, %v5020_v48  ;;  %v5146_v32 = vand.u32 2147483647, %v5082_v26  ;;  %v5022_v44 = vld [vmem:[#allocation5 + $0x1f28] sm:$0xff]  ;;  %v4958_v20 = vld [vmem:[#allocation2 + $0x1f30] sm:$0xff] }
 0x330   :  { %v5208_v40 = vadd.f32 %v5207_v53, %v5144_v62  ;;  %v4256_v55 = vadd.f32 %v4255_v10, %v4192_v58  ;;  %v4579_v6 = vadd.f32 %v4578_v1, %v4515_v52  ;;  %v4776_v37 = vsub.f32 %v4647_v39, %v4712_v49  ;;  %v8815_v46 = vld [vmem:[#allocation19_spill] sm:$0xff]  ;;  %v5023_v57 = vld [vmem:[#allocation5 + $0x1f30] sm:$0xff]  ;;  %v4959_v14 = vld [vmem:[#allocation2 + $0x1f38] sm:$0xff] }
 0x331   :  { %v4839_v30 = vand.u32 2147483647, %v4775_v51  ;;  %v4902_v54 = vadd.f32 %v4901_v34, %v4838_v17  ;;  %v5085_v7 = vsub.f32 %v4956_v35, %v5021_v61  ;;  %v5147_v60 = vand.u32 2147483647, %v5083_v59  ;;  %v4326_v29 = vld [vmem:[#allocation2 + $0x1bb0] sm:$0xff]  ;;  %v5024_v52 = vld [vmem:[#allocation5 + $0x1f38] sm:$0xff] }
 0x332   :  { %v5209_v24 = vadd.f32 %v5208_v40, %v5145_v9  ;;  %v3934_v50 = vadd.f32 %v3933_v47, %v8815_v46  ;;  %v4131_v63 = vsub.f32 %v4002_v16, %v4067_v23  ;;  %v4194_v56 = vand.u32 2147483647, %v4130_v13  ;;  %v4391_v43 = vld [vmem:[#allocation5 + $0x1bb0] sm:$0xff]  ;;  %v4004_v26 = vld [vmem:[#allocation2 + $0x19c0] sm:$0xff]  ;;  %v4649_v62 = vld [vmem:[#allocation2 + $0x1da8] sm:$0xff] }
 0x333   :  { %v4454_v3 = vsub.f32 %v4325_v8, %v4390_v22  ;;  %v4517_v36 = vand.u32 2147483647, %v4453_v33  ;;  %v5086_v18 = vsub.f32 %v4957_v27, %v5022_v44  ;;  %v5148_v0 = vand.u32 2147483647, %v5084_v42  ;;  %v4714_v11 = vld [vmem:[#allocation5 + $0x1da8] sm:$0xff]  ;;  %v8816_v21 = vld [vmem:[#allocation16_spill] sm:$0xff] }
 0x334   :  { %v5210_v58 = vadd.f32 %v5209_v24, %v5146_v32  ;;  %v4257_v4 = vadd.f32 %v4256_v55, %v4193_v41  ;;  %v4580_v12 = vadd.f32 %v4579_v6, %v4516_v45  ;;  %v4777_v38 = vsub.f32 %v4648_v19, %v4713_v25  ;;  %v4069_v16 = vld [vmem:[#allocation5 + $0x19c0] sm:$0xff]  ;;  %v4327_v53 = vld [vmem:[#allocation2 + $0x1bb8] sm:$0xff]  ;;  %v4961_v22 = vld [vmem:[#allocation2 + $0x1f48] sm:$0xff] }
 0x335   :  { %v4840_v28 = vand.u32 2147483647, %v4776_v37  ;;  %v4903_v10 = vadd.f32 %v4902_v54, %v4839_v30  ;;  %v5087_v1 = vsub.f32 %v4958_v20, %v5023_v57  ;;  %v5149_v51 = vand.u32 2147483647, %v5085_v7  ;;  %v4960_v59 = vld [vmem:[#allocation2 + $0x1f40] sm:$0xff]  ;;  %v4392_v2 = vld [vmem:[#allocation5 + $0x1bb8] sm:$0xff] }
 0x336   :  { %v5211_v17 = vadd.f32 %v5210_v58, %v5147_v60  ;;  %v3935_v48 = vadd.f32 %v3934_v50, %v8816_v21  ;;  %v4132_v39 = vsub.f32 %v4003_v15, %v4068_v31  ;;  %v4195_v49 = vand.u32 2147483647, %v4131_v63  ;;  %v5025_v9 = vld [vmem:[#allocation5 + $0x1f40] sm:$0xff]  ;;  %v5026_v45 = vld [vmem:[#allocation5 + $0x1f48] sm:$0xff]  ;;  %v4650_v32 = vld [vmem:[#allocation2 + $0x1db0] sm:$0xff] }
 0x337   :  { %v4455_v34 = vsub.f32 %v4326_v29, %v4391_v43  ;;  %v4518_v47 = vand.u32 2147483647, %v4454_v3  ;;  %v5088_v23 = vsub.f32 %v4959_v14, %v5024_v52  ;;  %v5150_v13 = vand.u32 2147483647, %v5086_v18  ;;  %v4005_v42 = vld [vmem:[#allocation2 + $0x19c8] sm:$0xff]  ;;  %v4715_v40 = vld [vmem:[#allocation5 + $0x1db0] sm:$0xff] }
 0x338   :  { %v5212_v41 = vadd.f32 %v5211_v17, %v5148_v0  ;;  %v4258_v33 = vadd.f32 %v4257_v4, %v4194_v56  ;;  %v4581_v35 = vadd.f32 %v4580_v12, %v4517_v36  ;;  %v4778_v61 = vsub.f32 %v4649_v62, %v4714_v11  ;;  %v8817_v27 = vld [vmem:[#allocation24_spill] sm:$0xff]  ;;  %v4070_v15 = vld [vmem:[#allocation5 + $0x19c8] sm:$0xff]  ;;  %v4328_v24 = vld [vmem:[#allocation2 + $0x1bc0] sm:$0xff] }
 0x339   :  { %v4841_v8 = vand.u32 2147483647, %v4777_v38  ;;  %v4904_v55 = vadd.f32 %v4903_v10, %v4840_v28  ;;  %v5089_v6 = vsub.f32 %v4960_v59, %v5025_v9  ;;  %v5151_v37 = vand.u32 2147483647, %v5087_v1  ;;  %v4962_v7 = vld [vmem:[#allocation2 + $0x1f50] sm:$0xff]  ;;  %v4393_v46 = vld [vmem:[#allocation5 + $0x1bc0] sm:$0xff] }
 0x33a   :  { %v5213_v30 = vadd.f32 %v5212_v41, %v5149_v51  ;;  %v3936_v44 = vadd.f32 %v3935_v48, %v8817_v27  ;;  %v4133_v19 = vsub.f32 %v4004_v26, %v4069_v16  ;;  %v4196_v25 = vand.u32 2147483647, %v4132_v39  ;;  %v5027_v60 = vld [vmem:[#allocation5 + $0x1f50] sm:$0xff]  ;;  %v4963_v43 = vld [vmem:[#allocation2 + $0x1f58] sm:$0xff]  ;;  %v8818_v14 = vld [vmem:[#allocation71_spill] sm:$0xff] }
 0x33b   :  { %v4456_v54 = vsub.f32 %v4327_v53, %v4392_v2  ;;  %v4519_v50 = vand.u32 2147483647, %v4455_v34  ;;  %v5090_v31 = vsub.f32 %v4961_v22, %v5026_v45  ;;  %v5152_v63 = vand.u32 2147483647, %v5088_v23  ;;  %v5028_v36 = vld [vmem:[#allocation5 + $0x1f58] sm:$0xff]  ;;  %v4006_v18 = vld [vmem:[#allocation2 + $0x19d0] sm:$0xff] }
 0x33c   :  { %v5214_v56 = vadd.f32 %v5213_v30, %v5150_v13  ;;  %v4259_v3 = vadd.f32 %v4258_v33, %v4195_v49  ;;  %v4582_v20 = vadd.f32 %v4581_v35, %v4518_v47  ;;  %v4779_v57 = vsub.f32 %v4650_v32, %v4715_v40  ;;  %v4651_v0 = vld [vmem:[#allocation2 + $0x1db8] sm:$0xff]  ;;  %v4071_v26 = vld [vmem:[#allocation5 + $0x19d0] sm:$0xff]  ;;  %v4964_v1 = vld [vmem:[#allocation2 + $0x1f60] sm:$0xff] }
 0x33d   :  { %v4842_v29 = vand.u32 2147483647, %v4778_v61  ;;  %v4716_v58 = vld [vmem:[#allocation5 + $0x1db8] sm:$0xff]  ;;  %v4905_v4 = vadd.f32 %v4904_v55, %v4841_v8  ;;  %v5091_v12 = vsub.f32 %v4962_v7, %v5027_v60  ;;  %v5153_v38 = vand.u32 2147483647, %v5089_v6  ;;  %v5029_v51 = vld [vmem:[#allocation5 + $0x1f60] sm:$0xff] }
 0x33e   :  { %v5215_v28 = vadd.f32 %v5214_v56, %v5151_v37  ;;  %v3937_v52 = vadd.f32 %v3936_v44, %v8818_v14  ;;  %v4134_v62 = vsub.f32 %v4005_v42, %v4070_v15  ;;  %v4197_v11 = vand.u32 2147483647, %v4133_v19  ;;  %v4329_v17 = vld [vmem:[#allocation2 + $0x1bc8] sm:$0xff]  ;;  %v4007_v23 = vld [vmem:[#allocation2 + $0x19d8] sm:$0xff]  ;;  %v4652_v13 = vld [vmem:[#allocation2 + $0x1dc0] sm:$0xff] }
 0x33f   :  { %v4457_v10 = vsub.f32 %v4328_v24, %v4393_v46  ;;  %v4394_v21 = vld [vmem:[#allocation5 + $0x1bc8] sm:$0xff]  ;;  %v4520_v48 = vand.u32 2147483647, %v4456_v54  ;;  %v5092_v16 = vsub.f32 %v4963_v43, %v5028_v36  ;;  %v5154_v39 = vand.u32 2147483647, %v5090_v31  ;;  %v4717_v41 = vld [vmem:[#allocation5 + $0x1dc0] sm:$0xff] }
 0x340   :  { %v5216_v49 = vadd.f32 %v5215_v28, %v5152_v63  ;;  %v4260_v34 = vadd.f32 %v4259_v3, %v4196_v25  ;;  %v4583_v59 = vadd.f32 %v4582_v20, %v4519_v50  ;;  %v4780_v9 = vsub.f32 %v4651_v0, %v4716_v58  ;;  %v4965_v2 = vld [vmem:[#allocation2 + $0x1f68] sm:$0xff]  ;;  %v8819_v22 = vld [vmem:[#allocation56_spill] sm:$0xff]  ;;  %v4072_v42 = vld [vmem:[#allocation5 + $0x19d8] sm:$0xff] }
 0x341   :  { %v4843_v53 = vand.u32 2147483647, %v4779_v57  ;;  %v5030_v47 = vld [vmem:[#allocation5 + $0x1f68] sm:$0xff]  ;;  %v4906_v33 = vadd.f32 %v4905_v4, %v4842_v29  ;;  %v5093_v35 = vsub.f32 %v4964_v1, %v5029_v51  ;;  %v5155_v61 = vand.u32 2147483647, %v5091_v12  ;;  %v4966_v6 = vld [vmem:[#allocation2 + $0x1f70] sm:$0xff] }
 0x342   :  { %v5217_v8 = vadd.f32 %v5216_v49, %v5153_v38  ;;  %v3938_v45 = vadd.f32 %v3937_v52, %v8819_v22  ;;  %v4135_v32 = vsub.f32 %v4006_v18, %v4071_v26  ;;  %v4198_v40 = vand.u32 2147483647, %v4134_v62  ;;  %v5031_v37 = vld [vmem:[#allocation5 + $0x1f70] sm:$0xff]  ;;  %v4967_v46 = vld [vmem:[#allocation2 + $0x1f78] sm:$0xff]  ;;  %v4008_v31 = vld [vmem:[#allocation2 + $0x19e0] sm:$0xff] }
 0x343   :  { %v4458_v55 = vsub.f32 %v4329_v17, %v4394_v21  ;;  %v4330_v30 = vld [vmem:[#allocation2 + $0x1bd0] sm:$0xff]  ;;  %v4521_v44 = vand.u32 2147483647, %v4457_v10  ;;  %v5094_v15 = vsub.f32 %v4965_v2, %v5030_v47  ;;  %v5156_v19 = vand.u32 2147483647, %v5092_v16  ;;  %v5032_v50 = vld [vmem:[#allocation5 + $0x1f78] sm:$0xff] }
 0x344   :  { %v4395_v27 = vld [vmem:[#allocation5 + $0x1bd0] sm:$0xff]  ;;  %v5218_v25 = vadd.f32 %v5217_v8, %v5154_v39  ;;  %v4261_v54 = vadd.f32 %v4260_v34, %v4197_v11  ;;  %v4584_v7 = vadd.f32 %v4583_v59, %v4520_v48  ;;  %v4781_v60 = vsub.f32 %v4652_v13, %v4717_v41  ;;  %v4653_v63 = vld [vmem:[#allocation2 + $0x1dc8] sm:$0xff]  ;;  %v4073_v18 = vld [vmem:[#allocation5 + $0x19e0] sm:$0xff] }
 0x345   :  { %v4844_v24 = vand.u32 2147483647, %v4780_v9  ;;  %v4718_v56 = vld [vmem:[#allocation5 + $0x1dc8] sm:$0xff]  ;;  %v4907_v3 = vadd.f32 %v4906_v33, %v4843_v53  ;;  %v5095_v20 = vsub.f32 %v4966_v6, %v5031_v37  ;;  %v5157_v57 = vand.u32 2147483647, %v5093_v35  ;;  %v4968_v12 = vld [vmem:[#allocation2 + $0x1f80] sm:$0xff] }
 0x346   :  { %v5219_v29 = vadd.f32 %v5218_v25, %v5155_v61  ;;  %v8820_v43 = vld [vmem:[#allocation35_spill] sm:$0xff]  ;;  %v4136_v0 = vsub.f32 %v4007_v23, %v4072_v42  ;;  %v4199_v58 = vand.u32 2147483647, %v4135_v32  ;;  %v4459_v4 = vsub.f32 %v4330_v30, %v4395_v27  ;;  %v5033_v38 = vld [vmem:[#allocation5 + $0x1f80] sm:$0xff]  ;;  %v4331_v28 = vld [vmem:[#allocation2 + $0x1bd8] sm:$0xff] }
 0x347   :  { %v3939_v36 = vadd.f32 %v3938_v45, %v8820_v43  ;;  %v4396_v14 = vld [vmem:[#allocation5 + $0x1bd8] sm:$0xff]  ;;  %v4522_v52 = vand.u32 2147483647, %v4458_v55  ;;  %v5096_v26 = vsub.f32 %v4967_v46, %v5032_v50  ;;  %v5158_v62 = vand.u32 2147483647, %v5094_v15  ;;  %v4969_v21 = vld [vmem:[#allocation2 + $0x1f88] sm:$0xff] }
 0x348   :  { %v5220_v11 = vadd.f32 %v5219_v29, %v5156_v19  ;;  %v4262_v10 = vadd.f32 %v4261_v54, %v4198_v40  ;;  %v4585_v1 = vadd.f32 %v4584_v7, %v4521_v44  ;;  %v4782_v51 = vsub.f32 %v4653_v63, %v4718_v56  ;;  %v5034_v48 = vld [vmem:[#allocation5 + $0x1f88] sm:$0xff]  ;;  %v4654_v39 = vld [vmem:[#allocation2 + $0x1dd0] sm:$0xff]  ;;  %v8821_v2 = vld [vmem:[#allocation70_spill] sm:$0xff] }
 0x349   :  { %v4845_v17 = vand.u32 2147483647, %v4781_v60  ;;  %v4009_v16 = vld [vmem:[#allocation2 + $0x19e8] sm:$0xff]  ;;  %v4719_v49 = vld [vmem:[#allocation5 + $0x1dd0] sm:$0xff]  ;;  %v4908_v34 = vadd.f32 %v4907_v3, %v4844_v24  ;;  %v5097_v59 = vsub.f32 %v4968_v12, %v5033_v38  ;;  %v5159_v9 = vand.u32 2147483647, %v5095_v20 }
 0x34a   :  { %v5221_v53 = vadd.f32 %v5220_v11, %v5157_v57  ;;  %v3940_v47 = vadd.f32 %v3939_v36, %v8821_v2  ;;  %v4074_v23 = vld [vmem:[#allocation5 + $0x19e8] sm:$0xff]  ;;  %v4137_v13 = vsub.f32 %v4008_v31, %v4073_v18  ;;  %v4200_v41 = vand.u32 2147483647, %v4136_v0  ;;  %v4970_v35 = vld [vmem:[#allocation2 + $0x1f90] sm:$0xff]  ;;  %v4332_v8 = vld [vmem:[#allocation2 + $0x1be0] sm:$0xff] }
 0x34b   :  { %v4460_v33 = vsub.f32 %v4331_v28, %v4396_v14  ;;  %v5035_v61 = vld [vmem:[#allocation5 + $0x1f90] sm:$0xff]  ;;  %v4397_v22 = vld [vmem:[#allocation5 + $0x1be0] sm:$0xff]  ;;  %v4523_v45 = vand.u32 2147483647, %v4459_v4  ;;  %v5098_v42 = vsub.f32 %v4969_v21, %v5034_v48  ;;  %v5160_v32 = vand.u32 2147483647, %v5096_v26 }
 0x34c   :  { %v5222_v40 = vadd.f32 %v5221_v53, %v5158_v62  ;;  %v4263_v55 = vadd.f32 %v4262_v10, %v4199_v58  ;;  %v4586_v6 = vadd.f32 %v4585_v1, %v4522_v52  ;;  %v4783_v37 = vsub.f32 %v4654_v39, %v4719_v49  ;;  %v4971_v27 = vld [vmem:[#allocation2 + $0x1f98] sm:$0xff]  ;;  %v4010_v15 = vld [vmem:[#allocation2 + $0x19f0] sm:$0xff]  ;;  %v4972_v20 = vld [vmem:[#allocation2 + $0x1fa0] sm:$0xff] }
 0x34d   :  { %v4846_v30 = vand.u32 2147483647, %v4782_v51  ;;  %v5036_v44 = vld [vmem:[#allocation5 + $0x1f98] sm:$0xff]  ;;  %v4909_v54 = vadd.f32 %v4908_v34, %v4845_v17  ;;  %v5099_v7 = vsub.f32 %v4970_v35, %v5035_v61  ;;  %v5161_v60 = vand.u32 2147483647, %v5097_v59  ;;  %v4075_v31 = vld [vmem:[#allocation5 + $0x19f0] sm:$0xff] }
 0x34e   :  { %v4655_v19 = vld [vmem:[#allocation2 + $0x1dd8] sm:$0xff]  ;;  %v5223_v24 = vadd.f32 %v5222_v40, %v5159_v9  ;;  %v4138_v63 = vsub.f32 %v4009_v16, %v4074_v23  ;;  %v4201_v56 = vand.u32 2147483647, %v4137_v13  ;;  %v4461_v3 = vsub.f32 %v4332_v8, %v4397_v22  ;;  %v5037_v57 = vld [vmem:[#allocation5 + $0x1fa0] sm:$0xff]  ;;  %v4333_v29 = vld [vmem:[#allocation2 + $0x1be8] sm:$0xff] }
 0x34f   :  { %v4720_v25 = vld [vmem:[#allocation5 + $0x1dd8] sm:$0xff]  ;;  %v4398_v43 = vld [vmem:[#allocation5 + $0x1be8] sm:$0xff]  ;;  %v4524_v36 = vand.u32 2147483647, %v4460_v33  ;;  %v5100_v18 = vsub.f32 %v4971_v27, %v5036_v44  ;;  %v5162_v0 = vand.u32 2147483647, %v5098_v42  ;;  %v4264_v4 = vadd.f32 %v4263_v55, %v4200_v41 }
 0x350   :  { %v8822_v46 = vld [vmem:[#allocation37_spill] sm:$0xff]  ;;  %v5224_v58 = vadd.f32 %v5223_v24, %v5160_v32  ;;  %v4587_v12 = vadd.f32 %v4586_v6, %v4523_v45  ;;  %v4784_v38 = vsub.f32 %v4655_v19, %v4720_v25  ;;  %v4847_v28 = vand.u32 2147483647, %v4783_v37  ;;  %v4973_v14 = vld [vmem:[#allocation2 + $0x1fa8] sm:$0xff]  ;;  %v4656_v62 = vld [vmem:[#allocation2 + $0x1de0] sm:$0xff] }
 0x351   :  { %v3941_v50 = vadd.f32 %v3940_v47, %v8822_v46  ;;  %v5038_v52 = vld [vmem:[#allocation5 + $0x1fa8] sm:$0xff]  ;;  %v4011_v26 = vld [vmem:[#allocation2 + $0x19f8] sm:$0xff]  ;;  %v4721_v11 = vld [vmem:[#allocation5 + $0x1de0] sm:$0xff]  ;;  %v4910_v10 = vadd.f32 %v4909_v54, %v4846_v30  ;;  %v5101_v1 = vsub.f32 %v4972_v20, %v5037_v57  ;;  %v5163_v51 = vand.u32 2147483647, %v5099_v7 }
 0x352   :  { %v5225_v17 = vadd.f32 %v5224_v58, %v5161_v60  ;;  %v8823_v21 = vld [vmem:[#allocation40_spill] sm:$0xff]  ;;  %v4076_v16 = vld [vmem:[#allocation5 + $0x19f8] sm:$0xff]  ;;  %v4139_v39 = vsub.f32 %v4010_v15, %v4075_v31  ;;  %v4202_v49 = vand.u32 2147483647, %v4138_v63  ;;  %v4462_v34 = vsub.f32 %v4333_v29, %v4398_v43  ;;  %v4657_v42 = vld [vmem:[#allocation2 + $0x1de8] sm:$0xff] }
 0x353   :  { %v3942_v48 = vadd.f32 %v3941_v50, %v8823_v21  ;;  %v4974_v59 = vld [vmem:[#allocation2 + $0x1fb0] sm:$0xff]  ;;  %v4525_v47 = vand.u32 2147483647, %v4461_v3  ;;  %v5102_v23 = vsub.f32 %v4973_v14, %v5038_v52  ;;  %v5164_v13 = vand.u32 2147483647, %v5100_v18  ;;  %v4975_v22 = vld [vmem:[#allocation2 + $0x1fb8] sm:$0xff] }
 0x354   :  { %v5039_v9 = vld [vmem:[#allocation5 + $0x1fb0] sm:$0xff]  ;;  %v5226_v41 = vadd.f32 %v5225_v17, %v5162_v0  ;;  %v4265_v33 = vadd.f32 %v4264_v4, %v4201_v56  ;;  %v4588_v35 = vadd.f32 %v4587_v12, %v4524_v36  ;;  %v4785_v61 = vsub.f32 %v4656_v62, %v4721_v11  ;;  %v5040_v45 = vld [vmem:[#allocation5 + $0x1fb8] sm:$0xff]  ;;  %v4722_v32 = vld [vmem:[#allocation5 + $0x1de8] sm:$0xff] }
 0x355   :  { %v4334_v53 = vld [vmem:[#allocation2 + $0x1bf0] sm:$0xff]  ;;  %v4848_v8 = vand.u32 2147483647, %v4784_v38  ;;  %v4911_v40 = vadd.f32 %v4910_v10, %v4847_v28  ;;  %v5103_v55 = vsub.f32 %v4974_v59, %v5039_v9  ;;  %v5165_v6 = vand.u32 2147483647, %v5101_v1  ;;  %v8824_v30 = vld [vmem:[#allocation45_spill] sm:$0xff] }
 0x356   :  { %v4399_v2 = vld [vmem:[#allocation5 + $0x1bf0] sm:$0xff]  ;;  %v5227_v37 = vadd.f32 %v5226_v41, %v5163_v51  ;;  %v3943_v27 = vadd.f32 %v3942_v48, %v8824_v30  ;;  %v4140_v44 = vsub.f32 %v4011_v26, %v4076_v16  ;;  %v4203_v15 = vand.u32 2147483647, %v4139_v39  ;;  %v4976_v25 = vld [vmem:[#allocation2 + $0x1fc0] sm:$0xff]  ;;  %v4335_v7 = vld [vmem:[#allocation2 + $0x1bf8] sm:$0xff] }
 0x357   :  { %v4463_v19 = vsub.f32 %v4334_v53, %v4399_v2  ;;  %v5041_v54 = vld [vmem:[#allocation5 + $0x1fc0] sm:$0xff]  ;;  %v4400_v60 = vld [vmem:[#allocation5 + $0x1bf8] sm:$0xff]  ;;  %v4526_v24 = vand.u32 2147483647, %v4462_v34  ;;  %v5104_v46 = vsub.f32 %v4975_v22, %v5040_v45  ;;  %v5166_v50 = vand.u32 2147483647, %v5102_v23 }
 0x358   :  { %v5228_v31 = vadd.f32 %v5227_v37, %v5164_v13  ;;  %v4266_v63 = vadd.f32 %v4265_v33, %v4202_v49  ;;  %v4589_v56 = vadd.f32 %v4588_v35, %v4525_v47  ;;  %v4786_v3 = vsub.f32 %v4657_v42, %v4722_v32  ;;  %v4977_v57 = vld [vmem:[#allocation2 + $0x1fc8] sm:$0xff]  ;;  %v4658_v43 = vld [vmem:[#allocation2 + $0x1df0] sm:$0xff]  ;;  %v8825_v12 = vld [vmem:[#allocation25_spill] sm:$0xff] }
 0x359   :  { %v4849_v20 = vand.u32 2147483647, %v4785_v61  ;;  %v5042_v29 = vld [vmem:[#allocation5 + $0x1fc8] sm:$0xff]  ;;  %v4723_v36 = vld [vmem:[#allocation5 + $0x1df0] sm:$0xff]  ;;  %v4912_v18 = vadd.f32 %v4911_v40, %v4848_v8  ;;  %v5105_v0 = vsub.f32 %v4976_v25, %v5041_v54  ;;  %v5167_v58 = vand.u32 2147483647, %v5103_v55 }
 0x35a   :  { %v5229_v4 = vadd.f32 %v5228_v31, %v5165_v6  ;;  %v3621_v38 = vadd.f32 %v8178_v5, %v8825_v12  ;;  %v8826_v28 = vld [vmem:[#allocation61_spill] sm:$0xff]  ;;  %v4204_v52 = vand.u32 2147483647, %v4140_v44  ;;  %v4464_v26 = vsub.f32 %v4335_v7, %v4400_v60  ;;  %v4978_v62 = vld [vmem:[#allocation2 + $0x1fd0] sm:$0xff]  ;;  %v4980_v13 = vld [vmem:[#allocation2 + $0x1fe0] sm:$0xff] }
 0x35b   :  { %v3944_v14 = vadd.f32 %v3943_v27, %v8826_v28  ;;  %v5043_v11 = vld [vmem:[#allocation5 + $0x1fd0] sm:$0xff]  ;;  %v4527_v10 = vand.u32 2147483647, %v4463_v19  ;;  %v5106_v1 = vsub.f32 %v4977_v57, %v5042_v29  ;;  %v5168_v51 = vand.u32 2147483647, %v5104_v46  ;;  %v4979_v49 = vld [vmem:[#allocation2 + $0x1fd8] sm:$0xff] }
 0x35c   :  { %v5230_v17 = vadd.f32 %v5229_v4, %v5166_v50  ;;  %v4267_v21 = vadd.f32 %v4266_v63, %v4203_v15  ;;  %v4590_v48 = vadd.f32 %v4589_v56, %v4526_v24  ;;  %v4787_v16 = vsub.f32 %v4658_v43, %v4723_v36  ;;  %v5044_v34 = vld [vmem:[#allocation5 + $0x1fd8] sm:$0xff]  ;;  %v5045_v41 = vld [vmem:[#allocation5 + $0x1fe0] sm:$0xff]  ;;  %v4981_v40 = vld [vmem:[#allocation2 + $0x1fe8] sm:$0xff] }
 0x35d   :  { %v4850_v39 = vand.u32 2147483647, %v4786_v3  ;;  %v4659_v59 = vld [vmem:[#allocation2 + $0x1df8] sm:$0xff]  ;;  %v4913_v53 = vadd.f32 %v4912_v18, %v4849_v20  ;;  %v5107_v5 = vsub.f32 %v4978_v62, %v5043_v11  ;;  %v5169_v2 = vand.u32 2147483647, %v5105_v0  ;;  %v5046_v55 = vld [vmem:[#allocation5 + $0x1fe8] sm:$0xff] }
 0x35e   :  { %v4724_v9 = vld [vmem:[#allocation5 + $0x1df8] sm:$0xff]  ;;  %v5231_v47 = vadd.f32 %v5230_v17, %v5167_v58  ;;  %v3945_v23 = vadd.f32 %v3944_v14, %v3621_v38  ;;  %v4528_v33 = vand.u32 2147483647, %v4464_v26  ;;  %v5108_v35 = vsub.f32 %v4979_v49, %v5044_v34  ;;  %v4982_v44 = vld [vmem:[#allocation2 + $0x1ff0] sm:$0xff] }
 0x35f   :  { %v5170_v61 = vand.u32 2147483647, %v5106_v1  ;;  %v4268_v22 = vadd.f32 %v4267_v21, %v4204_v52  ;;  %v4591_v45 = vadd.f32 %v4590_v48, %v4527_v10  ;;  %v4788_v42 = vsub.f32 %v4659_v59, %v4724_v9  ;;  %v5047_v15 = vld [vmem:[#allocation5 + $0x1ff0] sm:$0xff]  ;;  %v4983_v46 = vld [vmem:[#allocation2 + $0x1ff8] sm:$0xff] }
 0x360   :  { %v5232_v8 = vadd.f32 %v5231_v47, %v5168_v51  ;;  %v4851_v32 = vand.u32 2147483647, %v4787_v16  ;;  %v4914_v6 = vadd.f32 %v4913_v53, %v4850_v39  ;;  %v5109_v37 = vsub.f32 %v4980_v13, %v5045_v41  ;;  %v5048_v50 = vld [vmem:[#allocation5 + $0x1ff8] sm:$0xff] }
 0x361   :  { %v5171_v30 = vand.u32 2147483647, %v5107_v5  ;;  %v5110_v19 = vsub.f32 %v4981_v40, %v5046_v55  ;;  %v5172_v25 = vand.u32 2147483647, %v5108_v35  ;;  %v4269_v7 = vadd.f32 %v4268_v22, %v3945_v23 }
 0x362   :  { %v5233_v27 = vadd.f32 %v5232_v8, %v5169_v2  ;;  %v4592_v60 = vadd.f32 %v4591_v45, %v4528_v33  ;;  %v4852_v24 = vand.u32 2147483647, %v4788_v42  ;;  %v4915_v31 = vadd.f32 %v4914_v6, %v4851_v32 }
 0x363   :  { %v5111_v63 = vsub.f32 %v4982_v44, %v5047_v15  ;;  %v5173_v56 = vand.u32 2147483647, %v5109_v37  ;;  %v5112_v20 = vsub.f32 %v4983_v46, %v5048_v50  ;;  %v5174_v57 = vand.u32 2147483647, %v5110_v19 }
 0x364   :  { %v5234_v54 = vadd.f32 %v5233_v27, %v5170_v61  ;;  %v4593_v43 = vadd.f32 %v4592_v60, %v4269_v7  ;;  %v4916_v36 = vadd.f32 %v4915_v31, %v4852_v24 }
 0x365   :  { %v5175_v18 = vand.u32 2147483647, %v5111_v63  ;;  %v5176_v58 = vand.u32 2147483647, %v5112_v20 }
 0x366   :  { %v5235_v3 = vadd.f32 %v5234_v54, %v5171_v30  ;;  %v4917_v12 = vadd.f32 %v4916_v36, %v4593_v43 }
 0x368   :  { %v5236_v29 = vadd.f32 %v5235_v3, %v5172_v25 }
 0x36a   :  { %v5237_v0 = vadd.f32 %v5236_v29, %v5173_v56 }
 0x36c   :  { %v5238_v4 = vadd.f32 %v5237_v0, %v5174_v57 }
 0x36e   :  { %v5239_v38 = vadd.f32 %v5238_v4, %v5175_v18 }
 0x370   :  { %v5240_v28 = vadd.f32 %v5239_v38, %v5176_v58 }
 0x372   :  { %v5241_v14 = vadd.f32 %v5240_v28, %v4917_v12 }
 0x374   :  { %5242 = vst [vmem:[#allocation7] sm:$0xff] %v5241_v14 }
 0x375   :  { %5253 = dma.vmem_to_hbm [thread:$0]  %s5249_s1, 128, %s5251_s23, [#allocation4]  }
 0x376   :  { %5343 = dma.done.wait [#allocation4], 128  }
 0x377   :  { %5344 = vsyncadd [#allocation4], 4294967168 }
 0x378   :  { %5258 = vsyncpa [#allocation3], 1 }
 0x379   :  { %5259 = vsyncpa [#allocation6], 1 }
 0x37a   :  { %5260 = vsyncpa [#allocation4], 1 }

</bundles_post_ra>
